<compile_context>
chip_gen: v7x
topology: tpu7x:2x2x1
jax: 0.10.0
libtpu: 0.0.40
codegen_flags: <defaults>
</compile_context>

<pallas_src>
import numpy as np

import jax
import jax.numpy as jnp
from jax import lax
from jax.experimental import pallas as pl
from jax.experimental.pallas import tpu as pltpu

# ----------------------------------------------------------------------------
# Static shape constants (input 28x28 is implied by fc1 = Linear(16*4*4, 120))
# ----------------------------------------------------------------------------
C1, C2 = 6, 16                 # conv output channels
K5 = 5                         # conv kernel size
H_IN = W_IN = 28               # input spatial size
H1 = W1 = H_IN - (K5 - 1)      # 24 after conv1 (VALID)
HP1 = WP1 = H1 // 2            # 12 after pool1
H2 = W2 = HP1 - (K5 - 1)       # 8 after conv2
HP2 = WP2 = H2 // 2            # 4 after pool2
FLAT = HP2 * WP2 * C2          # 256
N1, N2, N3 = 120, 84, 10       # fc sizes
N1P = N2P = N3P = 128          # fc outputs zero-padded to full 128 lanes

P1_BLOCK = HP1 * WP1 * C1      # 864 valid columns per conv1 pool-position block
P1_PAD = 32                    # pad each block to 896 = 7*128 -> lane-aligned
P1_STRIDE = P1_BLOCK + P1_PAD  # 896
P2_BLOCK = HP2 * WP2 * C2      # 256 (already a multiple of 128)


# ----------------------------------------------------------------------------
# Static (numpy) metadata: conv -> Toeplitz matmul with pool-position-major
# output columns.
# ----------------------------------------------------------------------------
def _conv_pool_toeplitz_meta(h_in, w_in, c_in, c_out, k, block_pad):
    """Index maps turning a VALID kxk conv (followed by a 2x2/2 max-pool whose
    data arrangement we pre-stage) into one matmul.

    Rows index the flattened (y, x, c) input.  Columns come in 4 blocks, one
    per (ys, xs) position of the 2x2 pool window; each block holds the
    (yp, xp, c_out) outputs that pool position contributes to, zero-padded by
    `block_pad` columns so every block starts at a multiple-of-128 lane.

    Returns (idx, bias_idx, n_cols): `idx[(row, col)]` indexes the flattened
    (dy, dx, c_in, c_out) conv weight (sentinel k*k*c_in*c_out => 0), and
    `bias_idx[col]` indexes the bias (sentinel c_out => 0).
    """
    h_out, w_out = h_in - (k - 1), w_in - (k - 1)
    hp, wp = h_out // 2, w_out // 2
    block = hp * wp * c_out + block_pad
    rows, cols = h_in * w_in * c_in, 4 * block
    w_sentinel = k * k * c_in * c_out

    YS, XS, YP, XP, CO = np.meshgrid(np.arange(2), np.arange(2),
                                     np.arange(hp), np.arange(wp),
                                     np.arange(c_out), indexing="ij")
    col = (YS * 2 + XS) * block + (YP * wp + XP) * c_out + CO
    yo, xo = 2 * YP + YS, 2 * XP + XS

    DY, DX, CI = np.meshgrid(np.arange(k), np.arange(k), np.arange(c_in),
                             indexing="ij")
    yi = yo[..., None, None, None] + DY            # (2,2,hp,wp,c_out,k,k,c_in)
    xi = xo[..., None, None, None] + DX
    row = (yi * w_in + xi) * c_in + CI
    widx = ((DY * k + DX) * c_in + CI) * c_out + CO[..., None, None, None]
    colb = np.broadcast_to(col[..., None, None, None], row.shape)

    idx = np.full((rows, cols), w_sentinel, np.int32)
    idx[row.ravel(), colb.ravel()] = widx.ravel()
    bias_idx = np.full((cols,), c_out, np.int32)
    bias_idx[col.ravel()] = CO.ravel()
    return idx, bias_idx, cols


_META1 = _conv_pool_toeplitz_meta(H_IN, W_IN, 1, C1, K5, P1_PAD)   # cols = 3584
_META2 = _conv_pool_toeplitz_meta(HP1, WP1, C1, C2, K5, 0)         # cols = 1024
T1_COLS = _META1[2]
T2_COLS = _META2[2]


# ----------------------------------------------------------------------------
# Fused kernel: 5 lane-dense matmuls + element-wise relu / pool-max.  No
# scratch, no masked stores.
# ----------------------------------------------------------------------------
def lenet5_kernel(x_ref, t1_ref, b1_ref, t2_ref, b2_ref,
                  fw1_ref, fb1_ref, fw2_ref, fb2_ref, fw3_ref, fb3_ref,
                  o_ref):
    bf16, f32 = jnp.bfloat16, jnp.float32
    x = x_ref[...].astype(bf16)                                    # (bt, 784)

    # ---- conv1 + bias + relu as one MXU matmul -----------------------------
    h1 = jnp.dot(x, t1_ref[...], preferred_element_type=f32)       # (bt, 3584)
    h1 = jnp.maximum(h1 + b1_ref[...], 0.0)
    # maxpool1 = element-wise max of 4 lane-aligned pool-position blocks
    p1 = h1[:, 0:P1_BLOCK]
    for q in range(1, 4):
        p1 = jnp.maximum(p1, h1[:, q * P1_STRIDE:q * P1_STRIDE + P1_BLOCK])

    # ---- conv2 + bias + relu -----------------------------------------------
    h2 = jnp.dot(p1.astype(bf16), t2_ref[...],
                 preferred_element_type=f32)                        # (bt, 1024)
    h2 = jnp.maximum(h2 + b2_ref[...], 0.0)
    p2 = h2[:, 0:P2_BLOCK]
    for q in range(1, 4):
        p2 = jnp.maximum(p2, h2[:, q * P2_BLOCK:(q + 1) * P2_BLOCK])
    # p2 is the NHWC flatten (4,4,16) -> 256, exactly what fc1 expects.

    # ---- MLP head (fc1/fc2/fc3 lane-padded to 128) -------------------------
    f1 = jnp.maximum(jnp.dot(p2.astype(bf16), fw1_ref[...],
                             preferred_element_type=f32) + fb1_ref[...], 0.0)
    f2 = jnp.maximum(jnp.dot(f1.astype(bf16), fw2_ref[...],
                             preferred_element_type=f32) + fb2_ref[...], 0.0)
    o_ref[...] = (jnp.dot(f2.astype(bf16), fw3_ref[...],
                          preferred_element_type=f32) + fb3_ref[...])


# ----------------------------------------------------------------------------
# Wrapper: parameter repacking + pallas_call
# ----------------------------------------------------------------------------
def _batch_tile(batch: int) -> int:
    # Large sublane-aligned tiles (multiple of 8 f32 sublanes), while keeping
    # >= 2 grid steps so both v7x TensorCores get work.  Tiny / odd batches
    # fall back to a single grid step (bt == batch keeps BlockSpecs legal).
    for bt in (32, 16, 8):
        if batch % bt == 0 and batch // bt >= 2:
            return bt
    return batch


def _prep_params(p):
    """Repack PyTorch-layout LeNet-5 params into lane-dense bf16 matrices."""
    f32, bf16 = jnp.float32, jnp.bfloat16
    idx1, bidx1, _ = _META1
    idx2, bidx2, _ = _META2

    # conv weights -> flattened (dy, dx, cin, cout) vectors + trailing zero
    # (the Toeplitz sentinel index points at that zero).
    w1v = jnp.concatenate([
        jnp.transpose(p["conv1_w"].astype(f32), (2, 3, 1, 0)).reshape(-1),
        jnp.zeros((1,), f32)])
    w2v = jnp.concatenate([
        jnp.transpose(p["conv2_w"].astype(f32), (2, 3, 1, 0)).reshape(-1),
        jnp.zeros((1,), f32)])
    t1 = w1v[idx1].astype(bf16)                                    # (784, 3584)
    t2 = w2v[idx2].astype(bf16)                                    # (864, 1024)

    b1v = jnp.concatenate([p["conv1_b"].astype(f32), jnp.zeros((1,), f32)])
    b2v = jnp.concatenate([p["conv2_b"].astype(f32), jnp.zeros((1,), f32)])
    b1t = b1v[bidx1].reshape(1, T1_COLS)                           # (1, 3584)
    b2t = b2v[bidx2].reshape(1, T2_COLS)                           # (1, 1024)

    # fc1: reorder input features from PyTorch's NCHW flatten (c*16 + h*4 + w)
    # to the kernel's NHWC flatten (h*64 + w*16 + c); pad outputs to 128.
    fw1 = (p["fc1_w"].astype(f32)
           .reshape(N1, C2, HP2, WP2)          # (n, c, h, w)
           .transpose(0, 2, 3, 1)              # (n, h, w, c)
           .reshape(N1, FLAT).T)               # (256, 120)
    fw1 = jnp.pad(fw1, ((0, 0), (0, N1P - N1))).astype(bf16)
    fb1 = jnp.pad(p["fc1_b"].astype(f32), (0, N1P - N1)).reshape(1, N1P)
    fw2 = jnp.pad(p["fc2_w"].astype(f32).T,
                  ((0, N1P - N1), (0, N2P - N2))).astype(bf16)
    fb2 = jnp.pad(p["fc2_b"].astype(f32), (0, N2P - N2)).reshape(1, N2P)
    fw3 = jnp.pad(p["fc3_w"].astype(f32).T,
                  ((0, N2P - N2), (0, N3P - N3))).astype(bf16)
    fb3 = jnp.pad(p["fc3_b"].astype(f32), (0, N3P - N3)).reshape(1, N3P)
    return t1, b1t, t2, b2t, fw1, fb1, fw2, fb2, fw3, fb3


def lenet5_forward(x_nchw, params):
    """Fused LeNet-5 forward.  x_nchw: (B, 1, 28, 28) float32 (PyTorch layout)."""
    assert x_nchw.shape[1:] == (1, H_IN, W_IN), x_nchw.shape
    batch = x_nchw.shape[0]
    bt = _batch_tile(batch)
    # Lane-dense input: NCHW flatten of a single-channel 28x28 image is
    # exactly the (y*28 + x) row order the Toeplitz matrices expect.
    x = x_nchw.astype(jnp.float32).reshape(batch, H_IN * W_IN)
    t1, b1t, t2, b2t, fw1, fb1, fw2, fb2, fw3, fb3 = _prep_params(params)

    def full(arr):  # whole-array block, constant index -> fetched once, resident
        nd = arr.ndim
        return pl.BlockSpec(arr.shape, lambda i, _nd=nd: (0,) * _nd)

    out = pl.pallas_call(
        lenet5_kernel,
        out_shape=jax.ShapeDtypeStruct((batch, N3P), jnp.float32),
        grid=(batch // bt,),
        in_specs=[
            pl.BlockSpec((bt, H_IN * W_IN), lambda i: (i, 0)),
            full(t1), full(b1t), full(t2), full(b2t),
            full(fw1), full(fb1), full(fw2), full(fb2), full(fw3), full(fb3),
        ],
        out_specs=pl.BlockSpec((bt, N3P), lambda i: (i, 0)),
        compiler_params=pltpu.CompilerParams(
            dimension_semantics=("parallel",),
            vmem_limit_bytes=32 * 1024 * 1024),
    )(x, t1, b1t, t2, b2t, fw1, fb1, fw2, fb2, fw3, fb3)
    return out[:, :N3]


# ----------------------------------------------------------------------------
# Deterministic parameters in PyTorch layouts (uniform +-1/sqrt(fan_in))
# ----------------------------------------------------------------------------
def init_params(key):
    ks = jax.random.split(key, 10)

    def u(k, shape, fan_in):
        bound = 1.0 / (fan_in ** 0.5)
        return jax.random.uniform(k, shape, jnp.float32, -bound, bound)

    return {
        "conv1_w": u(ks[0], (C1, 1, K5, K5), 1 * K5 * K5),
        "conv1_b": u(ks[1], (C1,), 1 * K5 * K5),
        "conv2_w": u(ks[2], (C2, C1, K5, K5), C1 * K5 * K5),
        "conv2_b": u(ks[3], (C2,), C1 * K5 * K5),
        "fc1_w": u(ks[4], (N1, FLAT), FLAT),
        "fc1_b": u(ks[5], (N1,), FLAT),
        "fc2_w": u(ks[6], (N2, N1), N1),
        "fc2_b": u(ks[7], (N2,), N1),
        "fc3_w": u(ks[8], (N3, N2), N2),
        "fc3_b": u(ks[9], (N3,), N2),
    }


# ----------------------------------------------------------------------------
# Pure-JAX reference (PyTorch semantics) for a self-check
# ----------------------------------------------------------------------------
def reference_forward(x, p):
    hp = lax.Precision.HIGHEST
    dn = ("NCHW", "OIHW", "NCHW")
    y = lax.conv_general_dilated(x, p["conv1_w"], (1, 1), "VALID",
                                 dimension_numbers=dn, precision=hp)
    y = jnp.maximum(y + p["conv1_b"][None, :, None, None], 0.0)
    y = lax.reduce_window(y, -jnp.inf, lax.max, (1, 1, 2, 2), (1, 1, 2, 2),
                          "VALID")
    y = lax.conv_general_dilated(y, p["conv2_w"], (1, 1), "VALID",
                                 dimension_numbers=dn, precision=hp)
    y = jnp.maximum(y + p["conv2_b"][None, :, None, None], 0.0)
    y = lax.reduce_window(y, -jnp.inf, lax.max, (1, 1, 2, 2), (1, 1, 2, 2),
                          "VALID")
    y = y.reshape(y.shape[0], -1)                 # NCHW flatten, like x.view
    y = jnp.maximum(jnp.dot(y, p["fc1_w"].T, precision=hp) + p["fc1_b"], 0.0)
    y = jnp.maximum(jnp.dot(y, p["fc2_w"].T, precision=hp) + p["fc2_b"], 0.0)
    return jnp.dot(y, p["fc3_w"].T, precision=hp) + p["fc3_b"]


if __name__ == "__main__":
    key = jax.random.PRNGKey(0)
    kx, kp = jax.random.split(key)
    # 28x28 input is forced by fc1 = Linear(16*4*4, 120).  batch=16 gives a
    # 2-step "parallel" grid (bt=8) while staying small.
    batch = 16
    x = jax.random.normal(kx, (batch, 1, H_IN, W_IN), jnp.float32)
    params = init_params(kp)

    out = jax.jit(lenet5_forward)(x, params)
    out = jax.block_until_ready(out)
    assert out.shape == (batch, N3) and out.dtype == jnp.float32
    assert bool(jnp.all(jnp.isfinite(out)))

    ref = reference_forward(x, params)
    err = float(jnp.max(jnp.abs(out - ref)))
    assert err < 5e-2, f"kernel/reference mismatch: max abs err {err}"
    print("KERNEL_OK")
</pallas_src>

<mosaic_0001>
module attributes {stable_mosaic.version = 11 : i64} {
  func.func @lenet5_kernel(%arg0: i32, %arg1: memref<8x784xf32, #tpu.memory_space<vmem>>, %arg2: memref<784x3584xbf16, #tpu.memory_space<vmem>>, %arg3: memref<1x3584xf32, #tpu.memory_space<vmem>>, %arg4: memref<864x1024xbf16, #tpu.memory_space<vmem>>, %arg5: memref<1x1024xf32, #tpu.memory_space<vmem>>, %arg6: memref<256x128xbf16, #tpu.memory_space<vmem>>, %arg7: memref<1x128xf32, #tpu.memory_space<vmem>>, %arg8: memref<128x128xbf16, #tpu.memory_space<vmem>>, %arg9: memref<1x128xf32, #tpu.memory_space<vmem>>, %arg10: memref<128x128xbf16, #tpu.memory_space<vmem>>, %arg11: memref<1x128xf32, #tpu.memory_space<vmem>>, %arg12: memref<8x128xf32, #tpu.memory_space<vmem>>) attributes {dimension_semantics = [#tpu.dimension_semantics<parallel>], iteration_bounds = array<i64: 2>, scalar_prefetch = 0 : i64, scratch_operands = 0 : i64, tpu.core_type = #tpu.core_type<tc>, window_params = [{transform_indices = @transform_0, window_bounds = array<i64: 8, 784>}, {pipeline_mode = #tpu.pipeline_mode<synchronous>, transform_indices = @transform_1, window_bounds = array<i64: 784, 3584>}, {pipeline_mode = #tpu.pipeline_mode<synchronous>, transform_indices = @transform_2, window_bounds = array<i64: 1, 3584>}, {pipeline_mode = #tpu.pipeline_mode<synchronous>, transform_indices = @transform_3, window_bounds = array<i64: 864, 1024>}, {pipeline_mode = #tpu.pipeline_mode<synchronous>, transform_indices = @transform_4, window_bounds = array<i64: 1, 1024>}, {pipeline_mode = #tpu.pipeline_mode<synchronous>, transform_indices = @transform_5, window_bounds = array<i64: 256, 128>}, {pipeline_mode = #tpu.pipeline_mode<synchronous>, transform_indices = @transform_6, window_bounds = array<i64: 1, 128>}, {pipeline_mode = #tpu.pipeline_mode<synchronous>, transform_indices = @transform_7, window_bounds = array<i64: 128, 128>}, {pipeline_mode = #tpu.pipeline_mode<synchronous>, transform_indices = @transform_8, window_bounds = array<i64: 1, 128>}, {pipeline_mode = #tpu.pipeline_mode<synchronous>, transform_indices = @transform_9, window_bounds = array<i64: 128, 128>}, {pipeline_mode = #tpu.pipeline_mode<synchronous>, transform_indices = @transform_10, window_bounds = array<i64: 1, 128>}, {transform_indices = @transform_11, window_bounds = array<i64: 8, 128>}]} {
    %c0 = arith.constant 0 : index
    %c0_0 = arith.constant 0 : index
    %0 = vector.load %arg1[%c0, %c0_0] : memref<8x784xf32, #tpu.memory_space<vmem>>, vector<8x784xf32>
    %1 = arith.truncf %0 : vector<8x784xf32> to vector<8x784xbf16>
    %c0_1 = arith.constant 0 : index
    %c0_2 = arith.constant 0 : index
    %2 = vector.load %arg2[%c0_1, %c0_2] : memref<784x3584xbf16, #tpu.memory_space<vmem>>, vector<784x3584xbf16>
    %cst = arith.constant dense<0.000000e+00> : vector<8x3584xf32>
    %3 = tpu.matmul %1, %2, %cst {dimension_numbers = #tpu.dot_dimension_numbers<[1], [0], [0], [1], [0, 0, 1, 1], [], []>} : vector<8x784xbf16>, vector<784x3584xbf16>, vector<8x3584xf32> -> vector<8x3584xf32>
    %c0_3 = arith.constant 0 : index
    %c0_4 = arith.constant 0 : index
    %4 = vector.load %arg3[%c0_3, %c0_4] : memref<1x3584xf32, #tpu.memory_space<vmem>>, vector<1x3584xf32>
    %5 = vector.broadcast %4 : vector<1x3584xf32> to vector<8x3584xf32>
    %6 = arith.addf %3, %5 : vector<8x3584xf32>
    %cst_5 = arith.constant 0.000000e+00 : f32
    %7 = vector.broadcast %cst_5 : f32 to vector<8x3584xf32>
    %8 = arith.maximumf %6, %7 : vector<8x3584xf32>
    %9 = vector.extract_strided_slice %8 {offsets = [0, 0], sizes = [8, 864], strides = [1, 1]} : vector<8x3584xf32> to vector<8x864xf32>
    %10 = vector.extract_strided_slice %8 {offsets = [0, 896], sizes = [8, 864], strides = [1, 1]} : vector<8x3584xf32> to vector<8x864xf32>
    %11 = arith.maximumf %9, %10 : vector<8x864xf32>
    %12 = vector.extract_strided_slice %8 {offsets = [0, 1792], sizes = [8, 864], strides = [1, 1]} : vector<8x3584xf32> to vector<8x864xf32>
    %13 = arith.maximumf %11, %12 : vector<8x864xf32>
    %14 = vector.extract_strided_slice %8 {offsets = [0, 2688], sizes = [8, 864], strides = [1, 1]} : vector<8x3584xf32> to vector<8x864xf32>
    %15 = arith.maximumf %13, %14 : vector<8x864xf32>
    %16 = arith.truncf %15 : vector<8x864xf32> to vector<8x864xbf16>
    %c0_6 = arith.constant 0 : index
    %c0_7 = arith.constant 0 : index
    %17 = vector.load %arg4[%c0_6, %c0_7] : memref<864x1024xbf16, #tpu.memory_space<vmem>>, vector<864x1024xbf16>
    %cst_8 = arith.constant dense<0.000000e+00> : vector<8x1024xf32>
    %18 = tpu.matmul %16, %17, %cst_8 {dimension_numbers = #tpu.dot_dimension_numbers<[1], [0], [0], [1], [0, 0, 1, 1], [], []>} : vector<8x864xbf16>, vector<864x1024xbf16>, vector<8x1024xf32> -> vector<8x1024xf32>
    %c0_9 = arith.constant 0 : index
    %c0_10 = arith.constant 0 : index
    %19 = vector.load %arg5[%c0_9, %c0_10] : memref<1x1024xf32, #tpu.memory_space<vmem>>, vector<1x1024xf32>
    %20 = vector.broadcast %19 : vector<1x1024xf32> to vector<8x1024xf32>
    %21 = arith.addf %18, %20 : vector<8x1024xf32>
    %cst_11 = arith.constant 0.000000e+00 : f32
    %22 = vector.broadcast %cst_11 : f32 to vector<8x1024xf32>
    %23 = arith.maximumf %21, %22 : vector<8x1024xf32>
    %24 = vector.extract_strided_slice %23 {offsets = [0, 0], sizes = [8, 256], strides = [1, 1]} : vector<8x1024xf32> to vector<8x256xf32>
    %25 = vector.extract_strided_slice %23 {offsets = [0, 256], sizes = [8, 256], strides = [1, 1]} : vector<8x1024xf32> to vector<8x256xf32>
    %26 = arith.maximumf %24, %25 : vector<8x256xf32>
    %27 = vector.extract_strided_slice %23 {offsets = [0, 512], sizes = [8, 256], strides = [1, 1]} : vector<8x1024xf32> to vector<8x256xf32>
    %28 = arith.maximumf %26, %27 : vector<8x256xf32>
    %29 = vector.extract_strided_slice %23 {offsets = [0, 768], sizes = [8, 256], strides = [1, 1]} : vector<8x1024xf32> to vector<8x256xf32>
    %30 = arith.maximumf %28, %29 : vector<8x256xf32>
    %31 = arith.truncf %30 : vector<8x256xf32> to vector<8x256xbf16>
    %c0_12 = arith.constant 0 : index
    %c0_13 = arith.constant 0 : index
    %32 = vector.load %arg6[%c0_12, %c0_13] : memref<256x128xbf16, #tpu.memory_space<vmem>>, vector<256x128xbf16>
    %cst_14 = arith.constant dense<0.000000e+00> : vector<8x128xf32>
    %33 = tpu.matmul %31, %32, %cst_14 {dimension_numbers = #tpu.dot_dimension_numbers<[1], [0], [0], [1], [0, 0, 1, 1], [], []>} : vector<8x256xbf16>, vector<256x128xbf16>, vector<8x128xf32> -> vector<8x128xf32>
    %c0_15 = arith.constant 0 : index
    %c0_16 = arith.constant 0 : index
    %34 = vector.load %arg7[%c0_15, %c0_16] : memref<1x128xf32, #tpu.memory_space<vmem>>, vector<1x128xf32>
    %35 = vector.broadcast %34 : vector<1x128xf32> to vector<8x128xf32>
    %36 = arith.addf %33, %35 : vector<8x128xf32>
    %cst_17 = arith.constant 0.000000e+00 : f32
    %37 = vector.broadcast %cst_17 : f32 to vector<8x128xf32>
    %38 = arith.maximumf %36, %37 : vector<8x128xf32>
    %39 = arith.truncf %38 : vector<8x128xf32> to vector<8x128xbf16>
    %c0_18 = arith.constant 0 : index
    %c0_19 = arith.constant 0 : index
    %40 = vector.load %arg8[%c0_18, %c0_19] : memref<128x128xbf16, #tpu.memory_space<vmem>>, vector<128x128xbf16>
    %cst_20 = arith.constant dense<0.000000e+00> : vector<8x128xf32>
    %41 = tpu.matmul %39, %40, %cst_20 {dimension_numbers = #tpu.dot_dimension_numbers<[1], [0], [0], [1], [0, 0, 1, 1], [], []>} : vector<8x128xbf16>, vector<128x128xbf16>, vector<8x128xf32> -> vector<8x128xf32>
    %c0_21 = arith.constant 0 : index
    %c0_22 = arith.constant 0 : index
    %42 = vector.load %arg9[%c0_21, %c0_22] : memref<1x128xf32, #tpu.memory_space<vmem>>, vector<1x128xf32>
    %43 = vector.broadcast %42 : vector<1x128xf32> to vector<8x128xf32>
    %44 = arith.addf %41, %43 : vector<8x128xf32>
    %cst_23 = arith.constant 0.000000e+00 : f32
    %45 = vector.broadcast %cst_23 : f32 to vector<8x128xf32>
    %46 = arith.maximumf %44, %45 : vector<8x128xf32>
    %47 = arith.truncf %46 : vector<8x128xf32> to vector<8x128xbf16>
    %c0_24 = arith.constant 0 : index
    %c0_25 = arith.constant 0 : index
    %48 = vector.load %arg10[%c0_24, %c0_25] : memref<128x128xbf16, #tpu.memory_space<vmem>>, vector<128x128xbf16>
    %cst_26 = arith.constant dense<0.000000e+00> : vector<8x128xf32>
    %49 = tpu.matmul %47, %48, %cst_26 {dimension_numbers = #tpu.dot_dimension_numbers<[1], [0], [0], [1], [0, 0, 1, 1], [], []>} : vector<8x128xbf16>, vector<128x128xbf16>, vector<8x128xf32> -> vector<8x128xf32>
    %c0_27 = arith.constant 0 : index
    %c0_28 = arith.constant 0 : index
    %50 = vector.load %arg11[%c0_27, %c0_28] : memref<1x128xf32, #tpu.memory_space<vmem>>, vector<1x128xf32>
    %51 = vector.broadcast %50 : vector<1x128xf32> to vector<8x128xf32>
    %52 = arith.addf %49, %51 : vector<8x128xf32>
    %c0_29 = arith.constant 0 : index
    %c0_30 = arith.constant 0 : index
    %53 = vector.load %arg12[%c0_29, %c0_30] : memref<8x128xf32, #tpu.memory_space<vmem>>, vector<8x128xf32>
    tpu.vector_store %arg12[%c0_29, %c0_30], %52 {strides = array<i32>} : memref<8x128xf32, #tpu.memory_space<vmem>>, vector<8x128xf32>,
    return
  }
  func.func @transform_0(%arg0: i32) -> (i32, i32) {
    %c0_i32 = arith.constant 0 : i32
    %c0_i32_0 = arith.constant 0 : i32
    return %arg0, %c0_i32 : i32, i32
  }
  func.func @transform_1(%arg0: i32) -> (i32, i32) {
    %c0_i32 = arith.constant 0 : i32
    %c0_i32_0 = arith.constant 0 : i32
    %c0_i32_1 = arith.constant 0 : i32
    return %c0_i32, %c0_i32_0 : i32, i32
  }
  func.func @transform_2(%arg0: i32) -> (i32, i32) {
    %c0_i32 = arith.constant 0 : i32
    %c0_i32_0 = arith.constant 0 : i32
    %c0_i32_1 = arith.constant 0 : i32
    return %c0_i32, %c0_i32_0 : i32, i32
  }
  func.func @transform_3(%arg0: i32) -> (i32, i32) {
    %c0_i32 = arith.constant 0 : i32
    %c0_i32_0 = arith.constant 0 : i32
    %c0_i32_1 = arith.constant 0 : i32
    return %c0_i32, %c0_i32_0 : i32, i32
  }
  func.func @transform_4(%arg0: i32) -> (i32, i32) {
    %c0_i32 = arith.constant 0 : i32
    %c0_i32_0 = arith.constant 0 : i32
    %c0_i32_1 = arith.constant 0 : i32
    return %c0_i32, %c0_i32_0 : i32, i32
  }
  func.func @transform_5(%arg0: i32) -> (i32, i32) {
    %c0_i32 = arith.constant 0 : i32
    %c0_i32_0 = arith.constant 0 : i32
    %c0_i32_1 = arith.constant 0 : i32
    return %c0_i32, %c0_i32_0 : i32, i32
  }
  func.func @transform_6(%arg0: i32) -> (i32, i32) {
    %c0_i32 = arith.constant 0 : i32
    %c0_i32_0 = arith.constant 0 : i32
    %c0_i32_1 = arith.constant 0 : i32
    return %c0_i32, %c0_i32_0 : i32, i32
  }
  func.func @transform_7(%arg0: i32) -> (i32, i32) {
    %c0_i32 = arith.constant 0 : i32
    %c0_i32_0 = arith.constant 0 : i32
    %c0_i32_1 = arith.constant 0 : i32
    return %c0_i32, %c0_i32_0 : i32, i32
  }
  func.func @transform_8(%arg0: i32) -> (i32, i32) {
    %c0_i32 = arith.constant 0 : i32
    %c0_i32_0 = arith.constant 0 : i32
    %c0_i32_1 = arith.constant 0 : i32
    return %c0_i32, %c0_i32_0 : i32, i32
  }
  func.func @transform_9(%arg0: i32) -> (i32, i32) {
    %c0_i32 = arith.constant 0 : i32
    %c0_i32_0 = arith.constant 0 : i32
    %c0_i32_1 = arith.constant 0 : i32
    return %c0_i32, %c0_i32_0 : i32, i32
  }
  func.func @transform_10(%arg0: i32) -> (i32, i32) {
    %c0_i32 = arith.constant 0 : i32
    %c0_i32_0 = arith.constant 0 : i32
    %c0_i32_1 = arith.constant 0 : i32
    return %c0_i32, %c0_i32_0 : i32, i32
  }
  func.func @transform_11(%arg0: i32) -> (i32, i32) {
    %c0_i32 = arith.constant 0 : i32
    %c0_i32_0 = arith.constant 0 : i32
    return %arg0, %c0_i32 : i32, i32
  }
}

</mosaic_0001>

<bundles_post_ra>
// kernel: lenet5_forward.1
= control target key start
LH: loop header
LB: loop body
LE: loop exit
PB: predicated region body
PF: predicated region fallthrough
CT: control target
= control target key end

     0   :  { %16 = vsyncpa [#allocation3], 0  ;;  %s21450_s0 = inlined_call_operand.vmem [shape: f32[16,784], index: 0, kind: input, shape index: {}]   ;;  %s21451_s1 = inlined_call_operand.hbm [shape: bf16[784,3584], index: 1, kind: input, shape index: {}]   ;;  %s21452_s2 = inlined_call_operand.vmem [shape: f32[1,3584], index: 2, kind: input, shape index: {}]   ;;  %s21453_s3 = inlined_call_operand.vmem [shape: bf16[864,1024], index: 3, kind: input, shape index: {}]   ;;  %s21454_s4 = inlined_call_operand.vmem [shape: f32[1,1024], index: 4, kind: input, shape index: {}]   ;;  %s21455_s5 = inlined_call_operand.vmem [shape: bf16[256,128], index: 5, kind: input, shape index: {}]   ;;  %s21456_s6 = inlined_call_operand.vmem [shape: f32[1,128], index: 6, kind: input, shape index: {}]   ;;  %s21457_s7 = inlined_call_operand.vmem [shape: bf16[128,128], index: 7, kind: input, shape index: {}]   ;;  %s21458_s8 = inlined_call_operand.vmem [shape: f32[1,128], index: 8, kind: input, shape index: {}]   ;;  %s21459_s9 = inlined_call_operand.vmem [shape: bf16[128,128], index: 9, kind: input, shape index: {}]   ;;  %s21460_s10 = inlined_call_operand.vmem [shape: f32[1,128], index: 10, kind: input, shape index: {}]   ;;  %s21461_s11 = inlined_call_operand.hbm [shape: f32[16,128], index: 11, kind: output, shape index: {}]  }
   0x1   :  { %17 = vsyncpa [#allocation4], 0 }
   0x2   :  { %19 = vsyncpa [#allocation4 + $0x1], 0  ;;  %s19458_s17 = smov 0   ;;  %s19460_s18 = smov 0  }
   0x3   :  { %s19462_s19 = smov 0   ;;  %s19464_s20 = smov 0  }
   0x4 LB: > { %s19479_s21 = sadd.s32 4294967295, %s19389_s20   ;;  %s14948_s22 = sadd.s32 4294967294, %s19389_s20   ;;  %s19389_s20 = sphi %s19464_s20, %s21479_s20   ;;  %s19385_s19 = sphi %s19462_s19, %s21478_s19   ;;  %s19381_s18 = sphi %s19460_s18, %s21477_s18   ;;  %s19377_s17 = sphi %s19458_s17, %s21476_s17  }
   0x5   : > { %s19483_s23 = sadd.s32 1, %s19389_s20   ;;  %s268_s24 = sadd.s32 1, %s19385_s19 }
   0x6   : > { %s265_s25 = ssub.s32 %s19389_s20, %s19483_s23  ;;  %p278_p0 = scmp.ne.s32.totalorder %s19385_s19, %s19381_s18 }
   0x7   : > { %p266_p1 = scmp.eq.s32.totalorder %s265_s25, 0  ;;  %p279_p2 = scmp.eq.s32.totalorder %s19479_s21, 1 }
   0x8   : > { %p284_p3 = scmp.ne.s32.totalorder %s19381_s18, %s19377_s17  ;;  %p285_p4 = scmp.eq.s32.totalorder %s14948_s22, 1 }
   0x9   : > { %s19494_s26 = scalar_select %p266_p1, %s19385_s19, %s268_s24  }
   0xa   : > { %p19496_p5 = por %p279_p2, %p278_p0  ;;  %p19500_p6 = por %p285_p4, %p284_p3 }
   0xb   : > { %21465 = sst [smem:[#allocation8_spill]] %s19494_s26  ;;  %p14949_p7 = scmp.ge.s32.totalorder %s19389_s20, 1 }
   0xc   : > { %s21466_s27 = scalar_select %p19496_p5, 1, 0 }
   0xd   : > { %s21467_s28 = scalar_select %p19500_p6, 1, 0 }
   0xe   : > { %p292_p8 = scmp.lt.s32.totalorder %s19389_s20, 3  ;;  %p21462_p9 = scmp.eq.s32.totalorder %s19479_s21, 0 }
   0xf   : > { %s19391_s30 = smov [#allocation2]   ;;  %s19295_s16 = scalar_lea.hbm %s21451_s1, 175616 }
  0x10   : > { %p19507_p10 = pnand %p14949_p7, %p292_p8  ;;  %s304_s12 = sshll.u32 %s19391_s30, 4  ;;  %s305_s12 = int_to_ptr.vmem [resolvable:$true] %s304_s12 }
  0x11   : > { %p19296_p13 = scmp.ne.s32.totalorder %s21451_s1, %s19295_s16  ;;  %p19302_p3 = scmp.lt.u32.totalorder %s19295_s16, %s21451_s1 }
  0x12   : > { %s21468_s29 = scalar_select %p19507_p10, 1, 0 }
  0x13   : > { %p17152_p11 = pneg %p19507_p10 }
  0x15   : > { %p19515_p12 = pnand %p21462_p9, %p17152_p11 }
  0x17   : > { %p19297_p0 = pneg %p19515_p12 }
  0x19   : > { %p19298_p1 = pnand %p19297_p0, %p19296_p13 }
  0x1b   : > { %p19299_p2 = pneg %p19298_p1 }
  0x1d   : > { %p19304_p4 = pnand %p19302_p3, %p19299_p2 }
  0x1f   : > { %19307 = shalt.err (!%p19304_p4)
}
  0x20   : > { %s19308_s26 = scalar_lea.vmem %s305_s12, 175616  ;;  %p19316_p9 = scmp.lt.s32.totalorder %s305_s12, %s305_s12 }
  0x21   : > { %p19309_p7 = scmp.ne.s32.totalorder %s305_s12, %s19308_s26  ;;  %p19317_p6 = scmp.lt.s32.totalorder %s19308_s26, %s19308_s26 }
  0x23   : > { %p19311_p8 = pnand %p19309_p7, %p19297_p0  ;;  %p19318_p5 = por %p19317_p6, %p19316_p9 }
  0x25   : > { %p19312_p11 = pneg %p19311_p8 }
  0x27   : > { %p19319_p10 = pnand %p19318_p5, %p19312_p11 }
  0x29   : > { %19322 = shalt.err (!%p19319_p10)
}
  0x2a   : > { %s19392_s14 = smov 1792   ;;  %s19393_s15 = smov 112  }
  0x2b   : > { %17155 = dma.hbm_to_vmem [thread:$0]  (!%p19515_p12), %s21451_s1, 175616, %s305_s12, [#allocation3], %s19392_s14, %s19392_s14, %s19393_s15  }
  0x2c   : > { %p21470_p13 = scmp.ne.s32.totalorder %s21468_s29, 0 }
  0x2d   : > { %p21471_p1 = scmp.eq.s32.totalorder (!%p21470_p13), %s19479_s21, 0 }
  0x2e   : > { %355 = sbr.rel (%p21470_p13) target bundleno = 2875 (0xb3b), region = 64 }
  0x35   : > { %19368 = dma.done.wait (%p21471_p1), [#allocation3], 175616   ;;  %p21472_p0 = pmov %p21471_p1 }
  0x36   : > { %p395_p5 = scmp.lt.s32.totalorder %s19479_s21, 1  ;;  %v19394_v0 = vmov 0   ;;  %v17201_v1 = vld [vmem:[#allocation2 + $0x4] ss:$112 sps:$4 sm:$0xff]   ;;  %v17205_v3 = vld [vmem:[#allocation2] ss:$112 sps:$4 sm:$0xff]  }
  0x37   : > { %19370 = vsyncadd (%p21472_p0), [#allocation3], 4294791680  ;;  %8954 = vmatprep.mubr.bf16.mxu1 %v19394_v0  ;;  %v17203_v2 = vld [vmem:[#allocation2 + $0x2a04] ss:$112 sps:$4 sm:$0xff]   ;;  %8799 = vmatprep.subr.bf16.mxu0 %v17201_v1  ;;  %v17206_v4 = vld [vmem:[#allocation2 + $0x2a00] ss:$112 sps:$4 sm:$0xff]  }
  0x38   : > { %s396_s26 = scalar_select %p395_p5, %s19479_s21, 1  ;;  %8922 = vmatprep.subr.bf16.mxu1 %v17203_v2  ;;  %v17207_v5 = vld [vmem:[#allocation2 + $0xe4] ss:$112 sps:$4 sm:$0xff]   ;;  %8800 = vmatpush1.bf16.msra.mxu0 %v17205_v3  ;;  %v17209_v6 = vld [vmem:[#allocation2 + $0x8] ss:$112 sps:$4 sm:$0xff]   ;;  %vm8795_vm0 = vcmask 130048  }
  0x39   : > { %8923 = vmatpush1.bf16.msra.mxu1 %v17206_v4  ;;  %v17211_v7 = vld [vmem:[#allocation2 + $0xc] ss:$112 sps:$4 sm:$0xff]   ;;  %8801 = vmatprep.subr.bf16.mxu0 %v17207_v5  ;;  %v17212_v8 = vld [vmem:[#allocation2 + $0xe0] ss:$112 sps:$4 sm:$0xff]   ;;  %v17213_v11 = vld [vmem:[#allocation2 + $0x1c4] ss:$112 sps:$4 sm:$0xff]  }
  0x3a   : > { %s17145_s13 = smul.u32 56, %s396_s26  ;;  %8963 = vmatprep.subr.bf16.mxu1 %v17211_v7  ;;  %v17215_v12 = vld [vmem:[#allocation2 + $0xe8] ss:$112 sps:$4 sm:$0xff]   ;;  %v17217_v13 = vld [vmem:[#allocation2 + $0xec] ss:$112 sps:$4 sm:$0xff]   ;;  %vm13785_vm1 = vcmask 785408  }
  0x3b   : > { %v17218_v14 = vld [vmem:[#allocation2 + $0x1c0] ss:$112 sps:$4 sm:$0xff]   ;;  %v17219_v15 = vld [vmem:[#allocation2 + $0x2a4] ss:$112 sps:$4 sm:$0xff]   ;;  %v17223_v16 = vld [vmem:[#allocation2 + $0x1cc] ss:$112 sps:$4 sm:$0xff]  }
  0x3c   : > { %s19547_s16 = scalar_lea.vmem %s21450_s0, %s17145_s13  ;;  %8802 = vmatpush1.bf16.msra.mxu0 %v17212_v8  ;;  %v17224_v17 = vld [vmem:[#allocation2 + $0x2a0] ss:$112 sps:$4 sm:$0xff]   ;;  %v17221_v18 = vld [vmem:[#allocation2 + $0x1c8] ss:$112 sps:$4 sm:$0xff]   ;;  %v17225_v19 = vld [vmem:[#allocation2 + $0x384] ss:$112 sps:$4 sm:$0xff]  }
  0x3d   : > { %v407_v9 = vld [vmem:[%s19547_s16 + $0x30] sm:$0xff]  ;;  %8803 = vmatprep.subr.bf16.mxu0 %v17213_v11  ;;  %v17229_v20 = vld [vmem:[#allocation2 + $0x2ac] ss:$112 sps:$4 sm:$0xff]   ;;  %v17227_v21 = vld [vmem:[#allocation2 + $0x2a8] ss:$112 sps:$4 sm:$0xff]   ;;  %vm19396_vm2 = vmmov 0  }
  0x3e   : > { %v19550_v10 = vpack.c.bf16 %v407_v9, %v407_v9  ;;  %v17230_v22 = vld [vmem:[#allocation2 + $0x380] ss:$112 sps:$4 sm:$0xff]   ;;  %v17231_v23 = vld [vmem:[#allocation2 + $0x464] ss:$112 sps:$4 sm:$0xff]   ;;  %v17235_v24 = vld [vmem:[#allocation2 + $0x38c] ss:$112 sps:$4 sm:$0xff]  }
  0x3f   : > { %v17236_v25 = vld [vmem:[#allocation2 + $0x460] ss:$112 sps:$4 sm:$0xff]   ;;  %v17233_v26 = vld [vmem:[#allocation2 + $0x388] ss:$112 sps:$4 sm:$0xff]   ;;  %v17237_v27 = vld [vmem:[#allocation2 + $0x544] ss:$112 sps:$4 sm:$0xff]  }
  0x40   : > { %16328 = vmatmul.mubr.msk.bf16.vlgmr.msra.gmra.mrb[0].mxu1 %vm8795_vm0, %v19550_v10  ;;  %8804 = vmatpush1.bf16.msra.mxu0 %v17218_v14  ;;  %v17241_v28 = vld [vmem:[#allocation2 + $0x46c] ss:$112 sps:$4 sm:$0xff]   ;;  %v17239_v29 = vld [vmem:[#allocation2 + $0x468] ss:$112 sps:$4 sm:$0xff]   ;;  %v17242_v30 = vld [vmem:[#allocation2 + $0x540] ss:$112 sps:$4 sm:$0xff]  }
  0x41   : > { %8964 = vmatpush1.bf16.msra.mxu1 %v17209_v6  ;;  %8805 = vmatprep.subr.bf16.mxu0 %v17219_v15  ;;  %v17243_v31 = vld [vmem:[#allocation2 + $0x624] ss:$112 sps:$4 sm:$0xff]   ;;  %v17247_v32 = vld [vmem:[#allocation2 + $0x54c] ss:$112 sps:$4 sm:$0xff]   ;;  %v17248_v33 = vld [vmem:[#allocation2 + $0x620] ss:$112 sps:$4 sm:$0xff]  }
  0x42   : > { %8965 = vmatprep.subr.bf16.mxu1 %v17217_v13  ;;  %v17245_v34 = vld [vmem:[#allocation2 + $0x548] ss:$112 sps:$4 sm:$0xff]   ;;  %v17249_v35 = vld [vmem:[#allocation2 + $0x704] ss:$112 sps:$4 sm:$0xff]   ;;  %v17253_v36 = vld [vmem:[#allocation2 + $0x62c] ss:$112 sps:$4 sm:$0xff]  }
  0x43   : > { %v17251_v37 = vld [vmem:[#allocation2 + $0x628] ss:$112 sps:$4 sm:$0xff]   ;;  %v17254_v38 = vld [vmem:[#allocation2 + $0x700] ss:$112 sps:$4 sm:$0xff]   ;;  %v17255_v39 = vld [vmem:[#allocation2 + $0x7e4] ss:$112 sps:$4 sm:$0xff]  }
  0x44   : > { %8806 = vmatpush1.bf16.msra.mxu0 %v17224_v17  ;;  %v17259_v40 = vld [vmem:[#allocation2 + $0x70c] ss:$112 sps:$4 sm:$0xff]   ;;  %v17260_v41 = vld [vmem:[#allocation2 + $0x7e0] ss:$112 sps:$4 sm:$0xff]   ;;  %v17257_v42 = vld [vmem:[#allocation2 + $0x708] ss:$112 sps:$4 sm:$0xff]  }
  0x45   : > { %8966 = vmatpush1.bf16.msra.mxu1 %v17215_v12  ;;  %8807 = vmatprep.subr.bf16.mxu0 %v17225_v19  ;;  %v17261_v43 = vld [vmem:[#allocation2 + $0x8c4] ss:$112 sps:$4 sm:$0xff]   ;;  %v17265_v44 = vld [vmem:[#allocation2 + $0x7ec] ss:$112 sps:$4 sm:$0xff]   ;;  %v17263_v45 = vld [vmem:[#allocation2 + $0x7e8] ss:$112 sps:$4 sm:$0xff]  }
  0x46   : > { %8967 = vmatprep.subr.bf16.mxu1 %v17223_v16  ;;  %v17266_v46 = vld [vmem:[#allocation2 + $0x8c0] ss:$112 sps:$4 sm:$0xff]   ;;  %v17267_v47 = vld [vmem:[#allocation2 + $0x9a4] ss:$112 sps:$4 sm:$0xff]   ;;  %v17271_v48 = vld [vmem:[#allocation2 + $0x8cc] ss:$112 sps:$4 sm:$0xff]  }
  0x47   : > { %v402_v49 = vld [vmem:[%s19547_s16 + $0x8] sm:$0xff]  ;;  %v17272_v50 = vld [vmem:[#allocation2 + $0x9a0] ss:$112 sps:$4 sm:$0xff]   ;;  %v17273_v53 = vld [vmem:[#allocation2 + $0xa84] ss:$112 sps:$4 sm:$0xff]   ;;  %s392_s22 = sand.u32 1, %s19381_s18  }
  0x48   : > { %8808 = vmatpush1.bf16.msra.mxu0 %v17230_v22  ;;  %v19555_v51 = vpack.c.bf16 %v402_v49, %v402_v49  ;;  %v17269_v52 = vld [vmem:[#allocation2 + $0x8c8] ss:$112 sps:$4 sm:$0xff]   ;;  %v17277_v54 = vld [vmem:[#allocation2 + $0x9ac] ss:$112 sps:$4 sm:$0xff]   ;;  %v17278_v56 = vld [vmem:[#allocation2 + $0xa80] ss:$112 sps:$4 sm:$0xff]  }
  0x49   : > { %8968 = vmatpush1.bf16.msra.mxu1 %v17221_v18  ;;  %8809 = vmatprep.subr.bf16.mxu0 %v17231_v23  ;;  %v17275_v55 = vld [vmem:[#allocation2 + $0x9a8] ss:$112 sps:$4 sm:$0xff]   ;;  %v17279_v57 = vld [vmem:[#allocation2 + $0xb64] ss:$112 sps:$4 sm:$0xff]   ;;  %v17283_v58 = vld [vmem:[#allocation2 + $0xa8c] ss:$112 sps:$4 sm:$0xff]  }
  0x4a   : > { %8969 = vmatprep.subr.bf16.mxu1 %v17229_v20  ;;  %8831 = vmatprep.mubr.bf16.mxu0 %v19555_v51  ;;  %v17281_v59 = vld [vmem:[#allocation2 + $0xa88] ss:$112 sps:$4 sm:$0xff]   ;;  %v17284_v60 = vld [vmem:[#allocation2 + $0xb60] ss:$112 sps:$4 sm:$0xff]   ;;  %v17285_v61 = vld [vmem:[#allocation2 + $0xc44] ss:$112 sps:$4 sm:$0xff]  }
  0x4b   : > { %8995 = vmatprep.mubr.bf16.mxu1 %v19555_v51  ;;  %v17289_v62 = vld [vmem:[#allocation2 + $0xb6c] ss:$112 sps:$4 sm:$0xff]   ;;  %v17287_v63 = vld [vmem:[#allocation2 + $0xb68] ss:$112 sps:$4 sm:$0xff]   ;;  %v17290_v1 = vld [vmem:[#allocation2 + $0xc40] ss:$112 sps:$4 sm:$0xff]  }
  0x4c   : > { %8810 = vmatpush1.bf16.msra.mxu0 %v17236_v25  ;;  %v17291_v2 = vld [vmem:[#allocation2 + $0xd24] ss:$112 sps:$4 sm:$0xff]   ;;  %v17295_v3 = vld [vmem:[#allocation2 + $0xc4c] ss:$112 sps:$4 sm:$0xff]   ;;  %v17293_v4 = vld [vmem:[#allocation2 + $0xc48] ss:$112 sps:$4 sm:$0xff]  }
  0x4d   : > { %8970 = vmatpush1.bf16.msra.mxu1 %v17227_v21  ;;  %8811 = vmatprep.subr.bf16.mxu0 %v17237_v27  ;;  %v17296_v5 = vld [vmem:[#allocation2 + $0xd20] ss:$112 sps:$4 sm:$0xff]   ;;  %v17299_v7 = vld [vmem:[#allocation2 + $0xe04] ss:$112 sps:$4 sm:$0xff]   ;;  %v17302_v8 = vld [vmem:[#allocation2 + $0xd2c] ss:$112 sps:$4 sm:$0xff]  }
  0x4e   : > { %8971 = vmatprep.subr.bf16.mxu1 %v17235_v24  ;;  %v401_v6 = vld [vmem:[%s19547_s16] sm:$0xff]  ;;  %v17300_v12 = vld [vmem:[#allocation2 + $0xd28] ss:$112 sps:$4 sm:$0xff]   ;;  %v17308_v14 = vld [vmem:[#allocation2 + $0xe0c] ss:$112 sps:$4 sm:$0xff]   ;;  %s14954_s24 = sshll.u32 %s392_s22, 3 }
  0x4f   : > { %v19560_v9 = vpack.c.bf16 %v401_v6, %v401_v6  ;;  %v17297_v11 = vld [vmem:[#allocation2 + $0xe00] ss:$112 sps:$4 sm:$0xff]   ;;  %v17305_v13 = vld [vmem:[#allocation2 + $0xee4] ss:$112 sps:$4 sm:$0xff]   ;;  %v17306_v16 = vld [vmem:[#allocation2 + $0xe08] ss:$112 sps:$4 sm:$0xff]  }
  0x50   : > { %8812 = vmatpush1.bf16.msra.mxu0 %v17242_v30  ;;  %v17303_v15 = vld [vmem:[#allocation2 + $0xee0] ss:$112 sps:$4 sm:$0xff]   ;;  %v17311_v17 = vld [vmem:[#allocation2 + $0xfc4] ss:$112 sps:$4 sm:$0xff]   ;;  %v17314_v18 = vld [vmem:[#allocation2 + $0xeec] ss:$112 sps:$4 sm:$0xff]  }
  0x51   : > { %8972 = vmatpush1.bf16.msra.mxu1 %v17233_v26  ;;  %8813 = vmatprep.subr.bf16.mxu0 %v17243_v31  ;;  %v17309_v19 = vld [vmem:[#allocation2 + $0xfc0] ss:$112 sps:$4 sm:$0xff]   ;;  %v17312_v20 = vld [vmem:[#allocation2 + $0xee8] ss:$112 sps:$4 sm:$0xff]   ;;  %v17317_v21 = vld [vmem:[#allocation2 + $0x10a4] ss:$112 sps:$4 sm:$0xff]  }
  0x52   : > { %8973 = vmatprep.subr.bf16.mxu1 %v17241_v28  ;;  %v17320_v22 = vld [vmem:[#allocation2 + $0xfcc] ss:$112 sps:$4 sm:$0xff]   ;;  %v17315_v23 = vld [vmem:[#allocation2 + $0x10a0] ss:$112 sps:$4 sm:$0xff]   ;;  %v17318_v24 = vld [vmem:[#allocation2 + $0xfc8] ss:$112 sps:$4 sm:$0xff]  }
  0x53   : > { %v17323_v25 = vld [vmem:[#allocation2 + $0x1184] ss:$112 sps:$4 sm:$0xff]   ;;  %v17326_v26 = vld [vmem:[#allocation2 + $0x10ac] ss:$112 sps:$4 sm:$0xff]   ;;  %v17321_v27 = vld [vmem:[#allocation2 + $0x1180] ss:$112 sps:$4 sm:$0xff]  }
  0x54   : > { %8814 = vmatpush1.bf16.msra.mxu0 %v17248_v33  ;;  %v17324_v28 = vld [vmem:[#allocation2 + $0x10a8] ss:$112 sps:$4 sm:$0xff]   ;;  %v17332_v30 = vld [vmem:[#allocation2 + $0x118c] ss:$112 sps:$4 sm:$0xff]   ;;  %v17327_v31 = vld [vmem:[#allocation2 + $0x1260] ss:$112 sps:$4 sm:$0xff]  }
  0x55   : > { %8974 = vmatpush1.bf16.msra.mxu1 %v17239_v29  ;;  %8815 = vmatprep.subr.bf16.mxu0 %v17249_v35  ;;  %v17329_v29 = vld [vmem:[#allocation2 + $0x1264] ss:$112 sps:$4 sm:$0xff]   ;;  %v404_v35 = vld [vmem:[%s19547_s16 + $0x18] sm:$0xff]  ;;  %v17351_v49 = vld [vmem:[#allocation2 + $0x15e0] ss:$112 sps:$4 sm:$0xff]   ;;  %s16814_s29 = sshll.u32 %s19479_s21, 7 }
  0x56   : > { %8975 = vmatprep.subr.bf16.mxu1 %v17247_v32  ;;  %v17330_v32 = vld [vmem:[#allocation2 + $0x1188] ss:$112 sps:$4 sm:$0xff]   ;;  %v17335_v33 = vld [vmem:[#allocation2 + $0x1344] ss:$112 sps:$4 sm:$0xff]   ;;  %v17386_v6 = vld [vmem:[#allocation2 + $0x196c] ss:$112 sps:$4 sm:$0xff]   ;;  %s21408_s14 = scalar_lea.hbm %s21461_s11, %s16814_s29 }
  0x57   : > { %s394_s12 = scalar_lea.vmem [#allocation5], %s14954_s24  ;;  %s14864_s15 = scalar_lea.sflag [#allocation4], %s392_s22 }
  0x58   : > { %8816 = vmatpush1.bf16.msra.mxu0 %v17254_v38  ;;  %v17336_v38 = vld [vmem:[#allocation2 + $0x1268] ss:$112 sps:$4 sm:$0xff]   ;;  %p21473_p9 = scmp.ne.s32.totalorder %s21466_s27, 0  ;;  %s19397_s24 = smov [#allocation5]  }
  0x59   : > { %8976 = vmatpush1.bf16.msra.mxu1 %v17245_v34  ;;  %8817 = vmatprep.subr.bf16.mxu0 %v17255_v39  ;;  %v17338_v34 = vld [vmem:[#allocation2 + $0x126c] ss:$112 sps:$4 sm:$0xff]   ;;  %v17341_v39 = vld [vmem:[#allocation2 + $0x1424] ss:$112 sps:$4 sm:$0xff]   ;;  %s19327_s26 = sshll.u32 %s19397_s24, 4  ;;  %s19328_s26 = int_to_ptr.vmem [resolvable:$false] %s19327_s26 }
  0x5a   : > { %8977 = vmatprep.subr.bf16.mxu1 %v17253_v36  ;;  %v19565_v36 = vpack.c.bf16 %v404_v35, %v404_v35  ;;  %v17419_v35 = vld [vmem:[#allocation2 + $0x1f84] ss:$112 sps:$4 sm:$0xff]   ;;  %s19329_s13 = scalar_lea.vmem %s19328_s26, 256 }
  0x5c   : > { %8818 = vmatpush1.bf16.msra.mxu0 %v17260_v41  ;;  %v17339_v41 = vld [vmem:[#allocation2 + $0x1420] ss:$112 sps:$4 sm:$0xff]  }
  0x5d   : > { %8978 = vmatpush1.bf16.msra.mxu1 %v17251_v37  ;;  %8819 = vmatprep.subr.bf16.mxu0 %v17261_v43  ;;  %v17333_v37 = vld [vmem:[#allocation2 + $0x1340] ss:$112 sps:$4 sm:$0xff]   ;;  %v17347_v43 = vld [vmem:[#allocation2 + $0x1504] ss:$112 sps:$4 sm:$0xff]  }
  0x5e   : > { %8979 = vmatprep.subr.bf16.mxu1 %v17259_v40  ;;  %v17344_v40 = vld [vmem:[#allocation2 + $0x134c] ss:$112 sps:$4 sm:$0xff]  }
  0x60   : > { %8820 = vmatpush1.bf16.msra.mxu0 %v17266_v46  ;;  %v17348_v46 = vld [vmem:[#allocation2 + $0x1428] ss:$112 sps:$4 sm:$0xff]  }
  0x61   : > { %8980 = vmatpush1.bf16.msra.mxu1 %v17257_v42  ;;  %8821 = vmatprep.subr.bf16.mxu0 %v17267_v47  ;;  %v17342_v42 = vld [vmem:[#allocation2 + $0x1348] ss:$112 sps:$4 sm:$0xff]   ;;  %v17353_v47 = vld [vmem:[#allocation2 + $0x15e4] ss:$112 sps:$4 sm:$0xff]  }
  0x62   : > { %8981 = vmatprep.subr.bf16.mxu1 %v17265_v44  ;;  %v17350_v44 = vld [vmem:[#allocation2 + $0x142c] ss:$112 sps:$4 sm:$0xff]  }
  0x64   : > { %8822 = vmatpush1.bf16.msra.mxu0 %v17272_v50  ;;  %v17354_v50 = vld [vmem:[#allocation2 + $0x1508] ss:$112 sps:$4 sm:$0xff]  }
  0x65   : > { %8982 = vmatpush1.bf16.msra.mxu1 %v17263_v45  ;;  %8823 = vmatprep.subr.bf16.mxu0 %v17273_v53  ;;  %v17345_v45 = vld [vmem:[#allocation2 + $0x1500] ss:$112 sps:$4 sm:$0xff]   ;;  %v17362_v53 = vld [vmem:[#allocation2 + $0x15ec] ss:$112 sps:$4 sm:$0xff]  }
  0x66   : > { %8983 = vmatprep.subr.bf16.mxu1 %v17271_v48  ;;  %v17356_v48 = vld [vmem:[#allocation2 + $0x150c] ss:$112 sps:$4 sm:$0xff]  }
  0x68   : > { %8824 = vmatpush1.bf16.msra.mxu0 %v17278_v56  ;;  %v17365_v56 = vld [vmem:[#allocation2 + $0x17a4] ss:$112 sps:$4 sm:$0xff]  }
  0x69   : > { %8984 = vmatpush1.bf16.msra.mxu1 %v17269_v52  ;;  %8825 = vmatprep.subr.bf16.mxu0 %v17279_v57  ;;  %v17359_v52 = vld [vmem:[#allocation2 + $0x16c4] ss:$112 sps:$4 sm:$0xff]   ;;  %v17368_v57 = vld [vmem:[#allocation2 + $0x16cc] ss:$112 sps:$4 sm:$0xff]  }
  0x6a   : > { %8985 = vmatprep.subr.bf16.mxu1 %v17277_v54  ;;  %v17357_v54 = vld [vmem:[#allocation2 + $0x16c0] ss:$112 sps:$4 sm:$0xff]  }
  0x6c   : > { %8826 = vmatpush1.bf16.msra.mxu0 %v17284_v60  ;;  %v17371_v60 = vld [vmem:[#allocation2 + $0x1884] ss:$112 sps:$4 sm:$0xff]  }
  0x6d   : > { %8986 = vmatpush1.bf16.msra.mxu1 %v17275_v55  ;;  %8827 = vmatprep.subr.bf16.mxu0 %v17285_v61  ;;  %v17360_v55 = vld [vmem:[#allocation2 + $0x15e8] ss:$112 sps:$4 sm:$0xff]   ;;  %v17374_v61 = vld [vmem:[#allocation2 + $0x17ac] ss:$112 sps:$4 sm:$0xff]  }
  0x6e   : > { %8987 = vmatprep.subr.bf16.mxu1 %v17283_v58  ;;  %v17363_v58 = vld [vmem:[#allocation2 + $0x17a0] ss:$112 sps:$4 sm:$0xff]  }
  0x70   : > { %8828 = vmatpush1.bf16.msra.mxu0 %v17290_v1  ;;  %v17377_v1 = vld [vmem:[#allocation2 + $0x1964] ss:$112 sps:$4 sm:$0xff]  }
  0x71   : > { %8988 = vmatpush1.bf16.msra.mxu1 %v17281_v59  ;;  %8829 = vmatprep.subr.bf16.mxu0 %v17291_v2  ;;  %v17366_v59 = vld [vmem:[#allocation2 + $0x16c8] ss:$112 sps:$4 sm:$0xff]   ;;  %v17380_v2 = vld [vmem:[#allocation2 + $0x188c] ss:$112 sps:$4 sm:$0xff]  }
  0x72   : > { %8989 = vmatprep.subr.bf16.mxu1 %v17289_v62  ;;  %v17369_v62 = vld [vmem:[#allocation2 + $0x1880] ss:$112 sps:$4 sm:$0xff]  }
  0x74   : > { %8830 = vmatpush1.bf16.msra.mxu0 %v17296_v5  ;;  %v17383_v5 = vld [vmem:[#allocation2 + $0x1a44] ss:$112 sps:$4 sm:$0xff]  }
  0x75   : > { %8990 = vmatpush1.bf16.msra.mxu1 %v17287_v63  ;;  %8840 = vmatprep.subr.bf16.mxu0 %v17299_v7  ;;  %v17372_v63 = vld [vmem:[#allocation2 + $0x17a8] ss:$112 sps:$4 sm:$0xff]   ;;  %v17381_v7 = vld [vmem:[#allocation2 + $0x1a40] ss:$112 sps:$4 sm:$0xff]  }
  0x76   : > { %8991 = vmatprep.subr.bf16.mxu1 %v17295_v3  ;;  %v17375_v3 = vld [vmem:[#allocation2 + $0x1960] ss:$112 sps:$4 sm:$0xff]  }
  0x77   : > { %8832 = vmatmul.mubr.bf16.vlgmr.msra.gmra.mrb[0].mxu0 %v19560_v9 }
  0x78   : > { %8841 = vmatpush1.bf16.msra.mxu0 %v17297_v11  ;;  %8872 = vmatprep.mubr.bf16.mxu0 %v19565_v36  ;;  %v17389_v11 = vld [vmem:[#allocation2 + $0x1b24] ss:$112 sps:$4 sm:$0xff]  }
  0x79   : > { %8992 = vmatpush1.bf16.msra.mxu1 %v17293_v4  ;;  %8842 = vmatprep.subr.bf16.mxu0 %v17305_v13  ;;  %v17378_v4 = vld [vmem:[#allocation2 + $0x1888] ss:$112 sps:$4 sm:$0xff]   ;;  %v17387_v13 = vld [vmem:[#allocation2 + $0x1b20] ss:$112 sps:$4 sm:$0xff]  }
  0x7a   : > { %8993 = vmatprep.subr.bf16.mxu1 %v17302_v8  ;;  %v17384_v8 = vld [vmem:[#allocation2 + $0x1968] ss:$112 sps:$4 sm:$0xff]  }
  0x7c   : > { %8843 = vmatpush1.bf16.msra.mxu0 %v17303_v15  ;;  %v17390_v15 = vld [vmem:[#allocation2 + $0x1a48] ss:$112 sps:$4 sm:$0xff]  }
  0x7d   : > { %8994 = vmatpush1.bf16.msra.mxu1 %v17300_v12  ;;  %8844 = vmatprep.subr.bf16.mxu0 %v17311_v17  ;;  %v17392_v12 = vld [vmem:[#allocation2 + $0x1a4c] ss:$112 sps:$4 sm:$0xff]  }
  0x7e   : > { %9004 = vmatprep.subr.bf16.mxu1 %v17308_v14  ;;  %v403_v14 = vld [vmem:[%s19547_s16 + $0x10] sm:$0xff]  ;;  %v17398_v17 = vld [vmem:[#allocation2 + $0x1b2c] ss:$112 sps:$4 sm:$0xff]  }
  0x80   : > { %8996 = vmatmul.mubr.bf16.vlgmr.msra.gmra.mrb[4].mxu1 %v19560_v9  ;;  %8845 = vmatpush1.bf16.msra.mxu0 %v17309_v19  ;;  %v17393_v19 = vld [vmem:[#allocation2 + $0x1c00] ss:$112 sps:$4 sm:$0xff]  }
  0x81   : > { %9005 = vmatpush1.bf16.msra.mxu1 %v17306_v16  ;;  %8846 = vmatprep.subr.bf16.mxu0 %v17317_v21  ;;  %v17395_v16 = vld [vmem:[#allocation2 + $0x1c04] ss:$112 sps:$4 sm:$0xff]  }
  0x82   : > { %9006 = vmatprep.subr.bf16.mxu1 %v17314_v18  ;;  %9036 = vmatprep.mubr.bf16.mxu1 %v19565_v36  ;;  %v19570_v18 = vpack.c.bf16 %v403_v14, %v403_v14  ;;  %v17401_v21 = vld [vmem:[#allocation2 + $0x1ce4] ss:$112 sps:$4 sm:$0xff]   ;;  %v17471_v14 = vld [vmem:[#allocation2 + $0x2760] ss:$112 sps:$4 sm:$0xff]  }
  0x84   : > { %8847 = vmatpush1.bf16.msra.mxu0 %v17315_v23  ;;  %v17404_v23 = vld [vmem:[#allocation2 + $0x1c0c] ss:$112 sps:$4 sm:$0xff]  }
  0x85   : > { %9007 = vmatpush1.bf16.msra.mxu1 %v17312_v20  ;;  %8848 = vmatprep.subr.bf16.mxu0 %v17323_v25  ;;  %v17396_v20 = vld [vmem:[#allocation2 + $0x1b28] ss:$112 sps:$4 sm:$0xff]   ;;  %v17399_v25 = vld [vmem:[#allocation2 + $0x1ce0] ss:$112 sps:$4 sm:$0xff]  }
  0x86   : > { %9008 = vmatprep.subr.bf16.mxu1 %v17320_v22  ;;  %v406_v22 = vld [vmem:[%s19547_s16 + $0x28] sm:$0xff] }
  0x88   : > { %8849 = vmatpush1.bf16.msra.mxu0 %v17321_v27  ;;  %v17407_v27 = vld [vmem:[#allocation2 + $0x1dc4] ss:$112 sps:$4 sm:$0xff]  }
  0x89   : > { %9009 = vmatpush1.bf16.msra.mxu1 %v17318_v24  ;;  %8850 = vmatprep.subr.bf16.mxu0 %v17329_v29  ;;  %v19573_v24 = vpack.c.bf16 %v406_v22, %v406_v22  ;;  %v17405_v29 = vld [vmem:[#allocation2 + $0x1dc0] ss:$112 sps:$4 sm:$0xff]   ;;  %v17488_v22 = vld [vmem:[#allocation2 + $0x284c] ss:$112 sps:$4 sm:$0xff]  }
  0x8a   : > { %9010 = vmatprep.subr.bf16.mxu1 %v17326_v26  ;;  %v17402_v26 = vld [vmem:[#allocation2 + $0x1c08] ss:$112 sps:$4 sm:$0xff]  }
  0x8c   : > { %8851 = vmatpush1.bf16.msra.mxu0 %v17327_v31  ;;  %v17413_v31 = vld [vmem:[#allocation2 + $0x1ea4] ss:$112 sps:$4 sm:$0xff]  }
  0x8d   : > { %9011 = vmatpush1.bf16.msra.mxu1 %v17324_v28  ;;  %8852 = vmatprep.subr.bf16.mxu0 %v17335_v33  ;;  %v17410_v28 = vld [vmem:[#allocation2 + $0x1cec] ss:$112 sps:$4 sm:$0xff]   ;;  %v17411_v33 = vld [vmem:[#allocation2 + $0x1ea0] ss:$112 sps:$4 sm:$0xff]  }
  0x8e   : > { %9012 = vmatprep.subr.bf16.mxu1 %v17332_v30  ;;  %v17408_v30 = vld [vmem:[#allocation2 + $0x1ce8] ss:$112 sps:$4 sm:$0xff]  }
  0x90   : > { %8853 = vmatpush1.bf16.msra.mxu0 %v17333_v37  ;;  %v17422_v37 = vld [vmem:[#allocation2 + $0x1eac] ss:$112 sps:$4 sm:$0xff]  }
  0x91   : > { %9013 = vmatpush1.bf16.msra.mxu1 %v17330_v32  ;;  %8854 = vmatprep.subr.bf16.mxu0 %v17341_v39  ;;  %v17416_v32 = vld [vmem:[#allocation2 + $0x1dcc] ss:$112 sps:$4 sm:$0xff]   ;;  %v17420_v39 = vld [vmem:[#allocation2 + $0x1ea8] ss:$112 sps:$4 sm:$0xff]  }
  0x92   : > { %9014 = vmatprep.subr.bf16.mxu1 %v17338_v34  ;;  %v17414_v34 = vld [vmem:[#allocation2 + $0x1dc8] ss:$112 sps:$4 sm:$0xff]  }
  0x94   : > { %8855 = vmatpush1.bf16.msra.mxu0 %v17339_v41  ;;  %v17428_v41 = vld [vmem:[#allocation2 + $0x1f8c] ss:$112 sps:$4 sm:$0xff]  }
  0x95   : > { %9015 = vmatpush1.bf16.msra.mxu1 %v17336_v38  ;;  %8856 = vmatprep.subr.bf16.mxu0 %v17347_v43  ;;  %v17417_v38 = vld [vmem:[#allocation2 + $0x1f80] ss:$112 sps:$4 sm:$0xff]   ;;  %v17426_v43 = vld [vmem:[#allocation2 + $0x1f88] ss:$112 sps:$4 sm:$0xff]  }
  0x96   : > { %9016 = vmatprep.subr.bf16.mxu1 %v17344_v40  ;;  %v17425_v40 = vld [vmem:[#allocation2 + $0x2064] ss:$112 sps:$4 sm:$0xff]  }
  0x98   : > { %8857 = vmatpush1.bf16.msra.mxu0 %v17345_v45  ;;  %v17434_v45 = vld [vmem:[#allocation2 + $0x206c] ss:$112 sps:$4 sm:$0xff]  }
  0x99   : > { %9017 = vmatpush1.bf16.msra.mxu1 %v17342_v42  ;;  %8858 = vmatprep.subr.bf16.mxu0 %v17353_v47  ;;  %v17423_v42 = vld [vmem:[#allocation2 + $0x2060] ss:$112 sps:$4 sm:$0xff]   ;;  %v17432_v47 = vld [vmem:[#allocation2 + $0x2068] ss:$112 sps:$4 sm:$0xff]  }
  0x9a   : > { %9018 = vmatprep.subr.bf16.mxu1 %v17350_v44  ;;  %v17431_v44 = vld [vmem:[#allocation2 + $0x2144] ss:$112 sps:$4 sm:$0xff]  }
  0x9c   : > { %8859 = vmatpush1.bf16.msra.mxu0 %v17351_v49  ;;  %v17440_v49 = vld [vmem:[#allocation2 + $0x214c] ss:$112 sps:$4 sm:$0xff]  }
  0x9d   : > { %9019 = vmatpush1.bf16.msra.mxu1 %v17348_v46  ;;  %8860 = vmatprep.subr.bf16.mxu0 %v17359_v52  ;;  %v17429_v46 = vld [vmem:[#allocation2 + $0x2140] ss:$112 sps:$4 sm:$0xff]   ;;  %v17438_v52 = vld [vmem:[#allocation2 + $0x2148] ss:$112 sps:$4 sm:$0xff]  }
  0x9e   : > { %9020 = vmatprep.subr.bf16.mxu1 %v17356_v48  ;;  %v17437_v48 = vld [vmem:[#allocation2 + $0x2224] ss:$112 sps:$4 sm:$0xff]  }
  0xa0   : > { %8861 = vmatpush1.bf16.msra.mxu0 %v17357_v54  ;;  %v17446_v54 = vld [vmem:[#allocation2 + $0x222c] ss:$112 sps:$4 sm:$0xff]  }
  0xa1   : > { %9021 = vmatpush1.bf16.msra.mxu1 %v17354_v50  ;;  %8862 = vmatprep.subr.bf16.mxu0 %v17365_v56  ;;  %v17435_v50 = vld [vmem:[#allocation2 + $0x2220] ss:$112 sps:$4 sm:$0xff]   ;;  %v17444_v56 = vld [vmem:[#allocation2 + $0x2228] ss:$112 sps:$4 sm:$0xff]  }
  0xa2   : > { %9022 = vmatprep.subr.bf16.mxu1 %v17362_v53  ;;  %v17443_v53 = vld [vmem:[#allocation2 + $0x2304] ss:$112 sps:$4 sm:$0xff]  }
  0xa4   : > { %8863 = vmatpush1.bf16.msra.mxu0 %v17363_v58  ;;  %v17452_v58 = vld [vmem:[#allocation2 + $0x230c] ss:$112 sps:$4 sm:$0xff]  }
  0xa5   : > { %9023 = vmatpush1.bf16.msra.mxu1 %v17360_v55  ;;  %8864 = vmatprep.subr.bf16.mxu0 %v17371_v60  ;;  %v17441_v55 = vld [vmem:[#allocation2 + $0x2300] ss:$112 sps:$4 sm:$0xff]   ;;  %v17450_v60 = vld [vmem:[#allocation2 + $0x2308] ss:$112 sps:$4 sm:$0xff]  }
  0xa6   : > { %9024 = vmatprep.subr.bf16.mxu1 %v17368_v57  ;;  %v17449_v57 = vld [vmem:[#allocation2 + $0x23e4] ss:$112 sps:$4 sm:$0xff]  }
  0xa8   : > { %8865 = vmatpush1.bf16.msra.mxu0 %v17369_v62  ;;  %v17458_v62 = vld [vmem:[#allocation2 + $0x23ec] ss:$112 sps:$4 sm:$0xff]  }
  0xa9   : > { %9025 = vmatpush1.bf16.msra.mxu1 %v17366_v59  ;;  %8866 = vmatprep.subr.bf16.mxu0 %v17377_v1  ;;  %v17447_v59 = vld [vmem:[#allocation2 + $0x23e0] ss:$112 sps:$4 sm:$0xff]   ;;  %v17456_v1 = vld [vmem:[#allocation2 + $0x23e8] ss:$112 sps:$4 sm:$0xff]  }
  0xaa   : > { %9026 = vmatprep.subr.bf16.mxu1 %v17374_v61  ;;  %v17455_v61 = vld [vmem:[#allocation2 + $0x24c4] ss:$112 sps:$4 sm:$0xff]  }
  0xac   : > { %8867 = vmatpush1.bf16.msra.mxu0 %v17375_v3  ;;  %v17464_v3 = vld [vmem:[#allocation2 + $0x24cc] ss:$112 sps:$4 sm:$0xff]  }
  0xad   : > { %9027 = vmatpush1.bf16.msra.mxu1 %v17372_v63  ;;  %8868 = vmatprep.subr.bf16.mxu0 %v17383_v5  ;;  %v17453_v63 = vld [vmem:[#allocation2 + $0x24c0] ss:$112 sps:$4 sm:$0xff]   ;;  %v17462_v5 = vld [vmem:[#allocation2 + $0x24c8] ss:$112 sps:$4 sm:$0xff]  }
  0xae   : > { %9028 = vmatprep.subr.bf16.mxu1 %v17380_v2  ;;  %v17461_v2 = vld [vmem:[#allocation2 + $0x25a4] ss:$112 sps:$4 sm:$0xff]  }
  0xb0   : > { %8869 = vmatpush1.bf16.msra.mxu0 %v17381_v7  ;;  %v17470_v7 = vld [vmem:[#allocation2 + $0x25ac] ss:$112 sps:$4 sm:$0xff]  }
  0xb1   : > { %9029 = vmatpush1.bf16.msra.mxu1 %v17378_v4  ;;  %8870 = vmatprep.subr.bf16.mxu0 %v17389_v11  ;;  %v17459_v4 = vld [vmem:[#allocation2 + $0x25a0] ss:$112 sps:$4 sm:$0xff]   ;;  %v17468_v11 = vld [vmem:[#allocation2 + $0x25a8] ss:$112 sps:$4 sm:$0xff]  }
  0xb2   : > { %9030 = vmatprep.subr.bf16.mxu1 %v17386_v6  ;;  %v17467_v6 = vld [vmem:[#allocation2 + $0x2684] ss:$112 sps:$4 sm:$0xff]  }
  0xb4   : > { %8871 = vmatpush1.bf16.msra.mxu0 %v17387_v13  ;;  %v17476_v13 = vld [vmem:[#allocation2 + $0x268c] ss:$112 sps:$4 sm:$0xff]  }
  0xb5   : > { %9031 = vmatpush1.bf16.msra.mxu1 %v17384_v8  ;;  %8881 = vmatprep.subr.bf16.mxu0 %v17395_v16  ;;  %v17465_v8 = vld [vmem:[#allocation2 + $0x2680] ss:$112 sps:$4 sm:$0xff]   ;;  %v17479_v16 = vld [vmem:[#allocation2 + $0x2844] ss:$112 sps:$4 sm:$0xff]  }
  0xb6   : > { %9032 = vmatprep.subr.bf16.mxu1 %v17392_v12  ;;  %v17473_v12 = vld [vmem:[#allocation2 + $0x2764] ss:$112 sps:$4 sm:$0xff]  }
  0xb7   : > { %8873 = vmatmul.mubr.bf16.vlgmr.msra.gmra.mrb[0].mxu0 %v19570_v18 }
  0xb8   : > { %8882 = vmatpush1.bf16.msra.mxu0 %v17393_v19  ;;  %8913 = vmatprep.mubr.bf16.mxu0 %v19573_v24  ;;  %v17477_v19 = vld [vmem:[#allocation2 + $0x2840] ss:$112 sps:$4 sm:$0xff]  }
  0xb9   : > { %9033 = vmatpush1.bf16.msra.mxu1 %v17390_v15  ;;  %8883 = vmatprep.subr.bf16.mxu0 %v17401_v21  ;;  %v17474_v15 = vld [vmem:[#allocation2 + $0x2688] ss:$112 sps:$4 sm:$0xff]   ;;  %v17485_v21 = vld [vmem:[#allocation2 + $0x2924] ss:$112 sps:$4 sm:$0xff]  }
  0xba   : > { %9034 = vmatprep.subr.bf16.mxu1 %v17398_v17  ;;  %v17482_v17 = vld [vmem:[#allocation2 + $0x276c] ss:$112 sps:$4 sm:$0xff]  }
  0xbc   : > { %8884 = vmatpush1.bf16.msra.mxu0 %v17399_v25  ;;  %v17486_v25 = vld [vmem:[#allocation2 + $0x2848] ss:$112 sps:$4 sm:$0xff]  }
  0xbd   : > { %9035 = vmatpush1.bf16.msra.mxu1 %v17396_v20  ;;  %8885 = vmatprep.subr.bf16.mxu0 %v17407_v27  ;;  %v17480_v20 = vld [vmem:[#allocation2 + $0x2768] ss:$112 sps:$4 sm:$0xff]   ;;  %v17494_v27 = vld [vmem:[#allocation2 + $0x14] ss:$112 sps:$4 sm:$0xff]  }
  0xbe   : > { %9045 = vmatprep.subr.bf16.mxu1 %v17404_v23  ;;  %v17483_v23 = vld [vmem:[#allocation2 + $0x2920] ss:$112 sps:$4 sm:$0xff]  }
  0xc0   : > { %9037 = vmatmul.mubr.bf16.vlgmr.msra.gmra.mrb[4].mxu1 %v19570_v18  ;;  %8886 = vmatpush1.bf16.msra.mxu0 %v17405_v29 }
  0xc1   : > { %9046 = vmatpush1.bf16.msra.mxu1 %v17402_v26  ;;  %9077 = vmatprep.mubr.bf16.mxu1 %v19573_v24  ;;  %v405_v26 = vld [vmem:[%s19547_s16 + $0x20] sm:$0xff]  ;;  %s14877_s16 = sshll.u32 %s394_s12, 4  ;;  %s21410_s16 = int_to_ptr.vmem [resolvable:$true] %s14877_s16 }
  0xc2   : > { %9047 = vmatprep.subr.bf16.mxu1 %v17410_v28  ;;  %8887 = vmatprep.subr.bf16.mxu0 %v17413_v31  ;;  %v17491_v28 = vld [vmem:[#allocation2 + $0x292c] ss:$112 sps:$4 sm:$0xff]   ;;  %v19580_v29 = vpack.c.bf16 %v405_v26, %v405_v26  ;;  %v17492_v31 = vld [vmem:[#allocation2 + $0x10] ss:$112 sps:$4 sm:$0xff]   ;;  %s19323_s21 = scalar_lea.vmem %s21410_s16, 128  ;;  %p19330_p2 = scmp.lt.s32.totalorder %s21410_s16, %s19328_s26 }
  0xc3   : > { %v17566_v26 = vld [vmem:[#allocation2 + $0x71c] ss:$112 sps:$4 sm:$0xff]   ;;  %p19324_p6 = scmp.ne.s32.totalorder %s21410_s16, %s19323_s21  ;;  %p19331_p3 = scmp.lt.s32.totalorder %s19329_s13, %s19323_s21 }
  0xc4   : > { %8888 = vmatpush1.bf16.msra.mxu0 %v17411_v33  ;;  %v17503_v33 = vld [vmem:[#allocation2 + $0x2a0c] ss:$112 sps:$4 sm:$0xff]  }
  0xc5   : > { %9048 = vmatpush1.bf16.msra.mxu1 %v17408_v30  ;;  %8889 = vmatprep.subr.bf16.mxu0 %v17419_v35  ;;  %v17489_v30 = vld [vmem:[#allocation2 + $0x2928] ss:$112 sps:$4 sm:$0xff]   ;;  %v17500_v35 = vld [vmem:[#allocation2 + $0x1d4] ss:$112 sps:$4 sm:$0xff]   ;;  %p19325_p10 = pnand %p19324_p6, %p21473_p9  ;;  %p19332_p4 = por %p19331_p3, %p19330_p2 }
  0xc6   : > { %9049 = vmatprep.subr.bf16.mxu1 %v17416_v32  ;;  %v17497_v32 = vld [vmem:[#allocation2 + $0xf4] ss:$112 sps:$4 sm:$0xff]  }
  0xc7   : > { %p19326_p12 = pneg %p19325_p10 }
  0xc8   : > { %8890 = vmatpush1.bf16.msra.mxu0 %v17417_v38  ;;  %v17512_v38 = vld [vmem:[#allocation2 + $0x2a14] ss:$112 sps:$4 sm:$0xff]  }
  0xc9   : > { %9050 = vmatpush1.bf16.msra.mxu1 %v17414_v34  ;;  %8891 = vmatprep.subr.bf16.mxu0 %v17425_v40  ;;  %v17495_v34 = vld [vmem:[#allocation2 + $0xf0] ss:$112 sps:$4 sm:$0xff]   ;;  %v17506_v40 = vld [vmem:[#allocation2 + $0x2b4] ss:$112 sps:$4 sm:$0xff]   ;;  %p19333_p7 = pnand %p19332_p4, %p19326_p12 }
  0xca   : > { %9051 = vmatprep.subr.bf16.mxu1 %v17422_v37  ;;  %v17501_v37 = vld [vmem:[#allocation2 + $0x2a08] ss:$112 sps:$4 sm:$0xff]  }
  0xcc   : > { %8892 = vmatpush1.bf16.msra.mxu0 %v17423_v42  ;;  %v17509_v42 = vld [vmem:[#allocation2 + $0x394] ss:$112 sps:$4 sm:$0xff]  }
  0xcd   : > { %9052 = vmatpush1.bf16.msra.mxu1 %v17420_v39  ;;  %8893 = vmatprep.subr.bf16.mxu0 %v17431_v44  ;;  %v17498_v39 = vld [vmem:[#allocation2 + $0x1d0] ss:$112 sps:$4 sm:$0xff]  }
  0xce   : > { %9053 = vmatprep.subr.bf16.mxu1 %v17428_v41  ;;  %v17504_v41 = vld [vmem:[#allocation2 + $0x2b0] ss:$112 sps:$4 sm:$0xff]  }
  0xcf   : > { %v17510_v44 = vld [vmem:[#allocation2 + $0x2a10] ss:$112 sps:$4 sm:$0xff]  }
  0xd0   : > { %8894 = vmatpush1.bf16.msra.mxu0 %v17429_v46  ;;  %v17518_v46 = vld [vmem:[#allocation2 + $0x1c] ss:$112 sps:$4 sm:$0xff]  }
  0xd1   : > { %9054 = vmatpush1.bf16.msra.mxu1 %v17426_v43  ;;  %8895 = vmatprep.subr.bf16.mxu0 %v17437_v48  ;;  %v17507_v43 = vld [vmem:[#allocation2 + $0x390] ss:$112 sps:$4 sm:$0xff]   ;;  %v17521_v48 = vld [vmem:[#allocation2 + $0x554] ss:$112 sps:$4 sm:$0xff]  }
  0xd2   : > { %9055 = vmatprep.subr.bf16.mxu1 %v17434_v45  ;;  %v17515_v45 = vld [vmem:[#allocation2 + $0x474] ss:$112 sps:$4 sm:$0xff]  }
  0xd4   : > { %8896 = vmatpush1.bf16.msra.mxu0 %v17435_v50  ;;  %v17519_v50 = vld [vmem:[#allocation2 + $0x550] ss:$112 sps:$4 sm:$0xff]  }
  0xd5   : > { %9056 = vmatpush1.bf16.msra.mxu1 %v17432_v47  ;;  %8897 = vmatprep.subr.bf16.mxu0 %v17443_v53  ;;  %v17513_v47 = vld [vmem:[#allocation2 + $0x470] ss:$112 sps:$4 sm:$0xff]   ;;  %v17524_v53 = vld [vmem:[#allocation2 + $0xfc] ss:$112 sps:$4 sm:$0xff]  }
  0xd6   : > { %9057 = vmatprep.subr.bf16.mxu1 %v17440_v49  ;;  %v17516_v49 = vld [vmem:[#allocation2 + $0x18] ss:$112 sps:$4 sm:$0xff]  }
  0xd8   : > { %8898 = vmatpush1.bf16.msra.mxu0 %v17441_v55  ;;  %v17522_v55 = vld [vmem:[#allocation2 + $0xf8] ss:$112 sps:$4 sm:$0xff]  }
  0xd9   : > { %9058 = vmatpush1.bf16.msra.mxu1 %v17438_v52  ;;  %8899 = vmatprep.subr.bf16.mxu0 %v17449_v57  ;;  %v17527_v52 = vld [vmem:[#allocation2 + $0x634] ss:$112 sps:$4 sm:$0xff]  }
  0xda   : > { %9059 = vmatprep.subr.bf16.mxu1 %v17446_v54 }
  0xdc   : > { %8900 = vmatpush1.bf16.msra.mxu0 %v17447_v59 }
  0xdd   : > { %9060 = vmatpush1.bf16.msra.mxu1 %v17444_v56  ;;  %8901 = vmatprep.subr.bf16.mxu0 %v17455_v61  ;;  %v17525_v56 = vld [vmem:[#allocation2 + $0x630] ss:$112 sps:$4 sm:$0xff]  }
  0xde   : > { %9061 = vmatprep.subr.bf16.mxu1 %v17452_v58  ;;  %v17533_v58 = vld [vmem:[#allocation2 + $0x714] ss:$112 sps:$4 sm:$0xff]  }
  0xe0   : > { %8902 = vmatpush1.bf16.msra.mxu0 %v17453_v63  ;;  %v17531_v63 = vld [vmem:[#allocation2 + $0x710] ss:$112 sps:$4 sm:$0xff]  }
  0xe1   : > { %9062 = vmatpush1.bf16.msra.mxu1 %v17450_v60  ;;  %8903 = vmatprep.subr.bf16.mxu0 %v17461_v2  ;;  %v17530_v60 = vld [vmem:[#allocation2 + $0x1dc] ss:$112 sps:$4 sm:$0xff]  }
  0xe2   : > { %9063 = vmatprep.subr.bf16.mxu1 %v17458_v62  ;;  %v17528_v62 = vld [vmem:[#allocation2 + $0x1d8] ss:$112 sps:$4 sm:$0xff]   ;;  %v17536_v2 = vld [vmem:[#allocation2 + $0x2bc] ss:$112 sps:$4 sm:$0xff]  }
  0xe4   : > { %8904 = vmatpush1.bf16.msra.mxu0 %v17459_v4  ;;  %v17537_v4 = vld [vmem:[#allocation2 + $0x7f0] ss:$112 sps:$4 sm:$0xff]  }
  0xe5   : > { %9064 = vmatpush1.bf16.msra.mxu1 %v17456_v1  ;;  %8905 = vmatprep.subr.bf16.mxu0 %v17467_v6  ;;  %v17539_v1 = vld [vmem:[#allocation2 + $0x7f4] ss:$112 sps:$4 sm:$0xff]   ;;  %v17542_v6 = vld [vmem:[#allocation2 + $0x39c] ss:$112 sps:$4 sm:$0xff]  }
  0xe6   : > { %9065 = vmatprep.subr.bf16.mxu1 %v17464_v3  ;;  %v17534_v3 = vld [vmem:[#allocation2 + $0x2b8] ss:$112 sps:$4 sm:$0xff]  }
  0xe8   : > { %8906 = vmatpush1.bf16.msra.mxu0 %v17465_v8  ;;  %v17543_v8 = vld [vmem:[#allocation2 + $0x8d0] ss:$112 sps:$4 sm:$0xff]  }
  0xe9   : > { %9066 = vmatpush1.bf16.msra.mxu1 %v17462_v5  ;;  %8907 = vmatprep.subr.bf16.mxu0 %v17473_v12  ;;  %v17545_v5 = vld [vmem:[#allocation2 + $0x8d4] ss:$112 sps:$4 sm:$0xff]   ;;  %v17548_v12 = vld [vmem:[#allocation2 + $0x47c] ss:$112 sps:$4 sm:$0xff]  }
  0xea   : > { %9067 = vmatprep.subr.bf16.mxu1 %v17470_v7  ;;  %v17540_v7 = vld [vmem:[#allocation2 + $0x398] ss:$112 sps:$4 sm:$0xff]  }
  0xec   : > { %8908 = vmatpush1.bf16.msra.mxu0 %v17471_v14  ;;  %v17549_v14 = vld [vmem:[#allocation2 + $0x9b0] ss:$112 sps:$4 sm:$0xff]  }
  0xed   : > { %9068 = vmatpush1.bf16.msra.mxu1 %v17468_v11  ;;  %8909 = vmatprep.subr.bf16.mxu0 %v17479_v16  ;;  %v17551_v11 = vld [vmem:[#allocation2 + $0x9b4] ss:$112 sps:$4 sm:$0xff]   ;;  %v17554_v16 = vld [vmem:[#allocation2 + $0x55c] ss:$112 sps:$4 sm:$0xff]  }
  0xee   : > { %9069 = vmatprep.subr.bf16.mxu1 %v17476_v13  ;;  %v17546_v13 = vld [vmem:[#allocation2 + $0x478] ss:$112 sps:$4 sm:$0xff]  }
  0xf0   : > { %8910 = vmatpush1.bf16.msra.mxu0 %v17477_v19  ;;  %v17555_v19 = vld [vmem:[#allocation2 + $0xa90] ss:$112 sps:$4 sm:$0xff]  }
  0xf1   : > { %9070 = vmatpush1.bf16.msra.mxu1 %v17474_v15  ;;  %8911 = vmatprep.subr.bf16.mxu0 %v17485_v21  ;;  %v17557_v15 = vld [vmem:[#allocation2 + $0xa94] ss:$112 sps:$4 sm:$0xff]   ;;  %v17560_v21 = vld [vmem:[#allocation2 + $0x63c] ss:$112 sps:$4 sm:$0xff]  }
  0xf2   : > { %9071 = vmatprep.subr.bf16.mxu1 %v17482_v17  ;;  %v17552_v17 = vld [vmem:[#allocation2 + $0x558] ss:$112 sps:$4 sm:$0xff]  }
  0xf4   : > { %8912 = vmatpush1.bf16.msra.mxu0 %v17483_v23  ;;  %v17561_v23 = vld [vmem:[#allocation2 + $0xb70] ss:$112 sps:$4 sm:$0xff]  }
  0xf5   : > { %9072 = vmatpush1.bf16.msra.mxu1 %v17480_v20  ;;  %9127 = vmatprep.subr.bf16.mxu0 %v17494_v27  ;;  %v17563_v20 = vld [vmem:[#allocation2 + $0xb74] ss:$112 sps:$4 sm:$0xff]   ;;  %v17564_v27 = vld [vmem:[#allocation2 + $0x718] ss:$112 sps:$4 sm:$0xff]  }
  0xf6   : > { %9073 = vmatprep.subr.bf16.mxu1 %v17488_v22  ;;  %v17558_v22 = vld [vmem:[#allocation2 + $0x638] ss:$112 sps:$4 sm:$0xff]  }
  0xf7   : > { %8914 = vmatmul.mubr.bf16.vlgmr.msra.gmra.mrb[0].mxu0 %v19580_v29 }
  0xf8   : > { %9128 = vmatpush1.bf16.msra.mxu0 %v17492_v31  ;;  %9159 = vmatprep.mubr.bf16.mxu0 %v19555_v51  ;;  %v17572_v31 = vld [vmem:[#allocation2 + $0x7fc] ss:$112 sps:$4 sm:$0xff]  }
  0xf9   : > { %9074 = vmatpush1.bf16.msra.mxu1 %v17486_v25  ;;  %9129 = vmatprep.subr.bf16.mxu0 %v17497_v32  ;;  %v17569_v25 = vld [vmem:[#allocation2 + $0xc54] ss:$112 sps:$4 sm:$0xff]   ;;  %v17573_v32 = vld [vmem:[#allocation2 + $0xd30] ss:$112 sps:$4 sm:$0xff]  }
  0xfa   : > { %9075 = vmatprep.subr.bf16.mxu1 %v17491_v28  ;;  %v17567_v28 = vld [vmem:[#allocation2 + $0xc50] ss:$112 sps:$4 sm:$0xff]  }
  0xfc   : > { %9130 = vmatpush1.bf16.msra.mxu0 %v17495_v34  ;;  %v17581_v34 = vld [vmem:[#allocation2 + $0xe14] ss:$112 sps:$4 sm:$0xff]  }
  0xfd   : > { %9076 = vmatpush1.bf16.msra.mxu1 %v17489_v30  ;;  %9131 = vmatprep.subr.bf16.mxu0 %v17500_v35  ;;  %v17575_v30 = vld [vmem:[#allocation2 + $0xd34] ss:$112 sps:$4 sm:$0xff]   ;;  %v17578_v35 = vld [vmem:[#allocation2 + $0x8dc] ss:$112 sps:$4 sm:$0xff]  }
  0xfe   : > { %9086 = vmatprep.subr.bf16.mxu1 %v17503_v33  ;;  %v17570_v33 = vld [vmem:[#allocation2 + $0x7f8] ss:$112 sps:$4 sm:$0xff]  }
 0x100   : > { %9078 = vmatmul.mubr.bf16.vlgmr.msra.gmra.mrb[4].mxu1 %v19580_v29  ;;  %9132 = vmatpush1.bf16.msra.mxu0 %v17498_v39  ;;  %v17584_v39 = vld [vmem:[#allocation2 + $0x9bc] ss:$112 sps:$4 sm:$0xff]  }
 0x101   : > { %9087 = vmatpush1.bf16.msra.mxu1 %v17501_v37  ;;  %9118 = vmatprep.mubr.bf16.mxu1 %v19394_v0  ;;  %v17579_v37 = vld [vmem:[#allocation2 + $0xe10] ss:$112 sps:$4 sm:$0xff]  }
 0x102   : > { %9250 = vmatprep.subr.bf16.mxu1 %v17512_v38  ;;  %9133 = vmatprep.subr.bf16.mxu0 %v17506_v40  ;;  %v17576_v38 = vld [vmem:[#allocation2 + $0x8d8] ss:$112 sps:$4 sm:$0xff]   ;;  %v17587_v40 = vld [vmem:[#allocation2 + $0xef4] ss:$112 sps:$4 sm:$0xff]  }
 0x104   : > { %9134 = vmatpush1.bf16.msra.mxu0 %v17504_v41  ;;  %v17582_v41 = vld [vmem:[#allocation2 + $0x9b8] ss:$112 sps:$4 sm:$0xff]  }
 0x105   : > { %9135 = vmatprep.subr.bf16.mxu0 %v17509_v42  ;;  %v17585_v42 = vld [vmem:[#allocation2 + $0xef0] ss:$112 sps:$4 sm:$0xff]  }
 0x108   : > { %9136 = vmatpush1.bf16.msra.mxu0 %v17507_v43  ;;  %v17590_v43 = vld [vmem:[#allocation2 + $0xa9c] ss:$112 sps:$4 sm:$0xff]  }
 0x109   : > { %9137 = vmatprep.subr.bf16.mxu0 %v17515_v45  ;;  %v17588_v45 = vld [vmem:[#allocation2 + $0xa98] ss:$112 sps:$4 sm:$0xff]  }
 0x10c   : > { %16329 = vmatmul.mubr.msk.bf16.vlgmr.msra.gmra.mrb[4].mxu1 %vm8795_vm0, %v19550_v10  ;;  %9138 = vmatpush1.bf16.msra.mxu0 %v17513_v47  ;;  %v17596_v47 = vld [vmem:[#allocation2 + $0xb7c] ss:$112 sps:$4 sm:$0xff]  }
 0x10d   : > { %9251 = vmatpush1.bf16.msra.mxu1 %v17510_v44  ;;  %9282 = vmatprep.mubr.bf16.mxu1 %v19394_v0  ;;  %v17593_v44 = vld [vmem:[#allocation2 + $0xfd4] ss:$112 sps:$4 sm:$0xff]  }
 0x10e   : > { %9291 = vmatprep.subr.bf16.mxu1 %v17518_v46  ;;  %9139 = vmatprep.subr.bf16.mxu0 %v17521_v48  ;;  %v17591_v46 = vld [vmem:[#allocation2 + $0xfd0] ss:$112 sps:$4 sm:$0xff]   ;;  %v17599_v48 = vld [vmem:[#allocation2 + $0x10b4] ss:$112 sps:$4 sm:$0xff]  }
 0x110   : > { %9140 = vmatpush1.bf16.msra.mxu0 %v17519_v50  ;;  %v17597_v50 = vld [vmem:[#allocation2 + $0x10b0] ss:$112 sps:$4 sm:$0xff]  }
 0x111   : > { %9141 = vmatprep.subr.bf16.mxu0 %v17527_v52  ;;  %v17602_v52 = vld [vmem:[#allocation2 + $0xc5c] ss:$112 sps:$4 sm:$0xff]  }
 0x113   : > { %v19589_v54 = vpop.f32.mrb[0].mxu1 }
 0x114   : > { %16330 = vmatmul.mubr.msk.bf16.vlgmr.msra.gmra.mrb[8].mxu1 %vm8795_vm0, %v19550_v10  ;;  %v19593_v57 = vpop.f32.mrb[1].mxu1  ;;  %9142 = vmatpush1.bf16.msra.mxu0 %v17525_v56  ;;  %v17603_v56 = vld [vmem:[#allocation2 + $0x1190] ss:$112 sps:$4 sm:$0xff]  }
 0x115   : > { %9292 = vmatpush1.bf16.msra.mxu1 %v17516_v49  ;;  %v8960_v59 = vpop.f32.mrb[2].mxu1  ;;  %9323 = vmatprep.mubr.bf16.mxu1 %v19555_v51  ;;  %v17594_v49 = vld [vmem:[#allocation2 + $0xb78] ss:$112 sps:$4 sm:$0xff]  }
 0x116   : > { %9293 = vmatprep.subr.bf16.mxu1 %v17524_v53  ;;  %v8961_v61 = vpop.f32.mrb[3].mxu1  ;;  %9143 = vmatprep.subr.bf16.mxu0 %v17533_v58  ;;  %v17605_v53 = vld [vmem:[#allocation2 + $0x1194] ss:$112 sps:$4 sm:$0xff]   ;;  %v17608_v58 = vld [vmem:[#allocation2 + $0xd3c] ss:$112 sps:$4 sm:$0xff]  }
 0x117   : > { %v17611_v59 = vld [vmem:[#allocation2 + $0x1274] ss:$112 sps:$4 sm:$0xff]   ;;  %v17609_v61 = vld [vmem:[#allocation2 + $0x1270] ss:$112 sps:$4 sm:$0xff]  }
 0x118   : > { %9144 = vmatpush1.bf16.msra.mxu0 %v17531_v63  ;;  %v17614_v63 = vld [vmem:[#allocation2 + $0xe1c] ss:$112 sps:$4 sm:$0xff]  }
 0x119   : > { %9294 = vmatpush1.bf16.msra.mxu1 %v17522_v55  ;;  %9145 = vmatprep.subr.bf16.mxu0 %v17539_v1  ;;  %v17600_v55 = vld [vmem:[#allocation2 + $0xc58] ss:$112 sps:$4 sm:$0xff]  }
 0x11a   : > { %9295 = vmatprep.subr.bf16.mxu1 %v17530_v60  ;;  %v17606_v60 = vld [vmem:[#allocation2 + $0xd38] ss:$112 sps:$4 sm:$0xff]  }
 0x11b   : > { %v17612_v1 = vld [vmem:[#allocation2 + $0xe18] ss:$112 sps:$4 sm:$0xff]  }
 0x11c   : > { %9146 = vmatpush1.bf16.msra.mxu0 %v17537_v4  ;;  %v17623_v4 = vld [vmem:[#allocation2 + $0x1434] ss:$112 sps:$4 sm:$0xff]  }
 0x11d   : > { %9296 = vmatpush1.bf16.msra.mxu1 %v17528_v62  ;;  %9147 = vmatprep.subr.bf16.mxu0 %v17545_v5  ;;  %v17617_v62 = vld [vmem:[#allocation2 + $0x1354] ss:$112 sps:$4 sm:$0xff]   ;;  %v17618_v5 = vld [vmem:[#allocation2 + $0xef8] ss:$112 sps:$4 sm:$0xff]  }
 0x11e   : > { %9297 = vmatprep.subr.bf16.mxu1 %v17536_v2  ;;  %v17615_v2 = vld [vmem:[#allocation2 + $0x1350] ss:$112 sps:$4 sm:$0xff]  }
 0x120   : > { %9148 = vmatpush1.bf16.msra.mxu0 %v17543_v8  ;;  %v17629_v8 = vld [vmem:[#allocation2 + $0x1514] ss:$112 sps:$4 sm:$0xff]  }
 0x121   : > { %9298 = vmatpush1.bf16.msra.mxu1 %v17534_v3  ;;  %9149 = vmatprep.subr.bf16.mxu0 %v17551_v11  ;;  %v17620_v3 = vld [vmem:[#allocation2 + $0xefc] ss:$112 sps:$4 sm:$0xff]   ;;  %v17624_v11 = vld [vmem:[#allocation2 + $0xfd8] ss:$112 sps:$4 sm:$0xff]  }
 0x122   : > { %9299 = vmatprep.subr.bf16.mxu1 %v17542_v6  ;;  %v17621_v6 = vld [vmem:[#allocation2 + $0x1430] ss:$112 sps:$4 sm:$0xff]  }
 0x124   : > { %9150 = vmatpush1.bf16.msra.mxu0 %v17549_v14  ;;  %v17635_v14 = vld [vmem:[#allocation2 + $0x15f4] ss:$112 sps:$4 sm:$0xff]  }
 0x125   : > { %9300 = vmatpush1.bf16.msra.mxu1 %v17540_v7  ;;  %9151 = vmatprep.subr.bf16.mxu0 %v17557_v15  ;;  %v17626_v7 = vld [vmem:[#allocation2 + $0xfdc] ss:$112 sps:$4 sm:$0xff]   ;;  %v17633_v15 = vld [vmem:[#allocation2 + $0x15f0] ss:$112 sps:$4 sm:$0xff]  }
 0x126   : > { %9301 = vmatprep.subr.bf16.mxu1 %v17548_v12  ;;  %v17627_v12 = vld [vmem:[#allocation2 + $0x1510] ss:$112 sps:$4 sm:$0xff]  }
 0x128   : > { %9152 = vmatpush1.bf16.msra.mxu0 %v17555_v19  ;;  %v17641_v19 = vld [vmem:[#allocation2 + $0x16d4] ss:$112 sps:$4 sm:$0xff]  }
 0x129   : > { %9302 = vmatpush1.bf16.msra.mxu1 %v17546_v13  ;;  %9153 = vmatprep.subr.bf16.mxu0 %v17563_v20  ;;  %v17632_v13 = vld [vmem:[#allocation2 + $0x10bc] ss:$112 sps:$4 sm:$0xff]   ;;  %v17636_v20 = vld [vmem:[#allocation2 + $0x1198] ss:$112 sps:$4 sm:$0xff]  }
 0x12a   : > { %9303 = vmatprep.subr.bf16.mxu1 %v17554_v16  ;;  %v17630_v16 = vld [vmem:[#allocation2 + $0x10b8] ss:$112 sps:$4 sm:$0xff]  }
 0x12c   : > { %9154 = vmatpush1.bf16.msra.mxu0 %v17561_v23  ;;  %v17644_v23 = vld [vmem:[#allocation2 + $0x127c] ss:$112 sps:$4 sm:$0xff]  }
 0x12d   : > { %9304 = vmatpush1.bf16.msra.mxu1 %v17552_v17  ;;  %9155 = vmatprep.subr.bf16.mxu0 %v17569_v25  ;;  %v17638_v17 = vld [vmem:[#allocation2 + $0x119c] ss:$112 sps:$4 sm:$0xff]   ;;  %v17645_v25 = vld [vmem:[#allocation2 + $0x17b0] ss:$112 sps:$4 sm:$0xff]  }
 0x12e   : > { %9305 = vmatprep.subr.bf16.mxu1 %v17560_v21  ;;  %v17639_v21 = vld [vmem:[#allocation2 + $0x16d0] ss:$112 sps:$4 sm:$0xff]  }
 0x130   : > { %9156 = vmatpush1.bf16.msra.mxu0 %v17567_v28  ;;  %v17653_v28 = vld [vmem:[#allocation2 + $0x1894] ss:$112 sps:$4 sm:$0xff]  }
 0x131   : > { %9306 = vmatpush1.bf16.msra.mxu1 %v17558_v22  ;;  %9157 = vmatprep.subr.bf16.mxu0 %v17575_v30  ;;  %v17647_v22 = vld [vmem:[#allocation2 + $0x17b4] ss:$112 sps:$4 sm:$0xff]   ;;  %v17651_v30 = vld [vmem:[#allocation2 + $0x1890] ss:$112 sps:$4 sm:$0xff]  }
 0x132   : > { %9307 = vmatprep.subr.bf16.mxu1 %v17566_v26  ;;  %v17642_v26 = vld [vmem:[#allocation2 + $0x1278] ss:$112 sps:$4 sm:$0xff]  }
 0x134   : > { %9158 = vmatpush1.bf16.msra.mxu0 %v17573_v32  ;;  %v17656_v32 = vld [vmem:[#allocation2 + $0x143c] ss:$112 sps:$4 sm:$0xff]  }
 0x135   : > { %9308 = vmatpush1.bf16.msra.mxu1 %v17564_v27  ;;  %9168 = vmatprep.subr.bf16.mxu0 %v17581_v34  ;;  %v17650_v27 = vld [vmem:[#allocation2 + $0x135c] ss:$112 sps:$4 sm:$0xff]   ;;  %v17657_v34 = vld [vmem:[#allocation2 + $0x1970] ss:$112 sps:$4 sm:$0xff]  }
 0x136   : > { %9309 = vmatprep.subr.bf16.mxu1 %v17572_v31  ;;  %v17648_v31 = vld [vmem:[#allocation2 + $0x1358] ss:$112 sps:$4 sm:$0xff]  }
 0x137   : > { %9160 = vmatmul.mubr.bf16.vlgmr.msra.gmra.mrb[4].mxu0 %v19560_v9 }
 0x138   : > { %9169 = vmatpush1.bf16.msra.mxu0 %v17579_v37  ;;  %9200 = vmatprep.mubr.bf16.mxu0 %v19565_v36  ;;  %v17662_v37 = vld [vmem:[#allocation2 + $0x151c] ss:$112 sps:$4 sm:$0xff]  }
 0x139   : > { %9310 = vmatpush1.bf16.msra.mxu1 %v17570_v33  ;;  %9170 = vmatprep.subr.bf16.mxu0 %v17587_v40  ;;  %v17659_v33 = vld [vmem:[#allocation2 + $0x1974] ss:$112 sps:$4 sm:$0xff]   ;;  %v17660_v40 = vld [vmem:[#allocation2 + $0x1518] ss:$112 sps:$4 sm:$0xff]  }
 0x13a   : > { %9311 = vmatprep.subr.bf16.mxu1 %v17578_v35  ;;  %v17654_v35 = vld [vmem:[#allocation2 + $0x1438] ss:$112 sps:$4 sm:$0xff]  }
 0x13c   : > { %9171 = vmatpush1.bf16.msra.mxu0 %v17585_v42  ;;  %v17671_v42 = vld [vmem:[#allocation2 + $0x1b34] ss:$112 sps:$4 sm:$0xff]  }
 0x13d   : > { %9312 = vmatpush1.bf16.msra.mxu1 %v17576_v38  ;;  %9172 = vmatprep.subr.bf16.mxu0 %v17593_v44  ;;  %v17665_v38 = vld [vmem:[#allocation2 + $0x1a54] ss:$112 sps:$4 sm:$0xff]   ;;  %v17666_v44 = vld [vmem:[#allocation2 + $0x15f8] ss:$112 sps:$4 sm:$0xff]  }
 0x13e   : > { %9313 = vmatprep.subr.bf16.mxu1 %v17584_v39  ;;  %v17663_v39 = vld [vmem:[#allocation2 + $0x1a50] ss:$112 sps:$4 sm:$0xff]  }
 0x140   : > { %9173 = vmatpush1.bf16.msra.mxu0 %v17591_v46  ;;  %v17677_v46 = vld [vmem:[#allocation2 + $0x1c14] ss:$112 sps:$4 sm:$0xff]  }
 0x141   : > { %9314 = vmatpush1.bf16.msra.mxu1 %v17582_v41  ;;  %9174 = vmatprep.subr.bf16.mxu0 %v17599_v48  ;;  %v17668_v41 = vld [vmem:[#allocation2 + $0x15fc] ss:$112 sps:$4 sm:$0xff]   ;;  %v17672_v48 = vld [vmem:[#allocation2 + $0x16d8] ss:$112 sps:$4 sm:$0xff]  }
 0x142   : > { %9315 = vmatprep.subr.bf16.mxu1 %v17590_v43  ;;  %v17669_v43 = vld [vmem:[#allocation2 + $0x1b30] ss:$112 sps:$4 sm:$0xff]  }
 0x144   : > { %9175 = vmatpush1.bf16.msra.mxu0 %v17597_v50  ;;  %v17683_v50 = vld [vmem:[#allocation2 + $0x1cf4] ss:$112 sps:$4 sm:$0xff]  }
 0x145   : > { %9316 = vmatpush1.bf16.msra.mxu1 %v17588_v45  ;;  %9176 = vmatprep.subr.bf16.mxu0 %v17605_v53  ;;  %v17674_v45 = vld [vmem:[#allocation2 + $0x16dc] ss:$112 sps:$4 sm:$0xff]   ;;  %v17678_v53 = vld [vmem:[#allocation2 + $0x17b8] ss:$112 sps:$4 sm:$0xff]  }
 0x146   : > { %9317 = vmatprep.subr.bf16.mxu1 %v17596_v47  ;;  %v17675_v47 = vld [vmem:[#allocation2 + $0x1c10] ss:$112 sps:$4 sm:$0xff]  }
 0x148   : > { %9177 = vmatpush1.bf16.msra.mxu0 %v17603_v56  ;;  %v17689_v56 = vld [vmem:[#allocation2 + $0x1dd4] ss:$112 sps:$4 sm:$0xff]  }
 0x149   : > { %9318 = vmatpush1.bf16.msra.mxu1 %v17594_v49  ;;  %9178 = vmatprep.subr.bf16.mxu0 %v17611_v59  ;;  %v17680_v49 = vld [vmem:[#allocation2 + $0x17bc] ss:$112 sps:$4 sm:$0xff]   ;;  %v17684_v59 = vld [vmem:[#allocation2 + $0x1898] ss:$112 sps:$4 sm:$0xff]  }
 0x14a   : > { %9319 = vmatprep.subr.bf16.mxu1 %v17602_v52  ;;  %v17681_v52 = vld [vmem:[#allocation2 + $0x1cf0] ss:$112 sps:$4 sm:$0xff]  }
 0x14c   : > { %9179 = vmatpush1.bf16.msra.mxu0 %v17609_v61  ;;  %v17695_v61 = vld [vmem:[#allocation2 + $0x1eb4] ss:$112 sps:$4 sm:$0xff]  }
 0x14d   : > { %9320 = vmatpush1.bf16.msra.mxu1 %v17600_v55  ;;  %9180 = vmatprep.subr.bf16.mxu0 %v17617_v62  ;;  %v17686_v55 = vld [vmem:[#allocation2 + $0x189c] ss:$112 sps:$4 sm:$0xff]   ;;  %v17693_v62 = vld [vmem:[#allocation2 + $0x1eb0] ss:$112 sps:$4 sm:$0xff]  }
 0x14e   : > { %9321 = vmatprep.subr.bf16.mxu1 %v17608_v58  ;;  %v17687_v58 = vld [vmem:[#allocation2 + $0x1dd0] ss:$112 sps:$4 sm:$0xff]  }
 0x150   : > { %9181 = vmatpush1.bf16.msra.mxu0 %v17615_v2  ;;  %v17701_v2 = vld [vmem:[#allocation2 + $0x1f94] ss:$112 sps:$4 sm:$0xff]  }
 0x151   : > { %9322 = vmatpush1.bf16.msra.mxu1 %v17606_v60  ;;  %9182 = vmatprep.subr.bf16.mxu0 %v17623_v4  ;;  %v17692_v60 = vld [vmem:[#allocation2 + $0x197c] ss:$112 sps:$4 sm:$0xff]   ;;  %v17696_v4 = vld [vmem:[#allocation2 + $0x1a58] ss:$112 sps:$4 sm:$0xff]  }
 0x152   : > { %9332 = vmatprep.subr.bf16.mxu1 %v17614_v63  ;;  %v17690_v63 = vld [vmem:[#allocation2 + $0x1978] ss:$112 sps:$4 sm:$0xff]  }
 0x154   : > { %9324 = vmatmul.mubr.bf16.vlgmr.msra.gmra.mrb[12].mxu1 %v19560_v9  ;;  %9183 = vmatpush1.bf16.msra.mxu0 %v17621_v6  ;;  %v17707_v6 = vld [vmem:[#allocation2 + $0x2074] ss:$112 sps:$4 sm:$0xff]  }
 0x155   : > { %9333 = vmatpush1.bf16.msra.mxu1 %v17612_v1  ;;  %9364 = vmatprep.mubr.bf16.mxu1 %v19565_v36  ;;  %v17698_v1 = vld [vmem:[#allocation2 + $0x1a5c] ss:$112 sps:$4 sm:$0xff]  }
 0x156   : > { %9334 = vmatprep.subr.bf16.mxu1 %v17620_v3  ;;  %9184 = vmatprep.subr.bf16.mxu0 %v17629_v8  ;;  %v17699_v3 = vld [vmem:[#allocation2 + $0x1f90] ss:$112 sps:$4 sm:$0xff]   ;;  %v17702_v8 = vld [vmem:[#allocation2 + $0x1b38] ss:$112 sps:$4 sm:$0xff]  }
 0x158   : > { %9185 = vmatpush1.bf16.msra.mxu0 %v17627_v12  ;;  %v17713_v12 = vld [vmem:[#allocation2 + $0x2154] ss:$112 sps:$4 sm:$0xff]  }
 0x159   : > { %9335 = vmatpush1.bf16.msra.mxu1 %v17618_v5  ;;  %9186 = vmatprep.subr.bf16.mxu0 %v17635_v14  ;;  %v17704_v5 = vld [vmem:[#allocation2 + $0x1b3c] ss:$112 sps:$4 sm:$0xff]   ;;  %v17708_v14 = vld [vmem:[#allocation2 + $0x1c18] ss:$112 sps:$4 sm:$0xff]  }
 0x15a   : > { %9336 = vmatprep.subr.bf16.mxu1 %v17626_v7  ;;  %v17705_v7 = vld [vmem:[#allocation2 + $0x2070] ss:$112 sps:$4 sm:$0xff]  }
 0x15c   : > { %9187 = vmatpush1.bf16.msra.mxu0 %v17633_v15  ;;  %v17716_v15 = vld [vmem:[#allocation2 + $0x1cfc] ss:$112 sps:$4 sm:$0xff]  }
 0x15d   : > { %9337 = vmatpush1.bf16.msra.mxu1 %v17624_v11  ;;  %9188 = vmatprep.subr.bf16.mxu0 %v17641_v19  ;;  %v17710_v11 = vld [vmem:[#allocation2 + $0x1c1c] ss:$112 sps:$4 sm:$0xff]   ;;  %v17714_v19 = vld [vmem:[#allocation2 + $0x1cf8] ss:$112 sps:$4 sm:$0xff]  }
 0x15e   : > { %9338 = vmatprep.subr.bf16.mxu1 %v17632_v13  ;;  %v17711_v13 = vld [vmem:[#allocation2 + $0x2150] ss:$112 sps:$4 sm:$0xff]  }
 0x160   : > { %9189 = vmatpush1.bf16.msra.mxu0 %v17639_v21  ;;  %v17725_v21 = vld [vmem:[#allocation2 + $0x2314] ss:$112 sps:$4 sm:$0xff]  }
 0x161   : > { %9339 = vmatpush1.bf16.msra.mxu1 %v17630_v16  ;;  %9190 = vmatprep.subr.bf16.mxu0 %v17647_v22  ;;  %v17719_v16 = vld [vmem:[#allocation2 + $0x2234] ss:$112 sps:$4 sm:$0xff]   ;;  %v17723_v22 = vld [vmem:[#allocation2 + $0x2310] ss:$112 sps:$4 sm:$0xff]  }
 0x162   : > { %9340 = vmatprep.subr.bf16.mxu1 %v17638_v17  ;;  %v17717_v17 = vld [vmem:[#allocation2 + $0x2230] ss:$112 sps:$4 sm:$0xff]  }
 0x164   : > { %9191 = vmatpush1.bf16.msra.mxu0 %v17645_v25  ;;  %v17728_v25 = vld [vmem:[#allocation2 + $0x1ebc] ss:$112 sps:$4 sm:$0xff]  }
 0x165   : > { %9341 = vmatpush1.bf16.msra.mxu1 %v17636_v20  ;;  %9192 = vmatprep.subr.bf16.mxu0 %v17653_v28  ;;  %v17722_v20 = vld [vmem:[#allocation2 + $0x1ddc] ss:$112 sps:$4 sm:$0xff]   ;;  %v17726_v28 = vld [vmem:[#allocation2 + $0x1eb8] ss:$112 sps:$4 sm:$0xff]  }
 0x166   : > { %9342 = vmatprep.subr.bf16.mxu1 %v17644_v23  ;;  %v17720_v23 = vld [vmem:[#allocation2 + $0x1dd8] ss:$112 sps:$4 sm:$0xff]  }
 0x168   : > { %9193 = vmatpush1.bf16.msra.mxu0 %v17651_v30  ;;  %v17734_v30 = vld [vmem:[#allocation2 + $0x1f9c] ss:$112 sps:$4 sm:$0xff]  }
 0x169   : > { %9343 = vmatpush1.bf16.msra.mxu1 %v17642_v26  ;;  %9194 = vmatprep.subr.bf16.mxu0 %v17659_v33  ;;  %v17731_v26 = vld [vmem:[#allocation2 + $0x23f4] ss:$112 sps:$4 sm:$0xff]   ;;  %v17732_v33 = vld [vmem:[#allocation2 + $0x1f98] ss:$112 sps:$4 sm:$0xff]  }
 0x16a   : > { %9344 = vmatprep.subr.bf16.mxu1 %v17650_v27  ;;  %v17729_v27 = vld [vmem:[#allocation2 + $0x23f0] ss:$112 sps:$4 sm:$0xff]  }
 0x16c   : > { %9195 = vmatpush1.bf16.msra.mxu0 %v17657_v34  ;;  %v17740_v34 = vld [vmem:[#allocation2 + $0x207c] ss:$112 sps:$4 sm:$0xff]  }
 0x16d   : > { %9345 = vmatpush1.bf16.msra.mxu1 %v17648_v31  ;;  %9196 = vmatprep.subr.bf16.mxu0 %v17665_v38  ;;  %v17737_v31 = vld [vmem:[#allocation2 + $0x24d4] ss:$112 sps:$4 sm:$0xff]   ;;  %v17738_v38 = vld [vmem:[#allocation2 + $0x2078] ss:$112 sps:$4 sm:$0xff]  }
 0x16e   : > { %9346 = vmatprep.subr.bf16.mxu1 %v17656_v32  ;;  %v17735_v32 = vld [vmem:[#allocation2 + $0x24d0] ss:$112 sps:$4 sm:$0xff]  }
 0x170   : > { %9197 = vmatpush1.bf16.msra.mxu0 %v17663_v39  ;;  %v17746_v39 = vld [vmem:[#allocation2 + $0x215c] ss:$112 sps:$4 sm:$0xff]  }
 0x171   : > { %9347 = vmatpush1.bf16.msra.mxu1 %v17654_v35  ;;  %9198 = vmatprep.subr.bf16.mxu0 %v17671_v42  ;;  %v17743_v35 = vld [vmem:[#allocation2 + $0x25b4] ss:$112 sps:$4 sm:$0xff]   ;;  %v17744_v42 = vld [vmem:[#allocation2 + $0x2158] ss:$112 sps:$4 sm:$0xff]  }
 0x172   : > { %9348 = vmatprep.subr.bf16.mxu1 %v17662_v37  ;;  %v17741_v37 = vld [vmem:[#allocation2 + $0x25b0] ss:$112 sps:$4 sm:$0xff]  }
 0x174   : > { %9199 = vmatpush1.bf16.msra.mxu0 %v17669_v43  ;;  %v17752_v43 = vld [vmem:[#allocation2 + $0x223c] ss:$112 sps:$4 sm:$0xff]  }
 0x175   : > { %9349 = vmatpush1.bf16.msra.mxu1 %v17660_v40  ;;  %9209 = vmatprep.subr.bf16.mxu0 %v17677_v46  ;;  %v17749_v40 = vld [vmem:[#allocation2 + $0x2694] ss:$112 sps:$4 sm:$0xff]   ;;  %v17750_v46 = vld [vmem:[#allocation2 + $0x2238] ss:$112 sps:$4 sm:$0xff]  }
 0x176   : > { %9350 = vmatprep.subr.bf16.mxu1 %v17668_v41  ;;  %v17747_v41 = vld [vmem:[#allocation2 + $0x2690] ss:$112 sps:$4 sm:$0xff]  }
 0x177   : > { %9201 = vmatmul.mubr.bf16.vlgmr.msra.gmra.mrb[4].mxu0 %v19570_v18 }
 0x178   : > { %9210 = vmatpush1.bf16.msra.mxu0 %v17675_v47  ;;  %9241 = vmatprep.mubr.bf16.mxu0 %v19573_v24  ;;  %v17758_v47 = vld [vmem:[#allocation2 + $0x231c] ss:$112 sps:$4 sm:$0xff]  }
 0x179   : > { %9351 = vmatpush1.bf16.msra.mxu1 %v17666_v44  ;;  %9211 = vmatprep.subr.bf16.mxu0 %v17683_v50  ;;  %v17755_v44 = vld [vmem:[#allocation2 + $0x2774] ss:$112 sps:$4 sm:$0xff]   ;;  %v17756_v50 = vld [vmem:[#allocation2 + $0x2318] ss:$112 sps:$4 sm:$0xff]  }
 0x17a   : > { %9352 = vmatprep.subr.bf16.mxu1 %v17674_v45  ;;  %v17753_v45 = vld [vmem:[#allocation2 + $0x2770] ss:$112 sps:$4 sm:$0xff]  }
 0x17c   : > { %9212 = vmatpush1.bf16.msra.mxu0 %v17681_v52  ;;  %v17764_v52 = vld [vmem:[#allocation2 + $0x23fc] ss:$112 sps:$4 sm:$0xff]  }
 0x17d   : > { %9353 = vmatpush1.bf16.msra.mxu1 %v17672_v48  ;;  %9213 = vmatprep.subr.bf16.mxu0 %v17689_v56  ;;  %v17761_v48 = vld [vmem:[#allocation2 + $0x2854] ss:$112 sps:$4 sm:$0xff]   ;;  %v17762_v56 = vld [vmem:[#allocation2 + $0x23f8] ss:$112 sps:$4 sm:$0xff]  }
 0x17e   : > { %9354 = vmatprep.subr.bf16.mxu1 %v17680_v49  ;;  %v17759_v49 = vld [vmem:[#allocation2 + $0x2850] ss:$112 sps:$4 sm:$0xff]  }
 0x180   : > { %9214 = vmatpush1.bf16.msra.mxu0 %v17687_v58  ;;  %v17770_v58 = vld [vmem:[#allocation2 + $0x24dc] ss:$112 sps:$4 sm:$0xff]  }
 0x181   : > { %9355 = vmatpush1.bf16.msra.mxu1 %v17678_v53  ;;  %9215 = vmatprep.subr.bf16.mxu0 %v17695_v61  ;;  %v17767_v53 = vld [vmem:[#allocation2 + $0x2934] ss:$112 sps:$4 sm:$0xff]   ;;  %v17768_v61 = vld [vmem:[#allocation2 + $0x24d8] ss:$112 sps:$4 sm:$0xff]  }
 0x182   : > { %9356 = vmatprep.subr.bf16.mxu1 %v17686_v55  ;;  %v17765_v55 = vld [vmem:[#allocation2 + $0x2930] ss:$112 sps:$4 sm:$0xff]  }
 0x184   : > { %9216 = vmatpush1.bf16.msra.mxu0 %v17693_v62  ;;  %v17776_v62 = vld [vmem:[#allocation2 + $0x25bc] ss:$112 sps:$4 sm:$0xff]  }
 0x185   : > { %9357 = vmatpush1.bf16.msra.mxu1 %v17684_v59  ;;  %9217 = vmatprep.subr.bf16.mxu0 %v17701_v2  ;;  %v17773_v59 = vld [vmem:[#allocation2 + $0x24] ss:$112 sps:$4 sm:$0xff]   ;;  %v17774_v2 = vld [vmem:[#allocation2 + $0x25b8] ss:$112 sps:$4 sm:$0xff]  }
 0x186   : > { %9358 = vmatprep.subr.bf16.mxu1 %v17692_v60  ;;  %v17771_v60 = vld [vmem:[#allocation2 + $0x20] ss:$112 sps:$4 sm:$0xff]  }
 0x188   : > { %9218 = vmatpush1.bf16.msra.mxu0 %v17699_v3  ;;  %v17782_v3 = vld [vmem:[#allocation2 + $0x269c] ss:$112 sps:$4 sm:$0xff]  }
 0x189   : > { %9359 = vmatpush1.bf16.msra.mxu1 %v17690_v63  ;;  %9219 = vmatprep.subr.bf16.mxu0 %v17707_v6  ;;  %v17779_v63 = vld [vmem:[#allocation2 + $0x104] ss:$112 sps:$4 sm:$0xff]   ;;  %v17783_v6 = vld [vmem:[#allocation2 + $0x1e0] ss:$112 sps:$4 sm:$0xff]  }
 0x18a   : > { %9360 = vmatprep.subr.bf16.mxu1 %v17698_v1  ;;  %v17777_v1 = vld [vmem:[#allocation2 + $0x100] ss:$112 sps:$4 sm:$0xff]  }
 0x18c   : > { %9220 = vmatpush1.bf16.msra.mxu0 %v17705_v7  ;;  %v17780_v7 = vld [vmem:[#allocation2 + $0x2698] ss:$112 sps:$4 sm:$0xff]  }
 0x18d   : > { %9361 = vmatpush1.bf16.msra.mxu1 %v17696_v4  ;;  %9221 = vmatprep.subr.bf16.mxu0 %v17713_v12  ;;  %v17785_v4 = vld [vmem:[#allocation2 + $0x1e4] ss:$112 sps:$4 sm:$0xff]  }
 0x18e   : > { %9362 = vmatprep.subr.bf16.mxu1 %v17704_v5  ;;  %v1795_v5 = vlaneseq }
 0x190   : > { %9222 = vmatpush1.bf16.msra.mxu0 %v17711_v13  ;;  %v19606_v12 = vshrl.u32 %v1795_v5, 7  ;;  %v17789_v13 = vld [vmem:[#allocation2 + $0x2c0] ss:$112 sps:$4 sm:$0xff]  }
 0x191   : > { %9363 = vmatpush1.bf16.msra.mxu1 %v17702_v8  ;;  %9223 = vmatprep.subr.bf16.mxu0 %v17719_v16  ;;  %v17788_v8 = vld [vmem:[#allocation2 + $0x277c] ss:$112 sps:$4 sm:$0xff]   ;;  %v17797_v16 = vld [vmem:[#allocation2 + $0x3a4] ss:$112 sps:$4 sm:$0xff]   ;;  %v17837_v5 = vld [vmem:[#allocation2 + $0xaa0] ss:$112 sps:$4 sm:$0xff]  }
 0x192   : > { %9373 = vmatprep.subr.bf16.mxu1 %v17710_v11  ;;  %v17791_v11 = vld [vmem:[#allocation2 + $0x2c4] ss:$112 sps:$4 sm:$0xff]  }
 0x194   : > { %9365 = vmatmul.mubr.bf16.vlgmr.msra.gmra.mrb[12].mxu1 %v19570_v18  ;;  %9224 = vmatpush1.bf16.msra.mxu0 %v17717_v17  ;;  %v17795_v17 = vld [vmem:[#allocation2 + $0x3a0] ss:$112 sps:$4 sm:$0xff]  }
 0x195   : > { %9374 = vmatpush1.bf16.msra.mxu1 %v17708_v14  ;;  %9405 = vmatprep.mubr.bf16.mxu1 %v19573_v24  ;;  %v17786_v14 = vld [vmem:[#allocation2 + $0x2778] ss:$112 sps:$4 sm:$0xff]  }
 0x196   : > { %9375 = vmatprep.subr.bf16.mxu1 %v17716_v15  ;;  %9225 = vmatprep.subr.bf16.mxu0 %v17725_v21  ;;  %v17794_v15 = vld [vmem:[#allocation2 + $0x285c] ss:$112 sps:$4 sm:$0xff]   ;;  %v19615_v21 = vsub.s32 1, %v19606_v12 }
 0x198   : > { %9226 = vmatpush1.bf16.msra.mxu0 %v17723_v22  ;;  %v17792_v22 = vld [vmem:[#allocation2 + $0x2858] ss:$112 sps:$4 sm:$0xff]  }
 0x199   : > { %9376 = vmatpush1.bf16.msra.mxu1 %v17714_v19  ;;  %9227 = vmatprep.subr.bf16.mxu0 %v17731_v26  ;;  %v19609_v19 = vsub.s32 0, %v19606_v12 }
 0x19a   : > { %9377 = vmatprep.subr.bf16.mxu1 %v17722_v20  ;;  %v1787_v20 = vld [vmem:[%s21452_s2] sm:$0xff] }
 0x19b   : > { %v1798_v26 = vrot.slane %v1787_v20, %v19609_v19 }
 0x19c   : > { %9228 = vmatpush1.bf16.msra.mxu0 %v17729_v27  ;;  %v1802_v27 = vrot.slane %v1787_v20, %v19615_v21  ;;  %v17851_v20 = vld [vmem:[#allocation2 + $0xc64] ss:$112 sps:$4 sm:$0xff]  }
 0x19d   : > { %9378 = vmatpush1.bf16.msra.mxu1 %v17720_v23  ;;  %9229 = vmatprep.subr.bf16.mxu0 %v17737_v31  ;;  %v17800_v23 = vld [vmem:[#allocation2 + $0x293c] ss:$112 sps:$4 sm:$0xff]   ;;  %v17806_v31 = vld [vmem:[#allocation2 + $0x564] ss:$112 sps:$4 sm:$0xff]  }
 0x19e   : > { %9379 = vmatprep.subr.bf16.mxu1 %v17728_v25  ;;  %v17803_v25 = vld [vmem:[#allocation2 + $0x484] ss:$112 sps:$4 sm:$0xff]  }
 0x1a0   : > { %9230 = vmatpush1.bf16.msra.mxu0 %v17735_v32  ;;  %v17812_v32 = vld [vmem:[#allocation2 + $0x2a1c] ss:$112 sps:$4 sm:$0xff]  }
 0x1a1   : > { %9380 = vmatpush1.bf16.msra.mxu1 %v17726_v28  ;;  %9231 = vmatprep.subr.bf16.mxu0 %v17743_v35  ;;  %v17801_v28 = vld [vmem:[#allocation2 + $0x480] ss:$112 sps:$4 sm:$0xff]  }
 0x1a2   : > { %9381 = vmatprep.subr.bf16.mxu1 %v17734_v30  ;;  %v17798_v30 = vld [vmem:[#allocation2 + $0x2938] ss:$112 sps:$4 sm:$0xff]  }
 0x1a4   : > { %9232 = vmatpush1.bf16.msra.mxu0 %v17741_v37 }
 0x1a5   : > { %9382 = vmatpush1.bf16.msra.mxu1 %v17732_v33  ;;  %9233 = vmatprep.subr.bf16.mxu0 %v17749_v40 }
 0x1a6   : > { %9383 = vmatprep.subr.bf16.mxu1 %v17740_v34 }
 0x1a8   : > { %9234 = vmatpush1.bf16.msra.mxu0 %v17747_v41 }
 0x1a9   : > { %9384 = vmatpush1.bf16.msra.mxu1 %v17738_v38  ;;  %9235 = vmatprep.subr.bf16.mxu0 %v17755_v44 }
 0x1aa   : > { %9385 = vmatprep.subr.bf16.mxu1 %v17746_v39  ;;  %v17804_v39 = vld [vmem:[#allocation2 + $0x560] ss:$112 sps:$4 sm:$0xff]  }
 0x1ac   : > { %9236 = vmatpush1.bf16.msra.mxu0 %v17753_v45  ;;  %v17818_v45 = vld [vmem:[#allocation2 + $0x2c] ss:$112 sps:$4 sm:$0xff]  }
 0x1ad   : > { %9386 = vmatpush1.bf16.msra.mxu1 %v17744_v42  ;;  %9237 = vmatprep.subr.bf16.mxu0 %v17761_v48  ;;  %v17809_v42 = vld [vmem:[#allocation2 + $0x644] ss:$112 sps:$4 sm:$0xff]  }
 0x1ae   : > { %9387 = vmatprep.subr.bf16.mxu1 %v17752_v43  ;;  %v17810_v43 = vld [vmem:[#allocation2 + $0x2a18] ss:$112 sps:$4 sm:$0xff]   ;;  %v17821_v48 = vld [vmem:[#allocation2 + $0x804] ss:$112 sps:$4 sm:$0xff]  }
 0x1b0   : > { %9238 = vmatpush1.bf16.msra.mxu0 %v17759_v49  ;;  %v17819_v49 = vld [vmem:[#allocation2 + $0x800] ss:$112 sps:$4 sm:$0xff]  }
 0x1b1   : > { %9388 = vmatpush1.bf16.msra.mxu1 %v17750_v46  ;;  %9239 = vmatprep.subr.bf16.mxu0 %v17767_v53  ;;  %v17807_v46 = vld [vmem:[#allocation2 + $0x640] ss:$112 sps:$4 sm:$0xff]  }
 0x1b2   : > { %9389 = vmatprep.subr.bf16.mxu1 %v17758_v47  ;;  %v17815_v47 = vld [vmem:[#allocation2 + $0x724] ss:$112 sps:$4 sm:$0xff]  }
 0x1b4   : > { %9240 = vmatpush1.bf16.msra.mxu0 %v17765_v55 }
 0x1b5   : > { %9390 = vmatpush1.bf16.msra.mxu1 %v17756_v50  ;;  %9455 = vmatprep.subr.bf16.mxu0 %v17773_v59  ;;  %v17824_v50 = vld [vmem:[#allocation2 + $0x10c] ss:$112 sps:$4 sm:$0xff]   ;;  %v17822_v59 = vld [vmem:[#allocation2 + $0x108] ss:$112 sps:$4 sm:$0xff]  }
 0x1b6   : > { %9391 = vmatprep.subr.bf16.mxu1 %v17764_v52  ;;  %v17827_v52 = vld [vmem:[#allocation2 + $0x8e4] ss:$112 sps:$4 sm:$0xff]  }
 0x1b7   : > { %9242 = vmatmul.mubr.bf16.vlgmr.msra.gmra.mrb[4].mxu0 %v19580_v29 }
 0x1b8   : > { %9456 = vmatpush1.bf16.msra.mxu0 %v17771_v60  ;;  %9487 = vmatprep.mubr.bf16.mxu0 %v19555_v51  ;;  %v17833_v60 = vld [vmem:[#allocation2 + $0x9c4] ss:$112 sps:$4 sm:$0xff]  }
 0x1b9   : > { %9392 = vmatpush1.bf16.msra.mxu1 %v17762_v56  ;;  %9457 = vmatprep.subr.bf16.mxu0 %v17779_v63  ;;  %v17825_v56 = vld [vmem:[#allocation2 + $0x8e0] ss:$112 sps:$4 sm:$0xff]  }
 0x1ba   : > { %9393 = vmatprep.subr.bf16.mxu1 %v17770_v58  ;;  %v17831_v63 = vld [vmem:[#allocation2 + $0x9c0] ss:$112 sps:$4 sm:$0xff]  }
 0x1bc   : > { %9458 = vmatpush1.bf16.msra.mxu0 %v17777_v1  ;;  %v17828_v1 = vld [vmem:[#allocation2 + $0x1e8] ss:$112 sps:$4 sm:$0xff]  }
 0x1bd   : > { %9394 = vmatpush1.bf16.msra.mxu1 %v17768_v61  ;;  %9459 = vmatprep.subr.bf16.mxu0 %v17785_v4 }
 0x1be   : > { %9395 = vmatprep.subr.bf16.mxu1 %v17776_v62  ;;  %v17830_v62 = vld [vmem:[#allocation2 + $0x1ec] ss:$112 sps:$4 sm:$0xff]  }
 0x1c0   : > { %9460 = vmatpush1.bf16.msra.mxu0 %v17783_v6 }
 0x1c1   : > { %9396 = vmatpush1.bf16.msra.mxu1 %v17774_v2  ;;  %9461 = vmatprep.subr.bf16.mxu0 %v17791_v11  ;;  %v17836_v2 = vld [vmem:[#allocation2 + $0x2cc] ss:$112 sps:$4 sm:$0xff]  }
 0x1c2   : > { %9397 = vmatprep.subr.bf16.mxu1 %v17782_v3  ;;  %v17839_v3 = vld [vmem:[#allocation2 + $0xaa4] ss:$112 sps:$4 sm:$0xff]  }
 0x1c4   : > { %9462 = vmatpush1.bf16.msra.mxu0 %v17789_v13  ;;  %v17842_v13 = vld [vmem:[#allocation2 + $0x3ac] ss:$112 sps:$4 sm:$0xff]  }
 0x1c5   : > { %9398 = vmatpush1.bf16.msra.mxu1 %v17780_v7  ;;  %9463 = vmatprep.subr.bf16.mxu0 %v17797_v16  ;;  %v17834_v7 = vld [vmem:[#allocation2 + $0x2c8] ss:$112 sps:$4 sm:$0xff]  }
 0x1c6   : > { %9399 = vmatprep.subr.bf16.mxu1 %v17788_v8  ;;  %v17845_v8 = vld [vmem:[#allocation2 + $0xb84] ss:$112 sps:$4 sm:$0xff]   ;;  %v17840_v16 = vld [vmem:[#allocation2 + $0x3a8] ss:$112 sps:$4 sm:$0xff]  }
 0x1c8   : > { %9464 = vmatpush1.bf16.msra.mxu0 %v17795_v17  ;;  %v17848_v17 = vld [vmem:[#allocation2 + $0x48c] ss:$112 sps:$4 sm:$0xff]  }
 0x1c9   : > { %9400 = vmatpush1.bf16.msra.mxu1 %v17786_v14  ;;  %9465 = vmatprep.subr.bf16.mxu0 %v17803_v25  ;;  %v17854_v25 = vld [vmem:[#allocation2 + $0x56c] ss:$112 sps:$4 sm:$0xff]  }
 0x1ca   : > { %9401 = vmatprep.subr.bf16.mxu1 %v17794_v15  ;;  %v8915_v33 = vpop.f32.mrb[0].mxu0  ;;  %v17843_v15 = vld [vmem:[#allocation2 + $0xb80] ss:$112 sps:$4 sm:$0xff]  }
 0x1cb   : > { %v16897_v34 = vadd.f32 %v8915_v33, %v1798_v26  ;;  %v8917_v35 = vpop.f32.mrb[1].mxu0  ;;  %v17857_v26 = vld [vmem:[#allocation2 + $0xd44] ss:$112 sps:$4 sm:$0xff]   ;;  %v17858_v33 = vld [vmem:[#allocation2 + $0x648] ss:$112 sps:$4 sm:$0xff]  }
 0x1cc   : > { %v16899_v37 = vadd.f32 %v8917_v35, %v1802_v27  ;;  %v8919_v38 = vpop.f32.mrb[2].mxu0  ;;  %9466 = vmatpush1.bf16.msra.mxu0 %v17801_v28  ;;  %v17855_v27 = vld [vmem:[#allocation2 + $0xd40] ss:$112 sps:$4 sm:$0xff]   ;;  %v17852_v28 = vld [vmem:[#allocation2 + $0x568] ss:$112 sps:$4 sm:$0xff]  }
 0x1cd   : > { %9402 = vmatpush1.bf16.msra.mxu1 %v17792_v22  ;;  %v19620_v40 = vadd.f32 %v16897_v34, %v19589_v54  ;;  %v8920_v41 = vpop.f32.mrb[3].mxu0  ;;  %9467 = vmatprep.subr.bf16.mxu0 %v17806_v31  ;;  %v17813_v54 = vld [vmem:[#allocation2 + $0x720] ss:$112 sps:$4 sm:$0xff]   ;;  %v17863_v31 = vld [vmem:[#allocation2 + $0xe24] ss:$112 sps:$4 sm:$0xff]  }
 0x1ce   : > { %9403 = vmatprep.subr.bf16.mxu1 %v17800_v23  ;;  %v19623_v44 = vadd.f32 %v16899_v37, %v19593_v57  ;;  %v17816_v57 = vld [vmem:[#allocation2 + $0x28] ss:$112 sps:$4 sm:$0xff]   ;;  %v17849_v22 = vld [vmem:[#allocation2 + $0xc60] ss:$112 sps:$4 sm:$0xff]   ;;  %v17866_v34 = vld [vmem:[#allocation2 + $0x72c] ss:$112 sps:$4 sm:$0xff]  }
 0x1cf   : > { %v17846_v23 = vld [vmem:[#allocation2 + $0x488] ss:$112 sps:$4 sm:$0xff]   ;;  %v17869_v35 = vld [vmem:[#allocation2 + $0xf04] ss:$112 sps:$4 sm:$0xff]   ;;  %v17867_v37 = vld [vmem:[#allocation2 + $0xf00] ss:$112 sps:$4 sm:$0xff]  }
 0x1d0   : > { %9468 = vmatpush1.bf16.msra.mxu0 %v17804_v39  ;;  %v17864_v38 = vld [vmem:[#allocation2 + $0x728] ss:$112 sps:$4 sm:$0xff]   ;;  %v17872_v39 = vld [vmem:[#allocation2 + $0x80c] ss:$112 sps:$4 sm:$0xff]   ;;  %v17875_v41 = vld [vmem:[#allocation2 + $0xfe4] ss:$112 sps:$4 sm:$0xff]  }
 0x1d1   : > { %9404 = vmatpush1.bf16.msra.mxu1 %v17798_v30  ;;  %9469 = vmatprep.subr.bf16.mxu0 %v17809_v42  ;;  %v17860_v30 = vld [vmem:[#allocation2 + $0x64c] ss:$112 sps:$4 sm:$0xff]   ;;  %v17873_v42 = vld [vmem:[#allocation2 + $0xfe0] ss:$112 sps:$4 sm:$0xff]  }
 0x1d2   : > { %9414 = vmatprep.subr.bf16.mxu1 %v17812_v32  ;;  %v17861_v32 = vld [vmem:[#allocation2 + $0xe20] ss:$112 sps:$4 sm:$0xff]  }
 0x1d4   : > { %9406 = vmatmul.mubr.bf16.vlgmr.msra.gmra.mrb[12].mxu1 %v19580_v29  ;;  %9470 = vmatpush1.bf16.msra.mxu0 %v17807_v46  ;;  %v17881_v46 = vld [vmem:[#allocation2 + $0x10c4] ss:$112 sps:$4 sm:$0xff]  }
 0x1d5   : > { %9415 = vmatpush1.bf16.msra.mxu1 %v17810_v43  ;;  %9446 = vmatprep.mubr.bf16.mxu1 %v19394_v0  ;;  %v17870_v43 = vld [vmem:[#allocation2 + $0x808] ss:$112 sps:$4 sm:$0xff]  }
 0x1d6   : > { %9619 = vmatprep.subr.bf16.mxu1 %v17818_v45  ;;  %9471 = vmatprep.subr.bf16.mxu0 %v17815_v47  ;;  %v17878_v45 = vld [vmem:[#allocation2 + $0x8ec] ss:$112 sps:$4 sm:$0xff]   ;;  %v17879_v47 = vld [vmem:[#allocation2 + $0x10c0] ss:$112 sps:$4 sm:$0xff]  }
 0x1d8   : > { %9472 = vmatpush1.bf16.msra.mxu0 %v17813_v54  ;;  %v17876_v54 = vld [vmem:[#allocation2 + $0x8e8] ss:$112 sps:$4 sm:$0xff]  }
 0x1d9   : > { %9473 = vmatprep.subr.bf16.mxu0 %v17821_v48  ;;  %v17884_v48 = vld [vmem:[#allocation2 + $0x9cc] ss:$112 sps:$4 sm:$0xff]  }
 0x1dc   : > { %9474 = vmatpush1.bf16.msra.mxu0 %v17819_v49  ;;  %v17887_v49 = vld [vmem:[#allocation2 + $0x11a4] ss:$112 sps:$4 sm:$0xff]  }
 0x1dd   : > { %9475 = vmatprep.subr.bf16.mxu0 %v17827_v52  ;;  %v17890_v52 = vld [vmem:[#allocation2 + $0xaac] ss:$112 sps:$4 sm:$0xff]  }
 0x1df   : > { %v19627_v53 = vpop.f32.mrb[4].mxu1 }
 0x1e0   : > { %16331 = vmatmul.mubr.msk.bf16.vlgmr.msra.gmra.mrb[12].mxu1 %vm8795_vm0, %v19550_v10  ;;  %v19631_v55 = vpop.f32.mrb[5].mxu1  ;;  %9476 = vmatpush1.bf16.msra.mxu0 %v17825_v56  ;;  %v17893_v56 = vld [vmem:[#allocation2 + $0x1284] ss:$112 sps:$4 sm:$0xff]  }
 0x1e1   : > { %9620 = vmatpush1.bf16.msra.mxu1 %v17816_v57  ;;  %v9124_v58 = vpop.f32.mrb[6].mxu1  ;;  %9651 = vmatprep.mubr.bf16.mxu1 %v19555_v51  ;;  %v17882_v57 = vld [vmem:[#allocation2 + $0x9c8] ss:$112 sps:$4 sm:$0xff]  }
 0x1e2   : > { %v9125_v61 = vpop.f32.mrb[7].mxu1  ;;  %9621 = vmatprep.subr.bf16.mxu1 %v17824_v50  ;;  %9477 = vmatprep.subr.bf16.mxu0 %v17833_v60  ;;  %v17885_v50 = vld [vmem:[#allocation2 + $0x11a0] ss:$112 sps:$4 sm:$0xff]   ;;  %v17888_v58 = vld [vmem:[#allocation2 + $0xaa8] ss:$112 sps:$4 sm:$0xff]  }
 0x1e3   : > { %v17896_v60 = vld [vmem:[#allocation2 + $0xb8c] ss:$112 sps:$4 sm:$0xff]   ;;  %v17899_v61 = vld [vmem:[#allocation2 + $0x1364] ss:$112 sps:$4 sm:$0xff]  }
 0x1e4   : > { %9478 = vmatpush1.bf16.msra.mxu0 %v17831_v63  ;;  %v17897_v63 = vld [vmem:[#allocation2 + $0x1360] ss:$112 sps:$4 sm:$0xff]  }
 0x1e5   : > { %9622 = vmatpush1.bf16.msra.mxu1 %v17822_v59  ;;  %9479 = vmatprep.subr.bf16.mxu0 %v17839_v3  ;;  %v17891_v59 = vld [vmem:[#allocation2 + $0x1280] ss:$112 sps:$4 sm:$0xff]   ;;  %v17900_v3 = vld [vmem:[#allocation2 + $0xc68] ss:$112 sps:$4 sm:$0xff]  }
 0x1e6   : > { %9623 = vmatprep.subr.bf16.mxu1 %v17830_v62  ;;  %v17894_v62 = vld [vmem:[#allocation2 + $0xb88] ss:$112 sps:$4 sm:$0xff]  }
 0x1e7   : > { %v19634_v4 = vpop.f32.mrb[8].mxu1 }
 0x1e8   : > { %v19636_v6 = vpop.f32.mrb[9].mxu1  ;;  %9480 = vmatpush1.bf16.msra.mxu0 %v17837_v5  ;;  %v17903_v5 = vld [vmem:[#allocation2 + $0x1440] ss:$112 sps:$4 sm:$0xff]  }
 0x1e9   : > { %9624 = vmatpush1.bf16.msra.mxu1 %v17828_v1  ;;  %v9288_v11 = vpop.f32.mrb[10].mxu1  ;;  %9481 = vmatprep.subr.bf16.mxu0 %v17845_v8  ;;  %v17905_v1 = vld [vmem:[#allocation2 + $0x1444] ss:$112 sps:$4 sm:$0xff]  }
 0x1ea   : > { %9625 = vmatprep.subr.bf16.mxu1 %v17836_v2  ;;  %v9289_v14 = vpop.f32.mrb[11].mxu1  ;;  %v17902_v2 = vld [vmem:[#allocation2 + $0xc6c] ss:$112 sps:$4 sm:$0xff]   ;;  %v17911_v8 = vld [vmem:[#allocation2 + $0x1524] ss:$112 sps:$4 sm:$0xff]  }
 0x1eb   : > { %v17906_v11 = vld [vmem:[#allocation2 + $0xd48] ss:$112 sps:$4 sm:$0xff]   ;;  %v17914_v14 = vld [vmem:[#allocation2 + $0xe2c] ss:$112 sps:$4 sm:$0xff]  }
 0x1ec   : > { %9482 = vmatpush1.bf16.msra.mxu0 %v17843_v15  ;;  %v17917_v15 = vld [vmem:[#allocation2 + $0x1604] ss:$112 sps:$4 sm:$0xff]  }
 0x1ed   : > { %9626 = vmatpush1.bf16.msra.mxu1 %v17834_v7  ;;  %9483 = vmatprep.subr.bf16.mxu0 %v17851_v20  ;;  %v17908_v7 = vld [vmem:[#allocation2 + $0xd4c] ss:$112 sps:$4 sm:$0xff]  }
 0x1ee   : > { %9627 = vmatprep.subr.bf16.mxu1 %v17842_v13  ;;  %v17909_v13 = vld [vmem:[#allocation2 + $0x1520] ss:$112 sps:$4 sm:$0xff]   ;;  %v17920_v20 = vld [vmem:[#allocation2 + $0xf0c] ss:$112 sps:$4 sm:$0xff]  }
 0x1f0   : > { %9484 = vmatpush1.bf16.msra.mxu0 %v17849_v22  ;;  %v17923_v22 = vld [vmem:[#allocation2 + $0x16e4] ss:$112 sps:$4 sm:$0xff]  }
 0x1f1   : > { %9628 = vmatpush1.bf16.msra.mxu1 %v17840_v16  ;;  %9485 = vmatprep.subr.bf16.mxu0 %v17857_v26  ;;  %v17912_v16 = vld [vmem:[#allocation2 + $0xe28] ss:$112 sps:$4 sm:$0xff]   ;;  %v17926_v26 = vld [vmem:[#allocation2 + $0xfec] ss:$112 sps:$4 sm:$0xff]  }
 0x1f2   : > { %9629 = vmatprep.subr.bf16.mxu1 %v17848_v17  ;;  %v17915_v17 = vld [vmem:[#allocation2 + $0x1600] ss:$112 sps:$4 sm:$0xff]  }
 0x1f4   : > { %9486 = vmatpush1.bf16.msra.mxu0 %v17855_v27  ;;  %v17929_v27 = vld [vmem:[#allocation2 + $0x17c4] ss:$112 sps:$4 sm:$0xff]  }
 0x1f5   : > { %9630 = vmatpush1.bf16.msra.mxu1 %v17846_v23  ;;  %9496 = vmatprep.subr.bf16.mxu0 %v17863_v31  ;;  %v17918_v23 = vld [vmem:[#allocation2 + $0xf08] ss:$112 sps:$4 sm:$0xff]   ;;  %v17932_v31 = vld [vmem:[#allocation2 + $0x10cc] ss:$112 sps:$4 sm:$0xff]  }
 0x1f6   : > { %9631 = vmatprep.subr.bf16.mxu1 %v17854_v25  ;;  %v17921_v25 = vld [vmem:[#allocation2 + $0x16e0] ss:$112 sps:$4 sm:$0xff]  }
 0x1f7   : > { %9488 = vmatmul.mubr.bf16.vlgmr.msra.gmra.mrb[8].mxu0 %v19560_v9 }
 0x1f8   : > { %9497 = vmatpush1.bf16.msra.mxu0 %v17861_v32  ;;  %9528 = vmatprep.mubr.bf16.mxu0 %v19565_v36  ;;  %v17935_v32 = vld [vmem:[#allocation2 + $0x18a4] ss:$112 sps:$4 sm:$0xff]  }
 0x1f9   : > { %9632 = vmatpush1.bf16.msra.mxu1 %v17852_v28  ;;  %9498 = vmatprep.subr.bf16.mxu0 %v17869_v35  ;;  %v17924_v28 = vld [vmem:[#allocation2 + $0xfe8] ss:$112 sps:$4 sm:$0xff]   ;;  %v17938_v35 = vld [vmem:[#allocation2 + $0x11ac] ss:$112 sps:$4 sm:$0xff]  }
 0x1fa   : > { %9633 = vmatprep.subr.bf16.mxu1 %v17860_v30  ;;  %v17927_v30 = vld [vmem:[#allocation2 + $0x17c0] ss:$112 sps:$4 sm:$0xff]  }
 0x1fc   : > { %9499 = vmatpush1.bf16.msra.mxu0 %v17867_v37  ;;  %v17941_v37 = vld [vmem:[#allocation2 + $0x1984] ss:$112 sps:$4 sm:$0xff]  }
 0x1fd   : > { %9634 = vmatpush1.bf16.msra.mxu1 %v17858_v33  ;;  %9500 = vmatprep.subr.bf16.mxu0 %v17875_v41  ;;  %v17933_v33 = vld [vmem:[#allocation2 + $0x18a0] ss:$112 sps:$4 sm:$0xff]   ;;  %v17944_v41 = vld [vmem:[#allocation2 + $0x128c] ss:$112 sps:$4 sm:$0xff]  }
 0x1fe   : > { %9635 = vmatprep.subr.bf16.mxu1 %v17866_v34  ;;  %v17930_v34 = vld [vmem:[#allocation2 + $0x10c8] ss:$112 sps:$4 sm:$0xff]  }
 0x200   : > { %9501 = vmatpush1.bf16.msra.mxu0 %v17873_v42  ;;  %v17947_v42 = vld [vmem:[#allocation2 + $0x1a64] ss:$112 sps:$4 sm:$0xff]  }
 0x201   : > { %9636 = vmatpush1.bf16.msra.mxu1 %v17864_v38  ;;  %9502 = vmatprep.subr.bf16.mxu0 %v17881_v46  ;;  %v17939_v38 = vld [vmem:[#allocation2 + $0x1980] ss:$112 sps:$4 sm:$0xff]   ;;  %v17950_v46 = vld [vmem:[#allocation2 + $0x136c] ss:$112 sps:$4 sm:$0xff]  }
 0x202   : > { %9637 = vmatprep.subr.bf16.mxu1 %v17872_v39  ;;  %v17936_v39 = vld [vmem:[#allocation2 + $0x11a8] ss:$112 sps:$4 sm:$0xff]  }
 0x204   : > { %9503 = vmatpush1.bf16.msra.mxu0 %v17879_v47  ;;  %v17953_v47 = vld [vmem:[#allocation2 + $0x1b44] ss:$112 sps:$4 sm:$0xff]  }
 0x205   : > { %9638 = vmatpush1.bf16.msra.mxu1 %v17870_v43  ;;  %9504 = vmatprep.subr.bf16.mxu0 %v17887_v49  ;;  %v17945_v43 = vld [vmem:[#allocation2 + $0x1a60] ss:$112 sps:$4 sm:$0xff]   ;;  %v17959_v49 = vld [vmem:[#allocation2 + $0x1c24] ss:$112 sps:$4 sm:$0xff]  }
 0x206   : > { %9639 = vmatprep.subr.bf16.mxu1 %v17878_v45  ;;  %v17942_v45 = vld [vmem:[#allocation2 + $0x1288] ss:$112 sps:$4 sm:$0xff]  }
 0x208   : > { %9505 = vmatpush1.bf16.msra.mxu0 %v17885_v50  ;;  %v17957_v50 = vld [vmem:[#allocation2 + $0x1c20] ss:$112 sps:$4 sm:$0xff]  }
 0x209   : > { %9640 = vmatpush1.bf16.msra.mxu1 %v17876_v54  ;;  %9506 = vmatprep.subr.bf16.mxu0 %v17893_v56  ;;  %v17948_v54 = vld [vmem:[#allocation2 + $0x1368] ss:$112 sps:$4 sm:$0xff]   ;;  %v17962_v56 = vld [vmem:[#allocation2 + $0x152c] ss:$112 sps:$4 sm:$0xff]  }
 0x20a   : > { %9641 = vmatprep.subr.bf16.mxu1 %v17884_v48  ;;  %v17951_v48 = vld [vmem:[#allocation2 + $0x1b40] ss:$112 sps:$4 sm:$0xff]  }
 0x20c   : > { %9507 = vmatpush1.bf16.msra.mxu0 %v17891_v59  ;;  %v17963_v59 = vld [vmem:[#allocation2 + $0x1d00] ss:$112 sps:$4 sm:$0xff]  }
 0x20d   : > { %9642 = vmatpush1.bf16.msra.mxu1 %v17882_v57  ;;  %9508 = vmatprep.subr.bf16.mxu0 %v17899_v61  ;;  %v17956_v57 = vld [vmem:[#allocation2 + $0x144c] ss:$112 sps:$4 sm:$0xff]  }
 0x20e   : > { %9643 = vmatprep.subr.bf16.mxu1 %v17890_v52  ;;  %v17954_v52 = vld [vmem:[#allocation2 + $0x1448] ss:$112 sps:$4 sm:$0xff]   ;;  %v17968_v61 = vld [vmem:[#allocation2 + $0x160c] ss:$112 sps:$4 sm:$0xff]  }
 0x210   : > { %9509 = vmatpush1.bf16.msra.mxu0 %v17897_v63  ;;  %v17969_v63 = vld [vmem:[#allocation2 + $0x1de0] ss:$112 sps:$4 sm:$0xff]  }
 0x211   : > { %9644 = vmatpush1.bf16.msra.mxu1 %v17888_v58  ;;  %9510 = vmatprep.subr.bf16.mxu0 %v17905_v1  ;;  %v17965_v58 = vld [vmem:[#allocation2 + $0x1d04] ss:$112 sps:$4 sm:$0xff]   ;;  %v17966_v1 = vld [vmem:[#allocation2 + $0x1608] ss:$112 sps:$4 sm:$0xff]  }
 0x212   : > { %9645 = vmatprep.subr.bf16.mxu1 %v17896_v60  ;;  %v17960_v60 = vld [vmem:[#allocation2 + $0x1528] ss:$112 sps:$4 sm:$0xff]  }
 0x214   : > { %9511 = vmatpush1.bf16.msra.mxu0 %v17903_v5  ;;  %v17975_v5 = vld [vmem:[#allocation2 + $0x1ec0] ss:$112 sps:$4 sm:$0xff]  }
 0x215   : > { %9646 = vmatpush1.bf16.msra.mxu1 %v17894_v62  ;;  %9512 = vmatprep.subr.bf16.mxu0 %v17911_v8  ;;  %v17971_v62 = vld [vmem:[#allocation2 + $0x1de4] ss:$112 sps:$4 sm:$0xff]   ;;  %v17980_v8 = vld [vmem:[#allocation2 + $0x17cc] ss:$112 sps:$4 sm:$0xff]  }
 0x216   : > { %9647 = vmatprep.subr.bf16.mxu1 %v17902_v2  ;;  %v17974_v2 = vld [vmem:[#allocation2 + $0x16ec] ss:$112 sps:$4 sm:$0xff]  }
 0x218   : > { %9513 = vmatpush1.bf16.msra.mxu0 %v17909_v13  ;;  %v17981_v13 = vld [vmem:[#allocation2 + $0x1fa0] ss:$112 sps:$4 sm:$0xff]  }
 0x219   : > { %9648 = vmatpush1.bf16.msra.mxu1 %v17900_v3  ;;  %9514 = vmatprep.subr.bf16.mxu0 %v17917_v15  ;;  %v17977_v3 = vld [vmem:[#allocation2 + $0x1ec4] ss:$112 sps:$4 sm:$0xff]   ;;  %v17986_v15 = vld [vmem:[#allocation2 + $0x18ac] ss:$112 sps:$4 sm:$0xff]  }
 0x21a   : > { %9649 = vmatprep.subr.bf16.mxu1 %v17908_v7  ;;  %v17972_v7 = vld [vmem:[#allocation2 + $0x16e8] ss:$112 sps:$4 sm:$0xff]  }
 0x21c   : > { %9515 = vmatpush1.bf16.msra.mxu0 %v17915_v17  ;;  %v17987_v17 = vld [vmem:[#allocation2 + $0x2080] ss:$112 sps:$4 sm:$0xff]  }
 0x21d   : > { %9650 = vmatpush1.bf16.msra.mxu1 %v17906_v11  ;;  %9516 = vmatprep.subr.bf16.mxu0 %v17923_v22  ;;  %v17983_v11 = vld [vmem:[#allocation2 + $0x1fa4] ss:$112 sps:$4 sm:$0xff]   ;;  %v17992_v22 = vld [vmem:[#allocation2 + $0x198c] ss:$112 sps:$4 sm:$0xff]  }
 0x21e   : > { %9660 = vmatprep.subr.bf16.mxu1 %v17914_v14  ;;  %v17978_v14 = vld [vmem:[#allocation2 + $0x17c8] ss:$112 sps:$4 sm:$0xff]  }
 0x220   : > { %9652 = vmatmul.mubr.bf16.vlgmr.msra.gmra.mrb[16].mxu1 %v19560_v9  ;;  %9517 = vmatpush1.bf16.msra.mxu0 %v17921_v25  ;;  %v17993_v25 = vld [vmem:[#allocation2 + $0x2160] ss:$112 sps:$4 sm:$0xff]  }
 0x221   : > { %9661 = vmatpush1.bf16.msra.mxu1 %v17912_v16  ;;  %9692 = vmatprep.mubr.bf16.mxu1 %v19565_v36  ;;  %v17989_v16 = vld [vmem:[#allocation2 + $0x2084] ss:$112 sps:$4 sm:$0xff]  }
 0x222   : > { %9662 = vmatprep.subr.bf16.mxu1 %v17920_v20  ;;  %9518 = vmatprep.subr.bf16.mxu0 %v17929_v27  ;;  %v17984_v20 = vld [vmem:[#allocation2 + $0x18a8] ss:$112 sps:$4 sm:$0xff]   ;;  %v17998_v27 = vld [vmem:[#allocation2 + $0x1a6c] ss:$112 sps:$4 sm:$0xff]  }
 0x224   : > { %9519 = vmatpush1.bf16.msra.mxu0 %v17927_v30  ;;  %v17999_v30 = vld [vmem:[#allocation2 + $0x2240] ss:$112 sps:$4 sm:$0xff]  }
 0x225   : > { %9663 = vmatpush1.bf16.msra.mxu1 %v17918_v23  ;;  %9520 = vmatprep.subr.bf16.mxu0 %v17935_v32  ;;  %v17995_v23 = vld [vmem:[#allocation2 + $0x2164] ss:$112 sps:$4 sm:$0xff]   ;;  %v18004_v32 = vld [vmem:[#allocation2 + $0x1b4c] ss:$112 sps:$4 sm:$0xff]  }
 0x226   : > { %9664 = vmatprep.subr.bf16.mxu1 %v17926_v26  ;;  %v17990_v26 = vld [vmem:[#allocation2 + $0x1988] ss:$112 sps:$4 sm:$0xff]  }
 0x228   : > { %9521 = vmatpush1.bf16.msra.mxu0 %v17933_v33  ;;  %v18007_v33 = vld [vmem:[#allocation2 + $0x2324] ss:$112 sps:$4 sm:$0xff]  }
 0x229   : > { %9665 = vmatpush1.bf16.msra.mxu1 %v17924_v28  ;;  %9522 = vmatprep.subr.bf16.mxu0 %v17941_v37  ;;  %v18001_v28 = vld [vmem:[#allocation2 + $0x2244] ss:$112 sps:$4 sm:$0xff]   ;;  %v18010_v37 = vld [vmem:[#allocation2 + $0x1c2c] ss:$112 sps:$4 sm:$0xff]  }
 0x22a   : > { %9666 = vmatprep.subr.bf16.mxu1 %v17932_v31  ;;  %v17996_v31 = vld [vmem:[#allocation2 + $0x1a68] ss:$112 sps:$4 sm:$0xff]  }
 0x22c   : > { %9523 = vmatpush1.bf16.msra.mxu0 %v17939_v38  ;;  %v18013_v38 = vld [vmem:[#allocation2 + $0x2404] ss:$112 sps:$4 sm:$0xff]  }
 0x22d   : > { %9667 = vmatpush1.bf16.msra.mxu1 %v17930_v34  ;;  %9524 = vmatprep.subr.bf16.mxu0 %v17947_v42  ;;  %v18005_v34 = vld [vmem:[#allocation2 + $0x2320] ss:$112 sps:$4 sm:$0xff]   ;;  %v18016_v42 = vld [vmem:[#allocation2 + $0x1d0c] ss:$112 sps:$4 sm:$0xff]  }
 0x22e   : > { %9668 = vmatprep.subr.bf16.mxu1 %v17938_v35  ;;  %v18002_v35 = vld [vmem:[#allocation2 + $0x1b48] ss:$112 sps:$4 sm:$0xff]  }
 0x230   : > { %9525 = vmatpush1.bf16.msra.mxu0 %v17945_v43  ;;  %v18019_v43 = vld [vmem:[#allocation2 + $0x24e4] ss:$112 sps:$4 sm:$0xff]  }
 0x231   : > { %9669 = vmatpush1.bf16.msra.mxu1 %v17936_v39  ;;  %9526 = vmatprep.subr.bf16.mxu0 %v17953_v47  ;;  %v18011_v39 = vld [vmem:[#allocation2 + $0x2400] ss:$112 sps:$4 sm:$0xff]   ;;  %v18022_v47 = vld [vmem:[#allocation2 + $0x1dec] ss:$112 sps:$4 sm:$0xff]  }
 0x232   : > { %9670 = vmatprep.subr.bf16.mxu1 %v17944_v41  ;;  %v18008_v41 = vld [vmem:[#allocation2 + $0x1c28] ss:$112 sps:$4 sm:$0xff]  }
 0x234   : > { %9527 = vmatpush1.bf16.msra.mxu0 %v17951_v48  ;;  %v18023_v48 = vld [vmem:[#allocation2 + $0x25c0] ss:$112 sps:$4 sm:$0xff]  }
 0x235   : > { %9671 = vmatpush1.bf16.msra.mxu1 %v17942_v45  ;;  %9537 = vmatprep.subr.bf16.mxu0 %v17959_v49  ;;  %v18017_v45 = vld [vmem:[#allocation2 + $0x24e0] ss:$112 sps:$4 sm:$0xff]   ;;  %v18020_v49 = vld [vmem:[#allocation2 + $0x1de8] ss:$112 sps:$4 sm:$0xff]  }
 0x236   : > { %9672 = vmatprep.subr.bf16.mxu1 %v17950_v46  ;;  %v18014_v46 = vld [vmem:[#allocation2 + $0x1d08] ss:$112 sps:$4 sm:$0xff]  }
 0x237   : > { %9529 = vmatmul.mubr.bf16.vlgmr.msra.gmra.mrb[8].mxu0 %v19570_v18 }
 0x238   : > { %9538 = vmatpush1.bf16.msra.mxu0 %v17957_v50  ;;  %9569 = vmatprep.mubr.bf16.mxu0 %v19573_v24  ;;  %v18031_v50 = vld [vmem:[#allocation2 + $0x26a4] ss:$112 sps:$4 sm:$0xff]  }
 0x239   : > { %9673 = vmatpush1.bf16.msra.mxu1 %v17948_v54  ;;  %9539 = vmatprep.subr.bf16.mxu0 %v17965_v58  ;;  %v18025_v54 = vld [vmem:[#allocation2 + $0x25c4] ss:$112 sps:$4 sm:$0xff]   ;;  %v18034_v58 = vld [vmem:[#allocation2 + $0x1fac] ss:$112 sps:$4 sm:$0xff]  }
 0x23a   : > { %9674 = vmatprep.subr.bf16.mxu1 %v17956_v57  ;;  %v18028_v57 = vld [vmem:[#allocation2 + $0x1ecc] ss:$112 sps:$4 sm:$0xff]  }
 0x23c   : > { %9540 = vmatpush1.bf16.msra.mxu0 %v17963_v59  ;;  %v18037_v59 = vld [vmem:[#allocation2 + $0x2784] ss:$112 sps:$4 sm:$0xff]  }
 0x23d   : > { %9675 = vmatpush1.bf16.msra.mxu1 %v17954_v52  ;;  %9541 = vmatprep.subr.bf16.mxu0 %v17971_v62  ;;  %v18029_v52 = vld [vmem:[#allocation2 + $0x26a0] ss:$112 sps:$4 sm:$0xff]   ;;  %v18040_v62 = vld [vmem:[#allocation2 + $0x208c] ss:$112 sps:$4 sm:$0xff]  }
 0x23e   : > { %9676 = vmatprep.subr.bf16.mxu1 %v17962_v56  ;;  %v18026_v56 = vld [vmem:[#allocation2 + $0x1ec8] ss:$112 sps:$4 sm:$0xff]  }
 0x240   : > { %9542 = vmatpush1.bf16.msra.mxu0 %v17969_v63  ;;  %v18043_v63 = vld [vmem:[#allocation2 + $0x2864] ss:$112 sps:$4 sm:$0xff]  }
 0x241   : > { %9677 = vmatpush1.bf16.msra.mxu1 %v17960_v60  ;;  %9543 = vmatprep.subr.bf16.mxu0 %v17977_v3  ;;  %v18035_v60 = vld [vmem:[#allocation2 + $0x2780] ss:$112 sps:$4 sm:$0xff]   ;;  %v18046_v3 = vld [vmem:[#allocation2 + $0x216c] ss:$112 sps:$4 sm:$0xff]  }
 0x242   : > { %9678 = vmatprep.subr.bf16.mxu1 %v17968_v61  ;;  %v18032_v61 = vld [vmem:[#allocation2 + $0x1fa8] ss:$112 sps:$4 sm:$0xff]  }
 0x244   : > { %9544 = vmatpush1.bf16.msra.mxu0 %v17975_v5  ;;  %v18049_v5 = vld [vmem:[#allocation2 + $0x2944] ss:$112 sps:$4 sm:$0xff]  }
 0x245   : > { %9679 = vmatpush1.bf16.msra.mxu1 %v17966_v1  ;;  %9545 = vmatprep.subr.bf16.mxu0 %v17983_v11  ;;  %v18041_v1 = vld [vmem:[#allocation2 + $0x2860] ss:$112 sps:$4 sm:$0xff]   ;;  %v18052_v11 = vld [vmem:[#allocation2 + $0x224c] ss:$112 sps:$4 sm:$0xff]  }
 0x246   : > { %9680 = vmatprep.subr.bf16.mxu1 %v17974_v2  ;;  %v18038_v2 = vld [vmem:[#allocation2 + $0x2088] ss:$112 sps:$4 sm:$0xff]  }
 0x248   : > { %9546 = vmatpush1.bf16.msra.mxu0 %v17981_v13  ;;  %v18055_v13 = vld [vmem:[#allocation2 + $0x2a24] ss:$112 sps:$4 sm:$0xff]  }
 0x249   : > { %9681 = vmatpush1.bf16.msra.mxu1 %v17972_v7  ;;  %9547 = vmatprep.subr.bf16.mxu0 %v17989_v16  ;;  %v18047_v7 = vld [vmem:[#allocation2 + $0x2940] ss:$112 sps:$4 sm:$0xff]   ;;  %v18058_v16 = vld [vmem:[#allocation2 + $0x232c] ss:$112 sps:$4 sm:$0xff]  }
 0x24a   : > { %9682 = vmatprep.subr.bf16.mxu1 %v17980_v8  ;;  %v18044_v8 = vld [vmem:[#allocation2 + $0x2168] ss:$112 sps:$4 sm:$0xff]  }
 0x24c   : > { %9548 = vmatpush1.bf16.msra.mxu0 %v17987_v17  ;;  %v18067_v17 = vld [vmem:[#allocation2 + $0x34] ss:$112 sps:$4 sm:$0xff]  }
 0x24d   : > { %9683 = vmatpush1.bf16.msra.mxu1 %v17978_v14  ;;  %9549 = vmatprep.subr.bf16.mxu0 %v17995_v23  ;;  %v18053_v14 = vld [vmem:[#allocation2 + $0x2a20] ss:$112 sps:$4 sm:$0xff]   ;;  %v18059_v23 = vld [vmem:[#allocation2 + $0x2408] ss:$112 sps:$4 sm:$0xff]  }
 0x24e   : > { %9684 = vmatprep.subr.bf16.mxu1 %v17986_v15  ;;  %v18050_v15 = vld [vmem:[#allocation2 + $0x2248] ss:$112 sps:$4 sm:$0xff]  }
 0x250   : > { %9550 = vmatpush1.bf16.msra.mxu0 %v17993_v25  ;;  %v18064_v25 = vld [vmem:[#allocation2 + $0x24ec] ss:$112 sps:$4 sm:$0xff]  }
 0x251   : > { %9685 = vmatpush1.bf16.msra.mxu1 %v17984_v20  ;;  %9551 = vmatprep.subr.bf16.mxu0 %v18001_v28  ;;  %v18056_v20 = vld [vmem:[#allocation2 + $0x2328] ss:$112 sps:$4 sm:$0xff]   ;;  %v18070_v28 = vld [vmem:[#allocation2 + $0x25cc] ss:$112 sps:$4 sm:$0xff]  }
 0x252   : > { %9686 = vmatprep.subr.bf16.mxu1 %v17992_v22  ;;  %v18061_v22 = vld [vmem:[#allocation2 + $0x240c] ss:$112 sps:$4 sm:$0xff]  }
 0x254   : > { %9552 = vmatpush1.bf16.msra.mxu0 %v17999_v30  ;;  %v18073_v30 = vld [vmem:[#allocation2 + $0x114] ss:$112 sps:$4 sm:$0xff]  }
 0x255   : > { %9687 = vmatpush1.bf16.msra.mxu1 %v17990_v26  ;;  %9553 = vmatprep.subr.bf16.mxu0 %v18007_v33  ;;  %v18065_v26 = vld [vmem:[#allocation2 + $0x30] ss:$112 sps:$4 sm:$0xff]   ;;  %v19654_v33 = vsub.s32 5, %v19606_v12 }
 0x256   : > { %9688 = vmatprep.subr.bf16.mxu1 %v17998_v27  ;;  %v18062_v27 = vld [vmem:[#allocation2 + $0x24e8] ss:$112 sps:$4 sm:$0xff]  }
 0x258   : > { %9554 = vmatpush1.bf16.msra.mxu0 %v18005_v34  ;;  %v18068_v34 = vld [vmem:[#allocation2 + $0x25c8] ss:$112 sps:$4 sm:$0xff]  }
 0x259   : > { %9689 = vmatpush1.bf16.msra.mxu1 %v17996_v31  ;;  %9555 = vmatprep.subr.bf16.mxu0 %v18013_v38  ;;  %v19651_v31 = vsub.s32 4, %v19606_v12  ;;  %v19660_v38 = vld [vmem:[%s21452_s2] sm:$0xff] }
 0x25a   : > { %9690 = vmatprep.subr.bf16.mxu1 %v18004_v32  ;;  %v18071_v32 = vld [vmem:[#allocation2 + $0x110] ss:$112 sps:$4 sm:$0xff]  }
 0x25c   : > { %9556 = vmatpush1.bf16.msra.mxu0 %v18011_v39  ;;  %v1814_v39 = vrot.slane %v19660_v38, %v19651_v31 }
 0x25d   : > { %9691 = vmatpush1.bf16.msra.mxu1 %v18002_v35  ;;  %9557 = vmatprep.subr.bf16.mxu0 %v18019_v43  ;;  %v18076_v35 = vld [vmem:[#allocation2 + $0x26ac] ss:$112 sps:$4 sm:$0xff]   ;;  %v18074_v43 = vld [vmem:[#allocation2 + $0x26a8] ss:$112 sps:$4 sm:$0xff]  }
 0x25e   : > { %9701 = vmatprep.subr.bf16.mxu1 %v18010_v37  ;;  %v18079_v37 = vld [vmem:[#allocation2 + $0x1f4] ss:$112 sps:$4 sm:$0xff]  }
 0x260   : > { %9693 = vmatmul.mubr.bf16.vlgmr.msra.gmra.mrb[16].mxu1 %v19570_v18  ;;  %9558 = vmatpush1.bf16.msra.mxu0 %v18017_v45  ;;  %v18082_v45 = vld [vmem:[#allocation2 + $0x278c] ss:$112 sps:$4 sm:$0xff]  }
 0x261   : > { %9702 = vmatpush1.bf16.msra.mxu1 %v18008_v41  ;;  %9733 = vmatprep.mubr.bf16.mxu1 %v19573_v24  ;;  %v18077_v41 = vld [vmem:[#allocation2 + $0x1f0] ss:$112 sps:$4 sm:$0xff]  }
 0x262   : > { %9703 = vmatprep.subr.bf16.mxu1 %v18016_v42  ;;  %9559 = vmatprep.subr.bf16.mxu0 %v18025_v54  ;;  %v1818_v42 = vrot.slane %v19660_v38, %v19654_v33 }
 0x264   : > { %9560 = vmatpush1.bf16.msra.mxu0 %v18023_v48 }
 0x265   : > { %9704 = vmatpush1.bf16.msra.mxu1 %v18014_v46  ;;  %9561 = vmatprep.subr.bf16.mxu0 %v18031_v50  ;;  %v18085_v46 = vld [vmem:[#allocation2 + $0x2d4] ss:$112 sps:$4 sm:$0xff]   ;;  %v18083_v50 = vld [vmem:[#allocation2 + $0x2d0] ss:$112 sps:$4 sm:$0xff]  }
 0x266   : > { %9705 = vmatprep.subr.bf16.mxu1 %v18022_v47 }
 0x268   : > { %9562 = vmatpush1.bf16.msra.mxu0 %v18029_v52 }
 0x269   : > { %9706 = vmatpush1.bf16.msra.mxu1 %v18020_v49  ;;  %9563 = vmatprep.subr.bf16.mxu0 %v18037_v59  ;;  %v18091_v59 = vld [vmem:[#allocation2 + $0x3b4] ss:$112 sps:$4 sm:$0xff]  }
 0x26a   : > { %9707 = vmatprep.subr.bf16.mxu1 %v18028_v57 }
 0x26c   : > { %9564 = vmatpush1.bf16.msra.mxu0 %v18035_v60 }
 0x26d   : > { %9708 = vmatpush1.bf16.msra.mxu1 %v18026_v56  ;;  %9565 = vmatprep.subr.bf16.mxu0 %v18043_v63  ;;  %v18086_v63 = vld [vmem:[#allocation2 + $0x2868] ss:$112 sps:$4 sm:$0xff]  }
 0x26e   : > { %9709 = vmatprep.subr.bf16.mxu1 %v18034_v58  ;;  %v18080_v58 = vld [vmem:[#allocation2 + $0x2788] ss:$112 sps:$4 sm:$0xff]  }
 0x270   : > { %9566 = vmatpush1.bf16.msra.mxu0 %v18041_v1  ;;  %v18094_v1 = vld [vmem:[#allocation2 + $0x294c] ss:$112 sps:$4 sm:$0xff]  }
 0x271   : > { %9710 = vmatpush1.bf16.msra.mxu1 %v18032_v61  ;;  %9567 = vmatprep.subr.bf16.mxu0 %v18049_v5  ;;  %v18088_v61 = vld [vmem:[#allocation2 + $0x286c] ss:$112 sps:$4 sm:$0xff]   ;;  %v18100_v5 = vld [vmem:[#allocation2 + $0x574] ss:$112 sps:$4 sm:$0xff]  }
 0x272   : > { %9711 = vmatprep.subr.bf16.mxu1 %v18040_v62  ;;  %v18089_v62 = vld [vmem:[#allocation2 + $0x3b0] ss:$112 sps:$4 sm:$0xff]  }
 0x274   : > { %9568 = vmatpush1.bf16.msra.mxu0 %v18047_v7  ;;  %v18106_v7 = vld [vmem:[#allocation2 + $0x2a2c] ss:$112 sps:$4 sm:$0xff]  }
 0x275   : > { %9712 = vmatpush1.bf16.msra.mxu1 %v18038_v2  ;;  %9578 = vmatprep.subr.bf16.mxu0 %v18055_v13  ;;  %v18097_v2 = vld [vmem:[#allocation2 + $0x494] ss:$112 sps:$4 sm:$0xff]   ;;  %v18112_v13 = vld [vmem:[#allocation2 + $0x3c] ss:$112 sps:$4 sm:$0xff]  }
 0x276   : > { %9713 = vmatprep.subr.bf16.mxu1 %v18046_v3  ;;  %v18092_v3 = vld [vmem:[#allocation2 + $0x2948] ss:$112 sps:$4 sm:$0xff]  }
 0x277   : > { %9570 = vmatmul.mubr.bf16.vlgmr.msra.gmra.mrb[8].mxu0 %v19580_v29 }
 0x278   : > { %9579 = vmatpush1.bf16.msra.mxu0 %v18053_v14  ;;  %9610 = vmatprep.mubr.bf16.mxu0 %v19394_v0  ;;  %v18101_v14 = vld [vmem:[#allocation2 + $0x650] ss:$112 sps:$4 sm:$0xff]  }
 0x279   : > { %9714 = vmatpush1.bf16.msra.mxu1 %v18044_v8  ;;  %9783 = vmatprep.subr.bf16.mxu0 %v18067_v17  ;;  %v18103_v8 = vld [vmem:[#allocation2 + $0x654] ss:$112 sps:$4 sm:$0xff]  }
 0x27a   : > { %9715 = vmatprep.subr.bf16.mxu1 %v18052_v11  ;;  %v18104_v11 = vld [vmem:[#allocation2 + $0x2a28] ss:$112 sps:$4 sm:$0xff]   ;;  %v18115_v17 = vld [vmem:[#allocation2 + $0x814] ss:$112 sps:$4 sm:$0xff]  }
 0x27d   : > { %9716 = vmatpush1.bf16.msra.mxu1 %v18050_v15  ;;  %v18109_v15 = vld [vmem:[#allocation2 + $0x734] ss:$112 sps:$4 sm:$0xff]  }
 0x27e   : > { %9717 = vmatprep.subr.bf16.mxu1 %v18058_v16  ;;  %v18107_v16 = vld [vmem:[#allocation2 + $0x730] ss:$112 sps:$4 sm:$0xff]  }
 0x281   : > { %9718 = vmatpush1.bf16.msra.mxu1 %v18056_v20  ;;  %v18113_v20 = vld [vmem:[#allocation2 + $0x810] ss:$112 sps:$4 sm:$0xff]  }
 0x282   : > { %9719 = vmatprep.subr.bf16.mxu1 %v18061_v22  ;;  %v18110_v22 = vld [vmem:[#allocation2 + $0x38] ss:$112 sps:$4 sm:$0xff]  }
 0x283   : > { %16332 = vmatmul.mubr.msk.bf16.vlgmr.msra.gmra.mrb[8].mxu0 %vm8795_vm0, %v19550_v10 }
 0x284   : > { %9784 = vmatpush1.bf16.msra.mxu0 %v18065_v26  ;;  %9815 = vmatprep.mubr.bf16.mxu0 %v19555_v51  ;;  %v18116_v26 = vld [vmem:[#allocation2 + $0x118] ss:$112 sps:$4 sm:$0xff]  }
 0x285   : > { %9720 = vmatpush1.bf16.msra.mxu1 %v18059_v23  ;;  %9785 = vmatprep.subr.bf16.mxu0 %v18073_v30  ;;  %v18118_v23 = vld [vmem:[#allocation2 + $0x11c] ss:$112 sps:$4 sm:$0xff]   ;;  %v19677_v30 = vsub.s32 7, %v19606_v12 }
 0x286   : > { %9721 = vmatprep.subr.bf16.mxu1 %v18064_v25  ;;  %v18121_v25 = vld [vmem:[#allocation2 + $0x8f4] ss:$112 sps:$4 sm:$0xff]  }
 0x288   : > { %9786 = vmatpush1.bf16.msra.mxu0 %v18071_v32  ;;  %v18127_v32 = vld [vmem:[#allocation2 + $0x9d4] ss:$112 sps:$4 sm:$0xff]  }
 0x289   : > { %9722 = vmatpush1.bf16.msra.mxu1 %v18062_v27  ;;  %9787 = vmatprep.subr.bf16.mxu0 %v18079_v37  ;;  %v18119_v27 = vld [vmem:[#allocation2 + $0x8f0] ss:$112 sps:$4 sm:$0xff]   ;;  %v1826_v37 = vrot.slane %v19660_v38, %v19677_v30  ;;  %v11095_v38 = vmax.f32 %v19620_v40, 0.0 }
 0x28a   : > { %9723 = vmatprep.subr.bf16.mxu1 %v18070_v28  ;;  %v9243_v47 = vpop.f32.mrb[4].mxu0  ;;  %v18124_v28 = vld [vmem:[#allocation2 + $0x1fc] ss:$112 sps:$4 sm:$0xff]   ;;  %v18149_v40 = vld [vmem:[#allocation2 + $0xd50] ss:$112 sps:$4 sm:$0xff]  }
 0x28b   : > { %v16903_v54 = vadd.f32 %v9243_v47, %v1814_v39  ;;  %v9245_v48 = vpop.f32.mrb[5].mxu0  ;;  %v18130_v39 = vld [vmem:[#allocation2 + $0x2dc] ss:$112 sps:$4 sm:$0xff]  }
 0x28c   : > { %v16905_v49 = vadd.f32 %v9245_v48, %v1818_v42  ;;  %9788 = vmatpush1.bf16.msra.mxu0 %v18077_v41  ;;  %v9247_v57 = vpop.f32.mrb[6].mxu0  ;;  %v18133_v41 = vld [vmem:[#allocation2 + $0xab4] ss:$112 sps:$4 sm:$0xff]  }
 0x28d   : > { %9724 = vmatpush1.bf16.msra.mxu1 %v18068_v34  ;;  %v19667_v52 = vadd.f32 %v16903_v54, %v19634_v4  ;;  %v9248_v56 = vpop.f32.mrb[7].mxu0  ;;  %9789 = vmatprep.subr.bf16.mxu0 %v18085_v46  ;;  %v18095_v4 = vld [vmem:[#allocation2 + $0x490] ss:$112 sps:$4 sm:$0xff]   ;;  %v18128_v54 = vld [vmem:[#allocation2 + $0x2d8] ss:$112 sps:$4 sm:$0xff]  }
 0x28e   : > { %9725 = vmatprep.subr.bf16.mxu1 %v18076_v35  ;;  %v19670_v60 = vadd.f32 %v16905_v49, %v19636_v6  ;;  %v18098_v6 = vld [vmem:[#allocation2 + $0x570] ss:$112 sps:$4 sm:$0xff]   ;;  %v18122_v35 = vld [vmem:[#allocation2 + $0x1f8] ss:$112 sps:$4 sm:$0xff]   ;;  %v18139_v48 = vld [vmem:[#allocation2 + $0xb94] ss:$112 sps:$4 sm:$0xff]  }
 0x28f   : > { %v18125_v34 = vld [vmem:[#allocation2 + $0x9d0] ss:$112 sps:$4 sm:$0xff]   ;;  %v18136_v57 = vld [vmem:[#allocation2 + $0x3bc] ss:$112 sps:$4 sm:$0xff]  }
 0x290   : > { %9790 = vmatpush1.bf16.msra.mxu0 %v18083_v50  ;;  %v18137_v56 = vld [vmem:[#allocation2 + $0xb90] ss:$112 sps:$4 sm:$0xff]  }
 0x291   : > { %9726 = vmatpush1.bf16.msra.mxu1 %v18074_v43  ;;  %9791 = vmatprep.subr.bf16.mxu0 %v18091_v59  ;;  %v18134_v59 = vld [vmem:[#allocation2 + $0x3b8] ss:$112 sps:$4 sm:$0xff]  }
 0x292   : > { %9727 = vmatprep.subr.bf16.mxu1 %v18082_v45  ;;  %v18131_v45 = vld [vmem:[#allocation2 + $0xab0] ss:$112 sps:$4 sm:$0xff]  }
 0x294   : > { %9792 = vmatpush1.bf16.msra.mxu0 %v18089_v62  ;;  %v18145_v62 = vld [vmem:[#allocation2 + $0xc74] ss:$112 sps:$4 sm:$0xff]  }
 0x295   : > { %9728 = vmatpush1.bf16.msra.mxu1 %v18080_v58  ;;  %9793 = vmatprep.subr.bf16.mxu0 %v18097_v2  ;;  %v18148_v2 = vld [vmem:[#allocation2 + $0x57c] ss:$112 sps:$4 sm:$0xff]  }
 0x296   : > { %9729 = vmatprep.subr.bf16.mxu1 %v18088_v61  ;;  %v18142_v61 = vld [vmem:[#allocation2 + $0x49c] ss:$112 sps:$4 sm:$0xff]  }
 0x298   : > { %9794 = vmatpush1.bf16.msra.mxu0 %v18095_v4  ;;  %v18151_v4 = vld [vmem:[#allocation2 + $0xd54] ss:$112 sps:$4 sm:$0xff]  }
 0x299   : > { %9730 = vmatpush1.bf16.msra.mxu1 %v18086_v63  ;;  %9795 = vmatprep.subr.bf16.mxu0 %v18100_v5  ;;  %v18143_v63 = vld [vmem:[#allocation2 + $0xc70] ss:$112 sps:$4 sm:$0xff]   ;;  %v18154_v5 = vld [vmem:[#allocation2 + $0x65c] ss:$112 sps:$4 sm:$0xff]  }
 0x29a   : > { %9731 = vmatprep.subr.bf16.mxu1 %v18094_v1  ;;  %v18140_v1 = vld [vmem:[#allocation2 + $0x498] ss:$112 sps:$4 sm:$0xff]  }
 0x29c   : > { %9796 = vmatpush1.bf16.msra.mxu0 %v18098_v6  ;;  %v18155_v6 = vld [vmem:[#allocation2 + $0xe30] ss:$112 sps:$4 sm:$0xff]  }
 0x29d   : > { %9732 = vmatpush1.bf16.msra.mxu1 %v18092_v3  ;;  %9797 = vmatprep.subr.bf16.mxu0 %v18103_v8  ;;  %v18146_v3 = vld [vmem:[#allocation2 + $0x578] ss:$112 sps:$4 sm:$0xff]  }
 0x29e   : > { %9742 = vmatprep.subr.bf16.mxu1 %v18106_v7  ;;  %v18157_v7 = vld [vmem:[#allocation2 + $0xe34] ss:$112 sps:$4 sm:$0xff]   ;;  %v18152_v8 = vld [vmem:[#allocation2 + $0x658] ss:$112 sps:$4 sm:$0xff]  }
 0x2a0   : > { %9734 = vmatmul.mubr.bf16.vlgmr.msra.gmra.mrb[16].mxu1 %v19580_v29  ;;  %9798 = vmatpush1.bf16.msra.mxu0 %v18101_v14  ;;  %v18161_v14 = vld [vmem:[#allocation2 + $0xf10] ss:$112 sps:$4 sm:$0xff]  }
 0x2a1   : > { %9743 = vmatpush1.bf16.msra.mxu1 %v18104_v11  ;;  %9774 = vmatprep.mubr.bf16.mxu1 %v19394_v0  ;;  %v18160_v11 = vld [vmem:[#allocation2 + $0x73c] ss:$112 sps:$4 sm:$0xff]  }
 0x2a2   : > { %9947 = vmatprep.subr.bf16.mxu1 %v18112_v13  ;;  %9799 = vmatprep.subr.bf16.mxu0 %v18109_v15  ;;  %v18163_v13 = vld [vmem:[#allocation2 + $0xf14] ss:$112 sps:$4 sm:$0xff]   ;;  %v18158_v15 = vld [vmem:[#allocation2 + $0x738] ss:$112 sps:$4 sm:$0xff]  }
 0x2a4   : > { %9800 = vmatpush1.bf16.msra.mxu0 %v18107_v16  ;;  %v18166_v16 = vld [vmem:[#allocation2 + $0x81c] ss:$112 sps:$4 sm:$0xff]  }
 0x2a5   : > { %9801 = vmatprep.subr.bf16.mxu0 %v18115_v17  ;;  %v18169_v17 = vld [vmem:[#allocation2 + $0xff4] ss:$112 sps:$4 sm:$0xff]  }
 0x2a8   : > { %9802 = vmatpush1.bf16.msra.mxu0 %v18113_v20  ;;  %v18167_v20 = vld [vmem:[#allocation2 + $0xff0] ss:$112 sps:$4 sm:$0xff]  }
 0x2a9   : > { %9803 = vmatprep.subr.bf16.mxu0 %v18121_v25  ;;  %v18175_v25 = vld [vmem:[#allocation2 + $0x10d4] ss:$112 sps:$4 sm:$0xff]  }
 0x2ac   : > { %16333 = vmatmul.mubr.msk.bf16.vlgmr.msra.gmra.mrb[16].mxu1 %vm8795_vm0, %v19550_v10  ;;  %9804 = vmatpush1.bf16.msra.mxu0 %v18119_v27  ;;  %v18170_v27 = vld [vmem:[#allocation2 + $0x8f8] ss:$112 sps:$4 sm:$0xff]  }
 0x2ad   : > { %9948 = vmatpush1.bf16.msra.mxu1 %v18110_v22  ;;  %9979 = vmatprep.mubr.bf16.mxu1 %v19555_v51  ;;  %v18164_v22 = vld [vmem:[#allocation2 + $0x818] ss:$112 sps:$4 sm:$0xff]  }
 0x2ae   : > { %9949 = vmatprep.subr.bf16.mxu1 %v18118_v23  ;;  %9805 = vmatprep.subr.bf16.mxu0 %v18127_v32  ;;  %v18172_v23 = vld [vmem:[#allocation2 + $0x8fc] ss:$112 sps:$4 sm:$0xff]   ;;  %v18181_v32 = vld [vmem:[#allocation2 + $0x11b4] ss:$112 sps:$4 sm:$0xff]  }
 0x2b0   : > { %9806 = vmatpush1.bf16.msra.mxu0 %v18125_v34  ;;  %v18176_v34 = vld [vmem:[#allocation2 + $0x9d8] ss:$112 sps:$4 sm:$0xff]  }
 0x2b1   : > { %9950 = vmatpush1.bf16.msra.mxu1 %v18116_v26  ;;  %9807 = vmatprep.subr.bf16.mxu0 %v18133_v41  ;;  %v18173_v26 = vld [vmem:[#allocation2 + $0x10d0] ss:$112 sps:$4 sm:$0xff]   ;;  %v18182_v41 = vld [vmem:[#allocation2 + $0xab8] ss:$112 sps:$4 sm:$0xff]  }
 0x2b2   : > { %9951 = vmatprep.subr.bf16.mxu1 %v18124_v28  ;;  %v18178_v28 = vld [vmem:[#allocation2 + $0x9dc] ss:$112 sps:$4 sm:$0xff]  }
 0x2b3   : > { %v19682_v42 = vpop.f32.mrb[12].mxu1 }
 0x2b4   : > { %v9450_v43 = vpop.f32.mrb[13].mxu1  ;;  %9808 = vmatpush1.bf16.msra.mxu0 %v18131_v45  ;;  %v18190_v45 = vld [vmem:[#allocation2 + $0xb9c] ss:$112 sps:$4 sm:$0xff]  }
 0x2b5   : > { %9952 = vmatpush1.bf16.msra.mxu1 %v18122_v35  ;;  %v16908_v46 = vadd.f32 %v9450_v43, %v1826_v37  ;;  %v9452_v47 = vpop.f32.mrb[14].mxu1  ;;  %9809 = vmatprep.subr.bf16.mxu0 %v18139_v48  ;;  %v18179_v35 = vld [vmem:[#allocation2 + $0x11b0] ss:$112 sps:$4 sm:$0xff]   ;;  %v18184_v37 = vld [vmem:[#allocation2 + $0xabc] ss:$112 sps:$4 sm:$0xff]  }
 0x2b6   : > { %v9453_v49 = vpop.f32.mrb[15].mxu1  ;;  %9953 = vmatprep.subr.bf16.mxu1 %v18130_v39  ;;  %v18187_v39 = vld [vmem:[#allocation2 + $0x1294] ss:$112 sps:$4 sm:$0xff]   ;;  %v18185_v43 = vld [vmem:[#allocation2 + $0x1290] ss:$112 sps:$4 sm:$0xff]  }
 0x2b7   : > { %v11102_v50 = vmax.f32 %v16908_v46, 0.0  ;;  %v18193_v46 = vld [vmem:[#allocation2 + $0x1374] ss:$112 sps:$4 sm:$0xff]   ;;  %v18188_v47 = vld [vmem:[#allocation2 + $0xb98] ss:$112 sps:$4 sm:$0xff]  }
 0x2b8   : > { %9810 = vmatpush1.bf16.msra.mxu0 %v18137_v56  ;;  %v18199_v48 = vld [vmem:[#allocation2 + $0x1454] ss:$112 sps:$4 sm:$0xff]   ;;  %v18196_v49 = vld [vmem:[#allocation2 + $0xc7c] ss:$112 sps:$4 sm:$0xff]  }
 0x2b9   : > { %v19685_v58 = vmax.f32 %v11095_v38, %v11102_v50  ;;  %9954 = vmatpush1.bf16.msra.mxu1 %v18128_v54  ;;  %9811 = vmatprep.subr.bf16.mxu0 %v18145_v62  ;;  %v18191_v54 = vld [vmem:[#allocation2 + $0x1370] ss:$112 sps:$4 sm:$0xff]   ;;  %v18202_v50 = vld [vmem:[#allocation2 + $0xd5c] ss:$112 sps:$4 sm:$0xff]   ;;  %v18205_v56 = vld [vmem:[#allocation2 + $0x1534] ss:$112 sps:$4 sm:$0xff]  }
 0x2ba   : > { %9955 = vmatprep.subr.bf16.mxu1 %v18136_v57  ;;  %v18194_v57 = vld [vmem:[#allocation2 + $0xc78] ss:$112 sps:$4 sm:$0xff]   ;;  %v18197_v38 = vld [vmem:[#allocation2 + $0x1450] ss:$112 sps:$4 sm:$0xff]   ;;  %v18208_v62 = vld [vmem:[#allocation2 + $0xe3c] ss:$112 sps:$4 sm:$0xff]  }
 0x2bc   : > { %9812 = vmatpush1.bf16.msra.mxu0 %v18143_v63  ;;  %v18211_v63 = vld [vmem:[#allocation2 + $0x1614] ss:$112 sps:$4 sm:$0xff]  }
 0x2bd   : > { %9956 = vmatpush1.bf16.msra.mxu1 %v18134_v59  ;;  %9813 = vmatprep.subr.bf16.mxu0 %v18151_v4  ;;  %v18200_v59 = vld [vmem:[#allocation2 + $0xd58] ss:$112 sps:$4 sm:$0xff]   ;;  %v18214_v4 = vld [vmem:[#allocation2 + $0xf1c] ss:$112 sps:$4 sm:$0xff]  }
 0x2be   : > { %9957 = vmatprep.subr.bf16.mxu1 %v18142_v61  ;;  %v18203_v61 = vld [vmem:[#allocation2 + $0x1530] ss:$112 sps:$4 sm:$0xff]  }
 0x2c0   : > { %9814 = vmatpush1.bf16.msra.mxu0 %v18149_v40  ;;  %v18217_v40 = vld [vmem:[#allocation2 + $0x16f4] ss:$112 sps:$4 sm:$0xff]  }
 0x2c1   : > { %9958 = vmatpush1.bf16.msra.mxu1 %v18140_v1  ;;  %9824 = vmatprep.subr.bf16.mxu0 %v18157_v7  ;;  %v18206_v1 = vld [vmem:[#allocation2 + $0xe38] ss:$112 sps:$4 sm:$0xff]   ;;  %v18220_v7 = vld [vmem:[#allocation2 + $0xffc] ss:$112 sps:$4 sm:$0xff]  }
 0x2c2   : > { %9959 = vmatprep.subr.bf16.mxu1 %v18148_v2  ;;  %v18209_v2 = vld [vmem:[#allocation2 + $0x1610] ss:$112 sps:$4 sm:$0xff]  }
 0x2c3   : > { %9816 = vmatmul.mubr.bf16.vlgmr.msra.gmra.mrb[12].mxu0 %v19560_v9 }
 0x2c4   : > { %9825 = vmatpush1.bf16.msra.mxu0 %v18155_v6  ;;  %9856 = vmatprep.mubr.bf16.mxu0 %v19565_v36  ;;  %v18223_v6 = vld [vmem:[#allocation2 + $0x17d4] ss:$112 sps:$4 sm:$0xff]  }
 0x2c5   : > { %9960 = vmatpush1.bf16.msra.mxu1 %v18146_v3  ;;  %9826 = vmatprep.subr.bf16.mxu0 %v18163_v13  ;;  %v18212_v3 = vld [vmem:[#allocation2 + $0xf18] ss:$112 sps:$4 sm:$0xff]   ;;  %v18226_v13 = vld [vmem:[#allocation2 + $0x10dc] ss:$112 sps:$4 sm:$0xff]  }
 0x2c6   : > { %9961 = vmatprep.subr.bf16.mxu1 %v18154_v5  ;;  %v18215_v5 = vld [vmem:[#allocation2 + $0x16f0] ss:$112 sps:$4 sm:$0xff]  }
 0x2c8   : > { %9827 = vmatpush1.bf16.msra.mxu0 %v18161_v14  ;;  %v18229_v14 = vld [vmem:[#allocation2 + $0x18b4] ss:$112 sps:$4 sm:$0xff]  }
 0x2c9   : > { %9962 = vmatpush1.bf16.msra.mxu1 %v18152_v8  ;;  %9828 = vmatprep.subr.bf16.mxu0 %v18169_v17  ;;  %v18218_v8 = vld [vmem:[#allocation2 + $0xff8] ss:$112 sps:$4 sm:$0xff]   ;;  %v18232_v17 = vld [vmem:[#allocation2 + $0x11bc] ss:$112 sps:$4 sm:$0xff]  }
 0x2ca   : > { %9963 = vmatprep.subr.bf16.mxu1 %v18160_v11  ;;  %v18221_v11 = vld [vmem:[#allocation2 + $0x17d0] ss:$112 sps:$4 sm:$0xff]  }
 0x2cc   : > { %9829 = vmatpush1.bf16.msra.mxu0 %v18167_v20  ;;  %v18235_v20 = vld [vmem:[#allocation2 + $0x1994] ss:$112 sps:$4 sm:$0xff]  }
 0x2cd   : > { %9964 = vmatpush1.bf16.msra.mxu1 %v18158_v15  ;;  %9830 = vmatprep.subr.bf16.mxu0 %v18175_v25  ;;  %v18227_v15 = vld [vmem:[#allocation2 + $0x18b0] ss:$112 sps:$4 sm:$0xff]   ;;  %v18238_v25 = vld [vmem:[#allocation2 + $0x129c] ss:$112 sps:$4 sm:$0xff]  }
 0x2ce   : > { %9965 = vmatprep.subr.bf16.mxu1 %v18166_v16  ;;  %v18224_v16 = vld [vmem:[#allocation2 + $0x10d8] ss:$112 sps:$4 sm:$0xff]  }
 0x2d0   : > { %9831 = vmatpush1.bf16.msra.mxu0 %v18173_v26  ;;  %v18241_v26 = vld [vmem:[#allocation2 + $0x1a74] ss:$112 sps:$4 sm:$0xff]  }
 0x2d1   : > { %9966 = vmatpush1.bf16.msra.mxu1 %v18164_v22  ;;  %9832 = vmatprep.subr.bf16.mxu0 %v18181_v32  ;;  %v18233_v22 = vld [vmem:[#allocation2 + $0x1990] ss:$112 sps:$4 sm:$0xff]   ;;  %v18244_v32 = vld [vmem:[#allocation2 + $0x137c] ss:$112 sps:$4 sm:$0xff]  }
 0x2d2   : > { %9967 = vmatprep.subr.bf16.mxu1 %v18172_v23  ;;  %v18230_v23 = vld [vmem:[#allocation2 + $0x11b8] ss:$112 sps:$4 sm:$0xff]  }
 0x2d4   : > { %9833 = vmatpush1.bf16.msra.mxu0 %v18179_v35  ;;  %v18242_v35 = vld [vmem:[#allocation2 + $0x1378] ss:$112 sps:$4 sm:$0xff]  }
 0x2d5   : > { %9968 = vmatpush1.bf16.msra.mxu1 %v18170_v27  ;;  %9834 = vmatprep.subr.bf16.mxu0 %v18187_v39  ;;  %v18239_v27 = vld [vmem:[#allocation2 + $0x1a70] ss:$112 sps:$4 sm:$0xff]   ;;  %v18253_v39 = vld [vmem:[#allocation2 + $0x1c34] ss:$112 sps:$4 sm:$0xff]  }
 0x2d6   : > { %9969 = vmatprep.subr.bf16.mxu1 %v18178_v28  ;;  %v18236_v28 = vld [vmem:[#allocation2 + $0x1298] ss:$112 sps:$4 sm:$0xff]  }
 0x2d8   : > { %9835 = vmatpush1.bf16.msra.mxu0 %v18185_v43  ;;  %v18251_v43 = vld [vmem:[#allocation2 + $0x1c30] ss:$112 sps:$4 sm:$0xff]  }
 0x2d9   : > { %9970 = vmatpush1.bf16.msra.mxu1 %v18176_v34  ;;  %9836 = vmatprep.subr.bf16.mxu0 %v18193_v46  ;;  %v18247_v34 = vld [vmem:[#allocation2 + $0x1b54] ss:$112 sps:$4 sm:$0xff]   ;;  %v18256_v46 = vld [vmem:[#allocation2 + $0x153c] ss:$112 sps:$4 sm:$0xff]  }
 0x2da   : > { %9971 = vmatprep.subr.bf16.mxu1 %v18184_v37  ;;  %v18245_v37 = vld [vmem:[#allocation2 + $0x1b50] ss:$112 sps:$4 sm:$0xff]  }
 0x2dc   : > { %9837 = vmatpush1.bf16.msra.mxu0 %v18191_v54  ;;  %v18257_v54 = vld [vmem:[#allocation2 + $0x1d10] ss:$112 sps:$4 sm:$0xff]  }
 0x2dd   : > { %9972 = vmatpush1.bf16.msra.mxu1 %v18182_v41  ;;  %9838 = vmatprep.subr.bf16.mxu0 %v18199_v48  ;;  %v18250_v41 = vld [vmem:[#allocation2 + $0x145c] ss:$112 sps:$4 sm:$0xff]   ;;  %v18254_v48 = vld [vmem:[#allocation2 + $0x1538] ss:$112 sps:$4 sm:$0xff]  }
 0x2de   : > { %9973 = vmatprep.subr.bf16.mxu1 %v18190_v45  ;;  %v18248_v45 = vld [vmem:[#allocation2 + $0x1458] ss:$112 sps:$4 sm:$0xff]  }
 0x2e0   : > { %9839 = vmatpush1.bf16.msra.mxu0 %v18197_v38  ;;  %v18263_v38 = vld [vmem:[#allocation2 + $0x1df0] ss:$112 sps:$4 sm:$0xff]  }
 0x2e1   : > { %9974 = vmatpush1.bf16.msra.mxu1 %v18188_v47  ;;  %9840 = vmatprep.subr.bf16.mxu0 %v18205_v56  ;;  %v18259_v47 = vld [vmem:[#allocation2 + $0x1d14] ss:$112 sps:$4 sm:$0xff]   ;;  %v18268_v56 = vld [vmem:[#allocation2 + $0x16fc] ss:$112 sps:$4 sm:$0xff]  }
 0x2e2   : > { %9975 = vmatprep.subr.bf16.mxu1 %v18196_v49  ;;  %v18262_v49 = vld [vmem:[#allocation2 + $0x161c] ss:$112 sps:$4 sm:$0xff]  }
 0x2e4   : > { %9841 = vmatpush1.bf16.msra.mxu0 %v18203_v61  ;;  %v18269_v61 = vld [vmem:[#allocation2 + $0x1ed0] ss:$112 sps:$4 sm:$0xff]  }
 0x2e5   : > { %9976 = vmatpush1.bf16.msra.mxu1 %v18194_v57  ;;  %9842 = vmatprep.subr.bf16.mxu0 %v18211_v63  ;;  %v18265_v57 = vld [vmem:[#allocation2 + $0x1df4] ss:$112 sps:$4 sm:$0xff]   ;;  %v18274_v63 = vld [vmem:[#allocation2 + $0x17dc] ss:$112 sps:$4 sm:$0xff]  }
 0x2e6   : > { %9977 = vmatprep.subr.bf16.mxu1 %v18202_v50  ;;  %v18260_v50 = vld [vmem:[#allocation2 + $0x1618] ss:$112 sps:$4 sm:$0xff]  }
 0x2e8   : > { %9843 = vmatpush1.bf16.msra.mxu0 %v18209_v2  ;;  %v18275_v2 = vld [vmem:[#allocation2 + $0x1fb0] ss:$112 sps:$4 sm:$0xff]  }
 0x2e9   : > { %9978 = vmatpush1.bf16.msra.mxu1 %v18200_v59  ;;  %9844 = vmatprep.subr.bf16.mxu0 %v18217_v40  ;;  %v18271_v59 = vld [vmem:[#allocation2 + $0x1ed4] ss:$112 sps:$4 sm:$0xff]   ;;  %v18280_v40 = vld [vmem:[#allocation2 + $0x18bc] ss:$112 sps:$4 sm:$0xff]  }
 0x2ea   : > { %9988 = vmatprep.subr.bf16.mxu1 %v18208_v62  ;;  %v18266_v62 = vld [vmem:[#allocation2 + $0x16f8] ss:$112 sps:$4 sm:$0xff]  }
 0x2ec   : > { %9980 = vmatmul.mubr.bf16.vlgmr.msra.gmra.mrb[20].mxu1 %v19560_v9  ;;  %9845 = vmatpush1.bf16.msra.mxu0 %v18215_v5  ;;  %v18281_v5 = vld [vmem:[#allocation2 + $0x2090] ss:$112 sps:$4 sm:$0xff]  }
 0x2ed   : > { %9989 = vmatpush1.bf16.msra.mxu1 %v18206_v1  ;;  %10020 = vmatprep.mubr.bf16.mxu1 %v19565_v36  ;;  %v18277_v1 = vld [vmem:[#allocation2 + $0x1fb4] ss:$112 sps:$4 sm:$0xff]  }
 0x2ee   : > { %9990 = vmatprep.subr.bf16.mxu1 %v18214_v4  ;;  %9846 = vmatprep.subr.bf16.mxu0 %v18223_v6  ;;  %v18272_v4 = vld [vmem:[#allocation2 + $0x17d8] ss:$112 sps:$4 sm:$0xff]   ;;  %v18286_v6 = vld [vmem:[#allocation2 + $0x199c] ss:$112 sps:$4 sm:$0xff]  }
 0x2f0   : > { %9847 = vmatpush1.bf16.msra.mxu0 %v18221_v11  ;;  %v18287_v11 = vld [vmem:[#allocation2 + $0x2170] ss:$112 sps:$4 sm:$0xff]  }
 0x2f1   : > { %9991 = vmatpush1.bf16.msra.mxu1 %v18212_v3  ;;  %9848 = vmatprep.subr.bf16.mxu0 %v18229_v14  ;;  %v18283_v3 = vld [vmem:[#allocation2 + $0x2094] ss:$112 sps:$4 sm:$0xff]   ;;  %v18292_v14 = vld [vmem:[#allocation2 + $0x1a7c] ss:$112 sps:$4 sm:$0xff]  }
 0x2f2   : > { %9992 = vmatprep.subr.bf16.mxu1 %v18220_v7  ;;  %v18278_v7 = vld [vmem:[#allocation2 + $0x18b8] ss:$112 sps:$4 sm:$0xff]  }
 0x2f4   : > { %9849 = vmatpush1.bf16.msra.mxu0 %v18227_v15  ;;  %v18295_v15 = vld [vmem:[#allocation2 + $0x2254] ss:$112 sps:$4 sm:$0xff]  }
 0x2f5   : > { %9993 = vmatpush1.bf16.msra.mxu1 %v18218_v8  ;;  %9850 = vmatprep.subr.bf16.mxu0 %v18235_v20  ;;  %v18289_v8 = vld [vmem:[#allocation2 + $0x2174] ss:$112 sps:$4 sm:$0xff]   ;;  %v18298_v20 = vld [vmem:[#allocation2 + $0x1b5c] ss:$112 sps:$4 sm:$0xff]  }
 0x2f6   : > { %9994 = vmatprep.subr.bf16.mxu1 %v18226_v13  ;;  %v18284_v13 = vld [vmem:[#allocation2 + $0x1998] ss:$112 sps:$4 sm:$0xff]  }
 0x2f8   : > { %9851 = vmatpush1.bf16.msra.mxu0 %v18233_v22  ;;  %v18301_v22 = vld [vmem:[#allocation2 + $0x2334] ss:$112 sps:$4 sm:$0xff]  }
 0x2f9   : > { %9995 = vmatpush1.bf16.msra.mxu1 %v18224_v16  ;;  %9852 = vmatprep.subr.bf16.mxu0 %v18241_v26  ;;  %v18293_v16 = vld [vmem:[#allocation2 + $0x2250] ss:$112 sps:$4 sm:$0xff]   ;;  %v18304_v26 = vld [vmem:[#allocation2 + $0x1c3c] ss:$112 sps:$4 sm:$0xff]  }
 0x2fa   : > { %9996 = vmatprep.subr.bf16.mxu1 %v18232_v17  ;;  %v18290_v17 = vld [vmem:[#allocation2 + $0x1a78] ss:$112 sps:$4 sm:$0xff]  }
 0x2fc   : > { %9853 = vmatpush1.bf16.msra.mxu0 %v18239_v27  ;;  %v18307_v27 = vld [vmem:[#allocation2 + $0x2414] ss:$112 sps:$4 sm:$0xff]  }
 0x2fd   : > { %9997 = vmatpush1.bf16.msra.mxu1 %v18230_v23  ;;  %9854 = vmatprep.subr.bf16.mxu0 %v18247_v34  ;;  %v18299_v23 = vld [vmem:[#allocation2 + $0x2330] ss:$112 sps:$4 sm:$0xff]   ;;  %v18310_v34 = vld [vmem:[#allocation2 + $0x1d1c] ss:$112 sps:$4 sm:$0xff]  }
 0x2fe   : > { %9998 = vmatprep.subr.bf16.mxu1 %v18238_v25  ;;  %v18296_v25 = vld [vmem:[#allocation2 + $0x1b58] ss:$112 sps:$4 sm:$0xff]  }
 0x300   : > { %9855 = vmatpush1.bf16.msra.mxu0 %v18245_v37  ;;  %v18311_v37 = vld [vmem:[#allocation2 + $0x24f0] ss:$112 sps:$4 sm:$0xff]  }
 0x301   : > { %9999 = vmatpush1.bf16.msra.mxu1 %v18236_v28  ;;  %9865 = vmatprep.subr.bf16.mxu0 %v18253_v39  ;;  %v18305_v28 = vld [vmem:[#allocation2 + $0x2410] ss:$112 sps:$4 sm:$0xff]   ;;  %v18308_v39 = vld [vmem:[#allocation2 + $0x1d18] ss:$112 sps:$4 sm:$0xff]  }
 0x302   : > { %10000 = vmatprep.subr.bf16.mxu1 %v18244_v32  ;;  %v18302_v32 = vld [vmem:[#allocation2 + $0x1c38] ss:$112 sps:$4 sm:$0xff]  }
 0x303   : > { %9857 = vmatmul.mubr.bf16.vlgmr.msra.gmra.mrb[12].mxu0 %v19570_v18 }
 0x304   : > { %9866 = vmatpush1.bf16.msra.mxu0 %v18251_v43  ;;  %9897 = vmatprep.mubr.bf16.mxu0 %v19573_v24  ;;  %v18319_v43 = vld [vmem:[#allocation2 + $0x25d4] ss:$112 sps:$4 sm:$0xff]  }
 0x305   : > { %10001 = vmatpush1.bf16.msra.mxu1 %v18242_v35  ;;  %9867 = vmatprep.subr.bf16.mxu0 %v18259_v47  ;;  %v18313_v35 = vld [vmem:[#allocation2 + $0x24f4] ss:$112 sps:$4 sm:$0xff]   ;;  %v18322_v47 = vld [vmem:[#allocation2 + $0x1edc] ss:$112 sps:$4 sm:$0xff]  }
 0x306   : > { %10002 = vmatprep.subr.bf16.mxu1 %v18250_v41  ;;  %v18316_v41 = vld [vmem:[#allocation2 + $0x1dfc] ss:$112 sps:$4 sm:$0xff]  }
 0x308   : > { %9868 = vmatpush1.bf16.msra.mxu0 %v18257_v54  ;;  %v18325_v54 = vld [vmem:[#allocation2 + $0x26b4] ss:$112 sps:$4 sm:$0xff]  }
 0x309   : > { %10003 = vmatpush1.bf16.msra.mxu1 %v18248_v45  ;;  %9869 = vmatprep.subr.bf16.mxu0 %v18265_v57  ;;  %v18317_v45 = vld [vmem:[#allocation2 + $0x25d0] ss:$112 sps:$4 sm:$0xff]   ;;  %v18328_v57 = vld [vmem:[#allocation2 + $0x1fbc] ss:$112 sps:$4 sm:$0xff]  }
 0x30a   : > { %10004 = vmatprep.subr.bf16.mxu1 %v18256_v46  ;;  %v18314_v46 = vld [vmem:[#allocation2 + $0x1df8] ss:$112 sps:$4 sm:$0xff]  }
 0x30c   : > { %9870 = vmatpush1.bf16.msra.mxu0 %v18263_v38  ;;  %v18331_v38 = vld [vmem:[#allocation2 + $0x2794] ss:$112 sps:$4 sm:$0xff]  }
 0x30d   : > { %10005 = vmatpush1.bf16.msra.mxu1 %v18254_v48  ;;  %9871 = vmatprep.subr.bf16.mxu0 %v18271_v59  ;;  %v18323_v48 = vld [vmem:[#allocation2 + $0x26b0] ss:$112 sps:$4 sm:$0xff]   ;;  %v18334_v59 = vld [vmem:[#allocation2 + $0x209c] ss:$112 sps:$4 sm:$0xff]  }
 0x30e   : > { %10006 = vmatprep.subr.bf16.mxu1 %v18262_v49  ;;  %v18320_v49 = vld [vmem:[#allocation2 + $0x1ed8] ss:$112 sps:$4 sm:$0xff]  }
 0x310   : > { %9872 = vmatpush1.bf16.msra.mxu0 %v18269_v61  ;;  %v18337_v61 = vld [vmem:[#allocation2 + $0x2874] ss:$112 sps:$4 sm:$0xff]  }
 0x311   : > { %10007 = vmatpush1.bf16.msra.mxu1 %v18260_v50  ;;  %9873 = vmatprep.subr.bf16.mxu0 %v18277_v1  ;;  %v18329_v50 = vld [vmem:[#allocation2 + $0x2790] ss:$112 sps:$4 sm:$0xff]   ;;  %v18343_v1 = vld [vmem:[#allocation2 + $0x2954] ss:$112 sps:$4 sm:$0xff]  }
 0x312   : > { %10008 = vmatprep.subr.bf16.mxu1 %v18268_v56  ;;  %v18326_v56 = vld [vmem:[#allocation2 + $0x1fb8] ss:$112 sps:$4 sm:$0xff]  }
 0x314   : > { %9874 = vmatpush1.bf16.msra.mxu0 %v18275_v2  ;;  %v18340_v2 = vld [vmem:[#allocation2 + $0x217c] ss:$112 sps:$4 sm:$0xff]  }
 0x315   : > { %10009 = vmatpush1.bf16.msra.mxu1 %v18266_v62  ;;  %9875 = vmatprep.subr.bf16.mxu0 %v18283_v3  ;;  %v18335_v62 = vld [vmem:[#allocation2 + $0x2870] ss:$112 sps:$4 sm:$0xff]   ;;  %v18349_v3 = vld [vmem:[#allocation2 + $0x2a34] ss:$112 sps:$4 sm:$0xff]  }
 0x316   : > { %10010 = vmatprep.subr.bf16.mxu1 %v18274_v63  ;;  %v18332_v63 = vld [vmem:[#allocation2 + $0x2098] ss:$112 sps:$4 sm:$0xff]  }
 0x318   : > { %9876 = vmatpush1.bf16.msra.mxu0 %v18281_v5  ;;  %v18346_v5 = vld [vmem:[#allocation2 + $0x225c] ss:$112 sps:$4 sm:$0xff]  }
 0x319   : > { %10011 = vmatpush1.bf16.msra.mxu1 %v18272_v4  ;;  %9877 = vmatprep.subr.bf16.mxu0 %v18289_v8  ;;  %v18341_v4 = vld [vmem:[#allocation2 + $0x2950] ss:$112 sps:$4 sm:$0xff]   ;;  %v18361_v8 = vld [vmem:[#allocation2 + $0x44] ss:$112 sps:$4 sm:$0xff]  }
 0x31a   : > { %10012 = vmatprep.subr.bf16.mxu1 %v18280_v40  ;;  %v18338_v40 = vld [vmem:[#allocation2 + $0x2178] ss:$112 sps:$4 sm:$0xff]  }
 0x31c   : > { %9878 = vmatpush1.bf16.msra.mxu0 %v18287_v11  ;;  %v18352_v11 = vld [vmem:[#allocation2 + $0x233c] ss:$112 sps:$4 sm:$0xff]  }
 0x31d   : > { %10013 = vmatpush1.bf16.msra.mxu1 %v18278_v7  ;;  %9879 = vmatprep.subr.bf16.mxu0 %v18295_v15  ;;  %v18347_v7 = vld [vmem:[#allocation2 + $0x2a30] ss:$112 sps:$4 sm:$0xff]   ;;  %v18353_v15 = vld [vmem:[#allocation2 + $0x2418] ss:$112 sps:$4 sm:$0xff]  }
 0x31e   : > { %10014 = vmatprep.subr.bf16.mxu1 %v18286_v6  ;;  %v18344_v6 = vld [vmem:[#allocation2 + $0x2258] ss:$112 sps:$4 sm:$0xff]  }
 0x320   : > { %9880 = vmatpush1.bf16.msra.mxu0 %v18293_v16  ;;  %v18358_v16 = vld [vmem:[#allocation2 + $0x24fc] ss:$112 sps:$4 sm:$0xff]  }
 0x321   : > { %10015 = vmatpush1.bf16.msra.mxu1 %v18284_v13  ;;  %9881 = vmatprep.subr.bf16.mxu0 %v18301_v22  ;;  %v18350_v13 = vld [vmem:[#allocation2 + $0x2338] ss:$112 sps:$4 sm:$0xff]   ;;  %v18367_v22 = vld [vmem:[#allocation2 + $0x124] ss:$112 sps:$4 sm:$0xff]  }
 0x322   : > { %10016 = vmatprep.subr.bf16.mxu1 %v18292_v14  ;;  %v18355_v14 = vld [vmem:[#allocation2 + $0x241c] ss:$112 sps:$4 sm:$0xff]  }
 0x324   : > { %9882 = vmatpush1.bf16.msra.mxu0 %v18299_v23  ;;  %v19698_v23 = vsub.s32 2, %v19606_v12 }
 0x325   : > { %10017 = vmatpush1.bf16.msra.mxu1 %v18290_v17  ;;  %9883 = vmatprep.subr.bf16.mxu0 %v18307_v27  ;;  %v18359_v17 = vld [vmem:[#allocation2 + $0x40] ss:$112 sps:$4 sm:$0xff]   ;;  %v19705_v27 = vld [vmem:[%s21452_s2 + $0x8] sm:$0xff] }
 0x326   : > { %10018 = vmatprep.subr.bf16.mxu1 %v18298_v20  ;;  %v18356_v20 = vld [vmem:[#allocation2 + $0x24f8] ss:$112 sps:$4 sm:$0xff]  }
 0x328   : > { %9884 = vmatpush1.bf16.msra.mxu0 %v18305_v28  ;;  %v18362_v28 = vld [vmem:[#allocation2 + $0x25d8] ss:$112 sps:$4 sm:$0xff]  }
 0x329   : > { %10019 = vmatpush1.bf16.msra.mxu1 %v18296_v25  ;;  %9885 = vmatprep.subr.bf16.mxu0 %v18313_v35  ;;  %v18364_v25 = vld [vmem:[#allocation2 + $0x25dc] ss:$112 sps:$4 sm:$0xff]  }
 0x32a   : > { %10029 = vmatprep.subr.bf16.mxu1 %v18304_v26  ;;  %v18365_v26 = vld [vmem:[#allocation2 + $0x120] ss:$112 sps:$4 sm:$0xff]  }
 0x32c   : > { %10021 = vmatmul.mubr.bf16.vlgmr.msra.gmra.mrb[20].mxu1 %v19570_v18  ;;  %9886 = vmatpush1.bf16.msra.mxu0 %v18311_v37  ;;  %v18370_v37 = vld [vmem:[#allocation2 + $0x26bc] ss:$112 sps:$4 sm:$0xff]  }
 0x32d   : > { %10030 = vmatpush1.bf16.msra.mxu1 %v18302_v32  ;;  %10061 = vmatprep.mubr.bf16.mxu1 %v19573_v24  ;;  %v18373_v32 = vld [vmem:[#allocation2 + $0x204] ss:$112 sps:$4 sm:$0xff]  }
 0x32e   : > { %10031 = vmatprep.subr.bf16.mxu1 %v18310_v34  ;;  %9887 = vmatprep.subr.bf16.mxu0 %v18319_v43  ;;  %v19711_v34 = vld [vmem:[%s21452_s2] sm:$0xff]  ;;  %v1834_v43 = vrot.slane %v19705_v27, %v19615_v21 }
 0x32f   : > { %v1806_v35 = vrot.slane %v19711_v34, %v19698_v23 }
 0x330   : > { %9888 = vmatpush1.bf16.msra.mxu0 %v18317_v45  ;;  %v18368_v45 = vld [vmem:[#allocation2 + $0x26b8] ss:$112 sps:$4 sm:$0xff]  }
 0x331   : > { %10032 = vmatpush1.bf16.msra.mxu1 %v18308_v39  ;;  %9889 = vmatprep.subr.bf16.mxu0 %v18325_v54  ;;  %v1830_v39 = vrot.slane %v19705_v27, %v19609_v19 }
 0x332   : > { %10033 = vmatprep.subr.bf16.mxu1 %v18316_v41  ;;  %v18371_v41 = vld [vmem:[#allocation2 + $0x200] ss:$112 sps:$4 sm:$0xff]  }
 0x334   : > { %9890 = vmatpush1.bf16.msra.mxu0 %v18323_v48  ;;  %v18376_v48 = vld [vmem:[#allocation2 + $0x279c] ss:$112 sps:$4 sm:$0xff]  }
 0x335   : > { %10034 = vmatpush1.bf16.msra.mxu1 %v18314_v46  ;;  %9891 = vmatprep.subr.bf16.mxu0 %v18331_v38  ;;  %v18379_v46 = vld [vmem:[#allocation2 + $0x2e4] ss:$112 sps:$4 sm:$0xff]   ;;  %v11096_v38 = vmax.f32 %v19623_v44, 0.0  ;;  %v18383_v44 = vld [vmem:[#allocation2 + $0x3c0] ss:$112 sps:$4 sm:$0xff]  }
 0x336   : > { %10035 = vmatprep.subr.bf16.mxu1 %v18322_v47  ;;  %v16901_v47 = vadd.f32 %v19627_v53, %v1806_v35  ;;  %v18382_v53 = vld [vmem:[#allocation2 + $0x287c] ss:$112 sps:$4 sm:$0xff]   ;;  %v18404_v35 = vld [vmem:[#allocation2 + $0x48] ss:$112 sps:$4 sm:$0xff]  }
 0x338   : > { %9892 = vmatpush1.bf16.msra.mxu0 %v18329_v50 }
 0x339   : > { %10036 = vmatpush1.bf16.msra.mxu1 %v18320_v49  ;;  %9893 = vmatprep.subr.bf16.mxu0 %v18337_v61 }
 0x33a   : > { %10037 = vmatprep.subr.bf16.mxu1 %v18328_v57 }
 0x33c   : > { %9894 = vmatpush1.bf16.msra.mxu0 %v18335_v62  ;;  %v18374_v62 = vld [vmem:[#allocation2 + $0x2798] ss:$112 sps:$4 sm:$0xff]  }
 0x33d   : > { %10038 = vmatpush1.bf16.msra.mxu1 %v18326_v56  ;;  %9895 = vmatprep.subr.bf16.mxu0 %v18343_v1  ;;  %v18385_v1 = vld [vmem:[#allocation2 + $0x3c4] ss:$112 sps:$4 sm:$0xff]  }
 0x33e   : > { %10039 = vmatprep.subr.bf16.mxu1 %v18334_v59  ;;  %v18377_v59 = vld [vmem:[#allocation2 + $0x2e0] ss:$112 sps:$4 sm:$0xff]  }
 0x340   : > { %9896 = vmatpush1.bf16.msra.mxu0 %v18341_v4 }
 0x341   : > { %10040 = vmatpush1.bf16.msra.mxu1 %v18332_v63  ;;  %9906 = vmatprep.subr.bf16.mxu0 %v18349_v3 }
 0x342   : > { %10041 = vmatprep.subr.bf16.mxu1 %v18340_v2  ;;  %v11097_v2 = vmax.f32 %v16901_v47, 0.0 }
 0x343   : > { %9898 = vmatmul.mubr.bf16.vlgmr.msra.gmra.mrb[12].mxu0 %v19580_v29 }
 0x344   : > { %9907 = vmatpush1.bf16.msra.mxu0 %v18347_v7  ;;  %9938 = vmatprep.mubr.bf16.mxu0 %v19394_v0  ;;  %v18391_v7 = vld [vmem:[#allocation2 + $0x4a4] ss:$112 sps:$4 sm:$0xff]  }
 0x345   : > { %10042 = vmatpush1.bf16.msra.mxu1 %v18338_v40  ;;  %10111 = vmatprep.subr.bf16.mxu0 %v18361_v8  ;;  %v18389_v8 = vld [vmem:[#allocation2 + $0x4a0] ss:$112 sps:$4 sm:$0xff]  }
 0x346   : > { %10043 = vmatprep.subr.bf16.mxu1 %v18346_v5  ;;  %v18380_v5 = vld [vmem:[#allocation2 + $0x2878] ss:$112 sps:$4 sm:$0xff]  }
 0x349   : > { %10044 = vmatpush1.bf16.msra.mxu1 %v18344_v6  ;;  %v18388_v6 = vld [vmem:[#allocation2 + $0x295c] ss:$112 sps:$4 sm:$0xff]  }
 0x34a   : > { %10045 = vmatprep.subr.bf16.mxu1 %v18352_v11  ;;  %v18386_v11 = vld [vmem:[#allocation2 + $0x2958] ss:$112 sps:$4 sm:$0xff]  }
 0x34d   : > { %10046 = vmatpush1.bf16.msra.mxu1 %v18350_v13  ;;  %v18394_v13 = vld [vmem:[#allocation2 + $0x584] ss:$112 sps:$4 sm:$0xff]  }
 0x34e   : > { %10047 = vmatprep.subr.bf16.mxu1 %v18355_v14  ;;  %v18400_v14 = vld [vmem:[#allocation2 + $0x2a3c] ss:$112 sps:$4 sm:$0xff]  }
 0x34f   : > { %16334 = vmatmul.mubr.msk.bf16.vlgmr.msra.gmra.mrb[12].mxu0 %vm8795_vm0, %v19550_v10 }
 0x350   : > { %10112 = vmatpush1.bf16.msra.mxu0 %v18359_v17  ;;  %10143 = vmatprep.mubr.bf16.mxu0 %v19555_v51  ;;  %v18398_v17 = vld [vmem:[#allocation2 + $0x2a38] ss:$112 sps:$4 sm:$0xff]  }
 0x351   : > { %10048 = vmatpush1.bf16.msra.mxu1 %v18353_v15  ;;  %10113 = vmatprep.subr.bf16.mxu0 %v18367_v22  ;;  %v18392_v15 = vld [vmem:[#allocation2 + $0x580] ss:$112 sps:$4 sm:$0xff]  }
 0x352   : > { %10049 = vmatprep.subr.bf16.mxu1 %v18358_v16  ;;  %v18397_v16 = vld [vmem:[#allocation2 + $0x664] ss:$112 sps:$4 sm:$0xff]   ;;  %v18395_v22 = vld [vmem:[#allocation2 + $0x660] ss:$112 sps:$4 sm:$0xff]  }
 0x354   : > { %10114 = vmatpush1.bf16.msra.mxu0 %v18365_v26  ;;  %v18401_v26 = vld [vmem:[#allocation2 + $0x740] ss:$112 sps:$4 sm:$0xff]  }
 0x355   : > { %10050 = vmatpush1.bf16.msra.mxu1 %v18356_v20  ;;  %10115 = vmatprep.subr.bf16.mxu0 %v18373_v32  ;;  %v18406_v20 = vld [vmem:[#allocation2 + $0x4c] ss:$112 sps:$4 sm:$0xff]   ;;  %v18407_v32 = vld [vmem:[#allocation2 + $0x820] ss:$112 sps:$4 sm:$0xff]  }
 0x356   : > { %10051 = vmatprep.subr.bf16.mxu1 %v18364_v25  ;;  %v9612_v54 = vpop.f32.mrb[8].mxu0  ;;  %v18403_v25 = vld [vmem:[#allocation2 + $0x744] ss:$112 sps:$4 sm:$0xff]  }
 0x357   : > { %v16909_v49 = vadd.f32 %v9612_v54, %v1830_v39  ;;  %v9614_v57 = vpop.f32.mrb[9].mxu0  ;;  %v19728_v39 = vsub.s32 3, %v19606_v12  ;;  %v18418_v54 = vld [vmem:[#allocation2 + $0x20c] ss:$112 sps:$4 sm:$0xff]  }
 0x358   : > { %10116 = vmatpush1.bf16.msra.mxu0 %v18371_v41  ;;  %v16910_v50 = vadd.f32 %v9614_v57, %v1834_v43  ;;  %v9616_v56 = vpop.f32.mrb[10].mxu0  ;;  %v18412_v41 = vld [vmem:[#allocation2 + $0x12c] ss:$112 sps:$4 sm:$0xff]   ;;  %v18413_v43 = vld [vmem:[#allocation2 + $0x900] ss:$112 sps:$4 sm:$0xff]  }
 0x359   : > { %10052 = vmatpush1.bf16.msra.mxu1 %v18362_v28  ;;  %v11103_v61 = vmax.f32 %v16909_v49, 0.0  ;;  %v9617_v63 = vpop.f32.mrb[11].mxu0  ;;  %10117 = vmatprep.subr.bf16.mxu0 %v18379_v46  ;;  %v18409_v28 = vld [vmem:[#allocation2 + $0x824] ss:$112 sps:$4 sm:$0xff]   ;;  %v1810_v47 = vrot.slane %v19711_v34, %v19728_v39  ;;  %v18419_v49 = vld [vmem:[#allocation2 + $0x9e0] ss:$112 sps:$4 sm:$0xff]  }
 0x35a   : > { %10053 = vmatprep.subr.bf16.mxu1 %v18370_v37  ;;  %v11104_v4 = vmax.f32 %v16910_v50, 0.0  ;;  %v18415_v37 = vld [vmem:[#allocation2 + $0x904] ss:$112 sps:$4 sm:$0xff]   ;;  %v18416_v57 = vld [vmem:[#allocation2 + $0x208] ss:$112 sps:$4 sm:$0xff]  }
 0x35b   : > { %v19721_v40 = vmax.f32 %v11096_v38, %v11103_v61  ;;  %v18421_v46 = vld [vmem:[#allocation2 + $0x9e4] ss:$112 sps:$4 sm:$0xff]   ;;  %v1842_v38 = vrot.slane %v19705_v27, %v19728_v39  ;;  %v16902_v56 = vadd.f32 %v19631_v55, %v1810_v47  ;;  %v11099_v55 = vmax.f32 %v19667_v52, 0.0  ;;  %v18442_v52 = vld [vmem:[#allocation2 + $0x58c] ss:$112 sps:$4 sm:$0xff]  }
 0x35c   : > { %v19723_v3 = vmax.f32 %v11097_v2, %v11104_v4  ;;  %10118 = vmatpush1.bf16.msra.mxu0 %v18377_v59  ;;  %v18427_v50 = vld [vmem:[#allocation2 + $0xac4] ss:$112 sps:$4 sm:$0xff]   ;;  %v18424_v59 = vld [vmem:[#allocation2 + $0x2ec] ss:$112 sps:$4 sm:$0xff]   ;;  %v18455_v47 = vld [vmem:[#allocation2 + $0xf20] ss:$112 sps:$4 sm:$0xff]  }
 0x35d   : > { %10054 = vmatpush1.bf16.msra.mxu1 %v18368_v45  ;;  %10119 = vmatprep.subr.bf16.mxu0 %v18385_v1  ;;  %v18410_v45 = vld [vmem:[#allocation2 + $0x128] ss:$112 sps:$4 sm:$0xff]   ;;  %v18425_v1 = vld [vmem:[#allocation2 + $0xac0] ss:$112 sps:$4 sm:$0xff]  }
 0x35e   : > { %10055 = vmatprep.subr.bf16.mxu1 %v18376_v48  ;;  %v1838_v48 = vrot.slane %v19705_v27, %v19698_v23 }
 0x360   : > { %10120 = vmatpush1.bf16.msra.mxu0 %v18383_v44  ;;  %v18433_v44 = vld [vmem:[#allocation2 + $0xba4] ss:$112 sps:$4 sm:$0xff]  }
 0x361   : > { %10056 = vmatpush1.bf16.msra.mxu1 %v18374_v62  ;;  %10121 = vmatprep.subr.bf16.mxu0 %v18391_v7 }
 0x362   : > { %10057 = vmatprep.subr.bf16.mxu1 %v18382_v53  ;;  %v18422_v53 = vld [vmem:[#allocation2 + $0x2e8] ss:$112 sps:$4 sm:$0xff]  }
 0x364   : > { %10122 = vmatpush1.bf16.msra.mxu0 %v18389_v8  ;;  %v18430_v8 = vld [vmem:[#allocation2 + $0x3cc] ss:$112 sps:$4 sm:$0xff]  }
 0x365   : > { %10058 = vmatpush1.bf16.msra.mxu1 %v18380_v5  ;;  %10123 = vmatprep.subr.bf16.mxu0 %v18394_v13  ;;  %v11098_v5 = vmax.f32 %v16902_v56, 0.0  ;;  %v18466_v56 = vld [vmem:[#allocation2 + $0x90c] ss:$112 sps:$4 sm:$0xff]  }
 0x366   : > { %10059 = vmatprep.subr.bf16.mxu1 %v18388_v6 }
 0x368   : > { %10124 = vmatpush1.bf16.msra.mxu0 %v18392_v15 }
 0x369   : > { %10060 = vmatpush1.bf16.msra.mxu1 %v18386_v11  ;;  %10125 = vmatprep.subr.bf16.mxu0 %v18397_v16  ;;  %v18428_v16 = vld [vmem:[#allocation2 + $0x3c8] ss:$112 sps:$4 sm:$0xff]  }
 0x36a   : > { %10070 = vmatprep.subr.bf16.mxu1 %v18400_v14  ;;  %v18431_v14 = vld [vmem:[#allocation2 + $0xba0] ss:$112 sps:$4 sm:$0xff]  }
 0x36c   : > { %10062 = vmatmul.mubr.bf16.vlgmr.msra.gmra.mrb[20].mxu1 %v19580_v29  ;;  %10126 = vmatpush1.bf16.msra.mxu0 %v18395_v22  ;;  %v18437_v22 = vld [vmem:[#allocation2 + $0xc80] ss:$112 sps:$4 sm:$0xff]  }
 0x36d   : > { %10071 = vmatpush1.bf16.msra.mxu1 %v18398_v17  ;;  %10102 = vmatprep.mubr.bf16.mxu1 %v19394_v0  ;;  %v18439_v17 = vld [vmem:[#allocation2 + $0xc84] ss:$112 sps:$4 sm:$0xff]  }
 0x36e   : > { %10275 = vmatprep.subr.bf16.mxu1 %v18406_v20  ;;  %10127 = vmatprep.subr.bf16.mxu0 %v18403_v25  ;;  %v18436_v20 = vld [vmem:[#allocation2 + $0x4ac] ss:$112 sps:$4 sm:$0xff]   ;;  %v18434_v25 = vld [vmem:[#allocation2 + $0x4a8] ss:$112 sps:$4 sm:$0xff]  }
 0x370   : > { %10128 = vmatpush1.bf16.msra.mxu0 %v18401_v26  ;;  %v18445_v26 = vld [vmem:[#allocation2 + $0xd64] ss:$112 sps:$4 sm:$0xff]  }
 0x371   : > { %10129 = vmatprep.subr.bf16.mxu0 %v18409_v28  ;;  %v18443_v28 = vld [vmem:[#allocation2 + $0xd60] ss:$112 sps:$4 sm:$0xff]  }
 0x374   : > { %10130 = vmatpush1.bf16.msra.mxu0 %v18407_v32  ;;  %v18440_v32 = vld [vmem:[#allocation2 + $0x588] ss:$112 sps:$4 sm:$0xff]  }
 0x375   : > { %10131 = vmatprep.subr.bf16.mxu0 %v18415_v37  ;;  %v18448_v37 = vld [vmem:[#allocation2 + $0x66c] ss:$112 sps:$4 sm:$0xff]  }
 0x378   : > { %16335 = vmatmul.mubr.msk.bf16.vlgmr.msra.gmra.mrb[20].mxu1 %vm8795_vm0, %v19550_v10  ;;  %10132 = vmatpush1.bf16.msra.mxu0 %v18413_v43  ;;  %v18446_v43 = vld [vmem:[#allocation2 + $0x668] ss:$112 sps:$4 sm:$0xff]  }
 0x379   : > { %10276 = vmatpush1.bf16.msra.mxu1 %v18404_v35  ;;  %10307 = vmatprep.mubr.bf16.mxu1 %v19555_v51  ;;  %v18451_v35 = vld [vmem:[#allocation2 + $0xe44] ss:$112 sps:$4 sm:$0xff]  }
 0x37a   : > { %10277 = vmatprep.subr.bf16.mxu1 %v18412_v41  ;;  %10133 = vmatprep.subr.bf16.mxu0 %v18421_v46  ;;  %v18449_v41 = vld [vmem:[#allocation2 + $0xe40] ss:$112 sps:$4 sm:$0xff]   ;;  %v18454_v46 = vld [vmem:[#allocation2 + $0x74c] ss:$112 sps:$4 sm:$0xff]  }
 0x37c   : > { %10134 = vmatpush1.bf16.msra.mxu0 %v18419_v49  ;;  %v18460_v49 = vld [vmem:[#allocation2 + $0x82c] ss:$112 sps:$4 sm:$0xff]  }
 0x37d   : > { %10278 = vmatpush1.bf16.msra.mxu1 %v18410_v45  ;;  %10135 = vmatprep.subr.bf16.mxu0 %v18427_v50  ;;  %v18457_v45 = vld [vmem:[#allocation2 + $0xf24] ss:$112 sps:$4 sm:$0xff]  }
 0x37e   : > { %10279 = vmatprep.subr.bf16.mxu1 %v18418_v54  ;;  %v18452_v54 = vld [vmem:[#allocation2 + $0x748] ss:$112 sps:$4 sm:$0xff]   ;;  %v18469_v50 = vld [vmem:[#allocation2 + $0x10e4] ss:$112 sps:$4 sm:$0xff]  }
 0x37f   : > { %v9776_v61 = vpop.f32.mrb[16].mxu1 }
 0x380   : > { %v16911_v62 = vadd.f32 %v9776_v61, %v1838_v48  ;;  %v9778_v63 = vpop.f32.mrb[17].mxu1  ;;  %10136 = vmatpush1.bf16.msra.mxu0 %v18425_v1  ;;  %v18463_v48 = vld [vmem:[#allocation2 + $0x1004] ss:$112 sps:$4 sm:$0xff]   ;;  %v18464_v61 = vld [vmem:[#allocation2 + $0x908] ss:$112 sps:$4 sm:$0xff]  }
 0x381   : > { %10280 = vmatpush1.bf16.msra.mxu1 %v18416_v57  ;;  %v16912_v2 = vadd.f32 %v9778_v63, %v1842_v38  ;;  %v9780_v4 = vpop.f32.mrb[18].mxu1  ;;  %10137 = vmatprep.subr.bf16.mxu0 %v18433_v44  ;;  %v18461_v57 = vld [vmem:[#allocation2 + $0x1000] ss:$112 sps:$4 sm:$0xff]   ;;  %v18458_v38 = vld [vmem:[#allocation2 + $0x828] ss:$112 sps:$4 sm:$0xff]  }
 0x382   : > { %v11105_v7 = vmax.f32 %v16911_v62, 0.0  ;;  %v9781_v6 = vpop.f32.mrb[19].mxu1  ;;  %10281 = vmatprep.subr.bf16.mxu1 %v18424_v59  ;;  %v18467_v59 = vld [vmem:[#allocation2 + $0x10e0] ss:$112 sps:$4 sm:$0xff]   ;;  %v18475_v62 = vld [vmem:[#allocation2 + $0x11c4] ss:$112 sps:$4 sm:$0xff]  }
 0x383   : > { %v11106_v11 = vmax.f32 %v16912_v2, 0.0  ;;  %v18472_v63 = vld [vmem:[#allocation2 + $0x9ec] ss:$112 sps:$4 sm:$0xff]   ;;  %v18473_v1 = vld [vmem:[#allocation2 + $0x11c0] ss:$112 sps:$4 sm:$0xff]  }
 0x384   : > { %v19741_v13 = vmax.f32 %v11098_v5, %v11105_v7  ;;  %10138 = vmatpush1.bf16.msra.mxu0 %v18431_v14  ;;  %v18470_v2 = vld [vmem:[#allocation2 + $0x9e8] ss:$112 sps:$4 sm:$0xff]   ;;  %v18481_v4 = vld [vmem:[#allocation2 + $0x12a4] ss:$112 sps:$4 sm:$0xff]   ;;  %v18479_v44 = vld [vmem:[#allocation2 + $0x12a0] ss:$112 sps:$4 sm:$0xff]  }
 0x385   : > { %v19743_v15 = vmax.f32 %v11099_v55, %v11106_v11  ;;  %10282 = vmatpush1.bf16.msra.mxu1 %v18422_v53  ;;  %10139 = vmatprep.subr.bf16.mxu0 %v18439_v17  ;;  %v18478_v53 = vld [vmem:[#allocation2 + $0xacc] ss:$112 sps:$4 sm:$0xff]   ;;  %v18476_v5 = vld [vmem:[#allocation2 + $0xac8] ss:$112 sps:$4 sm:$0xff]   ;;  %v18487_v7 = vld [vmem:[#allocation2 + $0x1384] ss:$112 sps:$4 sm:$0xff]  }
 0x386   : > { %10283 = vmatprep.subr.bf16.mxu1 %v18430_v8  ;;  %v18484_v6 = vld [vmem:[#allocation2 + $0xbac] ss:$112 sps:$4 sm:$0xff]   ;;  %v18485_v8 = vld [vmem:[#allocation2 + $0x1380] ss:$112 sps:$4 sm:$0xff]   ;;  %v18482_v55 = vld [vmem:[#allocation2 + $0xba8] ss:$112 sps:$4 sm:$0xff]  }
 0x387   : > { %v18493_v11 = vld [vmem:[#allocation2 + $0x1464] ss:$112 sps:$4 sm:$0xff]   ;;  %v18490_v14 = vld [vmem:[#allocation2 + $0xc8c] ss:$112 sps:$4 sm:$0xff]   ;;  %v18488_v17 = vld [vmem:[#allocation2 + $0xc88] ss:$112 sps:$4 sm:$0xff]  }
 0x388   : > { %10140 = vmatpush1.bf16.msra.mxu0 %v18437_v22  ;;  %v18496_v22 = vld [vmem:[#allocation2 + $0xd6c] ss:$112 sps:$4 sm:$0xff]  }
 0x389   : > { %10284 = vmatpush1.bf16.msra.mxu1 %v18428_v16  ;;  %10141 = vmatprep.subr.bf16.mxu0 %v18445_v26  ;;  %v18491_v16 = vld [vmem:[#allocation2 + $0x1460] ss:$112 sps:$4 sm:$0xff]   ;;  %v18494_v26 = vld [vmem:[#allocation2 + $0xd68] ss:$112 sps:$4 sm:$0xff]  }
 0x38a   : > { %10285 = vmatprep.subr.bf16.mxu1 %v18436_v20  ;;  %v18499_v20 = vld [vmem:[#allocation2 + $0x1544] ss:$112 sps:$4 sm:$0xff]  }
 0x38c   : > { %10142 = vmatpush1.bf16.msra.mxu0 %v18443_v28  ;;  %v18502_v28 = vld [vmem:[#allocation2 + $0xe4c] ss:$112 sps:$4 sm:$0xff]  }
 0x38d   : > { %10286 = vmatpush1.bf16.msra.mxu1 %v18434_v25  ;;  %10152 = vmatprep.subr.bf16.mxu0 %v18451_v35  ;;  %v18497_v25 = vld [vmem:[#allocation2 + $0x1540] ss:$112 sps:$4 sm:$0xff]   ;;  %v18500_v35 = vld [vmem:[#allocation2 + $0xe48] ss:$112 sps:$4 sm:$0xff]  }
 0x38e   : > { %10287 = vmatprep.subr.bf16.mxu1 %v18442_v52  ;;  %v18505_v52 = vld [vmem:[#allocation2 + $0x1624] ss:$112 sps:$4 sm:$0xff]  }
 0x38f   : > { %10144 = vmatmul.mubr.bf16.vlgmr.msra.gmra.mrb[16].mxu0 %v19560_v9 }
 0x390   : > { %10153 = vmatpush1.bf16.msra.mxu0 %v18449_v41  ;;  %10184 = vmatprep.mubr.bf16.mxu0 %v19565_v36  ;;  %v18508_v41 = vld [vmem:[#allocation2 + $0xf2c] ss:$112 sps:$4 sm:$0xff]  }
 0x391   : > { %10288 = vmatpush1.bf16.msra.mxu1 %v18440_v32  ;;  %10154 = vmatprep.subr.bf16.mxu0 %v18457_v45  ;;  %v18503_v32 = vld [vmem:[#allocation2 + $0x1620] ss:$112 sps:$4 sm:$0xff]   ;;  %v18506_v45 = vld [vmem:[#allocation2 + $0xf28] ss:$112 sps:$4 sm:$0xff]  }
 0x392   : > { %10289 = vmatprep.subr.bf16.mxu1 %v18448_v37  ;;  %v18511_v37 = vld [vmem:[#allocation2 + $0x1704] ss:$112 sps:$4 sm:$0xff]  }
 0x394   : > { %10155 = vmatpush1.bf16.msra.mxu0 %v18455_v47  ;;  %v18514_v47 = vld [vmem:[#allocation2 + $0x100c] ss:$112 sps:$4 sm:$0xff]  }
 0x395   : > { %10290 = vmatpush1.bf16.msra.mxu1 %v18446_v43  ;;  %10156 = vmatprep.subr.bf16.mxu0 %v18463_v48  ;;  %v18509_v43 = vld [vmem:[#allocation2 + $0x1700] ss:$112 sps:$4 sm:$0xff]   ;;  %v18512_v48 = vld [vmem:[#allocation2 + $0x1008] ss:$112 sps:$4 sm:$0xff]  }
 0x396   : > { %10291 = vmatprep.subr.bf16.mxu1 %v18454_v46  ;;  %v18517_v46 = vld [vmem:[#allocation2 + $0x17e4] ss:$112 sps:$4 sm:$0xff]  }
 0x398   : > { %10157 = vmatpush1.bf16.msra.mxu0 %v18461_v57  ;;  %v18520_v57 = vld [vmem:[#allocation2 + $0x10ec] ss:$112 sps:$4 sm:$0xff]  }
 0x399   : > { %10292 = vmatpush1.bf16.msra.mxu1 %v18452_v54  ;;  %10158 = vmatprep.subr.bf16.mxu0 %v18469_v50  ;;  %v18515_v54 = vld [vmem:[#allocation2 + $0x17e0] ss:$112 sps:$4 sm:$0xff]   ;;  %v18518_v50 = vld [vmem:[#allocation2 + $0x10e8] ss:$112 sps:$4 sm:$0xff]  }
 0x39a   : > { %10293 = vmatprep.subr.bf16.mxu1 %v18460_v49  ;;  %v18523_v49 = vld [vmem:[#allocation2 + $0x18c4] ss:$112 sps:$4 sm:$0xff]  }
 0x39c   : > { %10159 = vmatpush1.bf16.msra.mxu0 %v18467_v59  ;;  %v18526_v59 = vld [vmem:[#allocation2 + $0x11cc] ss:$112 sps:$4 sm:$0xff]  }
 0x39d   : > { %10294 = vmatpush1.bf16.msra.mxu1 %v18458_v38  ;;  %10160 = vmatprep.subr.bf16.mxu0 %v18475_v62  ;;  %v18521_v38 = vld [vmem:[#allocation2 + $0x18c0] ss:$112 sps:$4 sm:$0xff]   ;;  %v18524_v62 = vld [vmem:[#allocation2 + $0x11c8] ss:$112 sps:$4 sm:$0xff]  }
 0x39e   : > { %10295 = vmatprep.subr.bf16.mxu1 %v18466_v56  ;;  %v18529_v56 = vld [vmem:[#allocation2 + $0x19a4] ss:$112 sps:$4 sm:$0xff]  }
 0x3a0   : > { %10161 = vmatpush1.bf16.msra.mxu0 %v18473_v1  ;;  %v18532_v1 = vld [vmem:[#allocation2 + $0x12ac] ss:$112 sps:$4 sm:$0xff]  }
 0x3a1   : > { %10296 = vmatpush1.bf16.msra.mxu1 %v18464_v61  ;;  %10162 = vmatprep.subr.bf16.mxu0 %v18481_v4  ;;  %v18527_v61 = vld [vmem:[#allocation2 + $0x19a0] ss:$112 sps:$4 sm:$0xff]   ;;  %v18530_v4 = vld [vmem:[#allocation2 + $0x12a8] ss:$112 sps:$4 sm:$0xff]  }
 0x3a2   : > { %10297 = vmatprep.subr.bf16.mxu1 %v18472_v63  ;;  %v18535_v63 = vld [vmem:[#allocation2 + $0x1a84] ss:$112 sps:$4 sm:$0xff]  }
 0x3a4   : > { %10163 = vmatpush1.bf16.msra.mxu0 %v18479_v44  ;;  %v18538_v44 = vld [vmem:[#allocation2 + $0x138c] ss:$112 sps:$4 sm:$0xff]  }
 0x3a5   : > { %10298 = vmatpush1.bf16.msra.mxu1 %v18470_v2  ;;  %10164 = vmatprep.subr.bf16.mxu0 %v18487_v7  ;;  %v18533_v2 = vld [vmem:[#allocation2 + $0x1a80] ss:$112 sps:$4 sm:$0xff]   ;;  %v18536_v7 = vld [vmem:[#allocation2 + $0x1388] ss:$112 sps:$4 sm:$0xff]  }
 0x3a6   : > { %10299 = vmatprep.subr.bf16.mxu1 %v18478_v53  ;;  %v18541_v53 = vld [vmem:[#allocation2 + $0x1b64] ss:$112 sps:$4 sm:$0xff]  }
 0x3a8   : > { %10165 = vmatpush1.bf16.msra.mxu0 %v18485_v8  ;;  %v18544_v8 = vld [vmem:[#allocation2 + $0x146c] ss:$112 sps:$4 sm:$0xff]  }
 0x3a9   : > { %10300 = vmatpush1.bf16.msra.mxu1 %v18476_v5  ;;  %10166 = vmatprep.subr.bf16.mxu0 %v18493_v11  ;;  %v18539_v5 = vld [vmem:[#allocation2 + $0x1b60] ss:$112 sps:$4 sm:$0xff]   ;;  %v18542_v11 = vld [vmem:[#allocation2 + $0x1468] ss:$112 sps:$4 sm:$0xff]  }
 0x3aa   : > { %10301 = vmatprep.subr.bf16.mxu1 %v18484_v6  ;;  %v18547_v6 = vld [vmem:[#allocation2 + $0x1c44] ss:$112 sps:$4 sm:$0xff]  }
 0x3ac   : > { %10167 = vmatpush1.bf16.msra.mxu0 %v18491_v16  ;;  %v18550_v16 = vld [vmem:[#allocation2 + $0x154c] ss:$112 sps:$4 sm:$0xff]  }
 0x3ad   : > { %10302 = vmatpush1.bf16.msra.mxu1 %v18482_v55  ;;  %10168 = vmatprep.subr.bf16.mxu0 %v18499_v20  ;;  %v18545_v55 = vld [vmem:[#allocation2 + $0x1c40] ss:$112 sps:$4 sm:$0xff]   ;;  %v18548_v20 = vld [vmem:[#allocation2 + $0x1548] ss:$112 sps:$4 sm:$0xff]  }
 0x3ae   : > { %10303 = vmatprep.subr.bf16.mxu1 %v18490_v14  ;;  %v18553_v14 = vld [vmem:[#allocation2 + $0x1d24] ss:$112 sps:$4 sm:$0xff]  }
 0x3b0   : > { %10169 = vmatpush1.bf16.msra.mxu0 %v18497_v25  ;;  %v18556_v25 = vld [vmem:[#allocation2 + $0x162c] ss:$112 sps:$4 sm:$0xff]  }
 0x3b1   : > { %10304 = vmatpush1.bf16.msra.mxu1 %v18488_v17  ;;  %10170 = vmatprep.subr.bf16.mxu0 %v18505_v52  ;;  %v18551_v17 = vld [vmem:[#allocation2 + $0x1d20] ss:$112 sps:$4 sm:$0xff]   ;;  %v18554_v52 = vld [vmem:[#allocation2 + $0x1628] ss:$112 sps:$4 sm:$0xff]  }
 0x3b2   : > { %10305 = vmatprep.subr.bf16.mxu1 %v18496_v22  ;;  %v18559_v22 = vld [vmem:[#allocation2 + $0x1e04] ss:$112 sps:$4 sm:$0xff]  }
 0x3b4   : > { %10171 = vmatpush1.bf16.msra.mxu0 %v18503_v32  ;;  %v18562_v32 = vld [vmem:[#allocation2 + $0x170c] ss:$112 sps:$4 sm:$0xff]  }
 0x3b5   : > { %10306 = vmatpush1.bf16.msra.mxu1 %v18494_v26  ;;  %10172 = vmatprep.subr.bf16.mxu0 %v18511_v37  ;;  %v18557_v26 = vld [vmem:[#allocation2 + $0x1e00] ss:$112 sps:$4 sm:$0xff]   ;;  %v18560_v37 = vld [vmem:[#allocation2 + $0x1708] ss:$112 sps:$4 sm:$0xff]  }
 0x3b6   : > { %10316 = vmatprep.subr.bf16.mxu1 %v18502_v28  ;;  %v18565_v28 = vld [vmem:[#allocation2 + $0x1ee4] ss:$112 sps:$4 sm:$0xff]  }
 0x3b8   : > { %10308 = vmatmul.mubr.bf16.vlgmr.msra.gmra.mrb[24].mxu1 %v19560_v9  ;;  %10173 = vmatpush1.bf16.msra.mxu0 %v18509_v43  ;;  %v18568_v43 = vld [vmem:[#allocation2 + $0x17ec] ss:$112 sps:$4 sm:$0xff]  }
 0x3b9   : > { %10317 = vmatpush1.bf16.msra.mxu1 %v18500_v35  ;;  %10348 = vmatprep.mubr.bf16.mxu1 %v19565_v36  ;;  %v18563_v35 = vld [vmem:[#allocation2 + $0x1ee0] ss:$112 sps:$4 sm:$0xff]  }
 0x3ba   : > { %10318 = vmatprep.subr.bf16.mxu1 %v18508_v41  ;;  %10174 = vmatprep.subr.bf16.mxu0 %v18517_v46  ;;  %v18571_v41 = vld [vmem:[#allocation2 + $0x1fc4] ss:$112 sps:$4 sm:$0xff]   ;;  %v18566_v46 = vld [vmem:[#allocation2 + $0x17e8] ss:$112 sps:$4 sm:$0xff]  }
 0x3bc   : > { %10175 = vmatpush1.bf16.msra.mxu0 %v18515_v54  ;;  %v18574_v54 = vld [vmem:[#allocation2 + $0x18cc] ss:$112 sps:$4 sm:$0xff]  }
 0x3bd   : > { %10319 = vmatpush1.bf16.msra.mxu1 %v18506_v45  ;;  %10176 = vmatprep.subr.bf16.mxu0 %v18523_v49  ;;  %v18569_v45 = vld [vmem:[#allocation2 + $0x1fc0] ss:$112 sps:$4 sm:$0xff]   ;;  %v18572_v49 = vld [vmem:[#allocation2 + $0x18c8] ss:$112 sps:$4 sm:$0xff]  }
 0x3be   : > { %10320 = vmatprep.subr.bf16.mxu1 %v18514_v47  ;;  %v18577_v47 = vld [vmem:[#allocation2 + $0x20a4] ss:$112 sps:$4 sm:$0xff]  }
 0x3c0   : > { %10177 = vmatpush1.bf16.msra.mxu0 %v18521_v38  ;;  %v18580_v38 = vld [vmem:[#allocation2 + $0x19ac] ss:$112 sps:$4 sm:$0xff]  }
 0x3c1   : > { %10321 = vmatpush1.bf16.msra.mxu1 %v18512_v48  ;;  %10178 = vmatprep.subr.bf16.mxu0 %v18529_v56  ;;  %v18575_v48 = vld [vmem:[#allocation2 + $0x20a0] ss:$112 sps:$4 sm:$0xff]   ;;  %v18578_v56 = vld [vmem:[#allocation2 + $0x19a8] ss:$112 sps:$4 sm:$0xff]  }
 0x3c2   : > { %10322 = vmatprep.subr.bf16.mxu1 %v18520_v57  ;;  %v18583_v57 = vld [vmem:[#allocation2 + $0x2184] ss:$112 sps:$4 sm:$0xff]  }
 0x3c4   : > { %10179 = vmatpush1.bf16.msra.mxu0 %v18527_v61  ;;  %v18586_v61 = vld [vmem:[#allocation2 + $0x1a8c] ss:$112 sps:$4 sm:$0xff]  }
 0x3c5   : > { %10323 = vmatpush1.bf16.msra.mxu1 %v18518_v50  ;;  %10180 = vmatprep.subr.bf16.mxu0 %v18535_v63  ;;  %v18581_v50 = vld [vmem:[#allocation2 + $0x2180] ss:$112 sps:$4 sm:$0xff]   ;;  %v18584_v63 = vld [vmem:[#allocation2 + $0x1a88] ss:$112 sps:$4 sm:$0xff]  }
 0x3c6   : > { %10324 = vmatprep.subr.bf16.mxu1 %v18526_v59  ;;  %v18589_v59 = vld [vmem:[#allocation2 + $0x2264] ss:$112 sps:$4 sm:$0xff]  }
 0x3c8   : > { %10181 = vmatpush1.bf16.msra.mxu0 %v18533_v2  ;;  %v18592_v2 = vld [vmem:[#allocation2 + $0x1b6c] ss:$112 sps:$4 sm:$0xff]  }
 0x3c9   : > { %10325 = vmatpush1.bf16.msra.mxu1 %v18524_v62  ;;  %10182 = vmatprep.subr.bf16.mxu0 %v18541_v53  ;;  %v18587_v62 = vld [vmem:[#allocation2 + $0x2260] ss:$112 sps:$4 sm:$0xff]   ;;  %v18590_v53 = vld [vmem:[#allocation2 + $0x1b68] ss:$112 sps:$4 sm:$0xff]  }
 0x3ca   : > { %10326 = vmatprep.subr.bf16.mxu1 %v18532_v1  ;;  %v18595_v1 = vld [vmem:[#allocation2 + $0x2344] ss:$112 sps:$4 sm:$0xff]  }
 0x3cc   : > { %10183 = vmatpush1.bf16.msra.mxu0 %v18539_v5  ;;  %v18598_v5 = vld [vmem:[#allocation2 + $0x1c4c] ss:$112 sps:$4 sm:$0xff]  }
 0x3cd   : > { %10327 = vmatpush1.bf16.msra.mxu1 %v18530_v4  ;;  %10193 = vmatprep.subr.bf16.mxu0 %v18547_v6  ;;  %v18593_v4 = vld [vmem:[#allocation2 + $0x2340] ss:$112 sps:$4 sm:$0xff]   ;;  %v18596_v6 = vld [vmem:[#allocation2 + $0x1c48] ss:$112 sps:$4 sm:$0xff]  }
 0x3ce   : > { %10328 = vmatprep.subr.bf16.mxu1 %v18538_v44  ;;  %v18601_v44 = vld [vmem:[#allocation2 + $0x2424] ss:$112 sps:$4 sm:$0xff]  }
 0x3cf   : > { %10185 = vmatmul.mubr.bf16.vlgmr.msra.gmra.mrb[16].mxu0 %v19570_v18 }
 0x3d0   : > { %10194 = vmatpush1.bf16.msra.mxu0 %v18545_v55  ;;  %10225 = vmatprep.mubr.bf16.mxu0 %v19573_v24  ;;  %v18604_v55 = vld [vmem:[#allocation2 + $0x1d2c] ss:$112 sps:$4 sm:$0xff]  }
 0x3d1   : > { %10329 = vmatpush1.bf16.msra.mxu1 %v18536_v7  ;;  %10195 = vmatprep.subr.bf16.mxu0 %v18553_v14  ;;  %v18599_v7 = vld [vmem:[#allocation2 + $0x2420] ss:$112 sps:$4 sm:$0xff]   ;;  %v18602_v14 = vld [vmem:[#allocation2 + $0x1d28] ss:$112 sps:$4 sm:$0xff]  }
 0x3d2   : > { %10330 = vmatprep.subr.bf16.mxu1 %v18544_v8  ;;  %v18607_v8 = vld [vmem:[#allocation2 + $0x2504] ss:$112 sps:$4 sm:$0xff]  }
 0x3d4   : > { %10196 = vmatpush1.bf16.msra.mxu0 %v18551_v17  ;;  %v18610_v17 = vld [vmem:[#allocation2 + $0x1e0c] ss:$112 sps:$4 sm:$0xff]  }
 0x3d5   : > { %10331 = vmatpush1.bf16.msra.mxu1 %v18542_v11  ;;  %10197 = vmatprep.subr.bf16.mxu0 %v18559_v22  ;;  %v18605_v11 = vld [vmem:[#allocation2 + $0x2500] ss:$112 sps:$4 sm:$0xff]   ;;  %v18608_v22 = vld [vmem:[#allocation2 + $0x1e08] ss:$112 sps:$4 sm:$0xff]  }
 0x3d6   : > { %10332 = vmatprep.subr.bf16.mxu1 %v18550_v16  ;;  %v18613_v16 = vld [vmem:[#allocation2 + $0x25e4] ss:$112 sps:$4 sm:$0xff]  }
 0x3d8   : > { %10198 = vmatpush1.bf16.msra.mxu0 %v18557_v26  ;;  %v18616_v26 = vld [vmem:[#allocation2 + $0x1eec] ss:$112 sps:$4 sm:$0xff]  }
 0x3d9   : > { %10333 = vmatpush1.bf16.msra.mxu1 %v18548_v20  ;;  %10199 = vmatprep.subr.bf16.mxu0 %v18565_v28  ;;  %v18611_v20 = vld [vmem:[#allocation2 + $0x25e0] ss:$112 sps:$4 sm:$0xff]   ;;  %v18614_v28 = vld [vmem:[#allocation2 + $0x1ee8] ss:$112 sps:$4 sm:$0xff]  }
 0x3da   : > { %10334 = vmatprep.subr.bf16.mxu1 %v18556_v25  ;;  %v18619_v25 = vld [vmem:[#allocation2 + $0x26c4] ss:$112 sps:$4 sm:$0xff]  }
 0x3dc   : > { %10200 = vmatpush1.bf16.msra.mxu0 %v18563_v35  ;;  %v18622_v35 = vld [vmem:[#allocation2 + $0x1fcc] ss:$112 sps:$4 sm:$0xff]  }
 0x3dd   : > { %10335 = vmatpush1.bf16.msra.mxu1 %v18554_v52  ;;  %10201 = vmatprep.subr.bf16.mxu0 %v18571_v41  ;;  %v18617_v52 = vld [vmem:[#allocation2 + $0x26c0] ss:$112 sps:$4 sm:$0xff]   ;;  %v18620_v41 = vld [vmem:[#allocation2 + $0x1fc8] ss:$112 sps:$4 sm:$0xff]  }
 0x3de   : > { %10336 = vmatprep.subr.bf16.mxu1 %v18562_v32  ;;  %v18625_v32 = vld [vmem:[#allocation2 + $0x27a4] ss:$112 sps:$4 sm:$0xff]  }
 0x3e0   : > { %10202 = vmatpush1.bf16.msra.mxu0 %v18569_v45  ;;  %v18628_v45 = vld [vmem:[#allocation2 + $0x20ac] ss:$112 sps:$4 sm:$0xff]  }
 0x3e1   : > { %10337 = vmatpush1.bf16.msra.mxu1 %v18560_v37  ;;  %10203 = vmatprep.subr.bf16.mxu0 %v18577_v47  ;;  %v18623_v37 = vld [vmem:[#allocation2 + $0x27a0] ss:$112 sps:$4 sm:$0xff]   ;;  %v18626_v47 = vld [vmem:[#allocation2 + $0x20a8] ss:$112 sps:$4 sm:$0xff]  }
 0x3e2   : > { %10338 = vmatprep.subr.bf16.mxu1 %v18568_v43  ;;  %v18631_v43 = vld [vmem:[#allocation2 + $0x2884] ss:$112 sps:$4 sm:$0xff]  }
 0x3e4   : > { %10204 = vmatpush1.bf16.msra.mxu0 %v18575_v48  ;;  %v18634_v48 = vld [vmem:[#allocation2 + $0x218c] ss:$112 sps:$4 sm:$0xff]  }
 0x3e5   : > { %10339 = vmatpush1.bf16.msra.mxu1 %v18566_v46  ;;  %10205 = vmatprep.subr.bf16.mxu0 %v18583_v57  ;;  %v18629_v46 = vld [vmem:[#allocation2 + $0x2880] ss:$112 sps:$4 sm:$0xff]   ;;  %v18632_v57 = vld [vmem:[#allocation2 + $0x2188] ss:$112 sps:$4 sm:$0xff]  }
 0x3e6   : > { %10340 = vmatprep.subr.bf16.mxu1 %v18574_v54  ;;  %v18637_v54 = vld [vmem:[#allocation2 + $0x2964] ss:$112 sps:$4 sm:$0xff]  }
 0x3e8   : > { %10206 = vmatpush1.bf16.msra.mxu0 %v18581_v50  ;;  %v18640_v50 = vld [vmem:[#allocation2 + $0x226c] ss:$112 sps:$4 sm:$0xff]  }
 0x3e9   : > { %10341 = vmatpush1.bf16.msra.mxu1 %v18572_v49  ;;  %10207 = vmatprep.subr.bf16.mxu0 %v18589_v59  ;;  %v18635_v49 = vld [vmem:[#allocation2 + $0x2960] ss:$112 sps:$4 sm:$0xff]   ;;  %v18638_v59 = vld [vmem:[#allocation2 + $0x2268] ss:$112 sps:$4 sm:$0xff]  }
 0x3ea   : > { %10342 = vmatprep.subr.bf16.mxu1 %v18580_v38  ;;  %v18643_v38 = vld [vmem:[#allocation2 + $0x2a44] ss:$112 sps:$4 sm:$0xff]  }
 0x3ec   : > { %10208 = vmatpush1.bf16.msra.mxu0 %v18587_v62  ;;  %v18646_v62 = vld [vmem:[#allocation2 + $0x234c] ss:$112 sps:$4 sm:$0xff]  }
 0x3ed   : > { %10343 = vmatpush1.bf16.msra.mxu1 %v18578_v56  ;;  %10209 = vmatprep.subr.bf16.mxu0 %v18595_v1  ;;  %v18641_v56 = vld [vmem:[#allocation2 + $0x2a40] ss:$112 sps:$4 sm:$0xff]   ;;  %v18649_v1 = vld [vmem:[#allocation2 + $0x242c] ss:$112 sps:$4 sm:$0xff]  }
 0x3ee   : > { %10344 = vmatprep.subr.bf16.mxu1 %v18586_v61  ;;  %v18655_v61 = vld [vmem:[#allocation2 + $0x54] ss:$112 sps:$4 sm:$0xff]  }
 0x3f0   : > { %10210 = vmatpush1.bf16.msra.mxu0 %v18593_v4  ;;  %v18652_v4 = vld [vmem:[#allocation2 + $0x250c] ss:$112 sps:$4 sm:$0xff]  }
 0x3f1   : > { %10345 = vmatpush1.bf16.msra.mxu1 %v18584_v63  ;;  %10211 = vmatprep.subr.bf16.mxu0 %v18601_v44  ;;  %v18644_v63 = vld [vmem:[#allocation2 + $0x2348] ss:$112 sps:$4 sm:$0xff]  }
 0x3f2   : > { %10346 = vmatprep.subr.bf16.mxu1 %v18592_v2  ;;  %v18647_v2 = vld [vmem:[#allocation2 + $0x2428] ss:$112 sps:$4 sm:$0xff]  }
 0x3f3   : > { %v18650_v44 = vld [vmem:[#allocation2 + $0x2508] ss:$112 sps:$4 sm:$0xff]  }
 0x3f4   : > { %10212 = vmatpush1.bf16.msra.mxu0 %v18599_v7  ;;  %v19756_v7 = vsub.s32 6, %v19606_v12  ;;  %v1846_v12 = vrot.slane %v19705_v27, %v19651_v31 }
 0x3f5   : > { %10347 = vmatpush1.bf16.msra.mxu1 %v18590_v53  ;;  %10213 = vmatprep.subr.bf16.mxu0 %v18607_v8  ;;  %v18653_v53 = vld [vmem:[#allocation2 + $0x50] ss:$112 sps:$4 sm:$0xff]  }
 0x3f6   : > { %10357 = vmatprep.subr.bf16.mxu1 %v18598_v5  ;;  %v18661_v5 = vld [vmem:[#allocation2 + $0x134] ss:$112 sps:$4 sm:$0xff]   ;;  %v18659_v8 = vld [vmem:[#allocation2 + $0x130] ss:$112 sps:$4 sm:$0xff]  }
 0x3f8   : > { %10349 = vmatmul.mubr.bf16.vlgmr.msra.gmra.mrb[24].mxu1 %v19570_v18  ;;  %10214 = vmatpush1.bf16.msra.mxu0 %v18605_v11  ;;  %v18667_v11 = vld [vmem:[#allocation2 + $0x214] ss:$112 sps:$4 sm:$0xff]  }
 0x3f9   : > { %10358 = vmatpush1.bf16.msra.mxu1 %v18596_v6  ;;  %10389 = vmatprep.mubr.bf16.mxu1 %v19573_v24  ;;  %v18658_v6 = vld [vmem:[#allocation2 + $0x25ec] ss:$112 sps:$4 sm:$0xff]  }
 0x3fa   : > { %10359 = vmatprep.subr.bf16.mxu1 %v18604_v55  ;;  %10215 = vmatprep.subr.bf16.mxu0 %v18613_v16  ;;  %v18656_v55 = vld [vmem:[#allocation2 + $0x25e8] ss:$112 sps:$4 sm:$0xff]   ;;  %v18664_v16 = vld [vmem:[#allocation2 + $0x26cc] ss:$112 sps:$4 sm:$0xff]  }
 0x3fc   : > { %10216 = vmatpush1.bf16.msra.mxu0 %v18611_v20  ;;  %v1850_v20 = vrot.slane %v19705_v27, %v19654_v33  ;;  %v18668_v27 = vld [vmem:[#allocation2 + $0x27a8] ss:$112 sps:$4 sm:$0xff]  }
 0x3fd   : > { %10360 = vmatpush1.bf16.msra.mxu1 %v18602_v14  ;;  %10217 = vmatprep.subr.bf16.mxu0 %v18619_v25  ;;  %v1822_v14 = vrot.slane %v19711_v34, %v19756_v7  ;;  %v18673_v25 = vld [vmem:[#allocation2 + $0x2f4] ss:$112 sps:$4 sm:$0xff]  }
 0x3fe   : > { %10361 = vmatprep.subr.bf16.mxu1 %v18610_v17  ;;  %v18665_v17 = vld [vmem:[#allocation2 + $0x210] ss:$112 sps:$4 sm:$0xff]  }
 0x400   : > { %10218 = vmatpush1.bf16.msra.mxu0 %v18617_v52 }
 0x401   : > { %10362 = vmatpush1.bf16.msra.mxu1 %v18608_v22  ;;  %10219 = vmatprep.subr.bf16.mxu0 %v18625_v32  ;;  %v18662_v22 = vld [vmem:[#allocation2 + $0x26c8] ss:$112 sps:$4 sm:$0xff]  }
 0x402   : > { %10363 = vmatprep.subr.bf16.mxu1 %v18616_v26  ;;  %v16907_v26 = vadd.f32 %v19682_v42, %v1822_v14  ;;  %v18676_v42 = vld [vmem:[#allocation2 + $0x288c] ss:$112 sps:$4 sm:$0xff]   ;;  %v18709_v14 = vld [vmem:[#allocation2 + $0x914] ss:$112 sps:$4 sm:$0xff]  }
 0x404   : > { %10220 = vmatpush1.bf16.msra.mxu0 %v18623_v37 }
 0x405   : > { %10364 = vmatpush1.bf16.msra.mxu1 %v18614_v28  ;;  %10221 = vmatprep.subr.bf16.mxu0 %v18631_v43  ;;  %v18670_v28 = vld [vmem:[#allocation2 + $0x27ac] ss:$112 sps:$4 sm:$0xff]   ;;  %v18671_v43 = vld [vmem:[#allocation2 + $0x2f0] ss:$112 sps:$4 sm:$0xff]  }
 0x406   : > { %10365 = vmatprep.subr.bf16.mxu1 %v18622_v35  ;;  %v11100_v35 = vmax.f32 %v19670_v60, 0.0  ;;  %v18677_v60 = vld [vmem:[#allocation2 + $0x3d0] ss:$112 sps:$4 sm:$0xff]  }
 0x408   : > { %10222 = vmatpush1.bf16.msra.mxu0 %v18629_v46 }
 0x409   : > { %10366 = vmatpush1.bf16.msra.mxu1 %v18620_v41  ;;  %10223 = vmatprep.subr.bf16.mxu0 %v18637_v54  ;;  %v11101_v54 = vmax.f32 %v16907_v26, 0.0 }
 0x40a   : > { %10367 = vmatprep.subr.bf16.mxu1 %v18628_v45 }
 0x40c   : > { %10224 = vmatpush1.bf16.msra.mxu0 %v18635_v49 }
 0x40d   : > { %10368 = vmatpush1.bf16.msra.mxu1 %v18626_v47  ;;  %10234 = vmatprep.subr.bf16.mxu0 %v18643_v38  ;;  %v18679_v47 = vld [vmem:[#allocation2 + $0x3d4] ss:$112 sps:$4 sm:$0xff]   ;;  %v18674_v38 = vld [vmem:[#allocation2 + $0x2888] ss:$112 sps:$4 sm:$0xff]  }
 0x40e   : > { %10369 = vmatprep.subr.bf16.mxu1 %v18634_v48 }
 0x40f   : > { %10226 = vmatmul.mubr.bf16.vlgmr.msra.gmra.mrb[16].mxu0 %v19580_v29 }
 0x410   : > { %10235 = vmatpush1.bf16.msra.mxu0 %v18641_v56  ;;  %10266 = vmatprep.mubr.bf16.mxu0 %v19394_v0  ;;  %v18682_v56 = vld [vmem:[#allocation2 + $0x296c] ss:$112 sps:$4 sm:$0xff]  }
 0x411   : > { %10370 = vmatpush1.bf16.msra.mxu1 %v18632_v57  ;;  %10439 = vmatprep.subr.bf16.mxu0 %v18655_v61  ;;  %v18680_v61 = vld [vmem:[#allocation2 + $0x2968] ss:$112 sps:$4 sm:$0xff]  }
 0x412   : > { %10371 = vmatprep.subr.bf16.mxu1 %v18640_v50  ;;  %v18685_v50 = vld [vmem:[#allocation2 + $0x4b4] ss:$112 sps:$4 sm:$0xff]  }
 0x415   : > { %10372 = vmatpush1.bf16.msra.mxu1 %v18638_v59  ;;  %v18683_v59 = vld [vmem:[#allocation2 + $0x4b0] ss:$112 sps:$4 sm:$0xff]  }
 0x416   : > { %10373 = vmatprep.subr.bf16.mxu1 %v18646_v62  ;;  %v18688_v62 = vld [vmem:[#allocation2 + $0x594] ss:$112 sps:$4 sm:$0xff]  }
 0x419   : > { %10374 = vmatpush1.bf16.msra.mxu1 %v18644_v63  ;;  %v18694_v63 = vld [vmem:[#allocation2 + $0x2a4c] ss:$112 sps:$4 sm:$0xff]  }
 0x41a   : > { %10375 = vmatprep.subr.bf16.mxu1 %v18649_v1  ;;  %v18686_v1 = vld [vmem:[#allocation2 + $0x590] ss:$112 sps:$4 sm:$0xff]  }
 0x41b   : > { %16336 = vmatmul.mubr.msk.bf16.vlgmr.msra.gmra.mrb[16].mxu0 %vm8795_vm0, %v19550_v10 }
 0x41c   : > { %10440 = vmatpush1.bf16.msra.mxu0 %v18653_v53  ;;  %10471 = vmatprep.mubr.bf16.mxu0 %v19555_v51  ;;  %v18700_v53 = vld [vmem:[#allocation2 + $0x5c] ss:$112 sps:$4 sm:$0xff]  }
 0x41d   : > { %10376 = vmatpush1.bf16.msra.mxu1 %v18647_v2  ;;  %10441 = vmatprep.subr.bf16.mxu0 %v18661_v5  ;;  %v18691_v2 = vld [vmem:[#allocation2 + $0x674] ss:$112 sps:$4 sm:$0xff]  }
 0x41e   : > { %10377 = vmatprep.subr.bf16.mxu1 %v18652_v4  ;;  %v18692_v4 = vld [vmem:[#allocation2 + $0x2a48] ss:$112 sps:$4 sm:$0xff]   ;;  %v18697_v5 = vld [vmem:[#allocation2 + $0x754] ss:$112 sps:$4 sm:$0xff]  }
 0x420   : > { %10442 = vmatpush1.bf16.msra.mxu0 %v18659_v8  ;;  %v18703_v8 = vld [vmem:[#allocation2 + $0x834] ss:$112 sps:$4 sm:$0xff]  }
 0x421   : > { %10378 = vmatpush1.bf16.msra.mxu1 %v18650_v44  ;;  %10443 = vmatprep.subr.bf16.mxu0 %v18667_v11  ;;  %v18689_v44 = vld [vmem:[#allocation2 + $0x670] ss:$112 sps:$4 sm:$0xff]   ;;  %v18698_v11 = vld [vmem:[#allocation2 + $0x58] ss:$112 sps:$4 sm:$0xff]  }
 0x422   : > { %10379 = vmatprep.subr.bf16.mxu1 %v18658_v6  ;;  %v9940_v52 = vpop.f32.mrb[12].mxu0  ;;  %v18695_v6 = vld [vmem:[#allocation2 + $0x750] ss:$112 sps:$4 sm:$0xff]  }
 0x423   : > { %v16913_v34 = vadd.f32 %v9940_v52, %v1846_v12  ;;  %v9942_v32 = vpop.f32.mrb[13].mxu0  ;;  %v18707_v12 = vld [vmem:[#allocation2 + $0x910] ss:$112 sps:$4 sm:$0xff]  }
 0x424   : > { %10444 = vmatpush1.bf16.msra.mxu0 %v18665_v17  ;;  %v16914_v37 = vadd.f32 %v9942_v32, %v1850_v20  ;;  %v9944_v41 = vpop.f32.mrb[14].mxu0  ;;  %v18704_v17 = vld [vmem:[#allocation2 + $0x138] ss:$112 sps:$4 sm:$0xff]   ;;  %v18715_v20 = vld [vmem:[#allocation2 + $0x9f4] ss:$112 sps:$4 sm:$0xff]  }
 0x425   : > { %10380 = vmatpush1.bf16.msra.mxu1 %v18656_v55  ;;  %v11107_v45 = vmax.f32 %v16913_v34, 0.0  ;;  %v9945_v46 = vpop.f32.mrb[15].mxu0  ;;  %10445 = vmatprep.subr.bf16.mxu0 %v18673_v25  ;;  %v18701_v55 = vld [vmem:[#allocation2 + $0x830] ss:$112 sps:$4 sm:$0xff]   ;;  %v19293_v25 = vld [vmem:[%s21452_s2 + $0x8] sm:$0xff] }
 0x426   : > { %10381 = vmatprep.subr.bf16.mxu1 %v18664_v16  ;;  %v11108_v48 = vmax.f32 %v16914_v37, 0.0  ;;  %v18706_v16 = vld [vmem:[#allocation2 + $0x13c] ss:$112 sps:$4 sm:$0xff]   ;;  %v1854_v26 = vrot.slane %v19293_v25, %v19756_v7  ;;  %v18713_v52 = vld [vmem:[#allocation2 + $0x9f0] ss:$112 sps:$4 sm:$0xff]   ;;  %v1858_v34 = vrot.slane %v19293_v25, %v19677_v30 }
 0x427   : > { %v19769_v49 = vmax.f32 %v11100_v35, %v11107_v45  ;;  %v18721_v32 = vld [vmem:[#allocation2 + $0xad4] ss:$112 sps:$4 sm:$0xff]   ;;  %v18718_v35 = vld [vmem:[#allocation2 + $0x2fc] ss:$112 sps:$4 sm:$0xff]   ;;  %v18719_v45 = vld [vmem:[#allocation2 + $0xad0] ss:$112 sps:$4 sm:$0xff]  }
 0x428   : > { %v19771_v57 = vmax.f32 %v11101_v54, %v11108_v48  ;;  %10446 = vmatpush1.bf16.msra.mxu0 %v18671_v43  ;;  %v18727_v54 = vld [vmem:[#allocation2 + $0xbb4] ss:$112 sps:$4 sm:$0xff]  }
 0x429   : > { %10382 = vmatpush1.bf16.msra.mxu1 %v18662_v22  ;;  %10447 = vmatprep.subr.bf16.mxu0 %v18679_v47  ;;  %v18712_v22 = vld [vmem:[#allocation2 + $0x21c] ss:$112 sps:$4 sm:$0xff]   ;;  %v18716_v47 = vld [vmem:[#allocation2 + $0x2f8] ss:$112 sps:$4 sm:$0xff]   ;;  %v18763_v25 = vld [vmem:[#allocation2 + $0x10f4] ss:$112 sps:$4 sm:$0xff]  }
 0x42a   : > { %10383 = vmatprep.subr.bf16.mxu1 %v18670_v28  ;;  %v18710_v28 = vld [vmem:[#allocation2 + $0x218] ss:$112 sps:$4 sm:$0xff]  }
 0x42c   : > { %10448 = vmatpush1.bf16.msra.mxu0 %v18677_v60  ;;  %v18724_v60 = vld [vmem:[#allocation2 + $0x3dc] ss:$112 sps:$4 sm:$0xff]  }
 0x42d   : > { %10384 = vmatpush1.bf16.msra.mxu1 %v18668_v27  ;;  %10449 = vmatprep.subr.bf16.mxu0 %v18685_v50 }
 0x42e   : > { %10385 = vmatprep.subr.bf16.mxu1 %v18676_v42 }
 0x430   : > { %10450 = vmatpush1.bf16.msra.mxu0 %v18683_v59 }
 0x431   : > { %10386 = vmatpush1.bf16.msra.mxu1 %v18674_v38  ;;  %10451 = vmatprep.subr.bf16.mxu0 %v18688_v62  ;;  %v18733_v62 = vld [vmem:[#allocation2 + $0xc94] ss:$112 sps:$4 sm:$0xff]  }
 0x432   : > { %10387 = vmatprep.subr.bf16.mxu1 %v18682_v56  ;;  %v18725_v56 = vld [vmem:[#allocation2 + $0xbb0] ss:$112 sps:$4 sm:$0xff]  }
 0x434   : > { %10452 = vmatpush1.bf16.msra.mxu0 %v18686_v1  ;;  %v18731_v1 = vld [vmem:[#allocation2 + $0xc90] ss:$112 sps:$4 sm:$0xff]  }
 0x435   : > { %10388 = vmatpush1.bf16.msra.mxu1 %v18680_v61  ;;  %10453 = vmatprep.subr.bf16.mxu0 %v18691_v2  ;;  %v18722_v61 = vld [vmem:[#allocation2 + $0x3d8] ss:$112 sps:$4 sm:$0xff]  }
 0x436   : > { %10398 = vmatprep.subr.bf16.mxu1 %v18694_v63  ;;  %v18730_v63 = vld [vmem:[#allocation2 + $0x4bc] ss:$112 sps:$4 sm:$0xff]   ;;  %v18728_v2 = vld [vmem:[#allocation2 + $0x4b8] ss:$112 sps:$4 sm:$0xff]  }
 0x438   : > { %10390 = vmatmul.mubr.bf16.vlgmr.msra.gmra.mrb[24].mxu1 %v19580_v29  ;;  %10454 = vmatpush1.bf16.msra.mxu0 %v18689_v44  ;;  %v18734_v44 = vld [vmem:[#allocation2 + $0x598] ss:$112 sps:$4 sm:$0xff]  }
 0x439   : > { %10399 = vmatpush1.bf16.msra.mxu1 %v18692_v4  ;;  %10430 = vmatprep.mubr.bf16.mxu1 %v19394_v0  ;;  %v18739_v4 = vld [vmem:[#allocation2 + $0xd74] ss:$112 sps:$4 sm:$0xff]  }
 0x43a   : > { %10603 = vmatprep.subr.bf16.mxu1 %v18700_v53  ;;  %10455 = vmatprep.subr.bf16.mxu0 %v18697_v5  ;;  %v18737_v53 = vld [vmem:[#allocation2 + $0xd70] ss:$112 sps:$4 sm:$0xff]   ;;  %v18742_v5 = vld [vmem:[#allocation2 + $0x67c] ss:$112 sps:$4 sm:$0xff]  }
 0x43c   : > { %10456 = vmatpush1.bf16.msra.mxu0 %v18695_v6  ;;  %v18743_v6 = vld [vmem:[#allocation2 + $0xe50] ss:$112 sps:$4 sm:$0xff]  }
 0x43d   : > { %10457 = vmatprep.subr.bf16.mxu0 %v18703_v8  ;;  %v18740_v8 = vld [vmem:[#allocation2 + $0x678] ss:$112 sps:$4 sm:$0xff]  }
 0x440   : > { %10458 = vmatpush1.bf16.msra.mxu0 %v18701_v55  ;;  %v18751_v55 = vld [vmem:[#allocation2 + $0xf34] ss:$112 sps:$4 sm:$0xff]  }
 0x441   : > { %10459 = vmatprep.subr.bf16.mxu0 %v18709_v14  ;;  %v18749_v14 = vld [vmem:[#allocation2 + $0xf30] ss:$112 sps:$4 sm:$0xff]  }
 0x444   : > { %16337 = vmatmul.mubr.msk.bf16.vlgmr.msra.gmra.mrb[24].mxu1 %vm8795_vm0, %v19550_v10  ;;  %10460 = vmatpush1.bf16.msra.mxu0 %v18707_v12  ;;  %v18757_v12 = vld [vmem:[#allocation2 + $0x1014] ss:$112 sps:$4 sm:$0xff]  }
 0x445   : > { %10604 = vmatpush1.bf16.msra.mxu1 %v18698_v11  ;;  %10635 = vmatprep.mubr.bf16.mxu1 %v19555_v51  ;;  %v18748_v11 = vld [vmem:[#allocation2 + $0x75c] ss:$112 sps:$4 sm:$0xff]  }
 0x446   : > { %10605 = vmatprep.subr.bf16.mxu1 %v18706_v16  ;;  %10461 = vmatprep.subr.bf16.mxu0 %v18715_v20  ;;  %v18746_v16 = vld [vmem:[#allocation2 + $0x758] ss:$112 sps:$4 sm:$0xff]   ;;  %v18755_v20 = vld [vmem:[#allocation2 + $0x1010] ss:$112 sps:$4 sm:$0xff]  }
 0x448   : > { %10462 = vmatpush1.bf16.msra.mxu0 %v18713_v52  ;;  %v18761_v52 = vld [vmem:[#allocation2 + $0x10f0] ss:$112 sps:$4 sm:$0xff]  }
 0x449   : > { %10606 = vmatpush1.bf16.msra.mxu1 %v18704_v17  ;;  %10463 = vmatprep.subr.bf16.mxu0 %v18721_v32  ;;  %v18754_v17 = vld [vmem:[#allocation2 + $0x83c] ss:$112 sps:$4 sm:$0xff]  }
 0x44a   : > { %10607 = vmatprep.subr.bf16.mxu1 %v18712_v22  ;;  %v18752_v22 = vld [vmem:[#allocation2 + $0x838] ss:$112 sps:$4 sm:$0xff]   ;;  %v18766_v32 = vld [vmem:[#allocation2 + $0x9fc] ss:$112 sps:$4 sm:$0xff]  }
 0x44b   : > { %v10104_v37 = vpop.f32.mrb[20].mxu1 }
 0x44c   : > { %v16915_v41 = vadd.f32 %v10104_v37, %v1854_v26  ;;  %v10106_v43 = vpop.f32.mrb[21].mxu1  ;;  %10464 = vmatpush1.bf16.msra.mxu0 %v18719_v45  ;;  %v18760_v26 = vld [vmem:[#allocation2 + $0x91c] ss:$112 sps:$4 sm:$0xff]   ;;  %v18764_v37 = vld [vmem:[#allocation2 + $0x9f8] ss:$112 sps:$4 sm:$0xff]  }
 0x44d   : > { %10608 = vmatpush1.bf16.msra.mxu1 %v18710_v28  ;;  %v16916_v27 = vadd.f32 %v10106_v43, %v1858_v34  ;;  %v10108_v46 = vpop.f32.mrb[22].mxu1  ;;  %10465 = vmatprep.subr.bf16.mxu0 %v18727_v54  ;;  %v18758_v28 = vld [vmem:[#allocation2 + $0x918] ss:$112 sps:$4 sm:$0xff]   ;;  %v18769_v34 = vld [vmem:[#allocation2 + $0x11d4] ss:$112 sps:$4 sm:$0xff]  }
 0x44e   : > { %v11109_v48 = vmax.f32 %v16915_v41, 0.0  ;;  %v10109_v42 = vpop.f32.mrb[23].mxu1  ;;  %10609 = vmatprep.subr.bf16.mxu1 %v18718_v35  ;;  %v18767_v35 = vld [vmem:[#allocation2 + $0x11d0] ss:$112 sps:$4 sm:$0xff]   ;;  %v18775_v41 = vld [vmem:[#allocation2 + $0x12b4] ss:$112 sps:$4 sm:$0xff]  }
 0x44f   : > { %v11110_v38 = vmax.f32 %v16916_v27, 0.0  ;;  %v18772_v43 = vld [vmem:[#allocation2 + $0xadc] ss:$112 sps:$4 sm:$0xff]   ;;  %v18773_v45 = vld [vmem:[#allocation2 + $0x12b0] ss:$112 sps:$4 sm:$0xff]  }
 0x450   : > { %v19784_v50 = vmax.f32 %v19685_v58, %v11109_v48  ;;  %10466 = vmatpush1.bf16.msra.mxu0 %v18725_v56  ;;  %v18736_v58 = vld [vmem:[#allocation2 + $0x59c] ss:$112 sps:$4 sm:$0xff]   ;;  %v18770_v27 = vld [vmem:[#allocation2 + $0xad8] ss:$112 sps:$4 sm:$0xff]   ;;  %v18781_v46 = vld [vmem:[#allocation2 + $0x1394] ss:$112 sps:$4 sm:$0xff]  }
 0x451   : > { %v19787_v59 = vmax.f32 %v19721_v40, %v11110_v38  ;;  %10610 = vmatpush1.bf16.msra.mxu1 %v18716_v47  ;;  %10467 = vmatprep.subr.bf16.mxu0 %v18733_v62  ;;  %v18745_v40 = vld [vmem:[#allocation2 + $0xe54] ss:$112 sps:$4 sm:$0xff]   ;;  %v18778_v47 = vld [vmem:[#allocation2 + $0xbbc] ss:$112 sps:$4 sm:$0xff]   ;;  %v18779_v54 = vld [vmem:[#allocation2 + $0x1390] ss:$112 sps:$4 sm:$0xff]  }
 0x452   : > { %10611 = vmatprep.subr.bf16.mxu1 %v18724_v60  ;;  %v18776_v48 = vld [vmem:[#allocation2 + $0xbb8] ss:$112 sps:$4 sm:$0xff]   ;;  %v18787_v42 = vld [vmem:[#allocation2 + $0x1474] ss:$112 sps:$4 sm:$0xff]   ;;  %v18784_v60 = vld [vmem:[#allocation2 + $0xc9c] ss:$112 sps:$4 sm:$0xff]  }
 0x453   : > { %v18785_v38 = vld [vmem:[#allocation2 + $0x1470] ss:$112 sps:$4 sm:$0xff]   ;;  %v18782_v56 = vld [vmem:[#allocation2 + $0xc98] ss:$112 sps:$4 sm:$0xff]   ;;  %v18790_v62 = vld [vmem:[#allocation2 + $0xd7c] ss:$112 sps:$4 sm:$0xff]  }
 0x454   : > { %10468 = vmatpush1.bf16.msra.mxu0 %v18731_v1  ;;  %v18788_v1 = vld [vmem:[#allocation2 + $0xd78] ss:$112 sps:$4 sm:$0xff]  }
 0x455   : > { %10612 = vmatpush1.bf16.msra.mxu1 %v18722_v61  ;;  %10469 = vmatprep.subr.bf16.mxu0 %v18739_v4  ;;  %v18793_v61 = vld [vmem:[#allocation2 + $0x1554] ss:$112 sps:$4 sm:$0xff]   ;;  %v18796_v4 = vld [vmem:[#allocation2 + $0xe5c] ss:$112 sps:$4 sm:$0xff]  }
 0x456   : > { %10613 = vmatprep.subr.bf16.mxu1 %v18730_v63  ;;  %v18791_v63 = vld [vmem:[#allocation2 + $0x1550] ss:$112 sps:$4 sm:$0xff]  }
 0x458   : > { %10470 = vmatpush1.bf16.msra.mxu0 %v18737_v53  ;;  %v18794_v53 = vld [vmem:[#allocation2 + $0xe58] ss:$112 sps:$4 sm:$0xff]  }
 0x459   : > { %10614 = vmatpush1.bf16.msra.mxu1 %v18728_v2  ;;  %10480 = vmatprep.subr.bf16.mxu0 %v18745_v40  ;;  %v18799_v2 = vld [vmem:[#allocation2 + $0x1634] ss:$112 sps:$4 sm:$0xff]   ;;  %v18802_v40 = vld [vmem:[#allocation2 + $0xf3c] ss:$112 sps:$4 sm:$0xff]  }
 0x45a   : > { %10615 = vmatprep.subr.bf16.mxu1 %v18736_v58  ;;  %v18797_v58 = vld [vmem:[#allocation2 + $0x1630] ss:$112 sps:$4 sm:$0xff]  }
 0x45b   : > { %10472 = vmatmul.mubr.bf16.vlgmr.msra.gmra.mrb[20].mxu0 %v19560_v9 }
 0x45c   : > { %10481 = vmatpush1.bf16.msra.mxu0 %v18743_v6  ;;  %10512 = vmatprep.mubr.bf16.mxu0 %v19565_v36  ;;  %v18800_v6 = vld [vmem:[#allocation2 + $0xf38] ss:$112 sps:$4 sm:$0xff]  }
 0x45d   : > { %10616 = vmatpush1.bf16.msra.mxu1 %v18734_v44  ;;  %10482 = vmatprep.subr.bf16.mxu0 %v18751_v55  ;;  %v18805_v44 = vld [vmem:[#allocation2 + $0x1714] ss:$112 sps:$4 sm:$0xff]   ;;  %v18808_v55 = vld [vmem:[#allocation2 + $0x101c] ss:$112 sps:$4 sm:$0xff]  }
 0x45e   : > { %10617 = vmatprep.subr.bf16.mxu1 %v18742_v5  ;;  %v18803_v5 = vld [vmem:[#allocation2 + $0x1710] ss:$112 sps:$4 sm:$0xff]  }
 0x460   : > { %10483 = vmatpush1.bf16.msra.mxu0 %v18749_v14  ;;  %v18806_v14 = vld [vmem:[#allocation2 + $0x1018] ss:$112 sps:$4 sm:$0xff]  }
 0x461   : > { %10618 = vmatpush1.bf16.msra.mxu1 %v18740_v8  ;;  %10484 = vmatprep.subr.bf16.mxu0 %v18757_v12  ;;  %v18811_v8 = vld [vmem:[#allocation2 + $0x17f4] ss:$112 sps:$4 sm:$0xff]   ;;  %v18814_v12 = vld [vmem:[#allocation2 + $0x10fc] ss:$112 sps:$4 sm:$0xff]  }
 0x462   : > { %10619 = vmatprep.subr.bf16.mxu1 %v18748_v11  ;;  %v18809_v11 = vld [vmem:[#allocation2 + $0x17f0] ss:$112 sps:$4 sm:$0xff]  }
 0x464   : > { %10485 = vmatpush1.bf16.msra.mxu0 %v18755_v20  ;;  %v18812_v20 = vld [vmem:[#allocation2 + $0x10f8] ss:$112 sps:$4 sm:$0xff]  }
 0x465   : > { %10620 = vmatpush1.bf16.msra.mxu1 %v18746_v16  ;;  %10486 = vmatprep.subr.bf16.mxu0 %v18763_v25  ;;  %v18817_v16 = vld [vmem:[#allocation2 + $0x18d4] ss:$112 sps:$4 sm:$0xff]   ;;  %v18820_v25 = vld [vmem:[#allocation2 + $0x11dc] ss:$112 sps:$4 sm:$0xff]  }
 0x466   : > { %10621 = vmatprep.subr.bf16.mxu1 %v18754_v17  ;;  %v18815_v17 = vld [vmem:[#allocation2 + $0x18d0] ss:$112 sps:$4 sm:$0xff]  }
 0x468   : > { %10487 = vmatpush1.bf16.msra.mxu0 %v18761_v52  ;;  %v18818_v52 = vld [vmem:[#allocation2 + $0x11d8] ss:$112 sps:$4 sm:$0xff]  }
 0x469   : > { %10622 = vmatpush1.bf16.msra.mxu1 %v18752_v22  ;;  %10488 = vmatprep.subr.bf16.mxu0 %v18769_v34  ;;  %v18823_v22 = vld [vmem:[#allocation2 + $0x19b4] ss:$112 sps:$4 sm:$0xff]   ;;  %v18826_v34 = vld [vmem:[#allocation2 + $0x12bc] ss:$112 sps:$4 sm:$0xff]  }
 0x46a   : > { %10623 = vmatprep.subr.bf16.mxu1 %v18760_v26  ;;  %v18821_v26 = vld [vmem:[#allocation2 + $0x19b0] ss:$112 sps:$4 sm:$0xff]  }
 0x46c   : > { %10489 = vmatpush1.bf16.msra.mxu0 %v18767_v35  ;;  %v18824_v35 = vld [vmem:[#allocation2 + $0x12b8] ss:$112 sps:$4 sm:$0xff]  }
 0x46d   : > { %10624 = vmatpush1.bf16.msra.mxu1 %v18758_v28  ;;  %10490 = vmatprep.subr.bf16.mxu0 %v18775_v41  ;;  %v18829_v28 = vld [vmem:[#allocation2 + $0x1a94] ss:$112 sps:$4 sm:$0xff]   ;;  %v18832_v41 = vld [vmem:[#allocation2 + $0x139c] ss:$112 sps:$4 sm:$0xff]  }
 0x46e   : > { %10625 = vmatprep.subr.bf16.mxu1 %v18766_v32  ;;  %v18827_v32 = vld [vmem:[#allocation2 + $0x1a90] ss:$112 sps:$4 sm:$0xff]  }
 0x470   : > { %10491 = vmatpush1.bf16.msra.mxu0 %v18773_v45  ;;  %v18830_v45 = vld [vmem:[#allocation2 + $0x1398] ss:$112 sps:$4 sm:$0xff]  }
 0x471   : > { %10626 = vmatpush1.bf16.msra.mxu1 %v18764_v37  ;;  %10492 = vmatprep.subr.bf16.mxu0 %v18781_v46  ;;  %v18835_v37 = vld [vmem:[#allocation2 + $0x1b74] ss:$112 sps:$4 sm:$0xff]   ;;  %v18838_v46 = vld [vmem:[#allocation2 + $0x147c] ss:$112 sps:$4 sm:$0xff]  }
 0x472   : > { %10627 = vmatprep.subr.bf16.mxu1 %v18772_v43  ;;  %v18833_v43 = vld [vmem:[#allocation2 + $0x1b70] ss:$112 sps:$4 sm:$0xff]  }
 0x474   : > { %10493 = vmatpush1.bf16.msra.mxu0 %v18779_v54  ;;  %v18836_v54 = vld [vmem:[#allocation2 + $0x1478] ss:$112 sps:$4 sm:$0xff]  }
 0x475   : > { %10628 = vmatpush1.bf16.msra.mxu1 %v18770_v27  ;;  %10494 = vmatprep.subr.bf16.mxu0 %v18787_v42  ;;  %v18841_v27 = vld [vmem:[#allocation2 + $0x1c54] ss:$112 sps:$4 sm:$0xff]   ;;  %v18844_v42 = vld [vmem:[#allocation2 + $0x155c] ss:$112 sps:$4 sm:$0xff]  }
 0x476   : > { %10629 = vmatprep.subr.bf16.mxu1 %v18778_v47  ;;  %v18839_v47 = vld [vmem:[#allocation2 + $0x1c50] ss:$112 sps:$4 sm:$0xff]  }
 0x478   : > { %10495 = vmatpush1.bf16.msra.mxu0 %v18785_v38  ;;  %v18842_v38 = vld [vmem:[#allocation2 + $0x1558] ss:$112 sps:$4 sm:$0xff]  }
 0x479   : > { %10630 = vmatpush1.bf16.msra.mxu1 %v18776_v48  ;;  %10496 = vmatprep.subr.bf16.mxu0 %v18793_v61  ;;  %v18847_v48 = vld [vmem:[#allocation2 + $0x1d34] ss:$112 sps:$4 sm:$0xff]   ;;  %v18850_v61 = vld [vmem:[#allocation2 + $0x163c] ss:$112 sps:$4 sm:$0xff]  }
 0x47a   : > { %10631 = vmatprep.subr.bf16.mxu1 %v18784_v60  ;;  %v18845_v60 = vld [vmem:[#allocation2 + $0x1d30] ss:$112 sps:$4 sm:$0xff]  }
 0x47c   : > { %10497 = vmatpush1.bf16.msra.mxu0 %v18791_v63  ;;  %v18848_v63 = vld [vmem:[#allocation2 + $0x1638] ss:$112 sps:$4 sm:$0xff]  }
 0x47d   : > { %10632 = vmatpush1.bf16.msra.mxu1 %v18782_v56  ;;  %10498 = vmatprep.subr.bf16.mxu0 %v18799_v2  ;;  %v18853_v56 = vld [vmem:[#allocation2 + $0x1e14] ss:$112 sps:$4 sm:$0xff]   ;;  %v18856_v2 = vld [vmem:[#allocation2 + $0x171c] ss:$112 sps:$4 sm:$0xff]  }
 0x47e   : > { %10633 = vmatprep.subr.bf16.mxu1 %v18790_v62  ;;  %v18851_v62 = vld [vmem:[#allocation2 + $0x1e10] ss:$112 sps:$4 sm:$0xff]  }
 0x480   : > { %10499 = vmatpush1.bf16.msra.mxu0 %v18797_v58  ;;  %v18854_v58 = vld [vmem:[#allocation2 + $0x1718] ss:$112 sps:$4 sm:$0xff]  }
 0x481   : > { %10634 = vmatpush1.bf16.msra.mxu1 %v18788_v1  ;;  %10500 = vmatprep.subr.bf16.mxu0 %v18805_v44  ;;  %v18859_v1 = vld [vmem:[#allocation2 + $0x1ef4] ss:$112 sps:$4 sm:$0xff]   ;;  %v18862_v44 = vld [vmem:[#allocation2 + $0x17fc] ss:$112 sps:$4 sm:$0xff]  }
 0x482   : > { %10644 = vmatprep.subr.bf16.mxu1 %v18796_v4  ;;  %v18857_v4 = vld [vmem:[#allocation2 + $0x1ef0] ss:$112 sps:$4 sm:$0xff]  }
 0x484   : > { %10636 = vmatmul.mubr.bf16.vlgmr.msra.gmra.mrb[28].mxu1 %v19560_v9  ;;  %10501 = vmatpush1.bf16.msra.mxu0 %v18803_v5  ;;  %v18860_v5 = vld [vmem:[#allocation2 + $0x17f8] ss:$112 sps:$4 sm:$0xff]  }
 0x485   : > { %10645 = vmatpush1.bf16.msra.mxu1 %v18794_v53  ;;  %10676 = vmatprep.mubr.bf16.mxu1 %v19565_v36  ;;  %v18865_v53 = vld [vmem:[#allocation2 + $0x1fd4] ss:$112 sps:$4 sm:$0xff]  }
 0x486   : > { %10646 = vmatprep.subr.bf16.mxu1 %v18802_v40  ;;  %10502 = vmatprep.subr.bf16.mxu0 %v18811_v8  ;;  %v18863_v40 = vld [vmem:[#allocation2 + $0x1fd0] ss:$112 sps:$4 sm:$0xff]   ;;  %v18868_v8 = vld [vmem:[#allocation2 + $0x18dc] ss:$112 sps:$4 sm:$0xff]  }
 0x488   : > { %10503 = vmatpush1.bf16.msra.mxu0 %v18809_v11  ;;  %v18866_v11 = vld [vmem:[#allocation2 + $0x18d8] ss:$112 sps:$4 sm:$0xff]  }
 0x489   : > { %10647 = vmatpush1.bf16.msra.mxu1 %v18800_v6  ;;  %10504 = vmatprep.subr.bf16.mxu0 %v18817_v16  ;;  %v18871_v6 = vld [vmem:[#allocation2 + $0x20b4] ss:$112 sps:$4 sm:$0xff]   ;;  %v18874_v16 = vld [vmem:[#allocation2 + $0x19bc] ss:$112 sps:$4 sm:$0xff]  }
 0x48a   : > { %10648 = vmatprep.subr.bf16.mxu1 %v18808_v55  ;;  %v18869_v55 = vld [vmem:[#allocation2 + $0x20b0] ss:$112 sps:$4 sm:$0xff]  }
 0x48c   : > { %10505 = vmatpush1.bf16.msra.mxu0 %v18815_v17  ;;  %v18872_v17 = vld [vmem:[#allocation2 + $0x19b8] ss:$112 sps:$4 sm:$0xff]  }
 0x48d   : > { %10649 = vmatpush1.bf16.msra.mxu1 %v18806_v14  ;;  %10506 = vmatprep.subr.bf16.mxu0 %v18823_v22  ;;  %v18877_v14 = vld [vmem:[#allocation2 + $0x2194] ss:$112 sps:$4 sm:$0xff]   ;;  %v18880_v22 = vld [vmem:[#allocation2 + $0x1a9c] ss:$112 sps:$4 sm:$0xff]  }
 0x48e   : > { %10650 = vmatprep.subr.bf16.mxu1 %v18814_v12  ;;  %v18875_v12 = vld [vmem:[#allocation2 + $0x2190] ss:$112 sps:$4 sm:$0xff]  }
 0x490   : > { %10507 = vmatpush1.bf16.msra.mxu0 %v18821_v26  ;;  %v18878_v26 = vld [vmem:[#allocation2 + $0x1a98] ss:$112 sps:$4 sm:$0xff]  }
 0x491   : > { %10651 = vmatpush1.bf16.msra.mxu1 %v18812_v20  ;;  %10508 = vmatprep.subr.bf16.mxu0 %v18829_v28  ;;  %v18883_v20 = vld [vmem:[#allocation2 + $0x2274] ss:$112 sps:$4 sm:$0xff]   ;;  %v18886_v28 = vld [vmem:[#allocation2 + $0x1b7c] ss:$112 sps:$4 sm:$0xff]  }
 0x492   : > { %10652 = vmatprep.subr.bf16.mxu1 %v18820_v25  ;;  %v18881_v25 = vld [vmem:[#allocation2 + $0x2270] ss:$112 sps:$4 sm:$0xff]  }
 0x494   : > { %10509 = vmatpush1.bf16.msra.mxu0 %v18827_v32  ;;  %v18884_v32 = vld [vmem:[#allocation2 + $0x1b78] ss:$112 sps:$4 sm:$0xff]  }
 0x495   : > { %10653 = vmatpush1.bf16.msra.mxu1 %v18818_v52  ;;  %10510 = vmatprep.subr.bf16.mxu0 %v18835_v37  ;;  %v18889_v52 = vld [vmem:[#allocation2 + $0x2354] ss:$112 sps:$4 sm:$0xff]   ;;  %v18892_v37 = vld [vmem:[#allocation2 + $0x1c5c] ss:$112 sps:$4 sm:$0xff]  }
 0x496   : > { %10654 = vmatprep.subr.bf16.mxu1 %v18826_v34  ;;  %v18887_v34 = vld [vmem:[#allocation2 + $0x2350] ss:$112 sps:$4 sm:$0xff]  }
 0x498   : > { %10511 = vmatpush1.bf16.msra.mxu0 %v18833_v43  ;;  %v18890_v43 = vld [vmem:[#allocation2 + $0x1c58] ss:$112 sps:$4 sm:$0xff]  }
 0x499   : > { %10655 = vmatpush1.bf16.msra.mxu1 %v18824_v35  ;;  %10521 = vmatprep.subr.bf16.mxu0 %v18841_v27  ;;  %v18895_v35 = vld [vmem:[#allocation2 + $0x2434] ss:$112 sps:$4 sm:$0xff]   ;;  %v18898_v27 = vld [vmem:[#allocation2 + $0x1d3c] ss:$112 sps:$4 sm:$0xff]  }
 0x49a   : > { %10656 = vmatprep.subr.bf16.mxu1 %v18832_v41  ;;  %v18893_v41 = vld [vmem:[#allocation2 + $0x2430] ss:$112 sps:$4 sm:$0xff]  }
 0x49b   : > { %10513 = vmatmul.mubr.bf16.vlgmr.msra.gmra.mrb[20].mxu0 %v19570_v18 }
 0x49c   : > { %10522 = vmatpush1.bf16.msra.mxu0 %v18839_v47  ;;  %10553 = vmatprep.mubr.bf16.mxu0 %v19573_v24  ;;  %v18896_v47 = vld [vmem:[#allocation2 + $0x1d38] ss:$112 sps:$4 sm:$0xff]  }
 0x49d   : > { %10657 = vmatpush1.bf16.msra.mxu1 %v18830_v45  ;;  %10523 = vmatprep.subr.bf16.mxu0 %v18847_v48  ;;  %v18901_v45 = vld [vmem:[#allocation2 + $0x2514] ss:$112 sps:$4 sm:$0xff]   ;;  %v18904_v48 = vld [vmem:[#allocation2 + $0x1e1c] ss:$112 sps:$4 sm:$0xff]  }
 0x49e   : > { %10658 = vmatprep.subr.bf16.mxu1 %v18838_v46  ;;  %v18899_v46 = vld [vmem:[#allocation2 + $0x2510] ss:$112 sps:$4 sm:$0xff]  }
 0x4a0   : > { %10524 = vmatpush1.bf16.msra.mxu0 %v18845_v60  ;;  %v18902_v60 = vld [vmem:[#allocation2 + $0x1e18] ss:$112 sps:$4 sm:$0xff]  }
 0x4a1   : > { %10659 = vmatpush1.bf16.msra.mxu1 %v18836_v54  ;;  %10525 = vmatprep.subr.bf16.mxu0 %v18853_v56  ;;  %v18907_v54 = vld [vmem:[#allocation2 + $0x25f4] ss:$112 sps:$4 sm:$0xff]   ;;  %v18910_v56 = vld [vmem:[#allocation2 + $0x1efc] ss:$112 sps:$4 sm:$0xff]  }
 0x4a2   : > { %10660 = vmatprep.subr.bf16.mxu1 %v18844_v42  ;;  %v18905_v42 = vld [vmem:[#allocation2 + $0x25f0] ss:$112 sps:$4 sm:$0xff]  }
 0x4a4   : > { %10526 = vmatpush1.bf16.msra.mxu0 %v18851_v62  ;;  %v18908_v62 = vld [vmem:[#allocation2 + $0x1ef8] ss:$112 sps:$4 sm:$0xff]  }
 0x4a5   : > { %10661 = vmatpush1.bf16.msra.mxu1 %v18842_v38  ;;  %10527 = vmatprep.subr.bf16.mxu0 %v18859_v1  ;;  %v18913_v38 = vld [vmem:[#allocation2 + $0x26d4] ss:$112 sps:$4 sm:$0xff]   ;;  %v18916_v1 = vld [vmem:[#allocation2 + $0x1fdc] ss:$112 sps:$4 sm:$0xff]  }
 0x4a6   : > { %10662 = vmatprep.subr.bf16.mxu1 %v18850_v61  ;;  %v18911_v61 = vld [vmem:[#allocation2 + $0x26d0] ss:$112 sps:$4 sm:$0xff]  }
 0x4a8   : > { %10528 = vmatpush1.bf16.msra.mxu0 %v18857_v4  ;;  %v18914_v4 = vld [vmem:[#allocation2 + $0x1fd8] ss:$112 sps:$4 sm:$0xff]  }
 0x4a9   : > { %10663 = vmatpush1.bf16.msra.mxu1 %v18848_v63  ;;  %10529 = vmatprep.subr.bf16.mxu0 %v18865_v53  ;;  %v18919_v63 = vld [vmem:[#allocation2 + $0x27b4] ss:$112 sps:$4 sm:$0xff]   ;;  %v18922_v53 = vld [vmem:[#allocation2 + $0x20bc] ss:$112 sps:$4 sm:$0xff]  }
 0x4aa   : > { %10664 = vmatprep.subr.bf16.mxu1 %v18856_v2  ;;  %v18917_v2 = vld [vmem:[#allocation2 + $0x27b0] ss:$112 sps:$4 sm:$0xff]  }
 0x4ac   : > { %10530 = vmatpush1.bf16.msra.mxu0 %v18863_v40  ;;  %v18920_v40 = vld [vmem:[#allocation2 + $0x20b8] ss:$112 sps:$4 sm:$0xff]  }
 0x4ad   : > { %10665 = vmatpush1.bf16.msra.mxu1 %v18854_v58  ;;  %10531 = vmatprep.subr.bf16.mxu0 %v18871_v6  ;;  %v18925_v58 = vld [vmem:[#allocation2 + $0x2894] ss:$112 sps:$4 sm:$0xff]   ;;  %v18928_v6 = vld [vmem:[#allocation2 + $0x219c] ss:$112 sps:$4 sm:$0xff]  }
 0x4ae   : > { %10666 = vmatprep.subr.bf16.mxu1 %v18862_v44  ;;  %v18923_v44 = vld [vmem:[#allocation2 + $0x2890] ss:$112 sps:$4 sm:$0xff]  }
 0x4b0   : > { %10532 = vmatpush1.bf16.msra.mxu0 %v18869_v55  ;;  %v18926_v55 = vld [vmem:[#allocation2 + $0x2198] ss:$112 sps:$4 sm:$0xff]  }
 0x4b1   : > { %10667 = vmatpush1.bf16.msra.mxu1 %v18860_v5  ;;  %10533 = vmatprep.subr.bf16.mxu0 %v18877_v14  ;;  %v18931_v5 = vld [vmem:[#allocation2 + $0x2974] ss:$112 sps:$4 sm:$0xff]   ;;  %v18934_v14 = vld [vmem:[#allocation2 + $0x227c] ss:$112 sps:$4 sm:$0xff]  }
 0x4b2   : > { %10668 = vmatprep.subr.bf16.mxu1 %v18868_v8  ;;  %v18929_v8 = vld [vmem:[#allocation2 + $0x2970] ss:$112 sps:$4 sm:$0xff]  }
 0x4b4   : > { %10534 = vmatpush1.bf16.msra.mxu0 %v18875_v12  ;;  %v18932_v12 = vld [vmem:[#allocation2 + $0x2278] ss:$112 sps:$4 sm:$0xff]  }
 0x4b5   : > { %10669 = vmatpush1.bf16.msra.mxu1 %v18866_v11  ;;  %10535 = vmatprep.subr.bf16.mxu0 %v18883_v20  ;;  %v18937_v11 = vld [vmem:[#allocation2 + $0x2a54] ss:$112 sps:$4 sm:$0xff]   ;;  %v18940_v20 = vld [vmem:[#allocation2 + $0x235c] ss:$112 sps:$4 sm:$0xff]  }
 0x4b6   : > { %10670 = vmatprep.subr.bf16.mxu1 %v18874_v16  ;;  %v18935_v16 = vld [vmem:[#allocation2 + $0x2a50] ss:$112 sps:$4 sm:$0xff]  }
 0x4b8   : > { %10536 = vmatpush1.bf16.msra.mxu0 %v18881_v25  ;;  %v18943_v25 = vld [vmem:[#allocation2 + $0x243c] ss:$112 sps:$4 sm:$0xff]  }
 0x4b9   : > { %10671 = vmatpush1.bf16.msra.mxu1 %v18872_v17  ;;  %10537 = vmatprep.subr.bf16.mxu0 %v18889_v52  ;;  %v18949_v17 = vld [vmem:[#allocation2 + $0x64] ss:$112 sps:$4 sm:$0xff]   ;;  %v18946_v52 = vld [vmem:[#allocation2 + $0x251c] ss:$112 sps:$4 sm:$0xff]  }
 0x4ba   : > { %10672 = vmatprep.subr.bf16.mxu1 %v18880_v22  ;;  %v18938_v22 = vld [vmem:[#allocation2 + $0x2358] ss:$112 sps:$4 sm:$0xff]  }
 0x4bc   : > { %10538 = vmatpush1.bf16.msra.mxu0 %v18887_v34  ;;  %v18944_v34 = vld [vmem:[#allocation2 + $0x2518] ss:$112 sps:$4 sm:$0xff]  }
 0x4bd   : > { %10673 = vmatpush1.bf16.msra.mxu1 %v18878_v26  ;;  %10539 = vmatprep.subr.bf16.mxu0 %v18895_v35  ;;  %v18941_v26 = vld [vmem:[#allocation2 + $0x2438] ss:$112 sps:$4 sm:$0xff]   ;;  %v18952_v35 = vld [vmem:[#allocation2 + $0x25fc] ss:$112 sps:$4 sm:$0xff]  }
 0x4be   : > { %10674 = vmatprep.subr.bf16.mxu1 %v18886_v28  ;;  %v18947_v28 = vld [vmem:[#allocation2 + $0x60] ss:$112 sps:$4 sm:$0xff]  }
 0x4c0   : > { %10540 = vmatpush1.bf16.msra.mxu0 %v18893_v41  ;;  %v19804_v41 = vld [vmem:[%s21452_s2 + $0x10] sm:$0xff] }
 0x4c1   : > { %10675 = vmatpush1.bf16.msra.mxu1 %v18884_v32  ;;  %10541 = vmatprep.subr.bf16.mxu0 %v18901_v45  ;;  %v18955_v32 = vld [vmem:[#allocation2 + $0x144] ss:$112 sps:$4 sm:$0xff]  }
 0x4c2   : > { %10685 = vmatprep.subr.bf16.mxu1 %v18892_v37  ;;  %v18953_v37 = vld [vmem:[#allocation2 + $0x140] ss:$112 sps:$4 sm:$0xff]   ;;  %v18961_v45 = vld [vmem:[#allocation2 + $0x224] ss:$112 sps:$4 sm:$0xff]  }
 0x4c4   : > { %10677 = vmatmul.mubr.bf16.vlgmr.msra.gmra.mrb[28].mxu1 %v19570_v18  ;;  %10542 = vmatpush1.bf16.msra.mxu0 %v18899_v46  ;;  %v1862_v46 = vrot.slane %v19804_v41, %v19609_v19 }
 0x4c5   : > { %10686 = vmatpush1.bf16.msra.mxu1 %v18890_v43  ;;  %10717 = vmatprep.mubr.bf16.mxu1 %v19573_v24  ;;  %v18950_v43 = vld [vmem:[#allocation2 + $0x25f8] ss:$112 sps:$4 sm:$0xff]  }
 0x4c6   : > { %10687 = vmatprep.subr.bf16.mxu1 %v18898_v27  ;;  %10543 = vmatprep.subr.bf16.mxu0 %v18907_v54  ;;  %v18958_v27 = vld [vmem:[#allocation2 + $0x26dc] ss:$112 sps:$4 sm:$0xff]   ;;  %v1866_v54 = vrot.slane %v19804_v41, %v19615_v21 }
 0x4c8   : > { %10544 = vmatpush1.bf16.msra.mxu0 %v18905_v42  ;;  %v18967_v42 = vld [vmem:[#allocation2 + $0x304] ss:$112 sps:$4 sm:$0xff]  }
 0x4c9   : > { %10688 = vmatpush1.bf16.msra.mxu1 %v18896_v47  ;;  %10545 = vmatprep.subr.bf16.mxu0 %v18913_v38  ;;  %v18959_v47 = vld [vmem:[#allocation2 + $0x220] ss:$112 sps:$4 sm:$0xff]   ;;  %v18964_v38 = vld [vmem:[#allocation2 + $0x27bc] ss:$112 sps:$4 sm:$0xff]  }
 0x4ca   : > { %10689 = vmatprep.subr.bf16.mxu1 %v18904_v48  ;;  %v18956_v48 = vld [vmem:[#allocation2 + $0x26d8] ss:$112 sps:$4 sm:$0xff]  }
 0x4cc   : > { %10546 = vmatpush1.bf16.msra.mxu0 %v18911_v61 }
 0x4cd   : > { %10690 = vmatpush1.bf16.msra.mxu1 %v18902_v60  ;;  %10547 = vmatprep.subr.bf16.mxu0 %v18919_v63 }
 0x4ce   : > { %10691 = vmatprep.subr.bf16.mxu1 %v18910_v56 }
 0x4d0   : > { %10548 = vmatpush1.bf16.msra.mxu0 %v18917_v2 }
 0x4d1   : > { %10692 = vmatpush1.bf16.msra.mxu1 %v18908_v62  ;;  %10549 = vmatprep.subr.bf16.mxu0 %v18925_v58 }
 0x4d2   : > { %10693 = vmatprep.subr.bf16.mxu1 %v18916_v1  ;;  %v18965_v1 = vld [vmem:[#allocation2 + $0x300] ss:$112 sps:$4 sm:$0xff]  }
 0x4d4   : > { %10550 = vmatpush1.bf16.msra.mxu0 %v18923_v44 }
 0x4d5   : > { %10694 = vmatpush1.bf16.msra.mxu1 %v18914_v4  ;;  %10551 = vmatprep.subr.bf16.mxu0 %v18931_v5  ;;  %v18962_v4 = vld [vmem:[#allocation2 + $0x27b8] ss:$112 sps:$4 sm:$0xff]  }
 0x4d6   : > { %10695 = vmatprep.subr.bf16.mxu1 %v18922_v53  ;;  %v18973_v53 = vld [vmem:[#allocation2 + $0x3e4] ss:$112 sps:$4 sm:$0xff]  }
 0x4d8   : > { %10552 = vmatpush1.bf16.msra.mxu0 %v18929_v8  ;;  %v18971_v8 = vld [vmem:[#allocation2 + $0x3e0] ss:$112 sps:$4 sm:$0xff]  }
 0x4d9   : > { %10696 = vmatpush1.bf16.msra.mxu1 %v18920_v40  ;;  %10562 = vmatprep.subr.bf16.mxu0 %v18937_v11  ;;  %v18970_v40 = vld [vmem:[#allocation2 + $0x289c] ss:$112 sps:$4 sm:$0xff]   ;;  %v18979_v11 = vld [vmem:[#allocation2 + $0x4c4] ss:$112 sps:$4 sm:$0xff]  }
 0x4da   : > { %10697 = vmatprep.subr.bf16.mxu1 %v18928_v6 }
 0x4db   : > { %10554 = vmatmul.mubr.bf16.vlgmr.msra.gmra.mrb[20].mxu0 %v19580_v29 }
 0x4dc   : > { %10563 = vmatpush1.bf16.msra.mxu0 %v18935_v16  ;;  %10594 = vmatprep.mubr.bf16.mxu0 %v19394_v0  ;;  %v18977_v16 = vld [vmem:[#allocation2 + $0x4c0] ss:$112 sps:$4 sm:$0xff]  }
 0x4dd   : > { %10698 = vmatpush1.bf16.msra.mxu1 %v18926_v55  ;;  %10767 = vmatprep.subr.bf16.mxu0 %v18949_v17  ;;  %v18968_v55 = vld [vmem:[#allocation2 + $0x2898] ss:$112 sps:$4 sm:$0xff]   ;;  %v18982_v17 = vld [vmem:[#allocation2 + $0x5a4] ss:$112 sps:$4 sm:$0xff]  }
 0x4de   : > { %10699 = vmatprep.subr.bf16.mxu1 %v18934_v14  ;;  %v18976_v14 = vld [vmem:[#allocation2 + $0x297c] ss:$112 sps:$4 sm:$0xff]  }
 0x4e1   : > { %10700 = vmatpush1.bf16.msra.mxu1 %v18932_v12  ;;  %v18974_v12 = vld [vmem:[#allocation2 + $0x2978] ss:$112 sps:$4 sm:$0xff]  }
 0x4e2   : > { %10701 = vmatprep.subr.bf16.mxu1 %v18940_v20  ;;  %v18980_v20 = vld [vmem:[#allocation2 + $0x5a0] ss:$112 sps:$4 sm:$0xff]  }
 0x4e5   : > { %10702 = vmatpush1.bf16.msra.mxu1 %v18938_v22  ;;  %v18986_v22 = vld [vmem:[#allocation2 + $0x2a58] ss:$112 sps:$4 sm:$0xff]  }
 0x4e6   : > { %10703 = vmatprep.subr.bf16.mxu1 %v18943_v25  ;;  %v18994_v25 = vld [vmem:[#allocation2 + $0x6c] ss:$112 sps:$4 sm:$0xff]  }
 0x4e7   : > { %16338 = vmatmul.mubr.msk.bf16.vlgmr.msra.gmra.mrb[20].mxu0 %vm8795_vm0, %v19550_v10 }
 0x4e8   : > { %10768 = vmatpush1.bf16.msra.mxu0 %v18947_v28  ;;  %10799 = vmatprep.mubr.bf16.mxu0 %v19555_v51  ;;  %v18989_v28 = vld [vmem:[#allocation2 + $0x760] ss:$112 sps:$4 sm:$0xff]  }
 0x4e9   : > { %10704 = vmatpush1.bf16.msra.mxu1 %v18941_v26  ;;  %10769 = vmatprep.subr.bf16.mxu0 %v18955_v32  ;;  %v18983_v26 = vld [vmem:[#allocation2 + $0x680] ss:$112 sps:$4 sm:$0xff]  }
 0x4ea   : > { %10705 = vmatprep.subr.bf16.mxu1 %v18946_v52  ;;  %v18991_v52 = vld [vmem:[#allocation2 + $0x764] ss:$112 sps:$4 sm:$0xff]   ;;  %v18995_v32 = vld [vmem:[#allocation2 + $0x840] ss:$112 sps:$4 sm:$0xff]  }
 0x4ec   : > { %10770 = vmatpush1.bf16.msra.mxu0 %v18953_v37  ;;  %v19003_v37 = vld [vmem:[#allocation2 + $0x924] ss:$112 sps:$4 sm:$0xff]  }
 0x4ed   : > { %10706 = vmatpush1.bf16.msra.mxu1 %v18944_v34  ;;  %10771 = vmatprep.subr.bf16.mxu0 %v18961_v45  ;;  %v18997_v34 = vld [vmem:[#allocation2 + $0x844] ss:$112 sps:$4 sm:$0xff]   ;;  %v19001_v45 = vld [vmem:[#allocation2 + $0x920] ss:$112 sps:$4 sm:$0xff]  }
 0x4ee   : > { %10707 = vmatprep.subr.bf16.mxu1 %v18952_v35  ;;  %v10268_v60 = vpop.f32.mrb[16].mxu0  ;;  %v18992_v35 = vld [vmem:[#allocation2 + $0x68] ss:$112 sps:$4 sm:$0xff]  }
 0x4ef   : > { %v16917_v56 = vadd.f32 %v10268_v60, %v1862_v46  ;;  %v10270_v61 = vpop.f32.mrb[17].mxu0  ;;  %v19009_v46 = vld [vmem:[#allocation2 + $0xa04] ss:$112 sps:$4 sm:$0xff]   ;;  %v1874_v60 = vrot.slane %v19804_v41, %v19728_v39 }
 0x4f0   : > { %10772 = vmatpush1.bf16.msra.mxu0 %v18959_v47  ;;  %v16918_v62 = vadd.f32 %v10270_v61, %v1866_v54  ;;  %v10272_v63 = vpop.f32.mrb[18].mxu0  ;;  %v19006_v47 = vld [vmem:[#allocation2 + $0x22c] ss:$112 sps:$4 sm:$0xff]   ;;  %v1870_v54 = vrot.slane %v19804_v41, %v19698_v23 }
 0x4f1   : > { %10708 = vmatpush1.bf16.msra.mxu1 %v18950_v43  ;;  %v11111_v2 = vmax.f32 %v16917_v56, 0.0  ;;  %v10273_v58 = vpop.f32.mrb[19].mxu0  ;;  %10773 = vmatprep.subr.bf16.mxu0 %v18967_v42  ;;  %v19000_v43 = vld [vmem:[#allocation2 + $0x14c] ss:$112 sps:$4 sm:$0xff]   ;;  %v19004_v42 = vld [vmem:[#allocation2 + $0x228] ss:$112 sps:$4 sm:$0xff]  }
 0x4f2   : > { %10709 = vmatprep.subr.bf16.mxu1 %v18958_v27  ;;  %v11112_v44 = vmax.f32 %v16918_v62, 0.0  ;;  %v18998_v27 = vld [vmem:[#allocation2 + $0x148] ss:$112 sps:$4 sm:$0xff]   ;;  %v19012_v56 = vld [vmem:[#allocation2 + $0x30c] ss:$112 sps:$4 sm:$0xff]  }
 0x4f3   : > { %v19812_v5 = vmax.f32 %v19723_v3, %v11111_v2  ;;  %v18988_v3 = vld [vmem:[#allocation2 + $0x2a5c] ss:$112 sps:$4 sm:$0xff]   ;;  %v19021_v58 = vld [vmem:[#allocation2 + $0xbc4] ss:$112 sps:$4 sm:$0xff]  }
 0x4f4   : > { %v19815_v6 = vmax.f32 %v19741_v13, %v11112_v44  ;;  %10774 = vmatpush1.bf16.msra.mxu0 %v18965_v1  ;;  %v18985_v13 = vld [vmem:[#allocation2 + $0x684] ss:$112 sps:$4 sm:$0xff]   ;;  %v19013_v1 = vld [vmem:[#allocation2 + $0xae0] ss:$112 sps:$4 sm:$0xff]  }
 0x4f5   : > { %10710 = vmatpush1.bf16.msra.mxu1 %v18956_v48  ;;  %10775 = vmatprep.subr.bf16.mxu0 %v18973_v53  ;;  %v19007_v48 = vld [vmem:[#allocation2 + $0xa00] ss:$112 sps:$4 sm:$0xff]  }
 0x4f6   : > { %10711 = vmatprep.subr.bf16.mxu1 %v18964_v38  ;;  %v19015_v38 = vld [vmem:[#allocation2 + $0xae4] ss:$112 sps:$4 sm:$0xff]  }
 0x4f8   : > { %10776 = vmatpush1.bf16.msra.mxu0 %v18971_v8 }
 0x4f9   : > { %10712 = vmatpush1.bf16.msra.mxu1 %v18962_v4  ;;  %10777 = vmatprep.subr.bf16.mxu0 %v18979_v11  ;;  %v19010_v4 = vld [vmem:[#allocation2 + $0x308] ss:$112 sps:$4 sm:$0xff]   ;;  %v19019_v11 = vld [vmem:[#allocation2 + $0xbc0] ss:$112 sps:$4 sm:$0xff]  }
 0x4fa   : > { %10713 = vmatprep.subr.bf16.mxu1 %v18970_v40  ;;  %v19018_v40 = vld [vmem:[#allocation2 + $0x3ec] ss:$112 sps:$4 sm:$0xff]  }
 0x4fc   : > { %10778 = vmatpush1.bf16.msra.mxu0 %v18977_v16  ;;  %v19016_v16 = vld [vmem:[#allocation2 + $0x3e8] ss:$112 sps:$4 sm:$0xff]  }
 0x4fd   : > { %10714 = vmatpush1.bf16.msra.mxu1 %v18968_v55  ;;  %10779 = vmatprep.subr.bf16.mxu0 %v18982_v17  ;;  %v19024_v17 = vld [vmem:[#allocation2 + $0x4cc] ss:$112 sps:$4 sm:$0xff]  }
 0x4fe   : > { %10715 = vmatprep.subr.bf16.mxu1 %v18976_v14 }
 0x500   : > { %10780 = vmatpush1.bf16.msra.mxu0 %v18980_v20  ;;  %v19022_v20 = vld [vmem:[#allocation2 + $0x4c8] ss:$112 sps:$4 sm:$0xff]  }
 0x501   : > { %10716 = vmatpush1.bf16.msra.mxu1 %v18974_v12  ;;  %10781 = vmatprep.subr.bf16.mxu0 %v18985_v13  ;;  %v19027_v12 = vld [vmem:[#allocation2 + $0xca4] ss:$112 sps:$4 sm:$0xff]  }
 0x502   : > { %10726 = vmatprep.subr.bf16.mxu1 %v18988_v3  ;;  %v19025_v3 = vld [vmem:[#allocation2 + $0xca0] ss:$112 sps:$4 sm:$0xff]   ;;  %v19033_v13 = vld [vmem:[#allocation2 + $0xd84] ss:$112 sps:$4 sm:$0xff]  }
 0x504   : > { %10718 = vmatmul.mubr.bf16.vlgmr.msra.gmra.mrb[28].mxu1 %v19580_v29  ;;  %10782 = vmatpush1.bf16.msra.mxu0 %v18983_v26  ;;  %v19036_v26 = vld [vmem:[#allocation2 + $0x68c] ss:$112 sps:$4 sm:$0xff]  }
 0x505   : > { %10727 = vmatpush1.bf16.msra.mxu1 %v18986_v22  ;;  %10758 = vmatprep.mubr.bf16.mxu1 %v19394_v0  ;;  %v19031_v22 = vld [vmem:[#allocation2 + $0xd80] ss:$112 sps:$4 sm:$0xff]  }
 0x506   : > { %10931 = vmatprep.subr.bf16.mxu1 %v18994_v25  ;;  %10783 = vmatprep.subr.bf16.mxu0 %v18991_v52  ;;  %v19028_v25 = vld [vmem:[#allocation2 + $0x5a8] ss:$112 sps:$4 sm:$0xff]   ;;  %v19037_v52 = vld [vmem:[#allocation2 + $0xe60] ss:$112 sps:$4 sm:$0xff]  }
 0x508   : > { %10784 = vmatpush1.bf16.msra.mxu0 %v18989_v28  ;;  %v19034_v28 = vld [vmem:[#allocation2 + $0x688] ss:$112 sps:$4 sm:$0xff]  }
 0x509   : > { %10785 = vmatprep.subr.bf16.mxu0 %v18997_v34  ;;  %v19045_v34 = vld [vmem:[#allocation2 + $0xf44] ss:$112 sps:$4 sm:$0xff]  }
 0x50c   : > { %10786 = vmatpush1.bf16.msra.mxu0 %v18995_v32  ;;  %v19042_v32 = vld [vmem:[#allocation2 + $0x76c] ss:$112 sps:$4 sm:$0xff]  }
 0x50d   : > { %10787 = vmatprep.subr.bf16.mxu0 %v19003_v37  ;;  %v19040_v37 = vld [vmem:[#allocation2 + $0x768] ss:$112 sps:$4 sm:$0xff]  }
 0x510   : > { %16339 = vmatmul.mubr.msk.bf16.vlgmr.msra.gmra.mrb[28].mxu1 %vm8795_vm0, %v19550_v10  ;;  %10788 = vmatpush1.bf16.msra.mxu0 %v19001_v45  ;;  %v19048_v45 = vld [vmem:[#allocation2 + $0x84c] ss:$112 sps:$4 sm:$0xff]  }
 0x511   : > { %10932 = vmatpush1.bf16.msra.mxu1 %v18992_v35  ;;  %10963 = vmatprep.mubr.bf16.mxu1 %v19555_v51  ;;  %v19043_v35 = vld [vmem:[#allocation2 + $0xf40] ss:$112 sps:$4 sm:$0xff]  }
 0x512   : > { %10933 = vmatprep.subr.bf16.mxu1 %v19000_v43  ;;  %10789 = vmatprep.subr.bf16.mxu0 %v19009_v46  ;;  %v19051_v43 = vld [vmem:[#allocation2 + $0x1024] ss:$112 sps:$4 sm:$0xff]   ;;  %v19046_v46 = vld [vmem:[#allocation2 + $0x848] ss:$112 sps:$4 sm:$0xff]  }
 0x514   : > { %10790 = vmatpush1.bf16.msra.mxu0 %v19007_v48  ;;  %v19055_v48 = vld [vmem:[#allocation2 + $0x1100] ss:$112 sps:$4 sm:$0xff]  }
 0x515   : > { %10934 = vmatpush1.bf16.msra.mxu1 %v18998_v27  ;;  %10791 = vmatprep.subr.bf16.mxu0 %v19015_v38  ;;  %v19049_v27 = vld [vmem:[#allocation2 + $0x1020] ss:$112 sps:$4 sm:$0xff]   ;;  %v19060_v38 = vld [vmem:[#allocation2 + $0xa0c] ss:$112 sps:$4 sm:$0xff]  }
 0x516   : > { %10935 = vmatprep.subr.bf16.mxu1 %v19006_v47  ;;  %v19057_v47 = vld [vmem:[#allocation2 + $0x1104] ss:$112 sps:$4 sm:$0xff]  }
 0x517   : > { %v10432_v61 = vpop.f32.mrb[24].mxu1 }
 0x518   : > { %v16919_v62 = vadd.f32 %v10432_v61, %v1870_v54  ;;  %v10434_v63 = vpop.f32.mrb[25].mxu1  ;;  %10792 = vmatpush1.bf16.msra.mxu0 %v19013_v1  ;;  %v19054_v54 = vld [vmem:[#allocation2 + $0x92c] ss:$112 sps:$4 sm:$0xff]   ;;  %v19058_v61 = vld [vmem:[#allocation2 + $0xa08] ss:$112 sps:$4 sm:$0xff]  }
 0x519   : > { %10936 = vmatpush1.bf16.msra.mxu1 %v19004_v42  ;;  %v16920_v51 = vadd.f32 %v10434_v63, %v1874_v60  ;;  %v10436_v2 = vpop.f32.mrb[26].mxu1  ;;  %10793 = vmatprep.subr.bf16.mxu0 %v19021_v58  ;;  %v19052_v42 = vld [vmem:[#allocation2 + $0x928] ss:$112 sps:$4 sm:$0xff]   ;;  %v19063_v60 = vld [vmem:[#allocation2 + $0x11e4] ss:$112 sps:$4 sm:$0xff]  }
 0x51a   : > { %v11113_v53 = vmax.f32 %v16919_v62, 0.0  ;;  %v10437_v44 = vpop.f32.mrb[27].mxu1  ;;  %10937 = vmatprep.subr.bf16.mxu1 %v19012_v56  ;;  %v19061_v56 = vld [vmem:[#allocation2 + $0x11e0] ss:$112 sps:$4 sm:$0xff]   ;;  %v19069_v62 = vld [vmem:[#allocation2 + $0x12c4] ss:$112 sps:$4 sm:$0xff]  }
 0x51b   : > { %v11114_v8 = vmax.f32 %v16920_v51, 0.0  ;;  %v19066_v63 = vld [vmem:[#allocation2 + $0xaec] ss:$112 sps:$4 sm:$0xff]   ;;  %v19067_v1 = vld [vmem:[#allocation2 + $0x12c0] ss:$112 sps:$4 sm:$0xff]  }
 0x51c   : > { %v19827_v55 = vmax.f32 %v19743_v15, %v11113_v53  ;;  %10794 = vmatpush1.bf16.msra.mxu0 %v19019_v11  ;;  %v19030_v15 = vld [vmem:[#allocation2 + $0x5ac] ss:$112 sps:$4 sm:$0xff]   ;;  %v19064_v51 = vld [vmem:[#allocation2 + $0xae8] ss:$112 sps:$4 sm:$0xff]   ;;  %v19075_v2 = vld [vmem:[#allocation2 + $0x13a4] ss:$112 sps:$4 sm:$0xff]  }
 0x51d   : > { %v19830_v14 = vmax.f32 %v19769_v49, %v11114_v8  ;;  %10938 = vmatpush1.bf16.msra.mxu1 %v19010_v4  ;;  %10795 = vmatprep.subr.bf16.mxu0 %v19027_v12  ;;  %v19039_v49 = vld [vmem:[#allocation2 + $0xe64] ss:$112 sps:$4 sm:$0xff]   ;;  %v19072_v4 = vld [vmem:[#allocation2 + $0xbcc] ss:$112 sps:$4 sm:$0xff]   ;;  %v19073_v58 = vld [vmem:[#allocation2 + $0x13a0] ss:$112 sps:$4 sm:$0xff]  }
 0x51e   : > { %10939 = vmatprep.subr.bf16.mxu1 %v19018_v40  ;;  %v19070_v53 = vld [vmem:[#allocation2 + $0xbc8] ss:$112 sps:$4 sm:$0xff]   ;;  %v19081_v44 = vld [vmem:[#allocation2 + $0x1484] ss:$112 sps:$4 sm:$0xff]   ;;  %v19078_v40 = vld [vmem:[#allocation2 + $0xcac] ss:$112 sps:$4 sm:$0xff]  }
 0x51f   : > { %v19079_v8 = vld [vmem:[#allocation2 + $0x1480] ss:$112 sps:$4 sm:$0xff]   ;;  %v19076_v11 = vld [vmem:[#allocation2 + $0xca8] ss:$112 sps:$4 sm:$0xff]   ;;  %v19084_v12 = vld [vmem:[#allocation2 + $0xd8c] ss:$112 sps:$4 sm:$0xff]  }
 0x520   : > { %10796 = vmatpush1.bf16.msra.mxu0 %v19025_v3  ;;  %v19082_v3 = vld [vmem:[#allocation2 + $0xd88] ss:$112 sps:$4 sm:$0xff]  }
 0x521   : > { %10940 = vmatpush1.bf16.msra.mxu1 %v19016_v16  ;;  %10797 = vmatprep.subr.bf16.mxu0 %v19033_v13  ;;  %v19087_v16 = vld [vmem:[#allocation2 + $0x1564] ss:$112 sps:$4 sm:$0xff]   ;;  %v19090_v13 = vld [vmem:[#allocation2 + $0xe6c] ss:$112 sps:$4 sm:$0xff]  }
 0x522   : > { %10941 = vmatprep.subr.bf16.mxu1 %v19024_v17  ;;  %v19085_v17 = vld [vmem:[#allocation2 + $0x1560] ss:$112 sps:$4 sm:$0xff]  }
 0x524   : > { %10798 = vmatpush1.bf16.msra.mxu0 %v19031_v22  ;;  %v19088_v22 = vld [vmem:[#allocation2 + $0xe68] ss:$112 sps:$4 sm:$0xff]  }
 0x525   : > { %10942 = vmatpush1.bf16.msra.mxu1 %v19022_v20  ;;  %10808 = vmatprep.subr.bf16.mxu0 %v19039_v49  ;;  %v19093_v20 = vld [vmem:[#allocation2 + $0x1644] ss:$112 sps:$4 sm:$0xff]   ;;  %v19096_v49 = vld [vmem:[#allocation2 + $0xf4c] ss:$112 sps:$4 sm:$0xff]  }
 0x526   : > { %10943 = vmatprep.subr.bf16.mxu1 %v19030_v15  ;;  %v19091_v15 = vld [vmem:[#allocation2 + $0x1640] ss:$112 sps:$4 sm:$0xff]  }
 0x527   : > { %10800 = vmatmul.mubr.bf16.vlgmr.msra.gmra.mrb[24].mxu0 %v19560_v9 }
 0x528   : > { %10809 = vmatpush1.bf16.msra.mxu0 %v19037_v52  ;;  %10840 = vmatprep.mubr.bf16.mxu0 %v19565_v36  ;;  %v19094_v52 = vld [vmem:[#allocation2 + $0xf48] ss:$112 sps:$4 sm:$0xff]  }
 0x529   : > { %10944 = vmatpush1.bf16.msra.mxu1 %v19028_v25  ;;  %10810 = vmatprep.subr.bf16.mxu0 %v19045_v34  ;;  %v19099_v25 = vld [vmem:[#allocation2 + $0x1724] ss:$112 sps:$4 sm:$0xff]   ;;  %v19102_v34 = vld [vmem:[#allocation2 + $0x102c] ss:$112 sps:$4 sm:$0xff]  }
 0x52a   : > { %10945 = vmatprep.subr.bf16.mxu1 %v19036_v26  ;;  %v19097_v26 = vld [vmem:[#allocation2 + $0x1720] ss:$112 sps:$4 sm:$0xff]  }
 0x52c   : > { %10811 = vmatpush1.bf16.msra.mxu0 %v19043_v35  ;;  %v19100_v35 = vld [vmem:[#allocation2 + $0x1028] ss:$112 sps:$4 sm:$0xff]  }
 0x52d   : > { %10946 = vmatpush1.bf16.msra.mxu1 %v19034_v28  ;;  %10812 = vmatprep.subr.bf16.mxu0 %v19051_v43  ;;  %v19105_v28 = vld [vmem:[#allocation2 + $0x1804] ss:$112 sps:$4 sm:$0xff]   ;;  %v19108_v43 = vld [vmem:[#allocation2 + $0x110c] ss:$112 sps:$4 sm:$0xff]  }
 0x52e   : > { %10947 = vmatprep.subr.bf16.mxu1 %v19042_v32  ;;  %v19103_v32 = vld [vmem:[#allocation2 + $0x1800] ss:$112 sps:$4 sm:$0xff]  }
 0x530   : > { %10813 = vmatpush1.bf16.msra.mxu0 %v19049_v27  ;;  %v19117_v27 = vld [vmem:[#allocation2 + $0x19c4] ss:$112 sps:$4 sm:$0xff]  }
 0x531   : > { %10948 = vmatpush1.bf16.msra.mxu1 %v19040_v37  ;;  %10814 = vmatprep.subr.bf16.mxu0 %v19057_v47  ;;  %v19111_v37 = vld [vmem:[#allocation2 + $0x18e4] ss:$112 sps:$4 sm:$0xff]   ;;  %v19115_v47 = vld [vmem:[#allocation2 + $0x19c0] ss:$112 sps:$4 sm:$0xff]  }
 0x532   : > { %10949 = vmatprep.subr.bf16.mxu1 %v19048_v45  ;;  %v19106_v45 = vld [vmem:[#allocation2 + $0x1108] ss:$112 sps:$4 sm:$0xff]  }
 0x534   : > { %10815 = vmatpush1.bf16.msra.mxu0 %v19055_v48  ;;  %v19120_v48 = vld [vmem:[#allocation2 + $0x12cc] ss:$112 sps:$4 sm:$0xff]  }
 0x535   : > { %10950 = vmatpush1.bf16.msra.mxu1 %v19046_v46  ;;  %10816 = vmatprep.subr.bf16.mxu0 %v19063_v60  ;;  %v19114_v46 = vld [vmem:[#allocation2 + $0x11ec] ss:$112 sps:$4 sm:$0xff]   ;;  %v19118_v60 = vld [vmem:[#allocation2 + $0x12c8] ss:$112 sps:$4 sm:$0xff]  }
 0x536   : > { %10951 = vmatprep.subr.bf16.mxu1 %v19054_v54  ;;  %v19123_v54 = vld [vmem:[#allocation2 + $0x1aa4] ss:$112 sps:$4 sm:$0xff]  }
 0x538   : > { %10817 = vmatpush1.bf16.msra.mxu0 %v19061_v56  ;;  %v19126_v56 = vld [vmem:[#allocation2 + $0x13ac] ss:$112 sps:$4 sm:$0xff]  }
 0x539   : > { %10952 = vmatpush1.bf16.msra.mxu1 %v19052_v42  ;;  %10818 = vmatprep.subr.bf16.mxu0 %v19069_v62  ;;  %v19121_v42 = vld [vmem:[#allocation2 + $0x1aa0] ss:$112 sps:$4 sm:$0xff]   ;;  %v19124_v62 = vld [vmem:[#allocation2 + $0x13a8] ss:$112 sps:$4 sm:$0xff]  }
 0x53a   : > { %10953 = vmatprep.subr.bf16.mxu1 %v19060_v38  ;;  %v19129_v38 = vld [vmem:[#allocation2 + $0x1b84] ss:$112 sps:$4 sm:$0xff]  }
 0x53c   : > { %10819 = vmatpush1.bf16.msra.mxu0 %v19067_v1  ;;  %v19132_v1 = vld [vmem:[#allocation2 + $0x148c] ss:$112 sps:$4 sm:$0xff]  }
 0x53d   : > { %10954 = vmatpush1.bf16.msra.mxu1 %v19058_v61  ;;  %10820 = vmatprep.subr.bf16.mxu0 %v19075_v2  ;;  %v19127_v61 = vld [vmem:[#allocation2 + $0x1b80] ss:$112 sps:$4 sm:$0xff]   ;;  %v19130_v2 = vld [vmem:[#allocation2 + $0x1488] ss:$112 sps:$4 sm:$0xff]  }
 0x53e   : > { %10955 = vmatprep.subr.bf16.mxu1 %v19066_v63  ;;  %v19135_v63 = vld [vmem:[#allocation2 + $0x1c64] ss:$112 sps:$4 sm:$0xff]  }
 0x540   : > { %10821 = vmatpush1.bf16.msra.mxu0 %v19073_v58  ;;  %v19138_v58 = vld [vmem:[#allocation2 + $0x156c] ss:$112 sps:$4 sm:$0xff]  }
 0x541   : > { %10956 = vmatpush1.bf16.msra.mxu1 %v19064_v51  ;;  %10822 = vmatprep.subr.bf16.mxu0 %v19081_v44  ;;  %v19133_v51 = vld [vmem:[#allocation2 + $0x1c60] ss:$112 sps:$4 sm:$0xff]   ;;  %v19136_v44 = vld [vmem:[#allocation2 + $0x1568] ss:$112 sps:$4 sm:$0xff]  }
 0x542   : > { %10957 = vmatprep.subr.bf16.mxu1 %v19072_v4  ;;  %v19141_v4 = vld [vmem:[#allocation2 + $0x1d44] ss:$112 sps:$4 sm:$0xff]  }
 0x544   : > { %10823 = vmatpush1.bf16.msra.mxu0 %v19079_v8  ;;  %v19144_v8 = vld [vmem:[#allocation2 + $0x164c] ss:$112 sps:$4 sm:$0xff]  }
 0x545   : > { %10958 = vmatpush1.bf16.msra.mxu1 %v19070_v53  ;;  %10824 = vmatprep.subr.bf16.mxu0 %v19087_v16  ;;  %v19139_v53 = vld [vmem:[#allocation2 + $0x1d40] ss:$112 sps:$4 sm:$0xff]   ;;  %v19142_v16 = vld [vmem:[#allocation2 + $0x1648] ss:$112 sps:$4 sm:$0xff]  }
 0x546   : > { %10959 = vmatprep.subr.bf16.mxu1 %v19078_v40  ;;  %v19147_v40 = vld [vmem:[#allocation2 + $0x1e24] ss:$112 sps:$4 sm:$0xff]  }
 0x548   : > { %10825 = vmatpush1.bf16.msra.mxu0 %v19085_v17  ;;  %v19150_v17 = vld [vmem:[#allocation2 + $0x172c] ss:$112 sps:$4 sm:$0xff]  }
 0x549   : > { %10960 = vmatpush1.bf16.msra.mxu1 %v19076_v11  ;;  %10826 = vmatprep.subr.bf16.mxu0 %v19093_v20  ;;  %v19145_v11 = vld [vmem:[#allocation2 + $0x1e20] ss:$112 sps:$4 sm:$0xff]   ;;  %v19148_v20 = vld [vmem:[#allocation2 + $0x1728] ss:$112 sps:$4 sm:$0xff]  }
 0x54a   : > { %10961 = vmatprep.subr.bf16.mxu1 %v19084_v12  ;;  %v19153_v12 = vld [vmem:[#allocation2 + $0x1f04] ss:$112 sps:$4 sm:$0xff]  }
 0x54c   : > { %10827 = vmatpush1.bf16.msra.mxu0 %v19091_v15  ;;  %v19156_v15 = vld [vmem:[#allocation2 + $0x180c] ss:$112 sps:$4 sm:$0xff]  }
 0x54d   : > { %10962 = vmatpush1.bf16.msra.mxu1 %v19082_v3  ;;  %10828 = vmatprep.subr.bf16.mxu0 %v19099_v25  ;;  %v19151_v3 = vld [vmem:[#allocation2 + $0x1f00] ss:$112 sps:$4 sm:$0xff]   ;;  %v19154_v25 = vld [vmem:[#allocation2 + $0x1808] ss:$112 sps:$4 sm:$0xff]  }
 0x54e   : > { %10972 = vmatprep.subr.bf16.mxu1 %v19090_v13  ;;  %v19159_v13 = vld [vmem:[#allocation2 + $0x1fe4] ss:$112 sps:$4 sm:$0xff]  }
 0x550   : > { %10964 = vmatmul.mubr.bf16.vlgmr.msra.gmra.mrb[32].mxu1 %v19560_v9  ;;  %10829 = vmatpush1.bf16.msra.mxu0 %v19097_v26  ;;  %v19109_v9 = vld [vmem:[#allocation2 + $0x18e0] ss:$112 sps:$4 sm:$0xff]   ;;  %v19162_v26 = vld [vmem:[#allocation2 + $0x18ec] ss:$112 sps:$4 sm:$0xff]  }
 0x551   : > { %10973 = vmatpush1.bf16.msra.mxu1 %v19088_v22  ;;  %11004 = vmatprep.mubr.bf16.mxu1 %v19565_v36  ;;  %v19112_v36 = vld [vmem:[#allocation2 + $0x11e8] ss:$112 sps:$4 sm:$0xff]   ;;  %v19157_v22 = vld [vmem:[#allocation2 + $0x1fe0] ss:$112 sps:$4 sm:$0xff]  }
 0x552   : > { %10974 = vmatprep.subr.bf16.mxu1 %v19096_v49  ;;  %10830 = vmatprep.subr.bf16.mxu0 %v19105_v28  ;;  %v19165_v49 = vld [vmem:[#allocation2 + $0x20c4] ss:$112 sps:$4 sm:$0xff]   ;;  %v19160_v28 = vld [vmem:[#allocation2 + $0x18e8] ss:$112 sps:$4 sm:$0xff]  }
 0x554   : > { %10831 = vmatpush1.bf16.msra.mxu0 %v19103_v32  ;;  %v19168_v32 = vld [vmem:[#allocation2 + $0x19cc] ss:$112 sps:$4 sm:$0xff]  }
 0x555   : > { %10975 = vmatpush1.bf16.msra.mxu1 %v19094_v52  ;;  %10832 = vmatprep.subr.bf16.mxu0 %v19111_v37  ;;  %v19163_v52 = vld [vmem:[#allocation2 + $0x20c0] ss:$112 sps:$4 sm:$0xff]   ;;  %v19166_v37 = vld [vmem:[#allocation2 + $0x19c8] ss:$112 sps:$4 sm:$0xff]  }
 0x556   : > { %10976 = vmatprep.subr.bf16.mxu1 %v19102_v34  ;;  %v19171_v34 = vld [vmem:[#allocation2 + $0x21a4] ss:$112 sps:$4 sm:$0xff]  }
 0x558   : > { %10833 = vmatpush1.bf16.msra.mxu0 %v19109_v9  ;;  %v19174_v9 = vld [vmem:[#allocation2 + $0x1aac] ss:$112 sps:$4 sm:$0xff]  }
 0x559   : > { %10977 = vmatpush1.bf16.msra.mxu1 %v19100_v35  ;;  %10834 = vmatprep.subr.bf16.mxu0 %v19117_v27  ;;  %v19169_v35 = vld [vmem:[#allocation2 + $0x21a0] ss:$112 sps:$4 sm:$0xff]   ;;  %v19172_v27 = vld [vmem:[#allocation2 + $0x1aa8] ss:$112 sps:$4 sm:$0xff]  }
 0x55a   : > { %10978 = vmatprep.subr.bf16.mxu1 %v19108_v43  ;;  %v19177_v43 = vld [vmem:[#allocation2 + $0x2284] ss:$112 sps:$4 sm:$0xff]  }
 0x55c   : > { %10835 = vmatpush1.bf16.msra.mxu0 %v19115_v47  ;;  %v19180_v47 = vld [vmem:[#allocation2 + $0x1b8c] ss:$112 sps:$4 sm:$0xff]  }
 0x55d   : > { %10979 = vmatpush1.bf16.msra.mxu1 %v19106_v45  ;;  %10836 = vmatprep.subr.bf16.mxu0 %v19123_v54  ;;  %v19175_v45 = vld [vmem:[#allocation2 + $0x2280] ss:$112 sps:$4 sm:$0xff]   ;;  %v19178_v54 = vld [vmem:[#allocation2 + $0x1b88] ss:$112 sps:$4 sm:$0xff]  }
 0x55e   : > { %10980 = vmatprep.subr.bf16.mxu1 %v19114_v46  ;;  %v19183_v46 = vld [vmem:[#allocation2 + $0x2364] ss:$112 sps:$4 sm:$0xff]  }
 0x560   : > { %10837 = vmatpush1.bf16.msra.mxu0 %v19121_v42  ;;  %v19186_v42 = vld [vmem:[#allocation2 + $0x1c6c] ss:$112 sps:$4 sm:$0xff]  }
 0x561   : > { %10981 = vmatpush1.bf16.msra.mxu1 %v19112_v36  ;;  %10838 = vmatprep.subr.bf16.mxu0 %v19129_v38  ;;  %v19181_v36 = vld [vmem:[#allocation2 + $0x2360] ss:$112 sps:$4 sm:$0xff]   ;;  %v19184_v38 = vld [vmem:[#allocation2 + $0x1c68] ss:$112 sps:$4 sm:$0xff]  }
 0x562   : > { %10982 = vmatprep.subr.bf16.mxu1 %v19120_v48  ;;  %v19189_v48 = vld [vmem:[#allocation2 + $0x2444] ss:$112 sps:$4 sm:$0xff]  }
 0x564   : > { %10839 = vmatpush1.bf16.msra.mxu0 %v19127_v61  ;;  %v19192_v61 = vld [vmem:[#allocation2 + $0x1d4c] ss:$112 sps:$4 sm:$0xff]  }
 0x565   : > { %10983 = vmatpush1.bf16.msra.mxu1 %v19118_v60  ;;  %10849 = vmatprep.subr.bf16.mxu0 %v19135_v63  ;;  %v19187_v60 = vld [vmem:[#allocation2 + $0x2440] ss:$112 sps:$4 sm:$0xff]   ;;  %v19190_v63 = vld [vmem:[#allocation2 + $0x1d48] ss:$112 sps:$4 sm:$0xff]  }
 0x566   : > { %10984 = vmatprep.subr.bf16.mxu1 %v19126_v56  ;;  %v19195_v56 = vld [vmem:[#allocation2 + $0x2524] ss:$112 sps:$4 sm:$0xff]  }
 0x567   : > { %10841 = vmatmul.mubr.bf16.vlgmr.msra.gmra.mrb[24].mxu0 %v19570_v18 }
 0x568   : > { %10850 = vmatpush1.bf16.msra.mxu0 %v19133_v51  ;;  %10881 = vmatprep.mubr.bf16.mxu0 %v19573_v24  ;;  %v19198_v51 = vld [vmem:[#allocation2 + $0x1e2c] ss:$112 sps:$4 sm:$0xff]  }
 0x569   : > { %10985 = vmatpush1.bf16.msra.mxu1 %v19124_v62  ;;  %10851 = vmatprep.subr.bf16.mxu0 %v19141_v4  ;;  %v19193_v62 = vld [vmem:[#allocation2 + $0x2520] ss:$112 sps:$4 sm:$0xff]   ;;  %v19196_v4 = vld [vmem:[#allocation2 + $0x1e28] ss:$112 sps:$4 sm:$0xff]  }
 0x56a   : > { %10986 = vmatprep.subr.bf16.mxu1 %v19132_v1  ;;  %v19201_v1 = vld [vmem:[#allocation2 + $0x2604] ss:$112 sps:$4 sm:$0xff]  }
 0x56c   : > { %10852 = vmatpush1.bf16.msra.mxu0 %v19139_v53  ;;  %v19204_v53 = vld [vmem:[#allocation2 + $0x1f0c] ss:$112 sps:$4 sm:$0xff]  }
 0x56d   : > { %10987 = vmatpush1.bf16.msra.mxu1 %v19130_v2  ;;  %10853 = vmatprep.subr.bf16.mxu0 %v19147_v40  ;;  %v19199_v2 = vld [vmem:[#allocation2 + $0x2600] ss:$112 sps:$4 sm:$0xff]   ;;  %v19213_v40 = vld [vmem:[#allocation2 + $0x27c4] ss:$112 sps:$4 sm:$0xff]  }
 0x56e   : > { %10988 = vmatprep.subr.bf16.mxu1 %v19138_v58  ;;  %v19207_v58 = vld [vmem:[#allocation2 + $0x26e4] ss:$112 sps:$4 sm:$0xff]  }
 0x570   : > { %10854 = vmatpush1.bf16.msra.mxu0 %v19145_v11  ;;  %v19211_v11 = vld [vmem:[#allocation2 + $0x27c0] ss:$112 sps:$4 sm:$0xff]  }
 0x571   : > { %10989 = vmatpush1.bf16.msra.mxu1 %v19136_v44  ;;  %10855 = vmatprep.subr.bf16.mxu0 %v19153_v12  ;;  %v19202_v44 = vld [vmem:[#allocation2 + $0x1f08] ss:$112 sps:$4 sm:$0xff]   ;;  %v19216_v12 = vld [vmem:[#allocation2 + $0x20cc] ss:$112 sps:$4 sm:$0xff]  }
 0x572   : > { %10990 = vmatprep.subr.bf16.mxu1 %v19144_v8  ;;  %v19210_v8 = vld [vmem:[#allocation2 + $0x1fec] ss:$112 sps:$4 sm:$0xff]  }
 0x574   : > { %10856 = vmatpush1.bf16.msra.mxu0 %v19151_v3  ;;  %v19214_v3 = vld [vmem:[#allocation2 + $0x20c8] ss:$112 sps:$4 sm:$0xff]  }
 0x575   : > { %10991 = vmatpush1.bf16.msra.mxu1 %v19142_v16  ;;  %10857 = vmatprep.subr.bf16.mxu0 %v19159_v13  ;;  %v19219_v16 = vld [vmem:[#allocation2 + $0x28a4] ss:$112 sps:$4 sm:$0xff]   ;;  %v19222_v13 = vld [vmem:[#allocation2 + $0x21ac] ss:$112 sps:$4 sm:$0xff]  }
 0x576   : > { %10992 = vmatprep.subr.bf16.mxu1 %v19150_v17  ;;  %v19217_v17 = vld [vmem:[#allocation2 + $0x28a0] ss:$112 sps:$4 sm:$0xff]  }
 0x578   : > { %10858 = vmatpush1.bf16.msra.mxu0 %v19157_v22  ;;  %v19220_v22 = vld [vmem:[#allocation2 + $0x21a8] ss:$112 sps:$4 sm:$0xff]  }
 0x579   : > { %10993 = vmatpush1.bf16.msra.mxu1 %v19148_v20  ;;  %10859 = vmatprep.subr.bf16.mxu0 %v19165_v49  ;;  %v19225_v20 = vld [vmem:[#allocation2 + $0x2984] ss:$112 sps:$4 sm:$0xff]   ;;  %v19228_v49 = vld [vmem:[#allocation2 + $0x228c] ss:$112 sps:$4 sm:$0xff]  }
 0x57a   : > { %10994 = vmatprep.subr.bf16.mxu1 %v19156_v15  ;;  %v19223_v15 = vld [vmem:[#allocation2 + $0x2980] ss:$112 sps:$4 sm:$0xff]  }
 0x57c   : > { %10860 = vmatpush1.bf16.msra.mxu0 %v19163_v52  ;;  %v11155_v52 = vld [vmem:[%s21453_s3 + $0x20] sm:$0xff] }
 0x57d   : > { %10995 = vmatpush1.bf16.msra.mxu1 %v19154_v25  ;;  %10861 = vmatprep.subr.bf16.mxu0 %v19171_v34  ;;  %v19231_v25 = vld [vmem:[#allocation2 + $0x2a64] ss:$112 sps:$4 sm:$0xff]   ;;  %v19226_v34 = vld [vmem:[#allocation2 + $0x2288] ss:$112 sps:$4 sm:$0xff]  }
 0x57e   : > { %10996 = vmatprep.subr.bf16.mxu1 %v19162_v26  ;;  %v11151_v26 = vld [vmem:[%s21453_s3] sm:$0xff] }
 0x580   : > { %10862 = vmatpush1.bf16.msra.mxu0 %v19169_v35  ;;  %v19234_v35 = vld [vmem:[#allocation2 + $0x236c] ss:$112 sps:$4 sm:$0xff]  }
 0x581   : > { %10997 = vmatpush1.bf16.msra.mxu1 %v19160_v28  ;;  %10863 = vmatprep.subr.bf16.mxu0 %v19177_v43  ;;  %v19229_v28 = vld [vmem:[#allocation2 + $0x2a60] ss:$112 sps:$4 sm:$0xff]   ;;  %v19237_v43 = vld [vmem:[#allocation2 + $0x244c] ss:$112 sps:$4 sm:$0xff]  }
 0x582   : > { %10998 = vmatprep.subr.bf16.mxu1 %v19168_v32  ;;  %v16343_v32 = vcombine.high %v11151_v26, %v11155_v52 }
 0x584   : > { %10864 = vmatpush1.bf16.msra.mxu0 %v19175_v45  ;;  %v19240_v45 = vld [vmem:[#allocation2 + $0x252c] ss:$112 sps:$4 sm:$0xff]  }
 0x585   : > { %10999 = vmatpush1.bf16.msra.mxu1 %v19166_v37  ;;  %10865 = vmatprep.subr.bf16.mxu0 %v19183_v46  ;;  %v19232_v37 = vld [vmem:[#allocation2 + $0x2368] ss:$112 sps:$4 sm:$0xff]   ;;  %v11163_v46 = vld [vmem:[%s21453_s3 + $0x60] sm:$0xff] }
 0x586   : > { %11000 = vmatprep.subr.bf16.mxu1 %v19174_v9  ;;  %v19235_v9 = vld [vmem:[#allocation2 + $0x2448] ss:$112 sps:$4 sm:$0xff]  }
 0x588   : > { %10866 = vmatpush1.bf16.msra.mxu0 %v19181_v36  ;;  %v19238_v36 = vld [vmem:[#allocation2 + $0x2528] ss:$112 sps:$4 sm:$0xff]  }
 0x589   : > { %11001 = vmatpush1.bf16.msra.mxu1 %v19172_v27  ;;  %10867 = vmatprep.subr.bf16.mxu0 %v19189_v48  ;;  %v11159_v27 = vld [vmem:[%s21453_s3 + $0x40] sm:$0xff]  ;;  %v19243_v48 = vld [vmem:[#allocation2 + $0x260c] ss:$112 sps:$4 sm:$0xff]  }
 0x58a   : > { %11002 = vmatprep.subr.bf16.mxu1 %v19180_v47  ;;  %v16342_v47 = vcombine.low %v11151_v26, %v11155_v52 }
 0x58c   : > { %10868 = vmatpush1.bf16.msra.mxu0 %v19187_v60  ;;  %v11171_v60 = vld [vmem:[%s21453_s3 + $0xa0] sm:$0xff] }
 0x58d   : > { %11003 = vmatpush1.bf16.msra.mxu1 %v19178_v54  ;;  %10869 = vmatprep.subr.bf16.mxu0 %v19195_v56  ;;  %v16351_v54 = vcombine.high %v11159_v27, %v11163_v46  ;;  %v19241_v56 = vld [vmem:[#allocation2 + $0x2608] ss:$112 sps:$4 sm:$0xff]  }
 0x58e   : > { %11013 = vmatprep.subr.bf16.mxu1 %v19186_v42  ;;  %v11167_v42 = vld [vmem:[%s21453_s3 + $0x80] sm:$0xff] }
 0x590   : > { %11005 = vmatmul.mubr.bf16.vlgmr.msra.gmra.mrb[32].mxu1 %v19570_v18  ;;  %10870 = vmatpush1.bf16.msra.mxu0 %v19193_v62  ;;  %v19205_v18 = vld [vmem:[#allocation2 + $0x26e0] ss:$112 sps:$4 sm:$0xff]   ;;  %v19246_v62 = vld [vmem:[#allocation2 + $0x26ec] ss:$112 sps:$4 sm:$0xff]  }
 0x591   : > { %11014 = vmatpush1.bf16.msra.mxu1 %v19184_v38  ;;  %11045 = vmatprep.mubr.bf16.mxu1 %v19573_v24  ;;  %v19208_v24 = vld [vmem:[#allocation2 + $0x1fe8] ss:$112 sps:$4 sm:$0xff]   ;;  %v16350_v38 = vcombine.low %v11159_v27, %v11163_v46  ;;  %v11211_v27 = vld [vmem:[%s21453_s3 + $0x1e0] sm:$0xff]  ;;  %v19258_v46 = vld [vmem:[#allocation2 + $0x2a6c] ss:$112 sps:$4 sm:$0xff]  }
 0x592   : > { %11015 = vmatprep.subr.bf16.mxu1 %v19192_v61  ;;  %10871 = vmatprep.subr.bf16.mxu0 %v19201_v1  ;;  %v16359_v61 = vcombine.high %v11167_v42, %v11171_v60  ;;  %v11179_v1 = vld [vmem:[%s21453_s3 + $0xe0] sm:$0xff] }
 0x594   : > { %10872 = vmatpush1.bf16.msra.mxu0 %v19199_v2  ;;  %v16358_v2 = vcombine.low %v11167_v42, %v11171_v60  ;;  %v19256_v42 = vld [vmem:[#allocation2 + $0x2a68] ss:$112 sps:$4 sm:$0xff]   ;;  %v11215_v60 = vld [vmem:[%s21453_s3 + $0x200] sm:$0xff] }
 0x595   : > { %11016 = vmatpush1.bf16.msra.mxu1 %v19190_v63  ;;  %10873 = vmatprep.subr.bf16.mxu0 %v19207_v58  ;;  %v11175_v63 = vld [vmem:[%s21453_s3 + $0xc0] sm:$0xff]  ;;  %v19244_v58 = vld [vmem:[#allocation2 + $0x26e8] ss:$112 sps:$4 sm:$0xff]  }
 0x596   : > { %11017 = vmatprep.subr.bf16.mxu1 %v19198_v51  ;;  %v1878_v51 = vrot.slane %v19804_v41, %v19651_v31 }
 0x598   : > { %10874 = vmatpush1.bf16.msra.mxu0 %v19205_v18 }
 0x599   : > { %11018 = vmatpush1.bf16.msra.mxu1 %v19196_v4  ;;  %10875 = vmatprep.subr.bf16.mxu0 %v19213_v40  ;;  %v1882_v4 = vrot.slane %v19804_v41, %v19654_v33  ;;  %v11183_v40 = vld [vmem:[%s21453_s3 + $0x100] sm:$0xff] }
 0x59a   : > { %11019 = vmatprep.subr.bf16.mxu1 %v19204_v53  ;;  %v16367_v53 = vcombine.high %v11175_v63, %v11179_v1 }
 0x59c   : > { %10876 = vmatpush1.bf16.msra.mxu0 %v19211_v11 }
 0x59d   : > { %11020 = vmatpush1.bf16.msra.mxu1 %v19202_v44  ;;  %10877 = vmatprep.subr.bf16.mxu0 %v19219_v16  ;;  %v19249_v44 = vld [vmem:[#allocation2 + $0x27cc] ss:$112 sps:$4 sm:$0xff]  }
 0x59e   : > { %11021 = vmatprep.subr.bf16.mxu1 %v19210_v8  ;;  %v11187_v8 = vld [vmem:[%s21453_s3 + $0x120] sm:$0xff] }
 0x5a0   : > { %10878 = vmatpush1.bf16.msra.mxu0 %v19217_v17 }
 0x5a1   : > { %11022 = vmatpush1.bf16.msra.mxu1 %v19208_v24  ;;  %10879 = vmatprep.subr.bf16.mxu0 %v19225_v20 }
 0x5a2   : > { %11023 = vmatprep.subr.bf16.mxu1 %v19216_v12  ;;  %v16366_v12 = vcombine.low %v11175_v63, %v11179_v1  ;;  %v11223_v63 = vld [vmem:[%s21453_s3 + $0x240] sm:$0xff] }
 0x5a3   : > { %v11227_v1 = vld [vmem:[%s21453_s3 + $0x260] sm:$0xff] }
 0x5a4   : > { %10880 = vmatpush1.bf16.msra.mxu0 %v19223_v15 }
 0x5a5   : > { %11024 = vmatpush1.bf16.msra.mxu1 %v19214_v3  ;;  %10890 = vmatprep.subr.bf16.mxu0 %v19231_v25  ;;  %v19247_v3 = vld [vmem:[#allocation2 + $0x27c8] ss:$112 sps:$4 sm:$0xff]   ;;  %v11191_v25 = vld [vmem:[%s21453_s3 + $0x140] sm:$0xff] }
 0x5a6   : > { %11025 = vmatprep.subr.bf16.mxu1 %v19222_v13  ;;  %v16375_v13 = vcombine.high %v11183_v40, %v11187_v8 }
 0x5a7   : > { %10882 = vmatmul.mubr.bf16.vlgmr.msra.gmra.mrb[24].mxu0 %v19580_v29 }
 0x5a8   : > { %10891 = vmatpush1.bf16.msra.mxu0 %v19229_v28  ;;  %10922 = vmatprep.mubr.bf16.mxu0 %v19394_v0  ;;  %v16374_v28 = vcombine.low %v11183_v40, %v11187_v8 }
 0x5a9   : > { %11026 = vmatpush1.bf16.msra.mxu1 %v19220_v22  ;;  %13789 = vmatprep.subr.bf16.mxu0 %v16343_v32  ;;  %v19252_v22 = vld [vmem:[#allocation2 + $0x28ac] ss:$112 sps:$4 sm:$0xff]  }
 0x5aa   : > { %11027 = vmatprep.subr.bf16.mxu1 %v19228_v49  ;;  %v11195_v49 = vld [vmem:[%s21453_s3 + $0x160] sm:$0xff] }
 0x5ab   : > { %v16383_v32 = vcombine.high %v11191_v25, %v11195_v49 }
 0x5ad   : > { %11028 = vmatpush1.bf16.msra.mxu1 %v19226_v34  ;;  %v19250_v34 = vld [vmem:[#allocation2 + $0x28a8] ss:$112 sps:$4 sm:$0xff]  }
 0x5ae   : > { %11029 = vmatprep.subr.bf16.mxu1 %v19234_v35  ;;  %v19255_v35 = vld [vmem:[#allocation2 + $0x298c] ss:$112 sps:$4 sm:$0xff]  }
 0x5b1   : > { %11030 = vmatpush1.bf16.msra.mxu1 %v19232_v37  ;;  %v11199_v37 = vld [vmem:[%s21453_s3 + $0x180] sm:$0xff] }
 0x5b2   : > { %11031 = vmatprep.subr.bf16.mxu1 %v19237_v43  ;;  %v16382_v43 = vcombine.low %v11191_v25, %v11195_v49  ;;  %v19294_v25 = vld [vmem:[%s21452_s2 + $0x10] sm:$0xff] }
 0x5b3   : > { %16340 = vmatmul.mubr.msk.bf16.vlgmr.msra.gmra.mrb[24].mxu0 %vm8795_vm0, %v19550_v10  ;;  %v1886_v49 = vrot.slane %v19294_v25, %v19756_v7 }
 0x5b4   : > { %13790 = vmatpush1.bf16.msra.mxu0 %v16342_v47  ;;  %v11152_v47 = vld [vmem:[%s21453_s3 + $0x8] sm:$0xff] }
 0x5b5   : > { %11032 = vmatpush1.bf16.msra.mxu1 %v19235_v9  ;;  %13791 = vmatprep.subr.bf16.mxu0 %v16351_v54 }
 0x5b6   : > { %11033 = vmatprep.subr.bf16.mxu1 %v19240_v45  ;;  %v11207_v45 = vld [vmem:[%s21453_s3 + $0x1c0] sm:$0xff] }
 0x5b8   : > { %13792 = vmatpush1.bf16.msra.mxu0 %v16350_v38  ;;  %v11219_v38 = vld [vmem:[%s21453_s3 + $0x220] sm:$0xff] }
 0x5b9   : > { %11034 = vmatpush1.bf16.msra.mxu1 %v19238_v36  ;;  %13793 = vmatprep.subr.bf16.mxu0 %v16359_v61  ;;  %v11156_v36 = vld [vmem:[%s21453_s3 + $0x28] sm:$0xff]  ;;  %v16398_v61 = vcombine.low %v11207_v45, %v11211_v27 }
 0x5ba   : > { %11035 = vmatprep.subr.bf16.mxu1 %v19243_v48  ;;  %v10596_v18 = vpop.f32.mrb[20].mxu0  ;;  %v16399_v48 = vcombine.high %v11207_v45, %v11211_v27  ;;  %v11188_v45 = vld [vmem:[%s21453_s3 + $0x128] sm:$0xff] }
 0x5bb   : > { %v16921_v11 = vadd.f32 %v10596_v18, %v1878_v51  ;;  %v10598_v24 = vpop.f32.mrb[21].mxu0  ;;  %v16406_v51 = vcombine.low %v11215_v60, %v11219_v38  ;;  %v16414_v18 = vcombine.low %v11223_v63, %v11227_v1 }
 0x5bc   : > { %13794 = vmatpush1.bf16.msra.mxu0 %v16358_v2  ;;  %v16922_v16 = vadd.f32 %v10598_v24, %v1882_v4  ;;  %v10600_v41 = vpop.f32.mrb[22].mxu0  ;;  %v11231_v2 = vld [vmem:[%s21453_s3 + $0x280] sm:$0xff] }
 0x5bd   : > { %11036 = vmatpush1.bf16.msra.mxu1 %v19241_v56  ;;  %v11115_v17 = vmax.f32 %v16921_v11, 0.0  ;;  %v10601_v20 = vpop.f32.mrb[23].mxu0  ;;  %13795 = vmatprep.subr.bf16.mxu0 %v16367_v53  ;;  %v16345_v56 = vcombine.high %v11152_v47, %v11156_v36  ;;  %v11235_v4 = vld [vmem:[%s21453_s3 + $0x2a0] sm:$0xff]  ;;  %v11164_v53 = vld [vmem:[%s21453_s3 + $0x68] sm:$0xff] }
 0x5be   : > { %11037 = vmatprep.subr.bf16.mxu1 %v19246_v62  ;;  %v11116_v15 = vmax.f32 %v16922_v16, 0.0  ;;  %v16407_v62 = vcombine.high %v11215_v60, %v11219_v38  ;;  %v16423_v40 = vcombine.high %v11231_v2, %v11235_v4  ;;  %v11239_v11 = vld [vmem:[%s21453_s3 + $0x2c0] sm:$0xff]  ;;  %v11168_v16 = vld [vmem:[%s21453_s3 + $0x88] sm:$0xff] }
 0x5bf   : > { %v19885_v26 = vmax.f32 %v19771_v57, %v11115_v17  ;;  %v11203_v57 = vld [vmem:[%s21453_s3 + $0x1a0] sm:$0xff]  ;;  %v11172_v41 = vld [vmem:[%s21453_s3 + $0xa8] sm:$0xff] }
 0x5c0   : > { %v19888_v52 = vmax.f32 %v19784_v50, %v11116_v15  ;;  %13796 = vmatpush1.bf16.msra.mxu0 %v16366_v12  ;;  %v19253_v50 = vld [vmem:[#allocation2 + $0x2988] ss:$112 sps:$4 sm:$0xff]   ;;  %v16391_v9 = vcombine.high %v11199_v37, %v11203_v57  ;;  %v16390_v54 = vcombine.low %v11199_v37, %v11203_v57  ;;  %v11243_v24 = vld [vmem:[%s21453_s3 + $0x2e0] sm:$0xff]  ;;  %v16422_v12 = vcombine.low %v11231_v2, %v11235_v4 }
 0x5c1   : > { %11038 = vmatpush1.bf16.msra.mxu1 %v19244_v58  ;;  %13797 = vmatprep.subr.bf16.mxu0 %v16375_v13  ;;  %v11160_v58 = vld [vmem:[%s21453_s3 + $0x48] sm:$0xff]  ;;  %v16361_v20 = vcombine.high %v11168_v16, %v11172_v41  ;;  %v11247_v13 = vld [vmem:[%s21453_s3 + $0x300] sm:$0xff] }
 0x5c2   : > { %11039 = vmatprep.subr.bf16.mxu1 %v19249_v44  ;;  %v16344_v44 = vcombine.low %v11152_v47, %v11156_v36  ;;  %v16353_v8 = vcombine.high %v11160_v58, %v11164_v53  ;;  %v16352_v17 = vcombine.low %v11160_v58, %v11164_v53  ;;  %v11251_v15 = vld [vmem:[%s21453_s3 + $0x320] sm:$0xff] }
 0x5c3   : > { %v11255_v57 = vld [vmem:[%s21453_s3 + $0x340] sm:$0xff]  ;;  %v16438_v47 = vcombine.low %v11247_v13, %v11251_v15 }
 0x5c4   : > { %13798 = vmatpush1.bf16.msra.mxu0 %v16374_v28  ;;  %v16430_v28 = vcombine.low %v11239_v11, %v11243_v24 }
 0x5c5   : > { %11040 = vmatpush1.bf16.msra.mxu1 %v19247_v3  ;;  %13799 = vmatprep.subr.bf16.mxu0 %v16383_v32  ;;  %v16431_v3 = vcombine.high %v11239_v11, %v11243_v24  ;;  %v1890_v32 = vrot.slane %v19294_v25, %v19677_v30 }
 0x5c6   : > { %11041 = vmatprep.subr.bf16.mxu1 %v19252_v22  ;;  %v11180_v22 = vld [vmem:[%s21453_s3 + $0xe8] sm:$0xff] }
 0x5c8   : > { %13800 = vmatpush1.bf16.msra.mxu0 %v16382_v43  ;;  %v11259_v43 = vld [vmem:[%s21453_s3 + $0x360] sm:$0xff] }
 0x5c9   : > { %11042 = vmatpush1.bf16.msra.mxu1 %v19250_v34  ;;  %13801 = vmatprep.subr.bf16.mxu0 %v16391_v9  ;;  %v16360_v34 = vcombine.low %v11168_v16, %v11172_v41  ;;  %v11184_v9 = vld [vmem:[%s21453_s3 + $0x108] sm:$0xff]  ;;  %v16446_v58 = vcombine.low %v11255_v57, %v11259_v43 }
 0x5ca   : > { %11043 = vmatprep.subr.bf16.mxu1 %v19255_v35  ;;  %v16439_v35 = vcombine.high %v11247_v13, %v11251_v15  ;;  %v16376_v4 = vcombine.low %v11184_v9, %v11188_v45 }
 0x5cc   : > { %13802 = vmatpush1.bf16.msra.mxu0 %v16390_v54 }
 0x5cd   : > { %11044 = vmatpush1.bf16.msra.mxu1 %v19253_v50  ;;  %13803 = vmatprep.subr.bf16.mxu0 %v16399_v48 }
 0x5ce   : > { %11054 = vmatprep.subr.bf16.mxu1 %v19258_v46 }
 0x5d0   : > { %11046 = vmatmul.mubr.bf16.vlgmr.msra.gmra.mrb[32].mxu1 %v19580_v29  ;;  %13804 = vmatpush1.bf16.msra.mxu0 %v16398_v61  ;;  %v16415_v29 = vcombine.high %v11223_v63, %v11227_v1  ;;  %v11192_v61 = vld [vmem:[%s21453_s3 + $0x148] sm:$0xff]  ;;  %v11263_v1 = vld [vmem:[%s21453_s3 + $0x380] sm:$0xff] }
 0x5d1   : > { %11055 = vmatpush1.bf16.msra.mxu1 %v19256_v42  ;;  %11086 = vmatprep.mubr.bf16.mxu1 %v19394_v0  ;;  %v16447_v42 = vcombine.high %v11255_v57, %v11259_v43  ;;  %v11196_v63 = vld [vmem:[%s21453_s3 + $0x168] sm:$0xff] }
 0x5d2   : > { %13953 = vmatprep.subr.bf16.mxu1 %v16345_v56  ;;  %13805 = vmatprep.subr.bf16.mxu0 %v16407_v62  ;;  %v16377_v56 = vcombine.high %v11184_v9, %v11188_v45  ;;  %v16384_v11 = vcombine.low %v11192_v61, %v11196_v63  ;;  %v11224_v43 = vld [vmem:[%s21453_s3 + $0x248] sm:$0xff]  ;;  %v11295_v45 = vld [vmem:[%s21453_s3 + $0x480] sm:$0xff] }
 0x5d3   : > { %v11228_v9 = vld [vmem:[%s21453_s3 + $0x268] sm:$0xff] }
 0x5d4   : > { %13806 = vmatpush1.bf16.msra.mxu0 %v16406_v51  ;;  %v11267_v51 = vld [vmem:[%s21453_s3 + $0x3a0] sm:$0xff] }
 0x5d5   : > { %13807 = vmatprep.subr.bf16.mxu0 %v16415_v29  ;;  %v16454_v24 = vcombine.low %v11263_v1, %v11267_v51 }
 0x5d8   : > { %13808 = vmatpush1.bf16.msra.mxu0 %v16414_v18  ;;  %v16385_v18 = vcombine.high %v11192_v61, %v11196_v63 }
 0x5d9   : > { %13809 = vmatprep.subr.bf16.mxu0 %v16423_v40  ;;  %v11200_v40 = vld [vmem:[%s21453_s3 + $0x188] sm:$0xff] }
 0x5dc   : > { %16341 = vmatmul.mubr.msk.bf16.vlgmr.msra.gmra.mrb[32].mxu1 %vm8795_vm0, %v19550_v10  ;;  %v11176_v10 = vld [vmem:[%s21453_s3 + $0xc8] sm:$0xff]  ;;  %13810 = vmatpush1.bf16.msra.mxu0 %v16422_v12 }
 0x5dd   : > { %13954 = vmatpush1.bf16.msra.mxu1 %v16344_v44  ;;  %13811 = vmatprep.subr.bf16.mxu0 %v16431_v3  ;;  %v16369_v37 = vcombine.high %v11176_v10, %v11180_v22  ;;  %v16368_v48 = vcombine.low %v11176_v10, %v11180_v22  ;;  %v16455_v44 = vcombine.high %v11263_v1, %v11267_v51  ;;  %v11208_v12 = vld [vmem:[%s21453_s3 + $0x1c8] sm:$0xff]  ;;  %v11279_v3 = vld [vmem:[%s21453_s3 + $0x400] sm:$0xff] }
 0x5de   : > { %13955 = vmatprep.subr.bf16.mxu1 %v16353_v8  ;;  %v11275_v8 = vld [vmem:[%s21453_s3 + $0x3e0] sm:$0xff]  ;;  %v11216_v22 = vld [vmem:[%s21453_s3 + $0x208] sm:$0xff] }
 0x5df   : > { %v11244_v1 = vld [vmem:[%s21453_s3 + $0x2e8] sm:$0xff]  ;;  %v11311_v51 = vld [vmem:[%s21453_s3 + $0x500] sm:$0xff] }
 0x5e0   : > { %13812 = vmatpush1.bf16.msra.mxu0 %v16430_v28  ;;  %v11287_v28 = vld [vmem:[%s21453_s3 + $0x440] sm:$0xff] }
 0x5e1   : > { %13956 = vmatpush1.bf16.msra.mxu1 %v16352_v17  ;;  %13813 = vmatprep.subr.bf16.mxu0 %v16439_v35  ;;  %v11212_v17 = vld [vmem:[%s21453_s3 + $0x1e8] sm:$0xff] }
 0x5e2   : > { %13957 = vmatprep.subr.bf16.mxu1 %v16361_v20  ;;  %v11283_v20 = vld [vmem:[%s21453_s3 + $0x420] sm:$0xff]  ;;  %v16401_v10 = vcombine.high %v11208_v12, %v11212_v17 }
 0x5e3   : > { %v10760_v50 = vpop.f32.mrb[28].mxu1  ;;  %v16471_v25 = vcombine.high %v11279_v3, %v11283_v20  ;;  %v16470_v35 = vcombine.low %v11279_v3, %v11283_v20  ;;  %v11327_v3 = vld [vmem:[%s21453_s3 + $0x580] sm:$0xff] }
 0x5e4   : > { %v16923_v27 = vadd.f32 %v10760_v50, %v1886_v49  ;;  %v10762_v46 = vpop.f32.mrb[29].mxu1  ;;  %13814 = vmatpush1.bf16.msra.mxu0 %v16438_v47  ;;  %v11220_v49 = vld [vmem:[%s21453_s3 + $0x228] sm:$0xff]  ;;  %v16417_v47 = vcombine.high %v11224_v43, %v11228_v9  ;;  %v11331_v20 = vld [vmem:[%s21453_s3 + $0x5a0] sm:$0xff] }
 0x5e5   : > { %13958 = vmatpush1.bf16.msra.mxu1 %v16360_v34  ;;  %v16924_v36 = vadd.f32 %v10762_v46, %v1890_v32  ;;  %v10764_v54 = vpop.f32.mrb[30].mxu1  ;;  %13815 = vmatprep.subr.bf16.mxu0 %v16447_v42  ;;  %v11291_v34 = vld [vmem:[%s21453_s3 + $0x460] sm:$0xff]  ;;  %v16400_v32 = vcombine.low %v11208_v12, %v11212_v17  ;;  %v16409_v57 = vcombine.high %v11216_v22, %v11220_v49  ;;  %v11260_v17 = vld [vmem:[%s21453_s3 + $0x368] sm:$0xff] }
 0x5e6   : > { %v11117_v60 = vmax.f32 %v16923_v27, 0.0  ;;  %v10765_v38 = vpop.f32.mrb[31].mxu1  ;;  %13959 = vmatprep.subr.bf16.mxu1 %v16369_v37  ;;  %v20035_v37 = vpack.c.bf16 %v19888_v52, %v19888_v52  ;;  %v16479_v50 = vcombine.high %v11287_v28, %v11291_v34  ;;  %v11299_v52 = vld [vmem:[%s21453_s3 + $0x4a0] sm:$0xff]  ;;  %v16408_v27 = vcombine.low %v11216_v22, %v11220_v49  ;;  %v11264_v22 = vld [vmem:[%s21453_s3 + $0x388] sm:$0xff] }
 0x5e7   : > { %v11118_v62 = vmax.f32 %v16924_v36, 0.0  ;;  %v16478_v46 = vcombine.low %v11287_v28, %v11291_v34  ;;  %v11232_v36 = vld [vmem:[%s21453_s3 + $0x288] sm:$0xff]  ;;  %v16487_v54 = vcombine.high %v11295_v45, %v11299_v52  ;;  %v11303_v42 = vld [vmem:[%s21453_s3 + $0x4c0] sm:$0xff]  ;;  %v16416_v38 = vcombine.low %v11224_v43, %v11228_v9 }
 0x5e8   : > { %v11138_v29 = vmax.f32 %v19787_v59, %v11117_v60  ;;  %v11204_v59 = vld [vmem:[%s21453_s3 + $0x1a8] sm:$0xff]  ;;  %13816 = vmatpush1.bf16.msra.mxu0 %v16446_v58  ;;  %v11307_v60 = vld [vmem:[%s21453_s3 + $0x4e0] sm:$0xff] }
 0x5e9   : > { %v19991_v2 = vmax.f32 %v19812_v5, %v11118_v62  ;;  %13960 = vmatpush1.bf16.msra.mxu1 %v16368_v48  ;;  %v11271_v5 = vld [vmem:[%s21453_s3 + $0x3c0] sm:$0xff]  ;;  %13817 = vmatprep.subr.bf16.mxu0 %v16455_v44  ;;  %v16393_v16 = vcombine.high %v11200_v40, %v11204_v59  ;;  %v16392_v13 = vcombine.low %v11200_v40, %v11204_v59  ;;  %v11236_v48 = vld [vmem:[%s21453_s3 + $0x2a8] sm:$0xff] }
 0x5ea   : > { %v19993_v53 = vpack.c.bf16 %v11138_v29, %v11138_v29  ;;  %13961 = vmatprep.subr.bf16.mxu1 %v16377_v56  ;;  %v16463_v41 = vcombine.high %v11271_v5, %v11275_v8  ;;  %v16462_v15 = vcombine.low %v11271_v5, %v11275_v8  ;;  %v16486_v56 = vcombine.low %v11295_v45, %v11299_v52  ;;  %v11240_v62 = vld [vmem:[%s21453_s3 + $0x2c8] sm:$0xff]  ;;  %v11315_v29 = vld [vmem:[%s21453_s3 + $0x520] sm:$0xff] }
 0x5eb   : > { %v16425_v61 = vcombine.high %v11232_v36, %v11236_v48  ;;  %v16495_v63 = vcombine.high %v11303_v42, %v11307_v60  ;;  %v16494_v58 = vcombine.low %v11303_v42, %v11307_v60  ;;  %v11248_v44 = vld [vmem:[%s21453_s3 + $0x308] sm:$0xff]  ;;  %v16503_v40 = vcombine.high %v11311_v51, %v11315_v29  ;;  %v11319_v5 = vld [vmem:[%s21453_s3 + $0x540] sm:$0xff] }
 0x5ec   : > { %13821 = vmatprep.mubr.bf16.mxu0 %v19993_v53  ;;  %13985 = vmatprep.mubr.bf16.mxu1 %v19993_v53  ;;  %v11252_v59 = vld [vmem:[%s21453_s3 + $0x328] sm:$0xff]  ;;  %v11323_v8 = vld [vmem:[%s21453_s3 + $0x560] sm:$0xff] }
 0x5ed   : > { %13962 = vmatpush1.bf16.msra.mxu1 %v16376_v4  ;;  %13818 = vmatpush1.bf16.msra.mxu0 %v16454_v24  ;;  %v16424_v4 = vcombine.low %v11232_v36, %v11236_v48  ;;  %v16502_v24 = vcombine.low %v11311_v51, %v11315_v29  ;;  %v16511_v12 = vcombine.high %v11319_v5, %v11323_v8  ;;  %v11268_v49 = vld [vmem:[%s21453_s3 + $0x3a8] sm:$0xff]  ;;  %v11335_v28 = vld [vmem:[%s21453_s3 + $0x5c0] sm:$0xff] }
 0x5ee   : > { %13963 = vmatprep.subr.bf16.mxu1 %v16385_v18  ;;  %13819 = vmatprep.subr.bf16.mxu0 %v16463_v41  ;;  %v16433_v18 = vcombine.high %v11240_v62, %v11244_v1  ;;  %v11256_v41 = vld [vmem:[%s21453_s3 + $0x348] sm:$0xff]  ;;  %v11339_v34 = vld [vmem:[%s21453_s3 + $0x5e0] sm:$0xff] }
 0x5ef   : > { %v11272_v43 = vld [vmem:[%s21453_s3 + $0x3c8] sm:$0xff]  ;;  %v11343_v45 = vld [vmem:[%s21453_s3 + $0x600] sm:$0xff] }
 0x5f0   : > { %v11276_v9 = vld [vmem:[%s21453_s3 + $0x3e8] sm:$0xff]  ;;  %v11347_v52 = vld [vmem:[%s21453_s3 + $0x620] sm:$0xff] }
 0x5f1   : > { %13964 = vmatpush1.bf16.msra.mxu1 %v16384_v11  ;;  %13820 = vmatpush1.bf16.msra.mxu0 %v16462_v15  ;;  %v16432_v11 = vcombine.low %v11240_v62, %v11244_v1  ;;  %v16510_v15 = vcombine.low %v11319_v5, %v11323_v8  ;;  %v11280_v36 = vld [vmem:[%s21453_s3 + $0x408] sm:$0xff]  ;;  %v16535_v48 = vcombine.high %v11343_v45, %v11347_v52  ;;  %v11351_v42 = vld [vmem:[%s21453_s3 + $0x640] sm:$0xff] }
 0x5f2   : > { %13965 = vmatprep.subr.bf16.mxu1 %v16393_v16  ;;  %13830 = vmatprep.subr.bf16.mxu0 %v16471_v25  ;;  %v16441_v16 = vcombine.high %v11248_v44, %v11252_v59  ;;  %v16519_v25 = vcombine.high %v11327_v3, %v11331_v20  ;;  %v11355_v60 = vld [vmem:[%s21453_s3 + $0x660] sm:$0xff]  ;;  %v16464_v62 = vcombine.low %v11272_v43, %v11276_v9  ;;  %v11288_v51 = vld [vmem:[%s21453_s3 + $0x448] sm:$0xff] }
 0x5f3   : > { %v16543_v29 = vcombine.high %v11351_v42, %v11355_v60  ;;  %v11296_v5 = vld [vmem:[%s21453_s3 + $0x488] sm:$0xff] }
 0x5f4   : > { %13822 = vmatmul.mubr.bf16.vlgmr.msra.gmra.mrb[28].mxu0 %v20035_v37 }
 0x5f5   : > { %13966 = vmatpush1.bf16.msra.mxu1 %v16392_v13  ;;  %13831 = vmatpush1.bf16.msra.mxu0 %v16470_v35  ;;  %v16440_v13 = vcombine.low %v11248_v44, %v11252_v59  ;;  %v16518_v35 = vcombine.low %v11327_v3, %v11331_v20  ;;  %v11304_v3 = vld [vmem:[%s21453_s3 + $0x4c8] sm:$0xff] }
 0x5f6   : > { %13967 = vmatprep.subr.bf16.mxu1 %v16401_v10  ;;  %13832 = vmatprep.subr.bf16.mxu0 %v16479_v50  ;;  %v16449_v10 = vcombine.high %v11256_v41, %v11260_v17  ;;  %v16527_v50 = vcombine.high %v11335_v28, %v11339_v34 }
 0x5f9   : > { %13968 = vmatpush1.bf16.msra.mxu1 %v16400_v32  ;;  %13833 = vmatpush1.bf16.msra.mxu0 %v16478_v46  ;;  %v16448_v32 = vcombine.low %v11256_v41, %v11260_v17  ;;  %v16526_v46 = vcombine.low %v11335_v28, %v11339_v34  ;;  %v11312_v28 = vld [vmem:[%s21453_s3 + $0x508] sm:$0xff] }
 0x5fa   : > { %13969 = vmatprep.subr.bf16.mxu1 %v16409_v57  ;;  %13834 = vmatprep.subr.bf16.mxu0 %v16487_v54  ;;  %v16457_v57 = vcombine.high %v11264_v22, %v11268_v49  ;;  %v11284_v54 = vld [vmem:[%s21453_s3 + $0x428] sm:$0xff] }
 0x5fb   : > { %v16473_v1 = vcombine.high %v11280_v36, %v11284_v54  ;;  %v16472_v44 = vcombine.low %v11280_v36, %v11284_v54 }
 0x5fd   : > { %13970 = vmatpush1.bf16.msra.mxu1 %v16408_v27  ;;  %13835 = vmatpush1.bf16.msra.mxu0 %v16486_v56  ;;  %v16456_v27 = vcombine.low %v11264_v22, %v11268_v49  ;;  %v20142_v56 = vld [vmem:[%s21453_s3 + $0x820] sm:$0xff] }
 0x5fe   : > { %13971 = vmatprep.subr.bf16.mxu1 %v16417_v47  ;;  %13836 = vmatprep.subr.bf16.mxu0 %v16495_v63  ;;  %v16465_v47 = vcombine.high %v11272_v43, %v11276_v9  ;;  %v16534_v63 = vcombine.low %v11343_v45, %v11347_v52  ;;  %v11320_v45 = vld [vmem:[%s21453_s3 + $0x548] sm:$0xff] }
 0x601   : > { %13972 = vmatpush1.bf16.msra.mxu1 %v16416_v38  ;;  %13837 = vmatpush1.bf16.msra.mxu0 %v16494_v58  ;;  %v20137_v38 = vld [vmem:[%s21453_s3 + $0x800] sm:$0xff] }
 0x602   : > { %13973 = vmatprep.subr.bf16.mxu1 %v16425_v61  ;;  %13838 = vmatprep.subr.bf16.mxu0 %v16503_v40  ;;  %v16598_v61 = vcombine.low %v20137_v38, %v20142_v56  ;;  %v11359_v58 = vld [vmem:[%s21453_s3 + $0x680] sm:$0xff]  ;;  %v16542_v40 = vcombine.low %v11351_v42, %v11355_v60  ;;  %v11328_v42 = vld [vmem:[%s21453_s3 + $0x588] sm:$0xff] }
 0x605   : > { %13974 = vmatpush1.bf16.msra.mxu1 %v16424_v4  ;;  %13839 = vmatpush1.bf16.msra.mxu0 %v16502_v24  ;;  %v11292_v4 = vld [vmem:[%s21453_s3 + $0x468] sm:$0xff]  ;;  %v11367_v24 = vld [vmem:[%s21453_s3 + $0x6c0] sm:$0xff] }
 0x606   : > { %13975 = vmatprep.subr.bf16.mxu1 %v16433_v18  ;;  %13840 = vmatprep.subr.bf16.mxu0 %v16511_v12  ;;  %v11363_v18 = vld [vmem:[%s21453_s3 + $0x6a0] sm:$0xff]  ;;  %v16481_v59 = vcombine.high %v11288_v51, %v11292_v4  ;;  %v16480_v41 = vcombine.low %v11288_v51, %v11292_v4 }
 0x607   : > { %v16551_v8 = vcombine.high %v11359_v58, %v11363_v18  ;;  %v16550_v12 = vcombine.low %v11359_v58, %v11363_v18  ;;  %v11336_v18 = vld [vmem:[%s21453_s3 + $0x5c8] sm:$0xff] }
 0x609   : > { %13976 = vmatpush1.bf16.msra.mxu1 %v16432_v11  ;;  %13841 = vmatpush1.bf16.msra.mxu0 %v16510_v15  ;;  %v11300_v11 = vld [vmem:[%s21453_s3 + $0x4a8] sm:$0xff]  ;;  %v11375_v15 = vld [vmem:[%s21453_s3 + $0x700] sm:$0xff] }
 0x60a   : > { %13977 = vmatprep.subr.bf16.mxu1 %v16441_v16  ;;  %13842 = vmatprep.subr.bf16.mxu0 %v16519_v25  ;;  %v11371_v16 = vld [vmem:[%s21453_s3 + $0x6e0] sm:$0xff]  ;;  %v16489_v17 = vcombine.high %v11296_v5, %v11300_v11  ;;  %v16488_v22 = vcombine.low %v11296_v5, %v11300_v11  ;;  %v11344_v11 = vld [vmem:[%s21453_s3 + $0x608] sm:$0xff] }
 0x60b   : > { %v16559_v20 = vcombine.high %v11367_v24, %v11371_v16  ;;  %v16558_v25 = vcombine.low %v11367_v24, %v11371_v16  ;;  %v11348_v24 = vld [vmem:[%s21453_s3 + $0x628] sm:$0xff] }
 0x60d   : > { %13978 = vmatpush1.bf16.msra.mxu1 %v16440_v13  ;;  %13843 = vmatpush1.bf16.msra.mxu0 %v16518_v35  ;;  %v11308_v13 = vld [vmem:[%s21453_s3 + $0x4e8] sm:$0xff]  ;;  %v11383_v35 = vld [vmem:[%s21453_s3 + $0x740] sm:$0xff] }
 0x60e   : > { %13979 = vmatprep.subr.bf16.mxu1 %v16449_v10  ;;  %13844 = vmatprep.subr.bf16.mxu0 %v16527_v50  ;;  %v11379_v10 = vld [vmem:[%s21453_s3 + $0x720] sm:$0xff]  ;;  %v16497_v49 = vcombine.high %v11304_v3, %v11308_v13  ;;  %v16496_v43 = vcombine.low %v11304_v3, %v11308_v13  ;;  %v16536_v3 = vcombine.low %v11344_v11, %v11348_v24  ;;  %v11360_v13 = vld [vmem:[%s21453_s3 + $0x688] sm:$0xff] }
 0x60f   : > { %v16567_v34 = vcombine.high %v11375_v15, %v11379_v10  ;;  %v16566_v50 = vcombine.low %v11375_v15, %v11379_v10  ;;  %v11364_v15 = vld [vmem:[%s21453_s3 + $0x6a8] sm:$0xff] }
 0x611   : > { %13980 = vmatpush1.bf16.msra.mxu1 %v16448_v32  ;;  %13845 = vmatpush1.bf16.msra.mxu0 %v16526_v46  ;;  %v11316_v32 = vld [vmem:[%s21453_s3 + $0x528] sm:$0xff]  ;;  %v11391_v46 = vld [vmem:[%s21453_s3 + $0x780] sm:$0xff] }
 0x612   : > { %13981 = vmatprep.subr.bf16.mxu1 %v16457_v57  ;;  %13846 = vmatprep.subr.bf16.mxu0 %v16535_v48  ;;  %v11387_v57 = vld [vmem:[%s21453_s3 + $0x760] sm:$0xff]  ;;  %v16505_v9 = vcombine.high %v11312_v28, %v11316_v32  ;;  %v16504_v36 = vcombine.low %v11312_v28, %v11316_v32  ;;  %v16552_v28 = vcombine.low %v11360_v13, %v11364_v15  ;;  %v11376_v32 = vld [vmem:[%s21453_s3 + $0x708] sm:$0xff] }
 0x613   : > { %v16575_v52 = vcombine.high %v11383_v35, %v11387_v57  ;;  %v16574_v54 = vcombine.low %v11383_v35, %v11387_v57  ;;  %v11380_v35 = vld [vmem:[%s21453_s3 + $0x728] sm:$0xff] }
 0x615   : > { %13982 = vmatpush1.bf16.msra.mxu1 %v16456_v27  ;;  %13847 = vmatpush1.bf16.msra.mxu0 %v16534_v63  ;;  %v11324_v27 = vld [vmem:[%s21453_s3 + $0x568] sm:$0xff]  ;;  %v11399_v63 = vld [vmem:[%s21453_s3 + $0x7c0] sm:$0xff] }
 0x616   : > { %13983 = vmatprep.subr.bf16.mxu1 %v16465_v47  ;;  %13848 = vmatprep.subr.bf16.mxu0 %v16543_v29  ;;  %v11395_v47 = vld [vmem:[%s21453_s3 + $0x7a0] sm:$0xff]  ;;  %v16513_v48 = vcombine.high %v11320_v45, %v11324_v27  ;;  %v16512_v51 = vcombine.low %v11320_v45, %v11324_v27  ;;  %v16568_v45 = vcombine.low %v11376_v32, %v11380_v35  ;;  %v11392_v27 = vld [vmem:[%s21453_s3 + $0x788] sm:$0xff] }
 0x617   : > { %v16583_v60 = vcombine.high %v11391_v46, %v11395_v47  ;;  %v16582_v29 = vcombine.low %v11391_v46, %v11395_v47  ;;  %v11396_v46 = vld [vmem:[%s21453_s3 + $0x7a8] sm:$0xff] }
 0x619   : > { %13984 = vmatpush1.bf16.msra.mxu1 %v16464_v62  ;;  %13849 = vmatpush1.bf16.msra.mxu0 %v16542_v40  ;;  %v11332_v62 = vld [vmem:[%s21453_s3 + $0x5a8] sm:$0xff] }
 0x61a   : > { %13994 = vmatprep.subr.bf16.mxu1 %v16473_v1  ;;  %13850 = vmatprep.subr.bf16.mxu0 %v16551_v8  ;;  %v11403_v1 = vld [vmem:[%s21453_s3 + $0x7e0] sm:$0xff]  ;;  %v16521_v4 = vcombine.high %v11328_v42, %v11332_v62  ;;  %v16520_v40 = vcombine.low %v11328_v42, %v11332_v62  ;;  %v16599_v8 = vcombine.high %v20137_v38, %v20142_v56  ;;  %v11408_v62 = vld [vmem:[%s21453_s3 + $0x808] sm:$0xff] }
 0x61b   : > { %v16591_v58 = vcombine.high %v11399_v63, %v11403_v1  ;;  %v16584_v42 = vcombine.low %v11392_v27, %v11396_v46  ;;  %v11432_v38 = vld [vmem:[%s21453_s3 + $0x8c8] sm:$0xff] }
 0x61c   : > { %13986 = vmatmul.mubr.bf16.vlgmr.msra.gmra.mrb[36].mxu1 %v20035_v37  ;;  %v11436_v56 = vld [vmem:[%s21453_s3 + $0x8e8] sm:$0xff] }
 0x61d   : > { %13995 = vmatpush1.bf16.msra.mxu1 %v16472_v44  ;;  %13851 = vmatpush1.bf16.msra.mxu0 %v16550_v12  ;;  %v11340_v44 = vld [vmem:[%s21453_s3 + $0x5e8] sm:$0xff] }
 0x61e   : > { %13996 = vmatprep.subr.bf16.mxu1 %v16481_v59  ;;  %13852 = vmatprep.subr.bf16.mxu0 %v16559_v20  ;;  %v16590_v59 = vcombine.low %v11399_v63, %v11403_v1  ;;  %v16529_v5 = vcombine.high %v11336_v18, %v11340_v44  ;;  %v16528_v16 = vcombine.low %v11336_v18, %v11340_v44  ;;  %v11352_v12 = vld [vmem:[%s21453_s3 + $0x648] sm:$0xff] }
 0x61f   : > { %v11412_v63 = vld [vmem:[%s21453_s3 + $0x828] sm:$0xff] }
 0x621   : > { %13997 = vmatpush1.bf16.msra.mxu1 %v16480_v41  ;;  %13853 = vmatpush1.bf16.msra.mxu0 %v16558_v25  ;;  %v16537_v41 = vcombine.high %v11344_v11, %v11348_v24  ;;  %v11368_v25 = vld [vmem:[%s21453_s3 + $0x6c8] sm:$0xff] }
 0x622   : > { %13998 = vmatprep.subr.bf16.mxu1 %v16489_v17  ;;  %13854 = vmatprep.subr.bf16.mxu0 %v16567_v34  ;;  %v11356_v17 = vld [vmem:[%s21453_s3 + $0x668] sm:$0xff] }
 0x623   : > { %v16545_v20 = vcombine.high %v11352_v12, %v11356_v17  ;;  %v16544_v10 = vcombine.low %v11352_v12, %v11356_v17  ;;  %v11419_v12 = vld [vmem:[%s21453_s3 + $0x860] sm:$0xff]  ;;  %v11416_v17 = vld [vmem:[%s21453_s3 + $0x848] sm:$0xff] }
 0x625   : > { %13999 = vmatpush1.bf16.msra.mxu1 %v16488_v22  ;;  %13855 = vmatpush1.bf16.msra.mxu0 %v16566_v50  ;;  %v16553_v22 = vcombine.high %v11360_v13, %v11364_v15  ;;  %v11384_v50 = vld [vmem:[%s21453_s3 + $0x748] sm:$0xff]  ;;  %v16600_v15 = vcombine.low %v11408_v62, %v11412_v63 }
 0x626   : > { %14000 = vmatprep.subr.bf16.mxu1 %v16497_v49  ;;  %13856 = vmatprep.subr.bf16.mxu0 %v16575_v52  ;;  %v11372_v49 = vld [vmem:[%s21453_s3 + $0x6e8] sm:$0xff] }
 0x627   : > { %v16561_v34 = vcombine.high %v11368_v25, %v11372_v49  ;;  %v16560_v57 = vcombine.low %v11368_v25, %v11372_v49  ;;  %v11423_v25 = vld [vmem:[%s21453_s3 + $0x880] sm:$0xff]  ;;  %v11424_v49 = vld [vmem:[%s21453_s3 + $0x888] sm:$0xff] }
 0x629   : > { %14001 = vmatpush1.bf16.msra.mxu1 %v16496_v43  ;;  %13857 = vmatpush1.bf16.msra.mxu0 %v16574_v54  ;;  %v16569_v43 = vcombine.high %v11376_v32, %v11380_v35  ;;  %v11400_v54 = vld [vmem:[%s21453_s3 + $0x7c8] sm:$0xff] }
 0x62a   : > { %14002 = vmatprep.subr.bf16.mxu1 %v16505_v9  ;;  %13858 = vmatprep.subr.bf16.mxu0 %v16583_v60  ;;  %v11388_v9 = vld [vmem:[%s21453_s3 + $0x768] sm:$0xff] }
 0x62b   : > { %v16577_v52 = vcombine.high %v11384_v50, %v11388_v9  ;;  %v16576_v47 = vcombine.low %v11384_v50, %v11388_v9 }
 0x62d   : > { %14003 = vmatpush1.bf16.msra.mxu1 %v16504_v36  ;;  %13859 = vmatpush1.bf16.msra.mxu0 %v16582_v29  ;;  %v16585_v36 = vcombine.high %v11392_v27, %v11396_v46  ;;  %v20284_v29 = vld [vmem:[%s21452_s2 + $0x18] sm:$0xf]  ;;  %v11443_v27 = vld [vmem:[%s21453_s3 + $0x920] sm:$0xff]  ;;  %v11440_v46 = vld [vmem:[%s21453_s3 + $0x908] sm:$0xff] }
 0x62e   : > { %14004 = vmatprep.subr.bf16.mxu1 %v16513_v48  ;;  %13860 = vmatprep.subr.bf16.mxu0 %v16591_v58  ;;  %v11404_v48 = vld [vmem:[%s21453_s3 + $0x7e8] sm:$0xff]  ;;  %v1898_v58 = vrot.slane %v20284_v29, %v19615_v21 }
 0x62f   : > { %v16593_v60 = vcombine.high %v11400_v54, %v11404_v48  ;;  %v16592_v1 = vcombine.low %v11400_v54, %v11404_v48  ;;  %v16624_v54 = vcombine.low %v11432_v38, %v11436_v56 }
 0x631   : > { %14005 = vmatpush1.bf16.msra.mxu1 %v16512_v51  ;;  %13861 = vmatpush1.bf16.msra.mxu0 %v16590_v59  ;;  %v16601_v51 = vcombine.high %v11408_v62, %v11412_v63  ;;  %v11451_v62 = vld [vmem:[%s21453_s3 + $0x960] sm:$0xff]  ;;  %v11448_v63 = vld [vmem:[%s21453_s3 + $0x948] sm:$0xff] }
 0x632   : > { %14006 = vmatprep.subr.bf16.mxu1 %v16521_v4  ;;  %13871 = vmatprep.subr.bf16.mxu0 %v16599_v8  ;;  %v1894_v4 = vrot.slane %v20284_v29, %v19609_v19 }
 0x635   : > { %14007 = vmatpush1.bf16.msra.mxu1 %v16520_v40 }
 0x636   : > { %14008 = vmatprep.subr.bf16.mxu1 %v16529_v5 }
 0x639   : > { %14009 = vmatpush1.bf16.msra.mxu1 %v16528_v16  ;;  %v11415_v16 = vld [vmem:[%s21453_s3 + $0x840] sm:$0xff] }
 0x63a   : > { %14010 = vmatprep.subr.bf16.mxu1 %v16537_v41 }
 0x63d   : > { %14011 = vmatpush1.bf16.msra.mxu1 %v16536_v3  ;;  %v11420_v3 = vld [vmem:[%s21453_s3 + $0x868] sm:$0xff] }
 0x63e   : > { %14012 = vmatprep.subr.bf16.mxu1 %v16545_v20 }
 0x641   : > { %14013 = vmatpush1.bf16.msra.mxu1 %v16544_v10  ;;  %v16607_v10 = vcombine.high %v11415_v16, %v11419_v12 }
 0x642   : > { %14014 = vmatprep.subr.bf16.mxu1 %v16553_v22  ;;  %v16609_v22 = vcombine.high %v11416_v17, %v11420_v3 }
 0x645   : > { %14015 = vmatpush1.bf16.msra.mxu1 %v16552_v28  ;;  %v16606_v28 = vcombine.low %v11415_v16, %v11419_v12  ;;  %v11467_v12 = vld [vmem:[%s21453_s3 + $0x9e0] sm:$0xff] }
 0x646   : > { %14016 = vmatprep.subr.bf16.mxu1 %v16561_v34  ;;  %v16608_v34 = vcombine.low %v11416_v17, %v11420_v3  ;;  %v11464_v17 = vld [vmem:[%s21453_s3 + $0x9c8] sm:$0xff] }
 0x647   : > { %v11468_v3 = vld [vmem:[%s21453_s3 + $0x9e8] sm:$0xff] }
 0x649   : > { %14017 = vmatpush1.bf16.msra.mxu1 %v16560_v57  ;;  %v11431_v57 = vld [vmem:[%s21453_s3 + $0x8c0] sm:$0xff] }
 0x64a   : > { %14018 = vmatprep.subr.bf16.mxu1 %v16569_v43  ;;  %v11435_v43 = vld [vmem:[%s21453_s3 + $0x8e0] sm:$0xff] }
 0x64b   : > { %v16623_v9 = vcombine.high %v11431_v57, %v11435_v43 }
 0x64d   : > { %14019 = vmatpush1.bf16.msra.mxu1 %v16568_v45  ;;  %v16625_v45 = vcombine.high %v11432_v38, %v11436_v56  ;;  %v11479_v56 = vld [vmem:[%s21453_s3 + $0xa40] sm:$0xff] }
 0x64e   : > { %14020 = vmatprep.subr.bf16.mxu1 %v16577_v52  ;;  %v11439_v52 = vld [vmem:[%s21453_s3 + $0x900] sm:$0xff] }
 0x64f   : > { %v16631_v48 = vcombine.high %v11439_v52, %v11443_v27 }
 0x651   : > { %14021 = vmatpush1.bf16.msra.mxu1 %v16576_v47  ;;  %v11444_v47 = vld [vmem:[%s21453_s3 + $0x928] sm:$0xff] }
 0x652   : > { %14022 = vmatprep.subr.bf16.mxu1 %v16585_v36  ;;  %v16622_v36 = vcombine.low %v11431_v57, %v11435_v43  ;;  %v16656_v57 = vcombine.low %v11464_v17, %v11468_v3 }
 0x655   : > { %14023 = vmatpush1.bf16.msra.mxu1 %v16584_v42  ;;  %v16633_v42 = vcombine.high %v11440_v46, %v11444_v47 }
 0x656   : > { %14024 = vmatprep.subr.bf16.mxu1 %v16593_v60  ;;  %v11447_v60 = vld [vmem:[%s21453_s3 + $0x940] sm:$0xff] }
 0x659   : > { %14025 = vmatpush1.bf16.msra.mxu1 %v16592_v1  ;;  %v11452_v1 = vld [vmem:[%s21453_s3 + $0x968] sm:$0xff] }
 0x65a   : > { %14035 = vmatprep.subr.bf16.mxu1 %v16601_v51  ;;  %v16630_v51 = vcombine.low %v11439_v52, %v11443_v27 }
 0x686   : > { %v10924_v18 = vpop.f32.mrb[24].mxu0 }
 0x687   : > { %v16925_v44 = vadd.f32 %v10924_v18, %v1894_v4  ;;  %v10926_v40 = vpop.f32.mrb[25].mxu0  ;;  %v16632_v4 = vcombine.low %v11440_v46, %v11444_v47  ;;  %v16641_v18 = vcombine.high %v11448_v63, %v11452_v1 }
 0x688   : > { %v16926_v59 = vadd.f32 %v10926_v40, %v1898_v58  ;;  %v10928_v5 = vpop.f32.mrb[26].mxu0  ;;  %v16639_v58 = vcombine.high %v11447_v60, %v11451_v62  ;;  %v11459_v40 = vld [vmem:[%s21453_s3 + $0x9a0] sm:$0xff] }
 0x689   : > { %v11119_v8 = vmax.f32 %v16925_v44, 0.0  ;;  %v10929_v11 = vpop.f32.mrb[27].mxu0  ;;  %v11455_v44 = vld [vmem:[%s21453_s3 + $0x980] sm:$0xff]  ;;  %v11460_v5 = vld [vmem:[%s21453_s3 + $0x9a8] sm:$0xff] }
 0x68a   : > { %v11120_v24 = vmax.f32 %v16926_v59, 0.0  ;;  %v11456_v59 = vld [vmem:[%s21453_s3 + $0x988] sm:$0xff]  ;;  %v16640_v11 = vcombine.low %v11448_v63, %v11452_v1  ;;  %v11491_v1 = vld [vmem:[%s21453_s3 + $0xaa0] sm:$0xff] }
 0x68b   : > { %v11140_v41 = vmax.f32 %v19815_v6, %v11119_v8  ;;  %v20310_v6 = vpack.c.bf16 %v19991_v2, %v19991_v2  ;;  %v11428_v2 = vld [vmem:[%s21453_s3 + $0x8a8] sm:$0xff]  ;;  %v16638_v8 = vcombine.low %v11447_v60, %v11451_v62  ;;  %v16649_v16 = vcombine.high %v11456_v59, %v11460_v5  ;;  %v11487_v62 = vld [vmem:[%s21453_s3 + $0xa80] sm:$0xff] }
 0x68c   : > { %v20304_v20 = vmax.f32 %v19827_v55, %v11120_v24  ;;  %v11427_v55 = vld [vmem:[%s21453_s3 + $0x8a0] sm:$0xff]  ;;  %v16617_v35 = vcombine.high %v11424_v49, %v11428_v2  ;;  %v16616_v50 = vcombine.low %v11424_v49, %v11428_v2  ;;  %v16647_v24 = vcombine.high %v11455_v44, %v11459_v40  ;;  %v11472_v2 = vld [vmem:[%s21453_s3 + $0xa08] sm:$0xff] }
 0x68d   : > { %v20306_v13 = vpack.c.bf16 %v11140_v41, %v11140_v41  ;;  %v16615_v32 = vcombine.high %v11423_v25, %v11427_v55  ;;  %v11463_v41 = vld [vmem:[%s21453_s3 + $0x9c0] sm:$0xff] }
 0x68e   : > { %v11475_v49 = vld [vmem:[%s21453_s3 + $0xa20] sm:$0xff] }
 0x68f   : > { %13862 = vmatprep.mubr.bf16.mxu0 %v20306_v13  ;;  %14026 = vmatprep.mubr.bf16.mxu1 %v20306_v13 }
 0x690   : > { %13863 = vmatmul.mubr.bf16.vlgmr.msra.gmra.mrb[28].mxu0 %v20310_v6  ;;  %14027 = vmatmul.mubr.bf16.vlgmr.msra.gmra.mrb[36].mxu1 %v20310_v6 }
 0x691   : > { %13872 = vmatpush1.bf16.msra.mxu0 %v16598_v61  ;;  %14036 = vmatpush1.bf16.msra.mxu1 %v16600_v15  ;;  %v16614_v61 = vcombine.low %v11423_v25, %v11427_v55  ;;  %v16646_v15 = vcombine.low %v11455_v44, %v11459_v40  ;;  %v16657_v25 = vcombine.high %v11464_v17, %v11468_v3  ;;  %v11471_v55 = vld [vmem:[%s21453_s3 + $0xa00] sm:$0xff] }
 0x692   : > { %13873 = vmatprep.subr.bf16.mxu0 %v16607_v10  ;;  %14037 = vmatprep.subr.bf16.mxu1 %v16609_v22  ;;  %v16648_v10 = vcombine.low %v11456_v59, %v11460_v5  ;;  %v16655_v22 = vcombine.high %v11463_v41, %v11467_v12  ;;  %v16663_v43 = vcombine.high %v11471_v55, %v11475_v49  ;;  %v11503_v3 = vld [vmem:[%s21453_s3 + $0xb00] sm:$0xff] }
 0x693   : > { %v16662_v47 = vcombine.low %v11471_v55, %v11475_v49  ;;  %v16679_v5 = vcombine.high %v11487_v62, %v11491_v1 }
 0x695   : > { %13874 = vmatpush1.bf16.msra.mxu0 %v16606_v28  ;;  %14038 = vmatpush1.bf16.msra.mxu1 %v16608_v34  ;;  %v11476_v28 = vld [vmem:[%s21453_s3 + $0xa28] sm:$0xff]  ;;  %v1902_v34 = vrot.slane %v20284_v29, %v19698_v23 }
 0x696   : > { %13875 = vmatprep.subr.bf16.mxu0 %v16615_v32  ;;  %14039 = vmatprep.subr.bf16.mxu1 %v16617_v35  ;;  %v1906_v32 = vrot.slane %v20284_v29, %v19728_v39  ;;  %v16654_v35 = vcombine.low %v11463_v41, %v11467_v12  ;;  %v16665_v38 = vcombine.high %v11472_v2, %v11476_v28  ;;  %v11484_v29 = vld [vmem:[%s21453_s3 + $0xa68] sm:$0xff] }
 0x699   : > { %13876 = vmatpush1.bf16.msra.mxu0 %v16614_v61  ;;  %14040 = vmatpush1.bf16.msra.mxu1 %v16616_v50  ;;  %v11483_v50 = vld [vmem:[%s21453_s3 + $0xa60] sm:$0xff] }
 0x69a   : > { %13877 = vmatprep.subr.bf16.mxu0 %v16623_v9  ;;  %14041 = vmatprep.subr.bf16.mxu1 %v16625_v45  ;;  %v11480_v9 = vld [vmem:[%s21453_s3 + $0xa48] sm:$0xff]  ;;  %v16670_v44 = vcombine.low %v11479_v56, %v11483_v50 }
 0x69b   : > { %v16673_v60 = vcombine.high %v11480_v9, %v11484_v29  ;;  %v16672_v40 = vcombine.low %v11480_v9, %v11484_v29  ;;  %v11520_v9 = vld [vmem:[%s21453_s3 + $0xb88] sm:$0xff] }
 0x69c   : > { %v11524_v29 = vld [vmem:[%s21453_s3 + $0xba8] sm:$0xff] }
 0x69d   : > { %13878 = vmatpush1.bf16.msra.mxu0 %v16622_v36  ;;  %14042 = vmatpush1.bf16.msra.mxu1 %v16624_v54  ;;  %v16664_v36 = vcombine.low %v11472_v2, %v11476_v28  ;;  %v11511_v28 = vld [vmem:[%s21453_s3 + $0xb40] sm:$0xff] }
 0x69e   : > { %13879 = vmatprep.subr.bf16.mxu0 %v16631_v48  ;;  %14043 = vmatprep.subr.bf16.mxu1 %v16633_v42  ;;  %v16671_v42 = vcombine.high %v11479_v56, %v11483_v50  ;;  %v11523_v50 = vld [vmem:[%s21453_s3 + $0xba0] sm:$0xff] }
 0x6a1   : > { %13880 = vmatpush1.bf16.msra.mxu0 %v16630_v51  ;;  %14044 = vmatpush1.bf16.msra.mxu1 %v16632_v4  ;;  %v11488_v51 = vld [vmem:[%s21453_s3 + $0xa88] sm:$0xff] }
 0x6a2   : > { %13881 = vmatprep.subr.bf16.mxu0 %v16639_v58  ;;  %14045 = vmatprep.subr.bf16.mxu1 %v16641_v18  ;;  %v11492_v4 = vld [vmem:[%s21453_s3 + $0xaa8] sm:$0xff] }
 0x6a3   : > { %v16680_v41 = vcombine.low %v11488_v51, %v11492_v4 }
 0x6a5   : > { %13882 = vmatpush1.bf16.msra.mxu0 %v16638_v8  ;;  %14046 = vmatpush1.bf16.msra.mxu1 %v16640_v11  ;;  %v16681_v8 = vcombine.high %v11488_v51, %v11492_v4  ;;  %v11495_v11 = vld [vmem:[%s21453_s3 + $0xac0] sm:$0xff]  ;;  %v11536_v4 = vld [vmem:[%s21453_s3 + $0xc08] sm:$0xff] }
 0x6a6   : > { %13883 = vmatprep.subr.bf16.mxu0 %v16647_v24  ;;  %14047 = vmatprep.subr.bf16.mxu1 %v16649_v16  ;;  %v11500_v24 = vld [vmem:[%s21453_s3 + $0xae8] sm:$0xff]  ;;  %v16678_v16 = vcombine.low %v11487_v62, %v11491_v1  ;;  %v11535_v1 = vld [vmem:[%s21453_s3 + $0xc00] sm:$0xff] }
 0x6a7   : > { %v11539_v51 = vld [vmem:[%s21453_s3 + $0xc20] sm:$0xff] }
 0x6a9   : > { %13884 = vmatpush1.bf16.msra.mxu0 %v16646_v15  ;;  %14048 = vmatpush1.bf16.msra.mxu1 %v16648_v10  ;;  %v11507_v15 = vld [vmem:[%s21453_s3 + $0xb20] sm:$0xff]  ;;  %v11504_v10 = vld [vmem:[%s21453_s3 + $0xb08] sm:$0xff] }
 0x6aa   : > { %13885 = vmatprep.subr.bf16.mxu0 %v16655_v22  ;;  %14049 = vmatprep.subr.bf16.mxu1 %v16657_v25  ;;  %v11508_v22 = vld [vmem:[%s21453_s3 + $0xb28] sm:$0xff]  ;;  %v16695_v49 = vcombine.high %v11503_v3, %v11507_v15 }
 0x6ab   : > { %v16697_v2 = vcombine.high %v11504_v10, %v11508_v22 }
 0x6ad   : > { %13886 = vmatpush1.bf16.msra.mxu0 %v16654_v35  ;;  %14050 = vmatpush1.bf16.msra.mxu1 %v16656_v57  ;;  %v11516_v35 = vld [vmem:[%s21453_s3 + $0xb68] sm:$0xff]  ;;  %v16694_v57 = vcombine.low %v11503_v3, %v11507_v15  ;;  %v11551_v15 = vld [vmem:[%s21453_s3 + $0xc80] sm:$0xff] }
 0x6ae   : > { %13887 = vmatprep.subr.bf16.mxu0 %v16663_v43  ;;  %14051 = vmatprep.subr.bf16.mxu1 %v16665_v38  ;;  %v16696_v43 = vcombine.low %v11504_v10, %v11508_v22  ;;  %v11555_v10 = vld [vmem:[%s21453_s3 + $0xca0] sm:$0xff]  ;;  %v11552_v22 = vld [vmem:[%s21453_s3 + $0xc88] sm:$0xff] }
 0x6af   : > { %v11088_v61 = vpop.f32.mrb[32].mxu1 }
 0x6b0   : > { %v16927_v45 = vadd.f32 %v11088_v61, %v1902_v34  ;;  %v11090_v52 = vpop.f32.mrb[33].mxu1  ;;  %v11515_v34 = vld [vmem:[%s21453_s3 + $0xb60] sm:$0xff] }
 0x6b1   : > { %v16928_v27 = vadd.f32 %v11090_v52, %v1906_v32  ;;  %v11092_v46 = vpop.f32.mrb[34].mxu1  ;;  %13888 = vmatpush1.bf16.msra.mxu0 %v16662_v47  ;;  %14052 = vmatpush1.bf16.msra.mxu1 %v16664_v36  ;;  %v11512_v32 = vld [vmem:[%s21453_s3 + $0xb48] sm:$0xff]  ;;  %v16703_v38 = vcombine.high %v11511_v28, %v11515_v34  ;;  %v11519_v61 = vld [vmem:[%s21453_s3 + $0xb80] sm:$0xff] }
 0x6b2   : > { %v11121_v54 = vmax.f32 %v16927_v45, 0.0  ;;  %v11093_v48 = vpop.f32.mrb[35].mxu1  ;;  %13889 = vmatprep.subr.bf16.mxu0 %v16671_v42  ;;  %14053 = vmatprep.subr.bf16.mxu1 %v16673_v60  ;;  %v16705_v56 = vcombine.high %v11512_v32, %v11516_v35  ;;  %v16702_v45 = vcombine.low %v11511_v28, %v11515_v34  ;;  %v16704_v52 = vcombine.low %v11512_v32, %v11516_v35  ;;  %v11527_v47 = vld [vmem:[%s21453_s3 + $0xbc0] sm:$0xff]  ;;  %v11560_v32 = vld [vmem:[%s21453_s3 + $0xcc8] sm:$0xff] }
 0x6b3   : > { %v11122_v63 = vmax.f32 %v16928_v27, 0.0  ;;  %v16711_v27 = vcombine.high %v11519_v61, %v11523_v50  ;;  %v16713_v46 = vcombine.high %v11520_v9, %v11524_v29  ;;  %v11531_v36 = vld [vmem:[%s21453_s3 + $0xbe0] sm:$0xff]  ;;  %v11532_v48 = vld [vmem:[%s21453_s3 + $0xbe8] sm:$0xff]  ;;  %v16710_v42 = vcombine.low %v11519_v61, %v11523_v50 }
 0x6b4   : > { %v11142_v58 = vmax.f32 %v19830_v14, %v11121_v54  ;;  %v11499_v14 = vld [vmem:[%s21453_s3 + $0xae0] sm:$0xff]  ;;  %v11528_v54 = vld [vmem:[%s21453_s3 + $0xbc8] sm:$0xff]  ;;  %v16712_v60 = vcombine.low %v11520_v9, %v11524_v29  ;;  %v16719_v62 = vcombine.high %v11527_v47, %v11531_v36 }
 0x6b5   : > { %v20433_v18 = vmax.f32 %v19885_v26, %v11122_v63  ;;  %v11496_v26 = vld [vmem:[%s21453_s3 + $0xac8] sm:$0xff]  ;;  %13890 = vmatpush1.bf16.msra.mxu0 %v16670_v44  ;;  %14054 = vmatpush1.bf16.msra.mxu1 %v16672_v40  ;;  %v16687_v12 = vcombine.high %v11495_v11, %v11499_v14  ;;  %v16686_v25 = vcombine.low %v11495_v11, %v11499_v14  ;;  %v11543_v11 = vld [vmem:[%s21453_s3 + $0xc40] sm:$0xff] }
 0x6b6   : > { %v20435_v59 = vpack.c.bf16 %v11142_v58, %v11142_v58  ;;  %13891 = vmatprep.subr.bf16.mxu0 %v16679_v5  ;;  %14055 = vmatprep.subr.bf16.mxu1 %v16681_v8  ;;  %v16689_v17 = vcombine.high %v11496_v26, %v11500_v24  ;;  %v16688_v55 = vcombine.low %v11496_v26, %v11500_v24  ;;  %v11540_v58 = vld [vmem:[%s21453_s3 + $0xc28] sm:$0xff]  ;;  %v11547_v14 = vld [vmem:[%s21453_s3 + $0xc60] sm:$0xff] }
 0x6b7   : > { %v16721_v63 = vcombine.high %v11528_v54, %v11532_v48  ;;  %v16718_v44 = vcombine.low %v11527_v47, %v11531_v36  ;;  %v16720_v40 = vcombine.low %v11528_v54, %v11532_v48  ;;  %v16727_v5 = vcombine.high %v11535_v1, %v11539_v51  ;;  %v11544_v26 = vld [vmem:[%s21453_s3 + $0xc48] sm:$0xff]  ;;  %v11559_v28 = vld [vmem:[%s21453_s3 + $0xcc0] sm:$0xff] }
 0x6b8   : > { %13903 = vmatprep.mubr.bf16.mxu0 %v20435_v59  ;;  %14067 = vmatprep.mubr.bf16.mxu1 %v20435_v59  ;;  %v16729_v8 = vcombine.high %v11536_v4, %v11540_v58  ;;  %v11548_v24 = vld [vmem:[%s21453_s3 + $0xc68] sm:$0xff]  ;;  %v11563_v34 = vld [vmem:[%s21453_s3 + $0xce0] sm:$0xff] }
 0x6b9   : > { %13892 = vmatpush1.bf16.msra.mxu0 %v16678_v16  ;;  %14056 = vmatpush1.bf16.msra.mxu1 %v16680_v41  ;;  %v16726_v16 = vcombine.low %v11535_v1, %v11539_v51  ;;  %v16728_v41 = vcombine.low %v11536_v4, %v11540_v58  ;;  %v16737_v3 = vcombine.high %v11544_v26, %v11548_v24  ;;  %v11564_v35 = vld [vmem:[%s21453_s3 + $0xce8] sm:$0xff]  ;;  %v11567_v61 = vld [vmem:[%s21453_s3 + $0xd00] sm:$0xff]  ;;  %v11153_v1 = vld [vmem:[%s21453_s3 + $0x10] sm:$0xff] }
 0x6ba   : > { %13893 = vmatprep.subr.bf16.mxu0 %v16687_v12  ;;  %14057 = vmatprep.subr.bf16.mxu1 %v16689_v17  ;;  %v20525_v12 = vpack.c.bf16 %v20304_v20, %v20304_v20  ;;  %v16735_v17 = vcombine.high %v11543_v11, %v11547_v14  ;;  %v11556_v20 = vld [vmem:[%s21453_s3 + $0xca8] sm:$0xff]  ;;  %v11571_v50 = vld [vmem:[%s21453_s3 + $0xd20] sm:$0xff]  ;;  %v11157_v51 = vld [vmem:[%s21453_s3 + $0x30] sm:$0xff] }
 0x6bb   : > { %v11568_v9 = vld [vmem:[%s21453_s3 + $0xd08] sm:$0xff]  ;;  %v11575_v47 = vld [vmem:[%s21453_s3 + $0xd40] sm:$0xff]  ;;  %v11154_v4 = vld [vmem:[%s21453_s3 + $0x18] sm:$0xff] }
 0x6bc   : > { %v11572_v29 = vld [vmem:[%s21453_s3 + $0xd28] sm:$0xff]  ;;  %v11579_v36 = vld [vmem:[%s21453_s3 + $0xd60] sm:$0xff]  ;;  %v11158_v58 = vld [vmem:[%s21453_s3 + $0x38] sm:$0xff] }
 0x6bd   : > { %13894 = vmatpush1.bf16.msra.mxu0 %v16686_v25  ;;  %14058 = vmatpush1.bf16.msra.mxu1 %v16688_v55  ;;  %v16734_v25 = vcombine.low %v11543_v11, %v11547_v14  ;;  %v16736_v55 = vcombine.low %v11544_v26, %v11548_v24  ;;  %v11576_v54 = vld [vmem:[%s21453_s3 + $0xd48] sm:$0xff]  ;;  %v11161_v11 = vld [vmem:[%s21453_s3 + $0x50] sm:$0xff]  ;;  %v11162_v26 = vld [vmem:[%s21453_s3 + $0x58] sm:$0xff] }
 0x6be   : > { %13895 = vmatprep.subr.bf16.mxu0 %v16695_v49  ;;  %14059 = vmatprep.subr.bf16.mxu1 %v16697_v2  ;;  %v16743_v49 = vcombine.high %v11551_v15, %v11555_v10  ;;  %v16745_v2 = vcombine.high %v11552_v22, %v11556_v20  ;;  %v11580_v48 = vld [vmem:[%s21453_s3 + $0xd68] sm:$0xff]  ;;  %v11165_v14 = vld [vmem:[%s21453_s3 + $0x70] sm:$0xff]  ;;  %v11166_v24 = vld [vmem:[%s21453_s3 + $0x78] sm:$0xff] }
 0x6c1   : > { %13896 = vmatpush1.bf16.msra.mxu0 %v16694_v57  ;;  %14060 = vmatpush1.bf16.msra.mxu1 %v16696_v43  ;;  %v16742_v57 = vcombine.low %v11551_v15, %v11555_v10  ;;  %v16744_v43 = vcombine.low %v11552_v22, %v11556_v20  ;;  %v16357_v15 = vcombine.high %v11162_v26, %v11166_v24  ;;  %v11169_v10 = vld [vmem:[%s21453_s3 + $0x90] sm:$0xff]  ;;  %v11174_v20 = vld [vmem:[%s21453_s3 + $0xb8] sm:$0xff] }
 0x6c2   : > { %13897 = vmatprep.subr.bf16.mxu0 %v16703_v38  ;;  %14061 = vmatprep.subr.bf16.mxu1 %v16705_v56  ;;  %v16751_v38 = vcombine.high %v11559_v28, %v11563_v34  ;;  %v16753_v56 = vcombine.high %v11560_v32, %v11564_v35  ;;  %v11173_v22 = vld [vmem:[%s21453_s3 + $0xb0] sm:$0xff] }
 0x6c5   : > { %13898 = vmatpush1.bf16.msra.mxu0 %v16702_v45  ;;  %14062 = vmatpush1.bf16.msra.mxu1 %v16704_v52  ;;  %v16750_v45 = vcombine.low %v11559_v28, %v11563_v34  ;;  %v16752_v52 = vcombine.low %v11560_v32, %v11564_v35  ;;  %v11177_v28 = vld [vmem:[%s21453_s3 + $0xd0] sm:$0xff]  ;;  %v11178_v32 = vld [vmem:[%s21453_s3 + $0xd8] sm:$0xff]  ;;  %v16362_v35 = vcombine.low %v11169_v10, %v11173_v22 }
 0x6c6   : > { %13899 = vmatprep.subr.bf16.mxu0 %v16711_v27  ;;  %14063 = vmatprep.subr.bf16.mxu1 %v16713_v46  ;;  %v16759_v27 = vcombine.high %v11567_v61, %v11571_v50  ;;  %v16761_v46 = vcombine.high %v11568_v9, %v11572_v29  ;;  %v11181_v34 = vld [vmem:[%s21453_s3 + $0xf0] sm:$0xff] }
 0x6c9   : > { %13900 = vmatpush1.bf16.msra.mxu0 %v16710_v42  ;;  %14064 = vmatpush1.bf16.msra.mxu1 %v16712_v60  ;;  %v16758_v42 = vcombine.low %v11567_v61, %v11571_v50  ;;  %v16760_v60 = vcombine.low %v11568_v9, %v11572_v29  ;;  %v11189_v61 = vld [vmem:[%s21453_s3 + $0x130] sm:$0xff]  ;;  %v11186_v50 = vld [vmem:[%s21453_s3 + $0x118] sm:$0xff]  ;;  %v16370_v29 = vcombine.low %v11177_v28, %v11181_v34 }
 0x6ca   : > { %13901 = vmatprep.subr.bf16.mxu0 %v16719_v62  ;;  %14065 = vmatprep.subr.bf16.mxu1 %v16721_v63  ;;  %v16767_v62 = vcombine.high %v11575_v47, %v11579_v36  ;;  %v16769_v63 = vcombine.high %v11576_v54, %v11580_v48  ;;  %v11190_v9 = vld [vmem:[%s21453_s3 + $0x138] sm:$0xff] }
 0x6cd   : > { %13902 = vmatpush1.bf16.msra.mxu0 %v16718_v44  ;;  %14066 = vmatpush1.bf16.msra.mxu1 %v16720_v40  ;;  %v16766_v44 = vcombine.low %v11575_v47, %v11579_v36  ;;  %v16768_v40 = vcombine.low %v11576_v54, %v11580_v48  ;;  %v11197_v47 = vld [vmem:[%s21453_s3 + $0x170] sm:$0xff]  ;;  %v11194_v36 = vld [vmem:[%s21453_s3 + $0x158] sm:$0xff] }
 0x6ce   : > { %13912 = vmatprep.subr.bf16.mxu0 %v16727_v5  ;;  %14076 = vmatprep.subr.bf16.mxu1 %v16729_v8  ;;  %v16347_v5 = vcombine.high %v11153_v1, %v11157_v51  ;;  %v16349_v8 = vcombine.high %v11154_v4, %v11158_v58  ;;  %v11198_v54 = vld [vmem:[%s21453_s3 + $0x178] sm:$0xff] }
 0x6d0   : > { %13904 = vmatmul.mubr.bf16.vlgmr.msra.gmra.mrb[28].mxu0 %v20525_v12  ;;  %14068 = vmatmul.mubr.bf16.vlgmr.msra.gmra.mrb[36].mxu1 %v20525_v12 }
 0x6d1   : > { %13913 = vmatpush1.bf16.msra.mxu0 %v16726_v16  ;;  %14077 = vmatpush1.bf16.msra.mxu1 %v16728_v41  ;;  %v16346_v16 = vcombine.low %v11153_v1, %v11157_v51  ;;  %v20605_v41 = vpack.c.bf16 %v20433_v18, %v20433_v18  ;;  %v11170_v18 = vld [vmem:[%s21453_s3 + $0x98] sm:$0xff]  ;;  %v11205_v1 = vld [vmem:[%s21453_s3 + $0x1b0] sm:$0xff] }
 0x6d2   : > { %13914 = vmatprep.subr.bf16.mxu0 %v16735_v17  ;;  %14078 = vmatprep.subr.bf16.mxu1 %v16737_v3  ;;  %v16348_v17 = vcombine.low %v11154_v4, %v11158_v58  ;;  %v16355_v3 = vcombine.high %v11161_v11, %v11165_v14  ;;  %v11202_v51 = vld [vmem:[%s21453_s3 + $0x198] sm:$0xff] }
 0x6d3   : > { %13944 = vmatprep.mubr.bf16.mxu0 %v19394_v0  ;;  %14108 = vmatprep.mubr.bf16.mxu1 %v19394_v0  ;;  %v11206_v4 = vld [vmem:[%s21453_s3 + $0x1b8] sm:$0xff] }
 0x6d5   : > { %13915 = vmatpush1.bf16.msra.mxu0 %v16734_v25  ;;  %14079 = vmatpush1.bf16.msra.mxu1 %v16736_v55  ;;  %v16354_v25 = vcombine.low %v11161_v11, %v11165_v14  ;;  %v16356_v55 = vcombine.low %v11162_v26, %v11166_v24  ;;  %v11213_v11 = vld [vmem:[%s21453_s3 + $0x1f0] sm:$0xff]  ;;  %v11210_v14 = vld [vmem:[%s21453_s3 + $0x1d8] sm:$0xff] }
 0x6d6   : > { %13916 = vmatprep.subr.bf16.mxu0 %v16743_v49  ;;  %14080 = vmatprep.subr.bf16.mxu1 %v16745_v2  ;;  %v16363_v49 = vcombine.high %v11169_v10, %v11173_v22  ;;  %v16365_v2 = vcombine.high %v11170_v18, %v11174_v20  ;;  %v11214_v26 = vld [vmem:[%s21453_s3 + $0x1f8] sm:$0xff]  ;;  %v11221_v10 = vld [vmem:[%s21453_s3 + $0x230] sm:$0xff] }
 0x6d7   : > { %v11218_v22 = vld [vmem:[%s21453_s3 + $0x218] sm:$0xff] }
 0x6d9   : > { %13917 = vmatpush1.bf16.msra.mxu0 %v16742_v57  ;;  %14081 = vmatpush1.bf16.msra.mxu1 %v16744_v43  ;;  %v16364_v57 = vcombine.low %v11170_v18, %v11174_v20  ;;  %v16371_v43 = vcombine.high %v11177_v28, %v11181_v34  ;;  %v11222_v18 = vld [vmem:[%s21453_s3 + $0x238] sm:$0xff]  ;;  %v11229_v28 = vld [vmem:[%s21453_s3 + $0x270] sm:$0xff] }
 0x6da   : > { %13918 = vmatprep.subr.bf16.mxu0 %v16751_v38  ;;  %14082 = vmatprep.subr.bf16.mxu1 %v16753_v56  ;;  %v11185_v56 = vld [vmem:[%s21453_s3 + $0x110] sm:$0xff]  ;;  %v11226_v34 = vld [vmem:[%s21453_s3 + $0x258] sm:$0xff] }
 0x6db   : > { %v16378_v48 = vcombine.low %v11185_v56, %v11189_v61 }
 0x6dd   : > { %13919 = vmatpush1.bf16.msra.mxu0 %v16750_v45  ;;  %14083 = vmatpush1.bf16.msra.mxu1 %v16752_v52  ;;  %v16379_v52 = vcombine.high %v11185_v56, %v11189_v61  ;;  %v11237_v56 = vld [vmem:[%s21453_s3 + $0x2b0] sm:$0xff]  ;;  %v11234_v61 = vld [vmem:[%s21453_s3 + $0x298] sm:$0xff] }
 0x6de   : > { %13920 = vmatprep.subr.bf16.mxu0 %v16759_v27  ;;  %14084 = vmatprep.subr.bf16.mxu1 %v16761_v46  ;;  %v16381_v27 = vcombine.high %v11186_v50, %v11190_v9  ;;  %v11193_v46 = vld [vmem:[%s21453_s3 + $0x150] sm:$0xff] }
 0x6df   : > { %v16386_v58 = vcombine.low %v11193_v46, %v11197_v47 }
 0x6e1   : > { %13921 = vmatpush1.bf16.msra.mxu0 %v16758_v42  ;;  %14085 = vmatpush1.bf16.msra.mxu1 %v16760_v60  ;;  %v16380_v42 = vcombine.low %v11186_v50, %v11190_v9  ;;  %v16387_v60 = vcombine.high %v11193_v46, %v11197_v47  ;;  %v11238_v50 = vld [vmem:[%s21453_s3 + $0x2b8] sm:$0xff]  ;;  %v11245_v46 = vld [vmem:[%s21453_s3 + $0x2f0] sm:$0xff] }
 0x6e2   : > { %13922 = vmatprep.subr.bf16.mxu0 %v16767_v62  ;;  %14086 = vmatprep.subr.bf16.mxu1 %v16769_v63  ;;  %v16389_v62 = vcombine.high %v11194_v36, %v11198_v54  ;;  %v11201_v63 = vld [vmem:[%s21453_s3 + $0x190] sm:$0xff]  ;;  %v11242_v47 = vld [vmem:[%s21453_s3 + $0x2d8] sm:$0xff] }
 0x6e3   : > { %v16394_v24 = vcombine.low %v11201_v63, %v11205_v1 }
 0x6e5   : > { %13923 = vmatpush1.bf16.msra.mxu0 %v16766_v44  ;;  %14087 = vmatpush1.bf16.msra.mxu1 %v16768_v40  ;;  %v16388_v44 = vcombine.low %v11194_v36, %v11198_v54  ;;  %v16395_v40 = vcombine.high %v11201_v63, %v11205_v1  ;;  %v11246_v36 = vld [vmem:[%s21453_s3 + $0x2f8] sm:$0xff]  ;;  %v11253_v63 = vld [vmem:[%s21453_s3 + $0x330] sm:$0xff] }
 0x6e6   : > { %14117 = vmatprep.subr.bf16.mxu0 %v16347_v5  ;;  %14281 = vmatprep.subr.bf16.mxu1 %v16349_v8  ;;  %v16397_v5 = vcombine.high %v11202_v51, %v11206_v4  ;;  %v11209_v8 = vld [vmem:[%s21453_s3 + $0x1d0] sm:$0xff]  ;;  %v11250_v1 = vld [vmem:[%s21453_s3 + $0x318] sm:$0xff] }
 0x6e7   : > { %v16402_v20 = vcombine.low %v11209_v8, %v11213_v11 }
 0x6e8   : > { %16774 = vmatmul.mubr.msk.bf16.vlgmr.msra.gmra.mrb[28].mxu0 %vm13785_vm1, %v20605_v41  ;;  %16775 = vmatmul.mubr.msk.bf16.vlgmr.msra.gmra.mrb[36].mxu1 %vm13785_vm1, %v20605_v41 }
 0x6e9   : > { %14118 = vmatpush1.bf16.msra.mxu0 %v16346_v16  ;;  %14149 = vmatprep.mubr.bf16.mxu0 %v19993_v53  ;;  %v16396_v16 = vcombine.low %v11202_v51, %v11206_v4  ;;  %v11254_v51 = vld [vmem:[%s21453_s3 + $0x338] sm:$0xff] }
 0x6ea   : > { %14282 = vmatpush1.bf16.msra.mxu1 %v16348_v17  ;;  %14313 = vmatprep.mubr.bf16.mxu1 %v19993_v53  ;;  %v11182_v53 = vld [vmem:[%s21453_s3 + $0xf8] sm:$0xff]  ;;  %v16403_v17 = vcombine.high %v11209_v8, %v11213_v11  ;;  %v11261_v8 = vld [vmem:[%s21453_s3 + $0x370] sm:$0xff] }
 0x6eb   : > { %14119 = vmatprep.subr.bf16.mxu0 %v16355_v3  ;;  %14283 = vmatprep.subr.bf16.mxu1 %v16357_v15  ;;  %v16373_v38 = vcombine.high %v11178_v32, %v11182_v53  ;;  %v16372_v45 = vcombine.low %v11178_v32, %v11182_v53  ;;  %v16405_v3 = vcombine.high %v11210_v14, %v11214_v26  ;;  %v11217_v15 = vld [vmem:[%s21453_s3 + $0x210] sm:$0xff]  ;;  %v11230_v32 = vld [vmem:[%s21453_s3 + $0x278] sm:$0xff] }
 0x6ec   : > { %v16410_v53 = vcombine.low %v11217_v15, %v11221_v10  ;;  %v11258_v11 = vld [vmem:[%s21453_s3 + $0x358] sm:$0xff] }
 0x6ed   : > { %14120 = vmatpush1.bf16.msra.mxu0 %v16354_v25  ;;  %v16404_v25 = vcombine.low %v11210_v14, %v11214_v26  ;;  %v11262_v14 = vld [vmem:[%s21453_s3 + $0x378] sm:$0xff] }
 0x6ee   : > { %14284 = vmatpush1.bf16.msra.mxu1 %v16356_v55  ;;  %14121 = vmatprep.subr.bf16.mxu0 %v16363_v49  ;;  %v16411_v55 = vcombine.high %v11217_v15, %v11221_v10  ;;  %v16413_v49 = vcombine.high %v11218_v22, %v11222_v18  ;;  %v11269_v15 = vld [vmem:[%s21453_s3 + $0x3b0] sm:$0xff]  ;;  %v11266_v10 = vld [vmem:[%s21453_s3 + $0x398] sm:$0xff] }
 0x6ef   : > { %14285 = vmatprep.subr.bf16.mxu1 %v16365_v2  ;;  %v11225_v2 = vld [vmem:[%s21453_s3 + $0x250] sm:$0xff] }
 0x6f0   : > { %v16418_v9 = vcombine.low %v11225_v2, %v11229_v28 }
 0x6f1   : > { %14122 = vmatpush1.bf16.msra.mxu0 %v16362_v35  ;;  %v16412_v35 = vcombine.low %v11218_v22, %v11222_v18  ;;  %v11270_v22 = vld [vmem:[%s21453_s3 + $0x3b8] sm:$0xff] }
 0x6f2   : > { %14286 = vmatpush1.bf16.msra.mxu1 %v16364_v57  ;;  %14123 = vmatprep.subr.bf16.mxu0 %v16371_v43  ;;  %v16419_v57 = vcombine.high %v11225_v2, %v11229_v28  ;;  %v16421_v43 = vcombine.high %v11226_v34, %v11230_v32  ;;  %v11277_v2 = vld [vmem:[%s21453_s3 + $0x3f0] sm:$0xff]  ;;  %v11274_v28 = vld [vmem:[%s21453_s3 + $0x3d8] sm:$0xff] }
 0x6f3   : > { %14287 = vmatprep.subr.bf16.mxu1 %v16373_v38  ;;  %v11233_v38 = vld [vmem:[%s21453_s3 + $0x290] sm:$0xff] }
 0x6f4   : > { %v16426_v54 = vcombine.low %v11233_v38, %v11237_v56 }
 0x6f5   : > { %14124 = vmatpush1.bf16.msra.mxu0 %v16370_v29  ;;  %v16420_v29 = vcombine.low %v11226_v34, %v11230_v32  ;;  %v11278_v34 = vld [vmem:[%s21453_s3 + $0x3f8] sm:$0xff] }
 0x6f6   : > { %14288 = vmatpush1.bf16.msra.mxu1 %v16372_v45  ;;  %14125 = vmatprep.subr.bf16.mxu0 %v16379_v52  ;;  %v16427_v45 = vcombine.high %v11233_v38, %v11237_v56  ;;  %v16429_v52 = vcombine.high %v11234_v61, %v11238_v50  ;;  %v11285_v38 = vld [vmem:[%s21453_s3 + $0x430] sm:$0xff]  ;;  %v11282_v56 = vld [vmem:[%s21453_s3 + $0x418] sm:$0xff] }
 0x6f7   : > { %14289 = vmatprep.subr.bf16.mxu1 %v16381_v27  ;;  %v11241_v27 = vld [vmem:[%s21453_s3 + $0x2d0] sm:$0xff] }
 0x6f8   : > { %v16434_v4 = vcombine.low %v11241_v27, %v11245_v46 }
 0x6f9   : > { %14126 = vmatpush1.bf16.msra.mxu0 %v16378_v48  ;;  %v16428_v48 = vcombine.low %v11234_v61, %v11238_v50  ;;  %v11286_v61 = vld [vmem:[%s21453_s3 + $0x438] sm:$0xff] }
 0x6fa   : > { %14290 = vmatpush1.bf16.msra.mxu1 %v16380_v42  ;;  %14127 = vmatprep.subr.bf16.mxu0 %v16387_v60  ;;  %v16435_v42 = vcombine.high %v11241_v27, %v11245_v46  ;;  %v16437_v60 = vcombine.high %v11242_v47, %v11246_v36  ;;  %v11293_v27 = vld [vmem:[%s21453_s3 + $0x470] sm:$0xff] }
 0x6fb   : > { %14291 = vmatprep.subr.bf16.mxu1 %v16389_v62  ;;  %v11249_v62 = vld [vmem:[%s21453_s3 + $0x310] sm:$0xff] }
 0x6fc   : > { %v16442_v26 = vcombine.low %v11249_v62, %v11253_v63 }
 0x6fd   : > { %14128 = vmatpush1.bf16.msra.mxu0 %v16386_v58  ;;  %v16436_v58 = vcombine.low %v11242_v47, %v11246_v36  ;;  %v11290_v47 = vld [vmem:[%s21453_s3 + $0x458] sm:$0xff] }
 0x6fe   : > { %14292 = vmatpush1.bf16.msra.mxu1 %v16388_v44  ;;  %14129 = vmatprep.subr.bf16.mxu0 %v16395_v40  ;;  %v16443_v44 = vcombine.high %v11249_v62, %v11253_v63  ;;  %v16445_v40 = vcombine.high %v11250_v1, %v11254_v51  ;;  %v11294_v36 = vld [vmem:[%s21453_s3 + $0x478] sm:$0xff] }
 0x6ff   : > { %14293 = vmatprep.subr.bf16.mxu1 %v16397_v5  ;;  %v11257_v5 = vld [vmem:[%s21453_s3 + $0x350] sm:$0xff]  ;;  %v16485_v62 = vcombine.high %v11290_v47, %v11294_v36  ;;  %v11298_v63 = vld [vmem:[%s21453_s3 + $0x498] sm:$0xff] }
 0x700   : > { %v16450_v18 = vcombine.low %v11257_v5, %v11261_v8 }
 0x701   : > { %14130 = vmatpush1.bf16.msra.mxu0 %v16394_v24  ;;  %v16444_v24 = vcombine.low %v11250_v1, %v11254_v51  ;;  %v11302_v1 = vld [vmem:[%s21453_s3 + $0x4b8] sm:$0xff] }
 0x702   : > { %14294 = vmatpush1.bf16.msra.mxu1 %v16396_v16  ;;  %14131 = vmatprep.subr.bf16.mxu0 %v16403_v17  ;;  %v16451_v16 = vcombine.high %v11257_v5, %v11261_v8  ;;  %v16453_v17 = vcombine.high %v11258_v11, %v11262_v14  ;;  %v11309_v5 = vld [vmem:[%s21453_s3 + $0x4f0] sm:$0xff]  ;;  %v11310_v8 = vld [vmem:[%s21453_s3 + $0x4f8] sm:$0xff] }
 0x703   : > { %14295 = vmatprep.subr.bf16.mxu1 %v16405_v3  ;;  %v11265_v3 = vld [vmem:[%s21453_s3 + $0x390] sm:$0xff] }
 0x704   : > { %v16458_v32 = vcombine.low %v11265_v3, %v11269_v15 }
 0x705   : > { %14132 = vmatpush1.bf16.msra.mxu0 %v16402_v20  ;;  %v16452_v20 = vcombine.low %v11258_v11, %v11262_v14  ;;  %v16492_v11 = vcombine.low %v11298_v63, %v11302_v1 }
 0x706   : > { %14296 = vmatpush1.bf16.msra.mxu1 %v16404_v25  ;;  %14133 = vmatprep.subr.bf16.mxu0 %v16411_v55  ;;  %v16459_v25 = vcombine.high %v11265_v3, %v11269_v15  ;;  %v16461_v55 = vcombine.high %v11266_v10, %v11270_v22  ;;  %v11318_v3 = vld [vmem:[%s21453_s3 + $0x538] sm:$0xff] }
 0x707   : > { %14297 = vmatprep.subr.bf16.mxu1 %v16413_v49  ;;  %v11273_v49 = vld [vmem:[%s21453_s3 + $0x3d0] sm:$0xff] }
 0x708   : > { %v16466_v50 = vcombine.low %v11273_v49, %v11277_v2 }
 0x709   : > { %14134 = vmatpush1.bf16.msra.mxu0 %v16410_v53  ;;  %v16460_v53 = vcombine.low %v11266_v10, %v11270_v22 }
 0x70a   : > { %14298 = vmatpush1.bf16.msra.mxu1 %v16412_v35  ;;  %14135 = vmatprep.subr.bf16.mxu0 %v16419_v57  ;;  %v16467_v35 = vcombine.high %v11273_v49, %v11277_v2  ;;  %v16469_v57 = vcombine.high %v11274_v28, %v11278_v34  ;;  %v11326_v49 = vld [vmem:[%s21453_s3 + $0x578] sm:$0xff] }
 0x70b   : > { %14299 = vmatprep.subr.bf16.mxu1 %v16421_v43  ;;  %v11281_v43 = vld [vmem:[%s21453_s3 + $0x410] sm:$0xff] }
 0x70c   : > { %v16474_v46 = vcombine.low %v11281_v43, %v11285_v38 }
 0x70d   : > { %14136 = vmatpush1.bf16.msra.mxu0 %v16418_v9  ;;  %v16468_v9 = vcombine.low %v11274_v28, %v11278_v34 }
 0x70e   : > { %14300 = vmatpush1.bf16.msra.mxu1 %v16420_v29  ;;  %14137 = vmatprep.subr.bf16.mxu0 %v16427_v45  ;;  %v16475_v29 = vcombine.high %v11281_v43, %v11285_v38  ;;  %v16477_v45 = vcombine.high %v11282_v56, %v11286_v61  ;;  %v11334_v43 = vld [vmem:[%s21453_s3 + $0x5b8] sm:$0xff] }
 0x70f   : > { %14301 = vmatprep.subr.bf16.mxu1 %v16429_v52  ;;  %v11289_v52 = vld [vmem:[%s21453_s3 + $0x450] sm:$0xff] }
 0x710   : > { %v16482_v51 = vcombine.low %v11289_v52, %v11293_v27 }
 0x711   : > { %14138 = vmatpush1.bf16.msra.mxu0 %v16426_v54  ;;  %v16476_v54 = vcombine.low %v11282_v56, %v11286_v61 }
 0x712   : > { %14302 = vmatpush1.bf16.msra.mxu1 %v16428_v48  ;;  %14139 = vmatprep.subr.bf16.mxu0 %v16435_v42  ;;  %v16483_v48 = vcombine.high %v11289_v52, %v11293_v27  ;;  %v11297_v42 = vld [vmem:[%s21453_s3 + $0x490] sm:$0xff]  ;;  %v11342_v52 = vld [vmem:[%s21453_s3 + $0x5f8] sm:$0xff] }
 0x713   : > { %14303 = vmatprep.subr.bf16.mxu1 %v16437_v60  ;;  %v11301_v60 = vld [vmem:[%s21453_s3 + $0x4b0] sm:$0xff] }
 0x715   : > { %14140 = vmatpush1.bf16.msra.mxu0 %v16434_v4  ;;  %v16484_v4 = vcombine.low %v11290_v47, %v11294_v36 }
 0x716   : > { %14304 = vmatpush1.bf16.msra.mxu1 %v16436_v58  ;;  %14141 = vmatprep.subr.bf16.mxu0 %v16443_v44  ;;  %v16491_v58 = vcombine.high %v11297_v42, %v11301_v60  ;;  %v16493_v44 = vcombine.high %v11298_v63, %v11302_v1 }
 0x717   : > { %14305 = vmatprep.subr.bf16.mxu1 %v16445_v40  ;;  %v11305_v40 = vld [vmem:[%s21453_s3 + $0x4d0] sm:$0xff] }
 0x718   : > { %v16499_v14 = vcombine.high %v11305_v40, %v11309_v5  ;;  %v16498_v15 = vcombine.low %v11305_v40, %v11309_v5  ;;  %v11358_v40 = vld [vmem:[%s21453_s3 + $0x678] sm:$0xff] }
 0x719   : > { %14142 = vmatpush1.bf16.msra.mxu0 %v16442_v26 }
 0x71a   : > { %14306 = vmatpush1.bf16.msra.mxu1 %v16444_v24  ;;  %14143 = vmatprep.subr.bf16.mxu0 %v16451_v16  ;;  %v11313_v24 = vld [vmem:[%s21453_s3 + $0x510] sm:$0xff] }
 0x71b   : > { %14307 = vmatprep.subr.bf16.mxu1 %v16453_v17  ;;  %v11317_v16 = vld [vmem:[%s21453_s3 + $0x530] sm:$0xff]  ;;  %v11314_v17 = vld [vmem:[%s21453_s3 + $0x518] sm:$0xff] }
 0x71c   : > { %v16507_v22 = vcombine.high %v11313_v24, %v11317_v16  ;;  %v16506_v2 = vcombine.low %v11313_v24, %v11317_v16  ;;  %v16508_v28 = vcombine.low %v11314_v17, %v11318_v3  ;;  %v11366_v24 = vld [vmem:[%s21453_s3 + $0x6b8] sm:$0xff] }
 0x71d   : > { %14144 = vmatpush1.bf16.msra.mxu0 %v16450_v18  ;;  %v16509_v18 = vcombine.high %v11314_v17, %v11318_v3 }
 0x71e   : > { %14308 = vmatpush1.bf16.msra.mxu1 %v16452_v20  ;;  %14145 = vmatprep.subr.bf16.mxu0 %v16459_v25  ;;  %v11321_v20 = vld [vmem:[%s21453_s3 + $0x550] sm:$0xff] }
 0x71f   : > { %14309 = vmatprep.subr.bf16.mxu1 %v16461_v55  ;;  %v11325_v25 = vld [vmem:[%s21453_s3 + $0x570] sm:$0xff]  ;;  %v11322_v55 = vld [vmem:[%s21453_s3 + $0x558] sm:$0xff] }
 0x720   : > { %v16515_v34 = vcombine.high %v11321_v20, %v11325_v25  ;;  %v16514_v38 = vcombine.low %v11321_v20, %v11325_v25  ;;  %v16516_v56 = vcombine.low %v11322_v55, %v11326_v49  ;;  %v11374_v20 = vld [vmem:[%s21453_s3 + $0x6f8] sm:$0xff] }
 0x721   : > { %14146 = vmatpush1.bf16.msra.mxu0 %v16458_v32  ;;  %v16517_v32 = vcombine.high %v11322_v55, %v11326_v49 }
 0x722   : > { %14310 = vmatpush1.bf16.msra.mxu1 %v16460_v53  ;;  %14147 = vmatprep.subr.bf16.mxu0 %v16467_v35  ;;  %v11329_v53 = vld [vmem:[%s21453_s3 + $0x590] sm:$0xff] }
 0x723   : > { %14311 = vmatprep.subr.bf16.mxu1 %v16469_v57  ;;  %v11333_v35 = vld [vmem:[%s21453_s3 + $0x5b0] sm:$0xff]  ;;  %v11330_v57 = vld [vmem:[%s21453_s3 + $0x598] sm:$0xff] }
 0x724   : > { %v16523_v61 = vcombine.high %v11329_v53, %v11333_v35  ;;  %v16522_v27 = vcombine.low %v11329_v53, %v11333_v35  ;;  %v11382_v53 = vld [vmem:[%s21453_s3 + $0x738] sm:$0xff] }
 0x725   : > { %14148 = vmatpush1.bf16.msra.mxu0 %v16466_v50  ;;  %v16525_v50 = vcombine.high %v11330_v57, %v11334_v43 }
 0x726   : > { %14312 = vmatpush1.bf16.msra.mxu1 %v16468_v9  ;;  %14158 = vmatprep.subr.bf16.mxu0 %v16475_v29  ;;  %v11337_v9 = vld [vmem:[%s21453_s3 + $0x5d0] sm:$0xff] }
 0x727   : > { %14322 = vmatprep.subr.bf16.mxu1 %v16477_v45  ;;  %v11341_v29 = vld [vmem:[%s21453_s3 + $0x5f0] sm:$0xff]  ;;  %v11338_v45 = vld [vmem:[%s21453_s3 + $0x5d8] sm:$0xff] }
 0x728   : > { %14150 = vmatmul.mubr.bf16.vlgmr.msra.gmra.mrb[32].mxu0 %v20035_v37  ;;  %v16531_v47 = vcombine.high %v11337_v9, %v11341_v29  ;;  %v16533_v36 = vcombine.high %v11338_v45, %v11342_v52  ;;  %v16532_v63 = vcombine.low %v11338_v45, %v11342_v52 }
 0x729   : > { %14314 = vmatmul.mubr.bf16.vlgmr.msra.gmra.mrb[40].mxu1 %v20035_v37  ;;  %14159 = vmatpush1.bf16.msra.mxu0 %v16474_v46  ;;  %v11306_v37 = vld [vmem:[%s21453_s3 + $0x4d8] sm:$0xff]  ;;  %v16524_v46 = vcombine.low %v11330_v57, %v11334_v43 }
 0x72a   : > { %14190 = vmatprep.mubr.bf16.mxu0 %v20306_v13  ;;  %14323 = vmatpush1.bf16.msra.mxu1 %v16476_v54  ;;  %v16501_v26 = vcombine.high %v11306_v37, %v11310_v8  ;;  %v16500_v10 = vcombine.low %v11306_v37, %v11310_v8  ;;  %v11345_v54 = vld [vmem:[%s21453_s3 + $0x610] sm:$0xff] }
 0x72b   : > { %14354 = vmatprep.mubr.bf16.mxu1 %v20306_v13  ;;  %14160 = vmatprep.subr.bf16.mxu0 %v16483_v48  ;;  %v16490_v13 = vcombine.low %v11297_v42, %v11301_v60  ;;  %v11349_v48 = vld [vmem:[%s21453_s3 + $0x630] sm:$0xff]  ;;  %v11346_v42 = vld [vmem:[%s21453_s3 + $0x618] sm:$0xff] }
 0x72c   : > { %14324 = vmatprep.subr.bf16.mxu1 %v16485_v62  ;;  %v11350_v60 = vld [vmem:[%s21453_s3 + $0x638] sm:$0xff]  ;;  %v16530_v62 = vcombine.low %v11337_v9, %v11341_v29  ;;  %v16539_v1 = vcombine.high %v11345_v54, %v11349_v48  ;;  %v16538_v5 = vcombine.low %v11345_v54, %v11349_v48 }
 0x72d   : > { %14161 = vmatpush1.bf16.msra.mxu0 %v16482_v51  ;;  %v16541_v51 = vcombine.high %v11346_v42, %v11350_v60  ;;  %v16540_v37 = vcombine.low %v11346_v42, %v11350_v60  ;;  %v11390_v9 = vld [vmem:[%s21453_s3 + $0x778] sm:$0xff] }
 0x72e   : > { %14325 = vmatpush1.bf16.msra.mxu1 %v16484_v4  ;;  %14162 = vmatprep.subr.bf16.mxu0 %v16491_v58  ;;  %v11353_v4 = vld [vmem:[%s21453_s3 + $0x650] sm:$0xff]  ;;  %v11398_v54 = vld [vmem:[%s21453_s3 + $0x7b8] sm:$0xff] }
 0x72f   : > { %14326 = vmatprep.subr.bf16.mxu1 %v16493_v44  ;;  %v11357_v58 = vld [vmem:[%s21453_s3 + $0x670] sm:$0xff]  ;;  %v11354_v44 = vld [vmem:[%s21453_s3 + $0x658] sm:$0xff] }
 0x730   : > { %v16547_v8 = vcombine.high %v11353_v4, %v11357_v58  ;;  %v16546_v16 = vcombine.low %v11353_v4, %v11357_v58  ;;  %v16548_v17 = vcombine.low %v11354_v44, %v11358_v40  ;;  %v11406_v4 = vld [vmem:[%s21453_s3 + $0x7f8] sm:$0xff] }
 0x731   : > { %14163 = vmatpush1.bf16.msra.mxu0 %v16490_v13  ;;  %v16549_v13 = vcombine.high %v11354_v44, %v11358_v40 }
 0x732   : > { %14327 = vmatpush1.bf16.msra.mxu1 %v16492_v11  ;;  %14164 = vmatprep.subr.bf16.mxu0 %v16499_v14  ;;  %v11361_v11 = vld [vmem:[%s21453_s3 + $0x690] sm:$0xff] }
 0x733   : > { %14328 = vmatprep.subr.bf16.mxu1 %v16501_v26  ;;  %v11365_v14 = vld [vmem:[%s21453_s3 + $0x6b0] sm:$0xff]  ;;  %v11362_v26 = vld [vmem:[%s21453_s3 + $0x698] sm:$0xff] }
 0x734   : > { %v16555_v3 = vcombine.high %v11361_v11, %v11365_v14  ;;  %v16554_v25 = vcombine.low %v11361_v11, %v11365_v14  ;;  %v16556_v55 = vcombine.low %v11362_v26, %v11366_v24  ;;  %v11414_v11 = vld [vmem:[%s21453_s3 + $0x838] sm:$0xff] }
 0x735   : > { %14165 = vmatpush1.bf16.msra.mxu0 %v16498_v15  ;;  %v16557_v15 = vcombine.high %v11362_v26, %v11366_v24 }
 0x736   : > { %14329 = vmatpush1.bf16.msra.mxu1 %v16500_v10  ;;  %14166 = vmatprep.subr.bf16.mxu0 %v16507_v22  ;;  %v11369_v10 = vld [vmem:[%s21453_s3 + $0x6d0] sm:$0xff] }
 0x737   : > { %14330 = vmatprep.subr.bf16.mxu1 %v16509_v18  ;;  %v11373_v22 = vld [vmem:[%s21453_s3 + $0x6f0] sm:$0xff]  ;;  %v11370_v18 = vld [vmem:[%s21453_s3 + $0x6d8] sm:$0xff] }
 0x738   : > { %v16563_v49 = vcombine.high %v11369_v10, %v11373_v22  ;;  %v16562_v35 = vcombine.low %v11369_v10, %v11373_v22  ;;  %v16564_v57 = vcombine.low %v11370_v18, %v11374_v20  ;;  %v11418_v10 = vld [vmem:[%s21453_s3 + $0x858] sm:$0xff] }
 0x739   : > { %14167 = vmatpush1.bf16.msra.mxu0 %v16506_v2  ;;  %v16565_v2 = vcombine.high %v11370_v18, %v11374_v20  ;;  %v11422_v22 = vld [vmem:[%s21453_s3 + $0x878] sm:$0xff] }
 0x73a   : > { %14331 = vmatpush1.bf16.msra.mxu1 %v16508_v28  ;;  %14168 = vmatprep.subr.bf16.mxu0 %v16515_v34  ;;  %v11377_v28 = vld [vmem:[%s21453_s3 + $0x710] sm:$0xff] }
 0x73b   : > { %14332 = vmatprep.subr.bf16.mxu1 %v16517_v32  ;;  %v11381_v34 = vld [vmem:[%s21453_s3 + $0x730] sm:$0xff]  ;;  %v11378_v32 = vld [vmem:[%s21453_s3 + $0x718] sm:$0xff] }
 0x73c   : > { %v16571_v43 = vcombine.high %v11377_v28, %v11381_v34  ;;  %v16570_v29 = vcombine.low %v11377_v28, %v11381_v34  ;;  %v16572_v45 = vcombine.low %v11378_v32, %v11382_v53  ;;  %v11430_v28 = vld [vmem:[%s21453_s3 + $0x8b8] sm:$0xff] }
 0x73d   : > { %14169 = vmatpush1.bf16.msra.mxu0 %v16514_v38  ;;  %v16573_v38 = vcombine.high %v11378_v32, %v11382_v53  ;;  %v16612_v32 = vcombine.low %v11418_v10, %v11422_v22 }
 0x73e   : > { %14333 = vmatpush1.bf16.msra.mxu1 %v16516_v56  ;;  %14170 = vmatprep.subr.bf16.mxu0 %v16523_v61  ;;  %v11385_v56 = vld [vmem:[%s21453_s3 + $0x750] sm:$0xff] }
 0x73f   : > { %14334 = vmatprep.subr.bf16.mxu1 %v16525_v50  ;;  %v11389_v61 = vld [vmem:[%s21453_s3 + $0x770] sm:$0xff]  ;;  %v11386_v50 = vld [vmem:[%s21453_s3 + $0x758] sm:$0xff] }
 0x740   : > { %v16579_v52 = vcombine.high %v11385_v56, %v11389_v61  ;;  %v16578_v48 = vcombine.low %v11385_v56, %v11389_v61  ;;  %v16580_v42 = vcombine.low %v11386_v50, %v11390_v9 }
 0x741   : > { %14171 = vmatpush1.bf16.msra.mxu0 %v16522_v27  ;;  %v16581_v27 = vcombine.high %v11386_v50, %v11390_v9  ;;  %v11441_v9 = vld [vmem:[%s21453_s3 + $0x910] sm:$0xff] }
 0x742   : > { %14335 = vmatpush1.bf16.msra.mxu1 %v16524_v46  ;;  %14172 = vmatprep.subr.bf16.mxu0 %v16531_v47  ;;  %v11393_v46 = vld [vmem:[%s21453_s3 + $0x790] sm:$0xff] }
 0x743   : > { %14336 = vmatprep.subr.bf16.mxu1 %v16533_v36  ;;  %v11397_v47 = vld [vmem:[%s21453_s3 + $0x7b0] sm:$0xff]  ;;  %v11394_v36 = vld [vmem:[%s21453_s3 + $0x798] sm:$0xff] }
 0x744   : > { %v16587_v60 = vcombine.high %v11393_v46, %v11397_v47  ;;  %v16586_v58 = vcombine.low %v11393_v46, %v11397_v47  ;;  %v16588_v44 = vcombine.low %v11394_v36, %v11398_v54 }
 0x745   : > { %14173 = vmatpush1.bf16.msra.mxu0 %v16530_v62  ;;  %v16589_v62 = vcombine.high %v11394_v36, %v11398_v54  ;;  %v11449_v54 = vld [vmem:[%s21453_s3 + $0x950] sm:$0xff] }
 0x746   : > { %14337 = vmatpush1.bf16.msra.mxu1 %v16532_v63  ;;  %14174 = vmatprep.subr.bf16.mxu0 %v16539_v1  ;;  %v11401_v63 = vld [vmem:[%s21453_s3 + $0x7d0] sm:$0xff] }
 0x747   : > { %14338 = vmatprep.subr.bf16.mxu1 %v16541_v51  ;;  %v11405_v1 = vld [vmem:[%s21453_s3 + $0x7f0] sm:$0xff]  ;;  %v11402_v51 = vld [vmem:[%s21453_s3 + $0x7d8] sm:$0xff] }
 0x748   : > { %v16595_v40 = vcombine.high %v11401_v63, %v11405_v1  ;;  %v16594_v14 = vcombine.low %v11401_v63, %v11405_v1  ;;  %v16596_v26 = vcombine.low %v11402_v51, %v11406_v4 }
 0x749   : > { %14175 = vmatpush1.bf16.msra.mxu0 %v16538_v5  ;;  %v16597_v5 = vcombine.high %v11402_v51, %v11406_v4  ;;  %v11457_v4 = vld [vmem:[%s21453_s3 + $0x990] sm:$0xff] }
 0x74a   : > { %14339 = vmatpush1.bf16.msra.mxu1 %v16540_v37  ;;  %14176 = vmatprep.subr.bf16.mxu0 %v16547_v8  ;;  %v11409_v37 = vld [vmem:[%s21453_s3 + $0x810] sm:$0xff] }
 0x74b   : > { %14340 = vmatprep.subr.bf16.mxu1 %v16549_v13  ;;  %v11413_v8 = vld [vmem:[%s21453_s3 + $0x830] sm:$0xff]  ;;  %v11410_v13 = vld [vmem:[%s21453_s3 + $0x818] sm:$0xff] }
 0x74c   : > { %v16603_v24 = vcombine.high %v11409_v37, %v11413_v8  ;;  %v16604_v18 = vcombine.low %v11410_v13, %v11414_v11 }
 0x74d   : > { %14177 = vmatpush1.bf16.msra.mxu0 %v16546_v16  ;;  %v16605_v16 = vcombine.high %v11410_v13, %v11414_v11  ;;  %v11465_v11 = vld [vmem:[%s21453_s3 + $0x9d0] sm:$0xff] }
 0x74e   : > { %14341 = vmatpush1.bf16.msra.mxu1 %v16548_v17  ;;  %14178 = vmatprep.subr.bf16.mxu0 %v16555_v3  ;;  %v11417_v17 = vld [vmem:[%s21453_s3 + $0x850] sm:$0xff] }
 0x74f   : > { %14342 = vmatprep.subr.bf16.mxu1 %v16557_v15  ;;  %v11421_v3 = vld [vmem:[%s21453_s3 + $0x870] sm:$0xff]  ;;  %v16602_v15 = vcombine.low %v11409_v37, %v11413_v8 }
 0x750   : > { %v16611_v20 = vcombine.high %v11417_v17, %v11421_v3  ;;  %v16610_v34 = vcombine.low %v11417_v17, %v11421_v3 }
 0x751   : > { %14179 = vmatpush1.bf16.msra.mxu0 %v16554_v25  ;;  %v11425_v25 = vld [vmem:[%s21453_s3 + $0x890] sm:$0xff] }
 0x752   : > { %14343 = vmatpush1.bf16.msra.mxu1 %v16556_v55  ;;  %14180 = vmatprep.subr.bf16.mxu0 %v16563_v49  ;;  %v11429_v55 = vld [vmem:[%s21453_s3 + $0x8b0] sm:$0xff]  ;;  %v16613_v49 = vcombine.high %v11418_v10, %v11422_v22 }
 0x753   : > { %14344 = vmatprep.subr.bf16.mxu1 %v16565_v2  ;;  %v11426_v2 = vld [vmem:[%s21453_s3 + $0x898] sm:$0xff]  ;;  %v16619_v53 = vcombine.high %v11425_v25, %v11429_v55  ;;  %v11473_v10 = vld [vmem:[%s21453_s3 + $0xa10] sm:$0xff] }
 0x754   : > { %v16620_v56 = vcombine.low %v11426_v2, %v11430_v28  ;;  %v11477_v22 = vld [vmem:[%s21453_s3 + $0xa30] sm:$0xff] }
 0x755   : > { %14181 = vmatpush1.bf16.msra.mxu0 %v16562_v35  ;;  %v16621_v35 = vcombine.high %v11426_v2, %v11430_v28  ;;  %v11481_v28 = vld [vmem:[%s21453_s3 + $0xa50] sm:$0xff] }
 0x756   : > { %14345 = vmatpush1.bf16.msra.mxu1 %v16564_v57  ;;  %14182 = vmatprep.subr.bf16.mxu0 %v16571_v43  ;;  %v11433_v57 = vld [vmem:[%s21453_s3 + $0x8d0] sm:$0xff] }
 0x757   : > { %14346 = vmatprep.subr.bf16.mxu1 %v16573_v38  ;;  %v11437_v43 = vld [vmem:[%s21453_s3 + $0x8f0] sm:$0xff]  ;;  %v11438_v38 = vld [vmem:[%s21453_s3 + $0x8f8] sm:$0xff] }
 0x758   : > { %v16627_v61 = vcombine.high %v11433_v57, %v11437_v43 }
 0x759   : > { %14183 = vmatpush1.bf16.msra.mxu0 %v16570_v29  ;;  %v11445_v29 = vld [vmem:[%s21453_s3 + $0x930] sm:$0xff] }
 0x75a   : > { %14347 = vmatpush1.bf16.msra.mxu1 %v16572_v45  ;;  %14184 = vmatprep.subr.bf16.mxu0 %v16579_v52  ;;  %v11442_v45 = vld [vmem:[%s21453_s3 + $0x918] sm:$0xff]  ;;  %v16635_v47 = vcombine.high %v11441_v9, %v11445_v29 }
 0x75b   : > { %14348 = vmatprep.subr.bf16.mxu1 %v16581_v27  ;;  %v11446_v52 = vld [vmem:[%s21453_s3 + $0x938] sm:$0xff]  ;;  %v16626_v27 = vcombine.low %v11433_v57, %v11437_v43 }
 0x75c   : > { %v16637_v36 = vcombine.high %v11442_v45, %v11446_v52  ;;  %v16636_v63 = vcombine.low %v11442_v45, %v11446_v52  ;;  %v11497_v52 = vld [vmem:[%s21453_s3 + $0xad0] sm:$0xff] }
 0x75d   : > { %14185 = vmatpush1.bf16.msra.mxu0 %v16578_v48  ;;  %v11453_v48 = vld [vmem:[%s21453_s3 + $0x970] sm:$0xff] }
 0x75e   : > { %14349 = vmatpush1.bf16.msra.mxu1 %v16580_v42  ;;  %14186 = vmatprep.subr.bf16.mxu0 %v16587_v60  ;;  %v11450_v42 = vld [vmem:[%s21453_s3 + $0x958] sm:$0xff]  ;;  %v16643_v1 = vcombine.high %v11449_v54, %v11453_v48 }
 0x75f   : > { %14350 = vmatprep.subr.bf16.mxu1 %v16589_v62  ;;  %v11454_v60 = vld [vmem:[%s21453_s3 + $0x978] sm:$0xff]  ;;  %v16634_v62 = vcombine.low %v11441_v9, %v11445_v29 }
 0x760   : > { %v16645_v51 = vcombine.high %v11450_v42, %v11454_v60  ;;  %v16644_v37 = vcombine.low %v11450_v42, %v11454_v60  ;;  %v11505_v60 = vld [vmem:[%s21453_s3 + $0xb10] sm:$0xff] }
 0x761   : > { %14187 = vmatpush1.bf16.msra.mxu0 %v16586_v58  ;;  %v11461_v58 = vld [vmem:[%s21453_s3 + $0x9b0] sm:$0xff] }
 0x762   : > { %14351 = vmatpush1.bf16.msra.mxu1 %v16588_v44  ;;  %14188 = vmatprep.subr.bf16.mxu0 %v16595_v40  ;;  %v11458_v44 = vld [vmem:[%s21453_s3 + $0x998] sm:$0xff]  ;;  %v16651_v8 = vcombine.high %v11457_v4, %v11461_v58 }
 0x763   : > { %14352 = vmatprep.subr.bf16.mxu1 %v16597_v5  ;;  %v11462_v40 = vld [vmem:[%s21453_s3 + $0x9b8] sm:$0xff]  ;;  %v16642_v5 = vcombine.low %v11449_v54, %v11453_v48 }
 0x764   : > { %v16653_v13 = vcombine.high %v11458_v44, %v11462_v40  ;;  %v16652_v17 = vcombine.low %v11458_v44, %v11462_v40  ;;  %v11513_v40 = vld [vmem:[%s21453_s3 + $0xb50] sm:$0xff] }
 0x765   : > { %14189 = vmatpush1.bf16.msra.mxu0 %v16594_v14  ;;  %v11469_v14 = vld [vmem:[%s21453_s3 + $0x9f0] sm:$0xff] }
 0x766   : > { %14353 = vmatpush1.bf16.msra.mxu1 %v16596_v26  ;;  %14199 = vmatprep.subr.bf16.mxu0 %v16603_v24  ;;  %v11466_v26 = vld [vmem:[%s21453_s3 + $0x9d8] sm:$0xff]  ;;  %v16659_v3 = vcombine.high %v11465_v11, %v11469_v14 }
 0x767   : > { %14363 = vmatprep.subr.bf16.mxu1 %v16605_v16  ;;  %v11470_v24 = vld [vmem:[%s21453_s3 + $0x9f8] sm:$0xff]  ;;  %v16650_v16 = vcombine.low %v11457_v4, %v11461_v58 }
 0x768   : > { %14191 = vmatmul.mubr.bf16.vlgmr.msra.gmra.mrb[32].mxu0 %v20310_v6 }
 0x769   : > { %14355 = vmatmul.mubr.bf16.vlgmr.msra.gmra.mrb[40].mxu1 %v20310_v6  ;;  %14200 = vmatpush1.bf16.msra.mxu0 %v16602_v15  ;;  %v11434_v6 = vld [vmem:[%s21453_s3 + $0x8d8] sm:$0xff]  ;;  %v16661_v15 = vcombine.high %v11466_v26, %v11470_v24 }
 0x76a   : > { %14231 = vmatprep.mubr.bf16.mxu0 %v20435_v59  ;;  %14364 = vmatpush1.bf16.msra.mxu1 %v16604_v18  ;;  %v16629_v50 = vcombine.high %v11434_v6, %v11438_v38  ;;  %v16628_v46 = vcombine.low %v11434_v6, %v11438_v38  ;;  %v11474_v18 = vld [vmem:[%s21453_s3 + $0xa18] sm:$0xff]  ;;  %v11489_v38 = vld [vmem:[%s21453_s3 + $0xa90] sm:$0xff] }
 0x76b   : > { %14395 = vmatprep.mubr.bf16.mxu1 %v20435_v59  ;;  %14201 = vmatprep.subr.bf16.mxu0 %v16611_v20  ;;  %v16618_v59 = vcombine.low %v11425_v25, %v11429_v55  ;;  %v11478_v20 = vld [vmem:[%s21453_s3 + $0xa38] sm:$0xff]  ;;  %v16658_v25 = vcombine.low %v11465_v11, %v11469_v14  ;;  %v16660_v55 = vcombine.low %v11466_v26, %v11470_v24  ;;  %v11521_v24 = vld [vmem:[%s21453_s3 + $0xb90] sm:$0xff] }
 0x76c   : > { %14365 = vmatprep.subr.bf16.mxu1 %v16613_v49  ;;  %v16667_v49 = vcombine.high %v11473_v10, %v11477_v22  ;;  %v16669_v2 = vcombine.high %v11474_v18, %v11478_v20  ;;  %v16668_v57 = vcombine.low %v11474_v18, %v11478_v20  ;;  %v11529_v20 = vld [vmem:[%s21453_s3 + $0xbd0] sm:$0xff] }
 0x76d   : > { %14202 = vmatpush1.bf16.msra.mxu0 %v16610_v34  ;;  %v11485_v34 = vld [vmem:[%s21453_s3 + $0xa70] sm:$0xff] }
 0x76e   : > { %14366 = vmatpush1.bf16.msra.mxu1 %v16612_v32  ;;  %14203 = vmatprep.subr.bf16.mxu0 %v16619_v53  ;;  %v11482_v32 = vld [vmem:[%s21453_s3 + $0xa58] sm:$0xff]  ;;  %v16675_v43 = vcombine.high %v11481_v28, %v11485_v34 }
 0x76f   : > { %14367 = vmatprep.subr.bf16.mxu1 %v16621_v35  ;;  %v11486_v53 = vld [vmem:[%s21453_s3 + $0xa78] sm:$0xff]  ;;  %v16666_v35 = vcombine.low %v11473_v10, %v11477_v22 }
 0x770   : > { %v16677_v6 = vcombine.high %v11482_v32, %v11486_v53  ;;  %v16676_v9 = vcombine.low %v11482_v32, %v11486_v53  ;;  %v11537_v53 = vld [vmem:[%s21453_s3 + $0xc10] sm:$0xff] }
 0x771   : > { %14204 = vmatpush1.bf16.msra.mxu0 %v16618_v59  ;;  %v11493_v59 = vld [vmem:[%s21453_s3 + $0xab0] sm:$0xff] }
 0x772   : > { %14368 = vmatpush1.bf16.msra.mxu1 %v16620_v56  ;;  %14205 = vmatprep.subr.bf16.mxu0 %v16627_v61  ;;  %v11490_v56 = vld [vmem:[%s21453_s3 + $0xa98] sm:$0xff]  ;;  %v16683_v29 = vcombine.high %v11489_v38, %v11493_v59 }
 0x773   : > { %14369 = vmatprep.subr.bf16.mxu1 %v16629_v50  ;;  %v11494_v61 = vld [vmem:[%s21453_s3 + $0xab8] sm:$0xff]  ;;  %v16674_v50 = vcombine.low %v11481_v28, %v11485_v34 }
 0x774   : > { %v16685_v45 = vcombine.high %v11490_v56, %v11494_v61  ;;  %v16684_v54 = vcombine.low %v11490_v56, %v11494_v61  ;;  %v11545_v61 = vld [vmem:[%s21453_s3 + $0xc50] sm:$0xff] }
 0x775   : > { %14206 = vmatpush1.bf16.msra.mxu0 %v16626_v27  ;;  %v11501_v27 = vld [vmem:[%s21453_s3 + $0xaf0] sm:$0xff] }
 0x776   : > { %14370 = vmatpush1.bf16.msra.mxu1 %v16628_v46  ;;  %14207 = vmatprep.subr.bf16.mxu0 %v16635_v47  ;;  %v11498_v46 = vld [vmem:[%s21453_s3 + $0xad8] sm:$0xff]  ;;  %v16691_v48 = vcombine.high %v11497_v52, %v11501_v27 }
 0x777   : > { %14371 = vmatprep.subr.bf16.mxu1 %v16637_v36  ;;  %v11502_v47 = vld [vmem:[%s21453_s3 + $0xaf8] sm:$0xff]  ;;  %v16682_v36 = vcombine.low %v11489_v38, %v11493_v59 }
 0x778   : > { %v16693_v42 = vcombine.high %v11498_v46, %v11502_v47  ;;  %v16692_v4 = vcombine.low %v11498_v46, %v11502_v47  ;;  %v11553_v47 = vld [vmem:[%s21453_s3 + $0xc90] sm:$0xff] }
 0x779   : > { %14208 = vmatpush1.bf16.msra.mxu0 %v16634_v62  ;;  %v11509_v62 = vld [vmem:[%s21453_s3 + $0xb30] sm:$0xff] }
 0x77a   : > { %14372 = vmatpush1.bf16.msra.mxu1 %v16636_v63  ;;  %14209 = vmatprep.subr.bf16.mxu0 %v16643_v1  ;;  %v11506_v63 = vld [vmem:[%s21453_s3 + $0xb18] sm:$0xff]  ;;  %v16699_v58 = vcombine.high %v11505_v60, %v11509_v62 }
 0x77b   : > { %14373 = vmatprep.subr.bf16.mxu1 %v16645_v51  ;;  %v11510_v1 = vld [vmem:[%s21453_s3 + $0xb38] sm:$0xff]  ;;  %v16690_v51 = vcombine.low %v11497_v52, %v11501_v27 }
 0x77c   : > { %v16701_v44 = vcombine.high %v11506_v63, %v11510_v1  ;;  %v16700_v11 = vcombine.low %v11506_v63, %v11510_v1  ;;  %v11561_v1 = vld [vmem:[%s21453_s3 + $0xcd0] sm:$0xff] }
 0x77d   : > { %14210 = vmatpush1.bf16.msra.mxu0 %v16642_v5  ;;  %v11517_v5 = vld [vmem:[%s21453_s3 + $0xb70] sm:$0xff] }
 0x77e   : > { %14374 = vmatpush1.bf16.msra.mxu1 %v16644_v37  ;;  %14211 = vmatprep.subr.bf16.mxu0 %v16651_v8  ;;  %v11514_v37 = vld [vmem:[%s21453_s3 + $0xb58] sm:$0xff]  ;;  %v16707_v14 = vcombine.high %v11513_v40, %v11517_v5 }
 0x77f   : > { %14375 = vmatprep.subr.bf16.mxu1 %v16653_v13  ;;  %v11518_v8 = vld [vmem:[%s21453_s3 + $0xb78] sm:$0xff]  ;;  %v16698_v13 = vcombine.low %v11505_v60, %v11509_v62 }
 0x780   : > { %v16709_v26 = vcombine.high %v11514_v37, %v11518_v8  ;;  %v16708_v10 = vcombine.low %v11514_v37, %v11518_v8  ;;  %v11569_v37 = vld [vmem:[%s21453_s3 + $0xd10] sm:$0xff] }
 0x781   : > { %14212 = vmatpush1.bf16.msra.mxu0 %v16650_v16  ;;  %v11525_v16 = vld [vmem:[%s21453_s3 + $0xbb0] sm:$0xff] }
 0x782   : > { %14376 = vmatpush1.bf16.msra.mxu1 %v16652_v17  ;;  %14213 = vmatprep.subr.bf16.mxu0 %v16659_v3  ;;  %v11522_v17 = vld [vmem:[%s21453_s3 + $0xb98] sm:$0xff]  ;;  %v16715_v22 = vcombine.high %v11521_v24, %v11525_v16  ;;  %v11573_v8 = vld [vmem:[%s21453_s3 + $0xd30] sm:$0xff] }
 0x783   : > { %14377 = vmatprep.subr.bf16.mxu1 %v16661_v15  ;;  %v11526_v3 = vld [vmem:[%s21453_s3 + $0xbb8] sm:$0xff]  ;;  %v16706_v15 = vcombine.low %v11513_v40, %v11517_v5 }
 0x784   : > { %v16717_v18 = vcombine.high %v11522_v17, %v11526_v3  ;;  %v16716_v28 = vcombine.low %v11522_v17, %v11526_v3  ;;  %v11581_v17 = vld [vmem:[%s21453_s3 + $0xd70] sm:$0xff]  ;;  %v11578_v3 = vld [vmem:[%s21453_s3 + $0xd58] sm:$0xff] }
 0x785   : > { %14214 = vmatpush1.bf16.msra.mxu0 %v16658_v25  ;;  %v11533_v25 = vld [vmem:[%s21453_s3 + $0xbf0] sm:$0xff] }
 0x786   : > { %14378 = vmatpush1.bf16.msra.mxu1 %v16660_v55  ;;  %14215 = vmatprep.subr.bf16.mxu0 %v16667_v49  ;;  %v11530_v55 = vld [vmem:[%s21453_s3 + $0xbd8] sm:$0xff]  ;;  %v16723_v34 = vcombine.high %v11529_v20, %v11533_v25 }
 0x787   : > { %14379 = vmatprep.subr.bf16.mxu1 %v16669_v2  ;;  %v11534_v49 = vld [vmem:[%s21453_s3 + $0xbf8] sm:$0xff]  ;;  %v16714_v2 = vcombine.low %v11521_v24, %v11525_v16  ;;  %v11577_v16 = vld [vmem:[%s21453_s3 + $0xd50] sm:$0xff] }
 0x788   : > { %v16725_v32 = vcombine.high %v11530_v55, %v11534_v49  ;;  %v16724_v38 = vcombine.low %v11530_v55, %v11534_v49 }
 0x789   : > { %14216 = vmatpush1.bf16.msra.mxu0 %v16666_v35  ;;  %v11541_v35 = vld [vmem:[%s21453_s3 + $0xc30] sm:$0xff] }
 0x78a   : > { %14380 = vmatpush1.bf16.msra.mxu1 %v16668_v57  ;;  %14217 = vmatprep.subr.bf16.mxu0 %v16675_v43  ;;  %v11538_v57 = vld [vmem:[%s21453_s3 + $0xc18] sm:$0xff]  ;;  %v16731_v59 = vcombine.high %v11537_v53, %v11541_v35 }
 0x78b   : > { %14381 = vmatprep.subr.bf16.mxu1 %v16677_v6  ;;  %v11542_v43 = vld [vmem:[%s21453_s3 + $0xc38] sm:$0xff]  ;;  %v16722_v6 = vcombine.low %v11529_v20, %v11533_v25  ;;  %v16771_v20 = vcombine.high %v11577_v16, %v11581_v17 }
 0x78c   : > { %v16733_v56 = vcombine.high %v11538_v57, %v11542_v43  ;;  %v16732_v52 = vcombine.low %v11538_v57, %v11542_v43 }
 0x78d   : > { %14218 = vmatpush1.bf16.msra.mxu0 %v16674_v50  ;;  %v11549_v50 = vld [vmem:[%s21453_s3 + $0xc70] sm:$0xff] }
 0x78e   : > { %14382 = vmatpush1.bf16.msra.mxu1 %v16676_v9  ;;  %14219 = vmatprep.subr.bf16.mxu0 %v16683_v29  ;;  %v11546_v9 = vld [vmem:[%s21453_s3 + $0xc58] sm:$0xff]  ;;  %v16739_v27 = vcombine.high %v11545_v61, %v11549_v50 }
 0x78f   : > { %14383 = vmatprep.subr.bf16.mxu1 %v16685_v45  ;;  %v11550_v29 = vld [vmem:[%s21453_s3 + $0xc78] sm:$0xff]  ;;  %v16730_v45 = vcombine.low %v11537_v53, %v11541_v35  ;;  %v19259_v53 = vld [vmem:[%s21455_s5 + $0x40] sm:$0xff]  }
 0x790   : > { %v16741_v46 = vcombine.high %v11546_v9, %v11550_v29  ;;  %v16740_v60 = vcombine.low %v11546_v9, %v11550_v29 }
 0x791   : > { %14220 = vmatpush1.bf16.msra.mxu0 %v16682_v36  ;;  %v11557_v36 = vld [vmem:[%s21453_s3 + $0xcb0] sm:$0xff] }
 0x792   : > { %14384 = vmatpush1.bf16.msra.mxu1 %v16684_v54  ;;  %14221 = vmatprep.subr.bf16.mxu0 %v16691_v48  ;;  %v11554_v54 = vld [vmem:[%s21453_s3 + $0xc98] sm:$0xff]  ;;  %v16747_v62 = vcombine.high %v11553_v47, %v11557_v36 }
 0x793   : > { %14385 = vmatprep.subr.bf16.mxu1 %v16693_v42  ;;  %v11558_v48 = vld [vmem:[%s21453_s3 + $0xcb8] sm:$0xff]  ;;  %v16738_v42 = vcombine.low %v11545_v61, %v11549_v50 }
 0x794   : > { %v16749_v63 = vcombine.high %v11554_v54, %v11558_v48 }
 0x795   : > { %14222 = vmatpush1.bf16.msra.mxu0 %v16690_v51  ;;  %v11565_v51 = vld [vmem:[%s21453_s3 + $0xcf0] sm:$0xff] }
 0x796   : > { %14386 = vmatpush1.bf16.msra.mxu1 %v16692_v4  ;;  %14223 = vmatprep.subr.bf16.mxu0 %v16699_v58  ;;  %v11566_v4 = vld [vmem:[%s21453_s3 + $0xcf8] sm:$0xff]  ;;  %v16746_v58 = vcombine.low %v11553_v47, %v11557_v36  ;;  %v16755_v40 = vcombine.high %v11561_v1, %v11565_v51  ;;  %v19262_v36 = vld [vmem:[%s21455_s5 + $0x8] sm:$0xff]  }
 0x797   : > { %14387 = vmatprep.subr.bf16.mxu1 %v16701_v44  ;;  %v16748_v44 = vcombine.low %v11554_v54, %v11558_v48  ;;  %v19263_v54 = vld [vmem:[%s21455_s5 + $0x50] sm:$0xff]  }
 0x798   : > { %v19264_v48 = vld [vmem:[%s21455_s5 + $0x10] sm:$0xff]  }
 0x799   : > { %14224 = vmatpush1.bf16.msra.mxu0 %v16698_v13  ;;  %v11574_v13 = vld [vmem:[%s21453_s3 + $0xd38] sm:$0xff] }
 0x79a   : > { %14388 = vmatpush1.bf16.msra.mxu1 %v16700_v11  ;;  %14225 = vmatprep.subr.bf16.mxu0 %v16707_v14  ;;  %v16754_v11 = vcombine.low %v11561_v1, %v11565_v51  ;;  %v19270_v1 = vld [vmem:[%s21455_s5 + $0x28] sm:$0xff]   ;;  %v19271_v51 = vld [vmem:[%s21455_s5 + $0x70] sm:$0xff]  }
 0x79b   : > { %14389 = vmatprep.subr.bf16.mxu1 %v16709_v26  ;;  %v16763_v26 = vcombine.high %v11569_v37, %v11573_v8 }
 0x79d   : > { %14226 = vmatpush1.bf16.msra.mxu0 %v16706_v15  ;;  %v11582_v15 = vld [vmem:[%s21453_s3 + $0xd78] sm:$0xff] }
 0x79e   : > { %14390 = vmatpush1.bf16.msra.mxu1 %v16708_v10  ;;  %14227 = vmatprep.subr.bf16.mxu0 %v16715_v22  ;;  %v16762_v10 = vcombine.low %v11569_v37, %v11573_v8  ;;  %v21252_v22 = vld [vmem:[%s21454_s4] sm:$0xff]  ;;  %v16773_v25 = vcombine.high %v11578_v3, %v11582_v15  ;;  %v19277_v37 = vld [vmem:[%s21457_s7 + $0x10] sm:$0xff]   ;;  %v19278_v8 = vld [vmem:[%s21457_s7 + $0x18] sm:$0xff]  }
 0x79f   : > { %14391 = vmatprep.subr.bf16.mxu1 %v16717_v18  ;;  %v11588_v55 = vrot.slane %v21252_v22, %v19609_v19  ;;  %v11596_v49 = vrot.slane %v21252_v22, %v19698_v23 }
 0x7a1   : > { %14228 = vmatpush1.bf16.msra.mxu0 %v16714_v2  ;;  %v11592_v2 = vrot.slane %v21252_v22, %v19615_v21 }
 0x7a2   : > { %14392 = vmatpush1.bf16.msra.mxu1 %v16716_v28  ;;  %14229 = vmatprep.subr.bf16.mxu0 %v16723_v34  ;;  %v11600_v28 = vrot.slane %v21252_v22, %v19728_v39  ;;  %v16770_v34 = vcombine.low %v11577_v16, %v11581_v17  ;;  %v19260_v39 = vld [vmem:[%s21455_s5] sm:$0xff]  }
 0x7a3   : > { %14393 = vmatprep.subr.bf16.mxu1 %v16725_v32  ;;  %v16772_v32 = vcombine.low %v11578_v3, %v11582_v15 }
 0x7a5   : > { %14230 = vmatpush1.bf16.msra.mxu0 %v16722_v6 }
 0x7a6   : > { %14394 = vmatpush1.bf16.msra.mxu1 %v16724_v38  ;;  %14240 = vmatprep.subr.bf16.mxu0 %v16731_v59 }
 0x7a7   : > { %14404 = vmatprep.subr.bf16.mxu1 %v16733_v56 }
 0x7a8   : > { %14232 = vmatmul.mubr.bf16.vlgmr.msra.gmra.mrb[32].mxu0 %v20525_v12 }
 0x7a9   : > { %14396 = vmatmul.mubr.bf16.vlgmr.msra.gmra.mrb[40].mxu1 %v20525_v12  ;;  %14241 = vmatpush1.bf16.msra.mxu0 %v16730_v45  ;;  %v11562_v12 = vld [vmem:[%s21453_s3 + $0xcd8] sm:$0xff]  ;;  %v19261_v45 = vld [vmem:[%s21455_s5 + $0x48] sm:$0xff]  }
 0x7aa   : > { %14405 = vmatpush1.bf16.msra.mxu1 %v16732_v52  ;;  %14242 = vmatprep.subr.bf16.mxu0 %v16739_v27  ;;  %v16757_v5 = vcombine.high %v11562_v12, %v11566_v4  ;;  %v16756_v14 = vcombine.low %v11562_v12, %v11566_v4  ;;  %v19272_v12 = vld [vmem:[%s21455_s5 + $0x30] sm:$0xff]   ;;  %v19273_v4 = vld [vmem:[%s21455_s5 + $0x78] sm:$0xff]  }
 0x7ab   : > { %14406 = vmatprep.subr.bf16.mxu1 %v16741_v46  ;;  %14272 = vmatprep.mubr.bf16.mxu0 %v19394_v0 }
 0x7ac   : > { %14436 = vmatprep.mubr.bf16.mxu1 %v19394_v0  ;;  %v11570_v0 = vld [vmem:[%s21453_s3 + $0xd18] sm:$0xff] }
 0x7ad   : > { %14243 = vmatpush1.bf16.msra.mxu0 %v16738_v42  ;;  %v16765_v24 = vcombine.high %v11570_v0, %v11574_v13  ;;  %v16764_v18 = vcombine.low %v11570_v0, %v11574_v13  ;;  %v19266_v42 = vld [vmem:[%s21455_s5 + $0x18] sm:$0xff]   ;;  %v19279_v0 = vld [vmem:[%s21457_s7 + $0x20] sm:$0xff]   ;;  %v19280_v13 = vld [vmem:[%s21457_s7 + $0x28] sm:$0xff]  }
 0x7ae   : > { %14407 = vmatpush1.bf16.msra.mxu1 %v16740_v60  ;;  %14244 = vmatprep.subr.bf16.mxu0 %v16747_v62  ;;  %v19267_v60 = vld [vmem:[%s21455_s5 + $0x60] sm:$0xff]  }
 0x7af   : > { %14408 = vmatprep.subr.bf16.mxu1 %v16749_v63  ;;  %v19268_v62 = vld [vmem:[%s21455_s5 + $0x20] sm:$0xff]   ;;  %v19269_v63 = vld [vmem:[%s21455_s5 + $0x68] sm:$0xff]  }
 0x7b1   : > { %14245 = vmatpush1.bf16.msra.mxu0 %v16746_v58  ;;  %v19274_v58 = vld [vmem:[%s21455_s5 + $0x38] sm:$0xff]  }
 0x7b2   : > { %14409 = vmatpush1.bf16.msra.mxu1 %v16748_v44  ;;  %14246 = vmatprep.subr.bf16.mxu0 %v16755_v40  ;;  %v19275_v44 = vld [vmem:[%s21457_s7] sm:$0xff]   ;;  %v19395_v40 = vmov 0.0  }
 0x7b3   : > { %14410 = vmatprep.subr.bf16.mxu1 %v16757_v5  ;;  %v19276_v5 = vld [vmem:[%s21457_s7 + $0x8] sm:$0xff]  }
 0x7b5   : > { %14247 = vmatpush1.bf16.msra.mxu0 %v16754_v11  ;;  %v11604_v11 = vrot.slane %v21252_v22, %v19651_v31 }
 0x7b6   : > { %14411 = vmatpush1.bf16.msra.mxu1 %v16756_v14  ;;  %14248 = vmatprep.subr.bf16.mxu0 %v16763_v26  ;;  %v11612_v14 = vrot.slane %v21252_v22, %v19756_v7  ;;  %v11608_v26 = vrot.slane %v21252_v22, %v19654_v33 }
 0x7b7   : > { %14412 = vmatprep.subr.bf16.mxu1 %v16765_v24  ;;  %v11616_v24 = vrot.slane %v21252_v22, %v19677_v30 }
 0x7b9   : > { %14249 = vmatpush1.bf16.msra.mxu0 %v16762_v10 }
 0x7ba   : > { %14413 = vmatpush1.bf16.msra.mxu1 %v16764_v18  ;;  %14250 = vmatprep.subr.bf16.mxu0 %v16771_v20 }
 0x7bb   : > { %v13946_v35 = vpop.f32.mrb[28].mxu0  ;;  %v14110_v19 = vpop.f32.mrb[36].mxu1  ;;  %14414 = vmatprep.subr.bf16.mxu1 %v16773_v25 }
 0x7bc   : > { %v16929_v57 = vadd.f32 %v13946_v35, %v11588_v55  ;;  %v16931_v23 = vadd.f32 %v14110_v19, %v11596_v49  ;;  %v13948_v43 = vpop.f32.mrb[29].mxu0  ;;  %v14112_v6 = vpop.f32.mrb[37].mxu1 }
 0x7bd   : > { %v16930_v38 = vadd.f32 %v13948_v43, %v11592_v2  ;;  %v16932_v21 = vadd.f32 %v14112_v6, %v11600_v28  ;;  %v13950_v59 = vpop.f32.mrb[30].mxu0  ;;  %v14114_v56 = vpop.f32.mrb[38].mxu1  ;;  %14251 = vmatpush1.bf16.msra.mxu0 %v16770_v34  ;;  %v19283_v43 = vld [vmem:[%s21459_s9] sm:$0xff]   ;;  %v19284_v6 = vld [vmem:[%s21459_s9 + $0x8] sm:$0xff]  }
 0x7be   : > { %v14445_v61 = vmax.f32 %v16929_v57, 0.0  ;;  %v14447_v50 = vmax.f32 %v16931_v23, 0.0  ;;  %14415 = vmatpush1.bf16.msra.mxu1 %v16772_v32  ;;  %v13951_v9 = vpop.f32.mrb[31].mxu0  ;;  %v14115_v29 = vpop.f32.mrb[39].mxu1  ;;  %16817 = vmatprep.subr.bf16.mxu0 %v19259_v53  ;;  %v19281_v57 = vld [vmem:[%s21457_s7 + $0x30] sm:$0xff]   ;;  %v19282_v23 = vld [vmem:[%s21457_s7 + $0x38] sm:$0xff]  }
 0x7bf   : > { %v14446_v52 = vmax.f32 %v16930_v38, 0.0  ;;  %v14448_v27 = vmax.f32 %v16932_v21, 0.0  ;;  %16857 = vmatprep.subr.bf16.mxu1 %v19395_v40  ;;  %v19285_v38 = vld [vmem:[%s21459_s9 + $0x10] sm:$0xff]   ;;  %v19286_v21 = vld [vmem:[%s21459_s9 + $0x18] sm:$0xff]   ;;  %v19287_v59 = vld [vmem:[%s21459_s9 + $0x20] sm:$0xff]  }
 0x7c0   : > { %v21271_v46 = vmax.f32 %v14445_v61, %v14447_v50  ;;  %16776 = vmatmul.mubr.msk.bf16.vlgmr.msra.gmra.mrb[32].mxu0 %vm13785_vm1, %v20605_v41  ;;  %v19288_v56 = vld [vmem:[%s21459_s9 + $0x28] sm:$0xff]   ;;  %v16778_v61 = vld [vmem:[%s21456_s6] ss:$0 sm:$0xff] }
 0x7c1   : > { %v21275_v47 = vmax.f32 %v14446_v52, %v14448_v27  ;;  %16777 = vmatmul.mubr.msk.bf16.vlgmr.msra.gmra.mrb[40].mxu1 %vm13785_vm1, %v20605_v41  ;;  %16818 = vmatpush3.bf16.msra.mxu0 %v19260_v39  ;;  %v19265_v41 = vld [vmem:[%s21455_s5 + $0x58] sm:$0xff]  }
 0x7c2   : > { %16819 = vmatprep.subr.bf16.mxu0 %v19261_v45  ;;  %16858 = vmatpush3.bf16.msra.mxu1 %v19275_v44 }
 0x7c3   : > { %16859 = vmatprep.subr.bf16.mxu1 %v19395_v40  ;;  %16873 = vmatprep.mubr.msk.bf16.mxu1 %vm19396_vm2, %v19395_v40 }
 0x7c5   : > { %16820 = vmatpush3.bf16.msra.mxu0 %v19262_v36  ;;  %v19290_v36 = vld [vmem:[%s21459_s9 + $0x38] sm:$0xff]  }
 0x7c6   : > { %16821 = vmatprep.subr.bf16.mxu0 %v19263_v54  ;;  %16860 = vmatpush3.bf16.msra.mxu1 %v19276_v5  ;;  %v16795_v54 = vld [vmem:[%s21458_s8] ss:$0 sm:$0xff] }
 0x7c7   : > { %16861 = vmatprep.subr.bf16.mxu1 %v19395_v40 }
 0x7c9   : > { %16822 = vmatpush3.bf16.msra.mxu0 %v19264_v48 }
 0x7ca   : > { %16823 = vmatprep.subr.bf16.mxu0 %v19265_v41  ;;  %16862 = vmatpush3.bf16.msra.mxu1 %v19277_v37 }
 0x7cb   : > { %16863 = vmatprep.subr.bf16.mxu1 %v19395_v40 }
 0x7cd   : > { %16824 = vmatpush3.bf16.msra.mxu0 %v19266_v42 }
 0x7ce   : > { %16825 = vmatprep.subr.bf16.mxu0 %v19267_v60  ;;  %16864 = vmatpush3.bf16.msra.mxu1 %v19278_v8 }
 0x7cf   : > { %16865 = vmatprep.subr.bf16.mxu1 %v19395_v40 }
 0x7d1   : > { %16826 = vmatpush3.bf16.msra.mxu0 %v19268_v62 }
 0x7d2   : > { %16827 = vmatprep.subr.bf16.mxu0 %v19269_v63  ;;  %16866 = vmatpush3.bf16.msra.mxu1 %v19279_v0 }
 0x7d3   : > { %16867 = vmatprep.subr.bf16.mxu1 %v19395_v40 }
 0x7d5   : > { %16828 = vmatpush3.bf16.msra.mxu0 %v19270_v1 }
 0x7d6   : > { %16829 = vmatprep.subr.bf16.mxu0 %v19271_v51  ;;  %16868 = vmatpush3.bf16.msra.mxu1 %v19280_v13  ;;  %v16804_v51 = vld [vmem:[%s21460_s10] ss:$0 sm:$0xff] }
 0x7d7   : > { %16869 = vmatprep.subr.bf16.mxu1 %v19395_v40 }
 0x7d9   : > { %16830 = vmatpush3.bf16.msra.mxu0 %v19272_v12 }
 0x7da   : > { %16831 = vmatprep.subr.bf16.mxu0 %v19273_v4  ;;  %16870 = vmatpush3.bf16.msra.mxu1 %v19281_v57 }
 0x7db   : > { %16871 = vmatprep.subr.bf16.mxu1 %v19395_v40 }
 0x7dd   : > { %16832 = vmatpush3.bf16.msra.mxu0 %v19274_v58 }
 0x7de   : > { %16877 = vmatprep.subr.bf16.mxu0 %v19395_v40  ;;  %16872 = vmatpush3.bf16.msra.mxu1 %v19282_v23 }
 0x893   : > { %v14274_v16 = vpop.f32.mrb[32].mxu0 }
 0x894   : > { %v16933_v17 = vadd.f32 %v14274_v16, %v11604_v11  ;;  %v14438_v3 = vpop.f32.mrb[40].mxu1  ;;  %v14276_v15 = vpop.f32.mrb[33].mxu0 }
 0x895   : > { %v16935_v10 = vadd.f32 %v14438_v3, %v11612_v14  ;;  %v16934_v18 = vadd.f32 %v14276_v15, %v11608_v26  ;;  %v14440_v20 = vpop.f32.mrb[41].mxu1  ;;  %v14278_v25 = vpop.f32.mrb[34].mxu0 }
 0x896   : > { %v14449_v55 = vmax.f32 %v16933_v17, 0.0  ;;  %v16936_v49 = vadd.f32 %v14440_v20, %v11616_v24  ;;  %v14442_v31 = vpop.f32.mrb[42].mxu1  ;;  %v14279_v2 = vpop.f32.mrb[35].mxu0 }
 0x897   : > { %v14450_v28 = vmax.f32 %v16934_v18, 0.0  ;;  %v14443_v7 = vpop.f32.mrb[43].mxu1  ;;  %v14451_v33 = vmax.f32 %v16935_v10, 0.0 }
 0x898   : > { %v14455_v34 = vmax.f32 %v21271_v46, %v14449_v55  ;;  %v14452_v30 = vmax.f32 %v16936_v49, 0.0 }
 0x899   : > { %v14456_v32 = vmax.f32 %v21275_v47, %v14450_v28  ;;  %v19289_v47 = vld [vmem:[%s21459_s9 + $0x30] sm:$0xff]  }
 0x89a   : > { %v14457_v22 = vmax.f32 %v14455_v34, %v14451_v33 }
 0x89b   : > { %v14458_v53 = vmax.f32 %v14456_v32, %v14452_v30 }
 0x89c   : > { %v14459_v19 = vpack.c.bf16 %v14457_v22, %v14457_v22 }
 0x89d   : > { %v14460_v35 = vpack.c.bf16 %v14458_v53, %v14458_v53 }
 0x89f   : > { %14628 = vmatprep.mubr.bf16.mxu0 %v14460_v35 }
 0x8a0   : > { %14629 = vmatmul.mubr.bf16.vlgmr.msra.gmra.mrb[36].mxu0 %v14459_v19 }
 0x8a1   : > { %16893 = vmatprep.mubr.msk.bf16.mxu0 %vm19396_vm2, %v19395_v40  ;;  %16878 = vmatpush3.bf16.msra.mxu0 %v19283_v43 }
 0x8a2   : > { %16879 = vmatprep.subr.bf16.mxu0 %v19395_v40 }
 0x8a5   : > { %16880 = vmatpush3.bf16.msra.mxu0 %v19284_v6 }
 0x8a6   : > { %16881 = vmatprep.subr.bf16.mxu0 %v19395_v40 }
 0x8a9   : > { %16882 = vmatpush3.bf16.msra.mxu0 %v19285_v38 }
 0x8aa   : > { %16883 = vmatprep.subr.bf16.mxu0 %v19395_v40 }
 0x8ad   : > { %16884 = vmatpush3.bf16.msra.mxu0 %v19286_v21 }
 0x8ae   : > { %16885 = vmatprep.subr.bf16.mxu0 %v19395_v40 }
 0x8b1   : > { %16886 = vmatpush3.bf16.msra.mxu0 %v19287_v59 }
 0x8b2   : > { %16887 = vmatprep.subr.bf16.mxu0 %v19395_v40 }
 0x8b5   : > { %16888 = vmatpush3.bf16.msra.mxu0 %v19288_v56 }
 0x8b6   : > { %16889 = vmatprep.subr.bf16.mxu0 %v19395_v40 }
 0x8b9   : > { %16890 = vmatpush3.bf16.msra.mxu0 %v19289_v47 }
 0x8ba   : > { %16891 = vmatprep.subr.bf16.mxu0 %v19395_v40 }
 0x8bd   : > { %16892 = vmatpush3.bf16.msra.mxu0 %v19290_v36 }
 0x973   : > { %v16833_v39 = vpop.f32.mrb[36].mxu0 }
 0x974   : > { %v16834_v50 = vpop.f32.mrb[37].mxu0 }
 0x975   : > { %v16835_v9 = vadd.f32 %v16834_v50, %v16833_v39  ;;  %v16836_v29 = vpop.f32.mrb[38].mxu0 }
 0x976   : > { %v16837_v45 = vpop.f32.mrb[39].mxu0 }
 0x977   : > { %v14631_v52 = vadd.f32 %v16835_v9, %v16778_v61 }
 0x979   : > { %v14636_v27 = vmax.f32 %v14631_v52, 0.0 }
 0x97b   : > { %v14637_v46 = vpack.c.bf16 %v14636_v27, %v14636_v27 }
 0x97d   : > { %16874 = vmatmul.mubr.bf16.vlgmr.msra.gmra.mrb[44].mxu1 %v14637_v46 }
 0xa50   : > { %v14743_v48 = vpop.f32.mrb[44].mxu1 }
 0xa51   : > { %v14744_v41 = vadd.f32 %v16795_v54, %v14743_v48  ;;  %v16875_v42 = vpop.f32.mrb[45].mxu1 }
 0xa52   : > { %v14746_v60 = vpop.f32.mrb[46].mxu1 }
 0xa53   : > { %v14749_v62 = vmax.f32 %v14744_v41, 0.0  ;;  %v16876_v63 = vpop.f32.mrb[47].mxu1 }
 0xa55   : > { %v14750_v1 = vpack.c.bf16 %v14749_v62, %v14749_v62 }
 0xa57   : > { %16894 = vmatmul.mubr.bf16.vlgmr.msra.gmra.mrb[40].mxu0 %v14750_v1 }
 0xb2a   : > { %v14856_v12 = vpop.f32.mrb[40].mxu0 }
 0xb2b   : > { %v14857_v4 = vadd.f32 %v16804_v51, %v14856_v12  ;;  %v16895_v58 = vpop.f32.mrb[41].mxu0 }
 0xb2c   : > { %v14859_v44 = vpop.f32.mrb[42].mxu0 }
 0xb2d   : > { %14862 = vst [vmem:[%s394_s12] sm:$0xff] %v14857_v4  ;;  %v16896_v40 = vpop.f32.mrb[43].mxu0 }
 0xb2e   : > { %19336 = shalt.err (!%p19333_p7)
}
 0xb2f   : > { %s19337_s22 = scalar_lea.hbm %s21408_s14, 128  ;;  %s19341_s25 = scalar_lea.hbm %s21461_s11, 256 }
 0xb30   : > { %p19338_p8 = scmp.ne.s32.totalorder %s21408_s14, %s19337_s22  ;;  %p19342_p1 = scmp.lt.u32.totalorder %s21408_s14, %s21461_s11 }
 0xb31   : > { %p19343_p0 = scmp.lt.u32.totalorder %s19341_s25, %s19337_s22  ;;  %p19345_p6 = scmp.lt.u32.totalorder %s19337_s22, %s21408_s14 }
 0xb32   : > { %p19339_p11 = pnand %p19338_p8, %p21473_p9 }
 0xb33   : > { %p19344_p5 = por %p19343_p0, %p19342_p1 }
 0xb34   : > { %p19340_p13 = pneg %p19339_p11 }
 0xb35   : > { %p19346_p10 = por %p19345_p6, %p19344_p5 }
 0xb37   : > { %p19347_p12 = pnand %p19346_p10, %p19340_p13 }
 0xb39   : > { %19350 = shalt.err (!%p19347_p12)
}
 0xb3a   : > { %17150 = dma.vmem_to_hbm [thread:$0]  (%p21473_p9), %s21410_s16, 128, %s21408_s14, %s14864_s15  }
 0xb3b PF: > { %p17162_p2 = scmp.ge.s32.totalorder %s19389_s20, 2  ;;  %s14889_s21 = sand.u32 1, %s19377_s17  }
 0xb3c   : > { %p21474_p3 = scmp.ne.s32.totalorder %s21467_s28, 0  ;;  %s14890_s26 = scalar_lea.sflag [#allocation4], %s14889_s21 }
 0xb3e   : > { %p17157_p4 = pnand %p17162_p2, %p21474_p3 }
 0xb40   : > { %19372 = dma.done.wait (!%p17157_p4), %s14890_s26, 128  }
 0xb41   : > { %19374 = vsyncadd (!%p17157_p4), %s14890_s26, 4294967168  ;;  %s21475_s13 = sld [smem:[#allocation8_spill]]  ;;  %p22_p7 = scmp.ge.s32.totalorder %s19483_s23, 4  }
 0xb42   : > { %s21476_s17 = smov %s19381_s18  ;;  %s21477_s18 = smov %s19385_s19 }
 0xb43   : > { %s21479_s20 = smov %s19483_s23  ;;  %24 = sbr.rel (!%p22_p7) target bundleno = 4 (0x4), region = 104 }
 0xb47   : > { %s21478_s19 = smov %s21475_s13 }
 0xb4a   :  { %14895 = vsyncpa [#allocation3], 1 }
 0xb4b   :  { %14897 = vsyncpa [#allocation3 + $0x1], 1 }
 0xb4c   :  { %14898 = vsyncpa [#allocation4], 1 }
 0xb4d   :  { %14900 = vsyncpa [#allocation4 + $0x1], 1 }

</bundles_post_ra>
